<compile_context>
chip_gen: v7x
topology: tpu7x:2x2x1
jax: 0.10.0
libtpu: 0.0.40
codegen_flags: <defaults>
</compile_context>

<pallas_src>
import functools
import numpy as np

import jax
import jax.numpy as jnp
from jax.experimental import pallas as pl
from jax.experimental.pallas import tpu as pltpu


# ---------------------------------------------------------------------------
# helpers
# ---------------------------------------------------------------------------

def _ceil_to(x, m):
    return (x + m - 1) // m * m


def _cpad(c):
    """Pad a channel count up to a multiple of 128 (lane-dense)."""
    return max(128, _ceil_to(c, 128))


# ---------------------------------------------------------------------------
# Pallas kernels
# ---------------------------------------------------------------------------

def _conv_bn_kernel(a_ref, w_ref, g_ref, b_ref, *rest,
                    m_real, m_pad, eps, relu, has_res):
    """Fused conv (as matmul) + batch-stat BN + optional residual + ReLU.

    a_ref: [Mp, K]  bf16 im2col patches (rows >= m_real are zero padding)
    w_ref: [K, TN]  bf16 weight tile
    g_ref/b_ref: [1, TN] f32 BN gamma/beta
    rest: (res_ref, o_ref) if has_res else (o_ref,)
    """
    if has_res:
        res_ref, o_ref = rest
    else:
        (o_ref,) = rest

    y = jnp.dot(a_ref[...], w_ref[...], preferred_element_type=jnp.float32)

    # training-mode BN statistics over the real rows only
    inv_m = 1.0 / float(m_real)
    if m_pad == m_real:
        # no padding rows -> skip the mask (saves VPU work on big tiles)
        mean = jnp.sum(y, axis=0, keepdims=True) * inv_m
        var = jnp.sum(jnp.square(y - mean), axis=0, keepdims=True) * inv_m
    else:
        rows = jax.lax.broadcasted_iota(jnp.int32, y.shape, 0)
        valid = (rows < m_real).astype(jnp.float32)
        mean = jnp.sum(y * valid, axis=0, keepdims=True) * inv_m
        var = jnp.sum(jnp.square(y - mean) * valid, axis=0,
                      keepdims=True) * inv_m

    scale = g_ref[...] * jax.lax.rsqrt(var + eps)      # (1, TN)
    shift = b_ref[...] - mean * scale                  # (1, TN)
    yn = y * scale + shift
    if has_res:
        yn = yn + res_ref[...].astype(jnp.float32)
    if relu:
        yn = jnp.maximum(yn, 0.0)
    o_ref[...] = yn.astype(o_ref.dtype)


def _max9_kernel(r0, r1, r2, r3, r4, r5, r6, r7, r8, o_ref):
    m = jnp.maximum(r0[...], r1[...])
    m = jnp.maximum(m, r2[...])
    m = jnp.maximum(m, r3[...])
    m = jnp.maximum(m, r4[...])
    m = jnp.maximum(m, r5[...])
    m = jnp.maximum(m, r6[...])
    m = jnp.maximum(m, r7[...])
    m = jnp.maximum(m, r8[...])
    o_ref[...] = m


def _head_kernel(x_ref, fcw_ref, fcb_ref, clsw_ref, clsb_ref,
                 feat_ref, logit_ref):
    """Global avg pool + fc + tanh + classifier (all fused)."""
    pooled = jnp.mean(x_ref[...].astype(jnp.float32), axis=1)          # [B, C]
    feat = jnp.tanh(jnp.dot(pooled, fcw_ref[...],
                            preferred_element_type=jnp.float32) + fcb_ref[...])
    logits = jnp.dot(feat, clsw_ref[...],
                     preferred_element_type=jnp.float32) + clsb_ref[...]
    feat_ref[...] = feat
    logit_ref[...] = logits


def _loss_kernel(f_ref, lg_ref, clsw_ref, lab_ref, wt_ref, o_ref, *,
                 num_labels, feature_size, reg, reg_causal,
                 disentangle_en, counterfactual_en):
    """Fused CE + counterfactual regularizer + covariance loss + weighted mean."""
    f = f_ref[...]                                    # [B, Fp] f32
    lg = lg_ref[...]                                  # [B, Lp] f32
    lab = lab_ref[...]                                # [B, 1]  i32
    B, Fp = f.shape
    _, Lp = lg.shape
    L = num_labels
    F_ = feature_size
    neg = -1e30

    col = jax.lax.broadcasted_iota(jnp.int32, (B, Lp), 1)
    lab_mask = col < L
    lg_m = jnp.where(lab_mask, lg, neg)               # mask padded logit lanes

    # cross entropy (reduction='none')
    m0 = jnp.max(lg_m, axis=-1, keepdims=True)
    e0 = jnp.exp(lg_m - m0)
    s0 = jnp.sum(e0, axis=-1, keepdims=True)
    lse = jnp.log(s0) + m0
    onehot = (col == lab).astype(jnp.float32)
    picked = jnp.sum(lg * onehot, axis=-1, keepdims=True)
    loss_vec = lse - picked                           # [B, 1]

    if counterfactual_en:
        sm0 = e0 / s0
        prob_raw = jnp.sum(sm0 * onehot, axis=-1, keepdims=True)   # [B, 1]
        w = clsw_ref[...]                                          # [Fp, Lp]
        # classifier is linear: ablating feature f == subtracting its row
        lc = lg[:, None, :] - f[:, :, None] * w[None, :, :]        # [B, Fp, Lp]
        col3 = jax.lax.broadcasted_iota(jnp.int32, (B, Fp, Lp), 2)
        lc_m = jnp.where(col3 < L, lc, neg)
        m1 = jnp.max(lc_m, axis=-1, keepdims=True)
        e1 = jnp.exp(lc_m - m1)
        sm1 = e1 / jnp.sum(e1, axis=-1, keepdims=True)
        oh3 = (col3 == lab[:, :, None]).astype(jnp.float32)
        prob_sub = jnp.sum(sm1 * oh3, axis=-1)                     # [B, Fp]
        z = prob_raw - prob_sub + 1.0
        z = jnp.maximum(z, 1.0)                       # torch.where(z > 1, z, 1)
        frow = jax.lax.broadcasted_iota(jnp.int32, (B, Fp), 1)
        fmask = (frow < F_).astype(jnp.float32)
        log_cpns = jnp.sum(jnp.log(z) * fmask, axis=-1,
                           keepdims=True) * (1.0 / float(F_))
        loss_vec = loss_vec + reg_causal * (-log_cpns)

    loss_vec = loss_vec * wt_ref[...]
    total = jnp.sum(loss_vec) * (1.0 / float(B))

    if disentangle_en:
        fm = jnp.sum(f, axis=0, keepdims=True) * (1.0 / float(B))
        c = f - fm
        cov = jax.lax.dot_general(c, c, (((0,), (0,)), ((), ())),
                                  preferred_element_type=jnp.float32)
        cov = cov * (1.0 / float(B - 1))
        r = jax.lax.broadcasted_iota(jnp.int32, cov.shape, 0)
        q = jax.lax.broadcasted_iota(jnp.int32, cov.shape, 1)
        off = jnp.where(r == q, 0.0, cov)
        dis = jnp.sqrt(jnp.sum(off * off))
        total = total + reg * dis

    o_ref[...] = total[None, None]


# ---------------------------------------------------------------------------
# Pallas wrappers
# ---------------------------------------------------------------------------

def _im2col(x, kh, kw, stride, pad):
    N, H, W, C = x.shape
    xp = jnp.pad(x, ((0, 0), (pad, pad), (pad, pad), (0, 0))) if pad else x
    OH = (H + 2 * pad - kh) // stride + 1
    OW = (W + 2 * pad - kw) // stride + 1
    if kh == 1 and kw == 1:
        patches = xp[:, 0:stride * OH:stride, 0:stride * OW:stride, :]
    else:
        cols = [xp[:, di:di + stride * OH:stride, dj:dj + stride * OW:stride, :]
                for di in range(kh) for dj in range(kw)]
        patches = jnp.concatenate(cols, axis=-1)
    return patches.reshape(N * OH * OW, kh * kw * C), OH, OW


def conv_bn_fused(x, w, gamma, beta, *, kh, kw, stride, pad, relu,
                  residual=None):
    """One fused pallas_call: im2col-matmul + BN(batch stats) [+res] [+relu]."""
    N = x.shape[0]
    patches, OH, OW = _im2col(x, kh, kw, stride, pad)
    M, K = patches.shape
    Kp, Cp = w.shape                      # K padded to 128-mult, Cout padded
    TN = 128
    if Kp != K:
        patches = jnp.pad(patches, ((0, 0), (0, Kp - K)))
    Mp = _ceil_to(M, 8)
    if Mp != M:
        patches = jnp.pad(patches, ((0, Mp - M), (0, 0)))

    has_res = residual is not None
    args = [patches.astype(jnp.bfloat16), w, gamma, beta]
    in_specs = [
        pl.BlockSpec((Mp, Kp), lambda j: (0, 0)),
        pl.BlockSpec((Kp, TN), lambda j: (0, j)),
        pl.BlockSpec((1, TN), lambda j: (0, j)),
        pl.BlockSpec((1, TN), lambda j: (0, j)),
    ]
    if has_res:
        r = residual.reshape(M, Cp)
        if Mp != M:
            r = jnp.pad(r, ((0, Mp - M), (0, 0)))
        args.append(r.astype(jnp.bfloat16))
        in_specs.append(pl.BlockSpec((Mp, TN), lambda j: (0, j)))

    out = pl.pallas_call(
        functools.partial(_conv_bn_kernel, m_real=M, m_pad=Mp, eps=1e-5,
                          relu=relu, has_res=has_res),
        out_shape=jax.ShapeDtypeStruct((Mp, Cp), jnp.bfloat16),
        grid=(Cp // TN,),
        in_specs=in_specs,
        out_specs=pl.BlockSpec((Mp, TN), lambda j: (0, j)),
        compiler_params=pltpu.CompilerParams(
            dimension_semantics=("parallel",),
            vmem_limit_bytes=32 * 1024 * 1024),
    )(*args)
    return out[:M].reshape(N, OH, OW, Cp)


def maxpool_3x3_s2_p1(x):
    N, H, W, C = x.shape
    xp = jnp.pad(x, ((0, 0), (1, 1), (1, 1), (0, 0)),
                 constant_values=-jnp.inf)
    OH = (H + 2 - 3) // 2 + 1
    OW = (W + 2 - 3) // 2 + 1
    M = N * OH * OW
    slabs = [xp[:, di:di + 2 * OH:2, dj:dj + 2 * OW:2, :].reshape(M, C)
             for di in range(3) for dj in range(3)]
    TM = 128 if (M % 128 == 0) else M
    out = pl.pallas_call(
        _max9_kernel,
        out_shape=jax.ShapeDtypeStruct((M, C), jnp.bfloat16),
        grid=(M // TM,),
        in_specs=[pl.BlockSpec((TM, C), lambda i: (i, 0)) for _ in range(9)],
        out_specs=pl.BlockSpec((TM, C), lambda i: (i, 0)),
        compiler_params=pltpu.CompilerParams(
            dimension_semantics=("parallel",)),
    )(*slabs)
    return out.reshape(N, OH, OW, C)


def head_forward(x, fc_w, fc_b, cls_w, cls_b):
    N, H, W, C = x.shape
    x3 = x.reshape(N, H * W, C)
    Fp = fc_w.shape[1]
    Lp = cls_w.shape[1]
    feature, logits = pl.pallas_call(
        _head_kernel,
        out_shape=(jax.ShapeDtypeStruct((N, Fp), jnp.float32),
                   jax.ShapeDtypeStruct((N, Lp), jnp.float32)),
    )(x3, fc_w, fc_b, cls_w, cls_b)
    return feature, logits


def total_loss_fn(feature, logits_p, cls_w, labels, weights, *,
                  num_labels, feature_size, reg, reg_causal,
                  disentangle_en, counterfactual_en):
    B = feature.shape[0]
    if weights is None:
        weights = jnp.ones((B,), jnp.float32)
    out = pl.pallas_call(
        functools.partial(_loss_kernel, num_labels=num_labels,
                          feature_size=feature_size, reg=reg,
                          reg_causal=reg_causal,
                          disentangle_en=disentangle_en,
                          counterfactual_en=counterfactual_en),
        out_shape=jax.ShapeDtypeStruct((1, 1), jnp.float32),
    )(feature, logits_p, cls_w,
      labels.reshape(B, 1).astype(jnp.int32),
      weights.reshape(B, 1).astype(jnp.float32))
    return out[0, 0]


# ---------------------------------------------------------------------------
# ResNet-50 structure
# ---------------------------------------------------------------------------

def bottleneck(x, p, stride, has_ds):
    out = conv_bn_fused(x, p['w1'], p['g1'], p['b1'],
                        kh=1, kw=1, stride=1, pad=0, relu=True)
    out = conv_bn_fused(out, p['w2'], p['g2'], p['b2'],
                        kh=3, kw=3, stride=stride, pad=1, relu=True)
    if has_ds:
        identity = conv_bn_fused(x, p['wd'], p['gd'], p['bd'],
                                 kh=1, kw=1, stride=stride, pad=0, relu=False)
    else:
        identity = x
    # conv3 + BN + residual add + ReLU all fused
    return conv_bn_fused(out, p['w3'], p['g3'], p['b3'],
                         kh=1, kw=1, stride=1, pad=0, relu=True,
                         residual=identity)


# ---------------------------------------------------------------------------
# Parameter init (deterministic, synthetic, channel-padded layout)
# ---------------------------------------------------------------------------

def _conv_w(key, k, cin_real, cout_real):
    """Conv weight directly in padded im2col layout [k*k*cin_pad, cout_pad] bf16."""
    cin_p, cout_p = _cpad(cin_real), _cpad(cout_real)
    fan_in = k * k * cin_real
    w = jax.random.normal(key, (k * k, cin_real, cout_real),
                          jnp.float32) * (1.0 / np.sqrt(fan_in))
    w = jnp.pad(w, ((0, 0), (0, cin_p - cin_real), (0, cout_p - cout_real)))
    return w.reshape(k * k * cin_p, cout_p).astype(jnp.bfloat16)


def _bn_params(cout_real):
    cp = _cpad(cout_real)
    return (jnp.ones((1, cp), jnp.float32),    # gamma (pad=1, harmless)
            jnp.zeros((1, cp), jnp.float32))   # beta  (pad=0 keeps pads zero)


def init_params(key, base, reduce_dim, output_dim):
    expansion = 4
    ki = iter(jax.random.split(key, 256))

    # conv1: raw 3-channel input, K = 7*7*3 = 147 padded up to 256
    c1 = jax.random.normal(next(ki), (7 * 7 * 3, base),
                           jnp.float32) * (1.0 / np.sqrt(7 * 7 * 3))
    k1p = _ceil_to(7 * 7 * 3, 128)
    conv1_w = jnp.pad(c1, ((0, k1p - 7 * 7 * 3),
                           (0, _cpad(base) - base))).astype(jnp.bfloat16)
    g1, b1 = _bn_params(base)
    params = {'conv1_w': conv1_w, 'bn1_g': g1, 'bn1_b': b1}

    blocks, block_cfg = [], []
    inplanes = base
    for planes, nblocks, stride in [(base, 3, 1), (base * 2, 4, 2),
                                    (base * 4, 6, 2), (base * 8, 3, 2)]:
        for bi in range(nblocks):
            s = stride if bi == 0 else 1
            out_ch = planes * expansion
            p = {}
            p['w1'] = _conv_w(next(ki), 1, inplanes, planes)
            p['g1'], p['b1'] = _bn_params(planes)
            p['w2'] = _conv_w(next(ki), 3, planes, planes)
            p['g2'], p['b2'] = _bn_params(planes)
            p['w3'] = _conv_w(next(ki), 1, planes, out_ch)
            p['g3'], p['b3'] = _bn_params(out_ch)
            has_ds = (s != 1) or (inplanes != out_ch)
            if has_ds:
                p['wd'] = _conv_w(next(ki), 1, inplanes, out_ch)
                p['gd'], p['bd'] = _bn_params(out_ch)
            blocks.append(p)
            block_cfg.append((s, has_ds))
            inplanes = out_ch
    params['blocks'] = blocks

    feat_real = inplanes                     # base * 8 * expansion
    feat_pad = _cpad(feat_real)
    Fp = _cpad(reduce_dim)
    Lp = _cpad(output_dim)
    kw1, kb1, kw2, kb2 = jax.random.split(next(ki), 4)
    fc_w = jax.random.normal(kw1, (feat_real, reduce_dim),
                             jnp.float32) * (1.0 / np.sqrt(feat_real))
    fc_b = jax.random.normal(kb1, (reduce_dim,), jnp.float32) * 0.01
    cls_w = jax.random.normal(kw2, (reduce_dim, output_dim),
                              jnp.float32) * (1.0 / np.sqrt(reduce_dim))
    cls_b = jax.random.normal(kb2, (output_dim,), jnp.float32) * 0.01
    params['fc_w'] = jnp.pad(fc_w, ((0, feat_pad - feat_real),
                                    (0, Fp - reduce_dim)))
    params['fc_b'] = jnp.pad(fc_b, (0, Fp - reduce_dim)).reshape(1, Fp)
    params['cls_w'] = jnp.pad(cls_w, ((0, Fp - reduce_dim),
                                      (0, Lp - output_dim)))
    params['cls_b'] = jnp.pad(cls_b, (0, Lp - output_dim)).reshape(1, Lp)
    return params, tuple(block_cfg)


# ---------------------------------------------------------------------------
# Full forward
# ---------------------------------------------------------------------------

def resnet_forward(params, x_nchw, labels, weights, cfg):
    B = x_nchw.shape[0]
    if cfg['disentangle_en'] and B < 2:
        raise ValueError("disentangle loss requires batch size >= 2 "
                         "(covariance divides by n-1)")
    # NCHW (PyTorch) -> NHWC, bf16 activations throughout the backbone
    x = jnp.transpose(x_nchw, (0, 2, 3, 1)).astype(jnp.bfloat16)
    x = conv_bn_fused(x, params['conv1_w'], params['bn1_g'], params['bn1_b'],
                      kh=7, kw=7, stride=2, pad=3, relu=True)
    x = maxpool_3x3_s2_p1(x)
    for p, (stride, has_ds) in zip(params['blocks'], cfg['block_cfg']):
        x = bottleneck(x, p, stride, has_ds)

    feature, logits_p = head_forward(x, params['fc_w'], params['fc_b'],
                                     params['cls_w'], params['cls_b'])
    logits = logits_p[:, :cfg['num_labels']]

    total_loss = jnp.float32(0.0)
    if labels is not None:
        total_loss = total_loss_fn(
            feature, logits_p, params['cls_w'], labels, weights,
            num_labels=cfg['num_labels'], feature_size=cfg['feature_size'],
            reg=cfg['reg'], reg_causal=cfg['reg_causal'],
            disentangle_en=cfg['disentangle_en'],
            counterfactual_en=cfg['counterfactual_en'])
    return logits, total_loss


# ---------------------------------------------------------------------------
# Demo
# ---------------------------------------------------------------------------

if __name__ == "__main__":
    base = 8              # scaled-down ResNet-50 width (torchvision uses 64)
    reduce_dim = 32       # feature_size
    output_dim = 5        # num_labels
    B = 2

    key = jax.random.PRNGKey(0)
    k_param, k_x, k_lab, k_w = jax.random.split(key, 4)

    params, block_cfg = init_params(k_param, base, reduce_dim, output_dim)
    cfg = dict(reg=0.1, reg_causal=0.05, disentangle_en=True,
               counterfactual_en=True, num_labels=output_dim,
               feature_size=reduce_dim, block_cfg=block_cfg)

    x = jax.random.normal(k_x, (B, 3, 32, 32), jnp.float32)      # NCHW input
    labels = jax.random.randint(k_lab, (B,), 0, output_dim, jnp.int32)
    weights = jax.random.uniform(k_w, (B,), jnp.float32) + 0.5

    fwd = jax.jit(functools.partial(resnet_forward, cfg=cfg))
    logits, total_loss = fwd(params, x, labels, weights)
    jax.block_until_ready((logits, total_loss))

    assert logits.shape == (B, output_dim)
    assert total_loss.shape == ()
    assert bool(jnp.isfinite(total_loss))
    print("KERNEL_OK")
</pallas_src>

<mosaic_0001>
module attributes {stable_mosaic.version = 11 : i64} {
  func.func @_conv_bn_kernel(%arg0: i32, %arg1: memref<512x256xbf16, #tpu.memory_space<vmem>>, %arg2: memref<256x128xbf16, #tpu.memory_space<vmem>>, %arg3: memref<1x128xf32, #tpu.memory_space<vmem>>, %arg4: memref<1x128xf32, #tpu.memory_space<vmem>>, %arg5: memref<512x128xbf16, #tpu.memory_space<vmem>>) attributes {dimension_semantics = [#tpu.dimension_semantics<parallel>], iteration_bounds = array<i64: 1>, scalar_prefetch = 0 : i64, scratch_operands = 0 : i64, tpu.core_type = #tpu.core_type<tc>, window_params = [{pipeline_mode = #tpu.pipeline_mode<synchronous>, transform_indices = @transform_0, window_bounds = array<i64: 512, 256>}, {transform_indices = @transform_1, window_bounds = array<i64: 256, 128>}, {transform_indices = @transform_2, window_bounds = array<i64: 1, 128>}, {transform_indices = @transform_3, window_bounds = array<i64: 1, 128>}, {transform_indices = @transform_4, window_bounds = array<i64: 512, 128>}]} {
    %c0 = arith.constant 0 : index
    %c0_0 = arith.constant 0 : index
    %0 = vector.load %arg1[%c0, %c0_0] : memref<512x256xbf16, #tpu.memory_space<vmem>>, vector<512x256xbf16>
    %c0_1 = arith.constant 0 : index
    %c0_2 = arith.constant 0 : index
    %1 = vector.load %arg2[%c0_1, %c0_2] : memref<256x128xbf16, #tpu.memory_space<vmem>>, vector<256x128xbf16>
    %cst = arith.constant dense<0.000000e+00> : vector<512x128xf32>
    %2 = tpu.matmul %0, %1, %cst {dimension_numbers = #tpu.dot_dimension_numbers<[1], [0], [0], [1], [0, 0, 1, 1], [], []>} : vector<512x256xbf16>, vector<256x128xbf16>, vector<512x128xf32> -> vector<512x128xf32>
    %cst_3 = arith.constant dense<0.000000e+00> : vector<128xf32>
    %3 = vector.multi_reduction <add>, %2, %cst_3 [0] : vector<512x128xf32> to vector<128xf32>
    %4 = vector.shape_cast %3 : vector<128xf32> to vector<1x128xf32>
    %cst_4 = arith.constant 0.001953125 : f32
    %5 = vector.broadcast %cst_4 : f32 to vector<1x128xf32>
    %6 = arith.mulf %4, %5 : vector<1x128xf32>
    %7 = vector.broadcast %6 : vector<1x128xf32> to vector<512x128xf32>
    %8 = arith.subf %2, %7 : vector<512x128xf32>
    %9 = arith.mulf %8, %8 : vector<512x128xf32>
    %cst_5 = arith.constant dense<0.000000e+00> : vector<128xf32>
    %10 = vector.multi_reduction <add>, %9, %cst_5 [0] : vector<512x128xf32> to vector<128xf32>
    %11 = vector.shape_cast %10 : vector<128xf32> to vector<1x128xf32>
    %cst_6 = arith.constant 0.001953125 : f32
    %12 = vector.broadcast %cst_6 : f32 to vector<1x128xf32>
    %13 = arith.mulf %11, %12 : vector<1x128xf32>
    %c0_7 = arith.constant 0 : index
    %c0_8 = arith.constant 0 : index
    %14 = vector.load %arg3[%c0_7, %c0_8] : memref<1x128xf32, #tpu.memory_space<vmem>>, vector<1x128xf32>
    %cst_9 = arith.constant 9.99999974E-6 : f32
    %15 = vector.broadcast %cst_9 : f32 to vector<1x128xf32>
    %16 = arith.addf %13, %15 : vector<1x128xf32>
    %17 = math.rsqrt %16 : vector<1x128xf32>
    %18 = arith.mulf %14, %17 : vector<1x128xf32>
    %c0_10 = arith.constant 0 : index
    %c0_11 = arith.constant 0 : index
    %19 = vector.load %arg4[%c0_10, %c0_11] : memref<1x128xf32, #tpu.memory_space<vmem>>, vector<1x128xf32>
    %20 = arith.mulf %6, %18 : vector<1x128xf32>
    %21 = arith.subf %19, %20 : vector<1x128xf32>
    %22 = vector.broadcast %18 : vector<1x128xf32> to vector<512x128xf32>
    %23 = arith.mulf %2, %22 : vector<512x128xf32>
    %24 = vector.broadcast %21 : vector<1x128xf32> to vector<512x128xf32>
    %25 = arith.addf %23, %24 : vector<512x128xf32>
    %cst_12 = arith.constant 0.000000e+00 : f32
    %26 = vector.broadcast %cst_12 : f32 to vector<512x128xf32>
    %27 = arith.maximumf %25, %26 : vector<512x128xf32>
    %28 = arith.truncf %27 : vector<512x128xf32> to vector<512x128xbf16>
    %c0_13 = arith.constant 0 : index
    %c0_14 = arith.constant 0 : index
    %29 = vector.load %arg5[%c0_13, %c0_14] : memref<512x128xbf16, #tpu.memory_space<vmem>>, vector<512x128xbf16>
    tpu.vector_store %arg5[%c0_13, %c0_14], %28 {strides = array<i32>} : memref<512x128xbf16, #tpu.memory_space<vmem>>, vector<512x128xbf16>,
    return
  }
  func.func @transform_0(%arg0: i32) -> (i32, i32) {
    %c0_i32 = arith.constant 0 : i32
    %c0_i32_0 = arith.constant 0 : i32
    %c0_i32_1 = arith.constant 0 : i32
    return %c0_i32, %c0_i32_0 : i32, i32
  }
  func.func @transform_1(%arg0: i32) -> (i32, i32) {
    %c0_i32 = arith.constant 0 : i32
    %c0_i32_0 = arith.constant 0 : i32
    return %c0_i32, %arg0 : i32, i32
  }
  func.func @transform_2(%arg0: i32) -> (i32, i32) {
    %c0_i32 = arith.constant 0 : i32
    %c0_i32_0 = arith.constant 0 : i32
    return %c0_i32, %arg0 : i32, i32
  }
  func.func @transform_3(%arg0: i32) -> (i32, i32) {
    %c0_i32 = arith.constant 0 : i32
    %c0_i32_0 = arith.constant 0 : i32
    return %c0_i32, %arg0 : i32, i32
  }
  func.func @transform_4(%arg0: i32) -> (i32, i32) {
    %c0_i32 = arith.constant 0 : i32
    %c0_i32_0 = arith.constant 0 : i32
    return %c0_i32, %arg0 : i32, i32
  }
}

module attributes {stable_mosaic.version = 11 : i64} {
  func.func @_conv_bn_kernel(%arg0: i32, %arg1: memref<128x128xbf16, #tpu.memory_space<vmem>>, %arg2: memref<128x128xbf16, #tpu.memory_space<vmem>>, %arg3: memref<1x128xf32, #tpu.memory_space<vmem>>, %arg4: memref<1x128xf32, #tpu.memory_space<vmem>>, %arg5: memref<128x128xbf16, #tpu.memory_space<vmem>>) attributes {dimension_semantics = [#tpu.dimension_semantics<parallel>], iteration_bounds = array<i64: 1>, scalar_prefetch = 0 : i64, scratch_operands = 0 : i64, tpu.core_type = #tpu.core_type<tc>, window_params = [{pipeline_mode = #tpu.pipeline_mode<synchronous>, transform_indices = @transform_0, window_bounds = array<i64: 128, 128>}, {transform_indices = @transform_1, window_bounds = array<i64: 128, 128>}, {transform_indices = @transform_2, window_bounds = array<i64: 1, 128>}, {transform_indices = @transform_3, window_bounds = array<i64: 1, 128>}, {transform_indices = @transform_4, window_bounds = array<i64: 128, 128>}]} {
    %c0 = arith.constant 0 : index
    %c0_0 = arith.constant 0 : index
    %0 = vector.load %arg1[%c0, %c0_0] : memref<128x128xbf16, #tpu.memory_space<vmem>>, vector<128x128xbf16>
    %c0_1 = arith.constant 0 : index
    %c0_2 = arith.constant 0 : index
    %1 = vector.load %arg2[%c0_1, %c0_2] : memref<128x128xbf16, #tpu.memory_space<vmem>>, vector<128x128xbf16>
    %cst = arith.constant dense<0.000000e+00> : vector<128x128xf32>
    %2 = tpu.matmul %0, %1, %cst {dimension_numbers = #tpu.dot_dimension_numbers<[1], [0], [0], [1], [0, 0, 1, 1], [], []>} : vector<128x128xbf16>, vector<128x128xbf16>, vector<128x128xf32> -> vector<128x128xf32>
    %cst_3 = arith.constant dense<0.000000e+00> : vector<128xf32>
    %3 = vector.multi_reduction <add>, %2, %cst_3 [0] : vector<128x128xf32> to vector<128xf32>
    %4 = vector.shape_cast %3 : vector<128xf32> to vector<1x128xf32>
    %cst_4 = arith.constant 7.812500e-03 : f32
    %5 = vector.broadcast %cst_4 : f32 to vector<1x128xf32>
    %6 = arith.mulf %4, %5 : vector<1x128xf32>
    %7 = vector.broadcast %6 : vector<1x128xf32> to vector<128x128xf32>
    %8 = arith.subf %2, %7 : vector<128x128xf32>
    %9 = arith.mulf %8, %8 : vector<128x128xf32>
    %cst_5 = arith.constant dense<0.000000e+00> : vector<128xf32>
    %10 = vector.multi_reduction <add>, %9, %cst_5 [0] : vector<128x128xf32> to vector<128xf32>
    %11 = vector.shape_cast %10 : vector<128xf32> to vector<1x128xf32>
    %cst_6 = arith.constant 7.812500e-03 : f32
    %12 = vector.broadcast %cst_6 : f32 to vector<1x128xf32>
    %13 = arith.mulf %11, %12 : vector<1x128xf32>
    %c0_7 = arith.constant 0 : index
    %c0_8 = arith.constant 0 : index
    %14 = vector.load %arg3[%c0_7, %c0_8] : memref<1x128xf32, #tpu.memory_space<vmem>>, vector<1x128xf32>
    %cst_9 = arith.constant 9.99999974E-6 : f32
    %15 = vector.broadcast %cst_9 : f32 to vector<1x128xf32>
    %16 = arith.addf %13, %15 : vector<1x128xf32>
    %17 = math.rsqrt %16 : vector<1x128xf32>
    %18 = arith.mulf %14, %17 : vector<1x128xf32>
    %c0_10 = arith.constant 0 : index
    %c0_11 = arith.constant 0 : index
    %19 = vector.load %arg4[%c0_10, %c0_11] : memref<1x128xf32, #tpu.memory_space<vmem>>, vector<1x128xf32>
    %20 = arith.mulf %6, %18 : vector<1x128xf32>
    %21 = arith.subf %19, %20 : vector<1x128xf32>
    %22 = vector.broadcast %18 : vector<1x128xf32> to vector<128x128xf32>
    %23 = arith.mulf %2, %22 : vector<128x128xf32>
    %24 = vector.broadcast %21 : vector<1x128xf32> to vector<128x128xf32>
    %25 = arith.addf %23, %24 : vector<128x128xf32>
    %cst_12 = arith.constant 0.000000e+00 : f32
    %26 = vector.broadcast %cst_12 : f32 to vector<128x128xf32>
    %27 = arith.maximumf %25, %26 : vector<128x128xf32>
    %28 = arith.truncf %27 : vector<128x128xf32> to vector<128x128xbf16>
    %c0_13 = arith.constant 0 : index
    %c0_14 = arith.constant 0 : index
    %29 = vector.load %arg5[%c0_13, %c0_14] : memref<128x128xbf16, #tpu.memory_space<vmem>>, vector<128x128xbf16>
    tpu.vector_store %arg5[%c0_13, %c0_14], %28 {strides = array<i32>} : memref<128x128xbf16, #tpu.memory_space<vmem>>, vector<128x128xbf16>,
    return
  }
  func.func @transform_0(%arg0: i32) -> (i32, i32) {
    %c0_i32 = arith.constant 0 : i32
    %c0_i32_0 = arith.constant 0 : i32
    %c0_i32_1 = arith.constant 0 : i32
    return %c0_i32, %c0_i32_0 : i32, i32
  }
  func.func @transform_1(%arg0: i32) -> (i32, i32) {
    %c0_i32 = arith.constant 0 : i32
    %c0_i32_0 = arith.constant 0 : i32
    return %c0_i32, %arg0 : i32, i32
  }
  func.func @transform_2(%arg0: i32) -> (i32, i32) {
    %c0_i32 = arith.constant 0 : i32
    %c0_i32_0 = arith.constant 0 : i32
    return %c0_i32, %arg0 : i32, i32
  }
  func.func @transform_3(%arg0: i32) -> (i32, i32) {
    %c0_i32 = arith.constant 0 : i32
    %c0_i32_0 = arith.constant 0 : i32
    return %c0_i32, %arg0 : i32, i32
  }
  func.func @transform_4(%arg0: i32) -> (i32, i32) {
    %c0_i32 = arith.constant 0 : i32
    %c0_i32_0 = arith.constant 0 : i32
    return %c0_i32, %arg0 : i32, i32
  }
}

module attributes {stable_mosaic.version = 11 : i64} {
  func.func @_max9_kernel(%arg0: i32, %arg1: memref<128x128xbf16, #tpu.memory_space<vmem>>, %arg2: memref<128x128xbf16, #tpu.memory_space<vmem>>, %arg3: memref<128x128xbf16, #tpu.memory_space<vmem>>, %arg4: memref<128x128xbf16, #tpu.memory_space<vmem>>, %arg5: memref<128x128xbf16, #tpu.memory_space<vmem>>, %arg6: memref<128x128xbf16, #tpu.memory_space<vmem>>, %arg7: memref<128x128xbf16, #tpu.memory_space<vmem>>, %arg8: memref<128x128xbf16, #tpu.memory_space<vmem>>, %arg9: memref<128x128xbf16, #tpu.memory_space<vmem>>, %arg10: memref<128x128xbf16, #tpu.memory_space<vmem>>) attributes {dimension_semantics = [#tpu.dimension_semantics<parallel>], iteration_bounds = array<i64: 1>, scalar_prefetch = 0 : i64, scratch_operands = 0 : i64, tpu.core_type = #tpu.core_type<tc>, window_params = [{transform_indices = @transform_0, window_bounds = array<i64: 128, 128>}, {transform_indices = @transform_1, window_bounds = array<i64: 128, 128>}, {transform_indices = @transform_2, window_bounds = array<i64: 128, 128>}, {transform_indices = @transform_3, window_bounds = array<i64: 128, 128>}, {transform_indices = @transform_4, window_bounds = array<i64: 128, 128>}, {transform_indices = @transform_5, window_bounds = array<i64: 128, 128>}, {transform_indices = @transform_6, window_bounds = array<i64: 128, 128>}, {transform_indices = @transform_7, window_bounds = array<i64: 128, 128>}, {transform_indices = @transform_8, window_bounds = array<i64: 128, 128>}, {transform_indices = @transform_9, window_bounds = array<i64: 128, 128>}]} {
    %c0 = arith.constant 0 : index
    %c0_0 = arith.constant 0 : index
    %0 = vector.load %arg1[%c0, %c0_0] : memref<128x128xbf16, #tpu.memory_space<vmem>>, vector<128x128xbf16>
    %c0_1 = arith.constant 0 : index
    %c0_2 = arith.constant 0 : index
    %1 = vector.load %arg2[%c0_1, %c0_2] : memref<128x128xbf16, #tpu.memory_space<vmem>>, vector<128x128xbf16>
    %2 = arith.maximumf %0, %1 : vector<128x128xbf16>
    %c0_3 = arith.constant 0 : index
    %c0_4 = arith.constant 0 : index
    %3 = vector.load %arg3[%c0_3, %c0_4] : memref<128x128xbf16, #tpu.memory_space<vmem>>, vector<128x128xbf16>
    %4 = arith.maximumf %2, %3 : vector<128x128xbf16>
    %c0_5 = arith.constant 0 : index
    %c0_6 = arith.constant 0 : index
    %5 = vector.load %arg4[%c0_5, %c0_6] : memref<128x128xbf16, #tpu.memory_space<vmem>>, vector<128x128xbf16>
    %6 = arith.maximumf %4, %5 : vector<128x128xbf16>
    %c0_7 = arith.constant 0 : index
    %c0_8 = arith.constant 0 : index
    %7 = vector.load %arg5[%c0_7, %c0_8] : memref<128x128xbf16, #tpu.memory_space<vmem>>, vector<128x128xbf16>
    %8 = arith.maximumf %6, %7 : vector<128x128xbf16>
    %c0_9 = arith.constant 0 : index
    %c0_10 = arith.constant 0 : index
    %9 = vector.load %arg6[%c0_9, %c0_10] : memref<128x128xbf16, #tpu.memory_space<vmem>>, vector<128x128xbf16>
    %10 = arith.maximumf %8, %9 : vector<128x128xbf16>
    %c0_11 = arith.constant 0 : index
    %c0_12 = arith.constant 0 : index
    %11 = vector.load %arg7[%c0_11, %c0_12] : memref<128x128xbf16, #tpu.memory_space<vmem>>, vector<128x128xbf16>
    %12 = arith.maximumf %10, %11 : vector<128x128xbf16>
    %c0_13 = arith.constant 0 : index
    %c0_14 = arith.constant 0 : index
    %13 = vector.load %arg8[%c0_13, %c0_14] : memref<128x128xbf16, #tpu.memory_space<vmem>>, vector<128x128xbf16>
    %14 = arith.maximumf %12, %13 : vector<128x128xbf16>
    %c0_15 = arith.constant 0 : index
    %c0_16 = arith.constant 0 : index
    %15 = vector.load %arg9[%c0_15, %c0_16] : memref<128x128xbf16, #tpu.memory_space<vmem>>, vector<128x128xbf16>
    %16 = arith.maximumf %14, %15 : vector<128x128xbf16>
    %c0_17 = arith.constant 0 : index
    %c0_18 = arith.constant 0 : index
    %17 = vector.load %arg10[%c0_17, %c0_18] : memref<128x128xbf16, #tpu.memory_space<vmem>>, vector<128x128xbf16>
    tpu.vector_store %arg10[%c0_17, %c0_18], %16 {strides = array<i32>} : memref<128x128xbf16, #tpu.memory_space<vmem>>, vector<128x128xbf16>,
    return
  }
  func.func @transform_0(%arg0: i32) -> (i32, i32) {
    %c0_i32 = arith.constant 0 : i32
    %c0_i32_0 = arith.constant 0 : i32
    return %arg0, %c0_i32 : i32, i32
  }
  func.func @transform_1(%arg0: i32) -> (i32, i32) {
    %c0_i32 = arith.constant 0 : i32
    %c0_i32_0 = arith.constant 0 : i32
    return %arg0, %c0_i32 : i32, i32
  }
  func.func @transform_2(%arg0: i32) -> (i32, i32) {
    %c0_i32 = arith.constant 0 : i32
    %c0_i32_0 = arith.constant 0 : i32
    return %arg0, %c0_i32 : i32, i32
  }
  func.func @transform_3(%arg0: i32) -> (i32, i32) {
    %c0_i32 = arith.constant 0 : i32
    %c0_i32_0 = arith.constant 0 : i32
    return %arg0, %c0_i32 : i32, i32
  }
  func.func @transform_4(%arg0: i32) -> (i32, i32) {
    %c0_i32 = arith.constant 0 : i32
    %c0_i32_0 = arith.constant 0 : i32
    return %arg0, %c0_i32 : i32, i32
  }
  func.func @transform_5(%arg0: i32) -> (i32, i32) {
    %c0_i32 = arith.constant 0 : i32
    %c0_i32_0 = arith.constant 0 : i32
    return %arg0, %c0_i32 : i32, i32
  }
  func.func @transform_6(%arg0: i32) -> (i32, i32) {
    %c0_i32 = arith.constant 0 : i32
    %c0_i32_0 = arith.constant 0 : i32
    return %arg0, %c0_i32 : i32, i32
  }
  func.func @transform_7(%arg0: i32) -> (i32, i32) {
    %c0_i32 = arith.constant 0 : i32
    %c0_i32_0 = arith.constant 0 : i32
    return %arg0, %c0_i32 : i32, i32
  }
  func.func @transform_8(%arg0: i32) -> (i32, i32) {
    %c0_i32 = arith.constant 0 : i32
    %c0_i32_0 = arith.constant 0 : i32
    return %arg0, %c0_i32 : i32, i32
  }
  func.func @transform_9(%arg0: i32) -> (i32, i32) {
    %c0_i32 = arith.constant 0 : i32
    %c0_i32_0 = arith.constant 0 : i32
    return %arg0, %c0_i32 : i32, i32
  }
}

module attributes {stable_mosaic.version = 11 : i64} {
  func.func @_conv_bn_kernel(%arg0: i32, %arg1: memref<128x1152xbf16, #tpu.memory_space<vmem>>, %arg2: memref<1152x128xbf16, #tpu.memory_space<vmem>>, %arg3: memref<1x128xf32, #tpu.memory_space<vmem>>, %arg4: memref<1x128xf32, #tpu.memory_space<vmem>>, %arg5: memref<128x128xbf16, #tpu.memory_space<vmem>>) attributes {dimension_semantics = [#tpu.dimension_semantics<parallel>], iteration_bounds = array<i64: 1>, scalar_prefetch = 0 : i64, scratch_operands = 0 : i64, tpu.core_type = #tpu.core_type<tc>, window_params = [{pipeline_mode = #tpu.pipeline_mode<synchronous>, transform_indices = @transform_0, window_bounds = array<i64: 128, 1152>}, {transform_indices = @transform_1, window_bounds = array<i64: 1152, 128>}, {transform_indices = @transform_2, window_bounds = array<i64: 1, 128>}, {transform_indices = @transform_3, window_bounds = array<i64: 1, 128>}, {transform_indices = @transform_4, window_bounds = array<i64: 128, 128>}]} {
    %c0 = arith.constant 0 : index
    %c0_0 = arith.constant 0 : index
    %0 = vector.load %arg1[%c0, %c0_0] : memref<128x1152xbf16, #tpu.memory_space<vmem>>, vector<128x1152xbf16>
    %c0_1 = arith.constant 0 : index
    %c0_2 = arith.constant 0 : index
    %1 = vector.load %arg2[%c0_1, %c0_2] : memref<1152x128xbf16, #tpu.memory_space<vmem>>, vector<1152x128xbf16>
    %cst = arith.constant dense<0.000000e+00> : vector<128x128xf32>
    %2 = tpu.matmul %0, %1, %cst {dimension_numbers = #tpu.dot_dimension_numbers<[1], [0], [0], [1], [0, 0, 1, 1], [], []>} : vector<128x1152xbf16>, vector<1152x128xbf16>, vector<128x128xf32> -> vector<128x128xf32>
    %cst_3 = arith.constant dense<0.000000e+00> : vector<128xf32>
    %3 = vector.multi_reduction <add>, %2, %cst_3 [0] : vector<128x128xf32> to vector<128xf32>
    %4 = vector.shape_cast %3 : vector<128xf32> to vector<1x128xf32>
    %cst_4 = arith.constant 7.812500e-03 : f32
    %5 = vector.broadcast %cst_4 : f32 to vector<1x128xf32>
    %6 = arith.mulf %4, %5 : vector<1x128xf32>
    %7 = vector.broadcast %6 : vector<1x128xf32> to vector<128x128xf32>
    %8 = arith.subf %2, %7 : vector<128x128xf32>
    %9 = arith.mulf %8, %8 : vector<128x128xf32>
    %cst_5 = arith.constant dense<0.000000e+00> : vector<128xf32>
    %10 = vector.multi_reduction <add>, %9, %cst_5 [0] : vector<128x128xf32> to vector<128xf32>
    %11 = vector.shape_cast %10 : vector<128xf32> to vector<1x128xf32>
    %cst_6 = arith.constant 7.812500e-03 : f32
    %12 = vector.broadcast %cst_6 : f32 to vector<1x128xf32>
    %13 = arith.mulf %11, %12 : vector<1x128xf32>
    %c0_7 = arith.constant 0 : index
    %c0_8 = arith.constant 0 : index
    %14 = vector.load %arg3[%c0_7, %c0_8] : memref<1x128xf32, #tpu.memory_space<vmem>>, vector<1x128xf32>
    %cst_9 = arith.constant 9.99999974E-6 : f32
    %15 = vector.broadcast %cst_9 : f32 to vector<1x128xf32>
    %16 = arith.addf %13, %15 : vector<1x128xf32>
    %17 = math.rsqrt %16 : vector<1x128xf32>
    %18 = arith.mulf %14, %17 : vector<1x128xf32>
    %c0_10 = arith.constant 0 : index
    %c0_11 = arith.constant 0 : index
    %19 = vector.load %arg4[%c0_10, %c0_11] : memref<1x128xf32, #tpu.memory_space<vmem>>, vector<1x128xf32>
    %20 = arith.mulf %6, %18 : vector<1x128xf32>
    %21 = arith.subf %19, %20 : vector<1x128xf32>
    %22 = vector.broadcast %18 : vector<1x128xf32> to vector<128x128xf32>
    %23 = arith.mulf %2, %22 : vector<128x128xf32>
    %24 = vector.broadcast %21 : vector<1x128xf32> to vector<128x128xf32>
    %25 = arith.addf %23, %24 : vector<128x128xf32>
    %cst_12 = arith.constant 0.000000e+00 : f32
    %26 = vector.broadcast %cst_12 : f32 to vector<128x128xf32>
    %27 = arith.maximumf %25, %26 : vector<128x128xf32>
    %28 = arith.truncf %27 : vector<128x128xf32> to vector<128x128xbf16>
    %c0_13 = arith.constant 0 : index
    %c0_14 = arith.constant 0 : index
    %29 = vector.load %arg5[%c0_13, %c0_14] : memref<128x128xbf16, #tpu.memory_space<vmem>>, vector<128x128xbf16>
    tpu.vector_store %arg5[%c0_13, %c0_14], %28 {strides = array<i32>} : memref<128x128xbf16, #tpu.memory_space<vmem>>, vector<128x128xbf16>,
    return
  }
  func.func @transform_0(%arg0: i32) -> (i32, i32) {
    %c0_i32 = arith.constant 0 : i32
    %c0_i32_0 = arith.constant 0 : i32
    %c0_i32_1 = arith.constant 0 : i32
    return %c0_i32, %c0_i32_0 : i32, i32
  }
  func.func @transform_1(%arg0: i32) -> (i32, i32) {
    %c0_i32 = arith.constant 0 : i32
    %c0_i32_0 = arith.constant 0 : i32
    return %c0_i32, %arg0 : i32, i32
  }
  func.func @transform_2(%arg0: i32) -> (i32, i32) {
    %c0_i32 = arith.constant 0 : i32
    %c0_i32_0 = arith.constant 0 : i32
    return %c0_i32, %arg0 : i32, i32
  }
  func.func @transform_3(%arg0: i32) -> (i32, i32) {
    %c0_i32 = arith.constant 0 : i32
    %c0_i32_0 = arith.constant 0 : i32
    return %c0_i32, %arg0 : i32, i32
  }
  func.func @transform_4(%arg0: i32) -> (i32, i32) {
    %c0_i32 = arith.constant 0 : i32
    %c0_i32_0 = arith.constant 0 : i32
    return %c0_i32, %arg0 : i32, i32
  }
}

module attributes {stable_mosaic.version = 11 : i64} {
  func.func @_conv_bn_kernel(%arg0: i32, %arg1: memref<128x128xbf16, #tpu.memory_space<vmem>>, %arg2: memref<128x128xbf16, #tpu.memory_space<vmem>>, %arg3: memref<1x128xf32, #tpu.memory_space<vmem>>, %arg4: memref<1x128xf32, #tpu.memory_space<vmem>>, %arg5: memref<128x128xbf16, #tpu.memory_space<vmem>>, %arg6: memref<128x128xbf16, #tpu.memory_space<vmem>>) attributes {dimension_semantics = [#tpu.dimension_semantics<parallel>], iteration_bounds = array<i64: 1>, scalar_prefetch = 0 : i64, scratch_operands = 0 : i64, tpu.core_type = #tpu.core_type<tc>, window_params = [{pipeline_mode = #tpu.pipeline_mode<synchronous>, transform_indices = @transform_0, window_bounds = array<i64: 128, 128>}, {transform_indices = @transform_1, window_bounds = array<i64: 128, 128>}, {transform_indices = @transform_2, window_bounds = array<i64: 1, 128>}, {transform_indices = @transform_3, window_bounds = array<i64: 1, 128>}, {transform_indices = @transform_4, window_bounds = array<i64: 128, 128>}, {transform_indices = @transform_5, window_bounds = array<i64: 128, 128>}]} {
    %c0 = arith.constant 0 : index
    %c0_0 = arith.constant 0 : index
    %0 = vector.load %arg1[%c0, %c0_0] : memref<128x128xbf16, #tpu.memory_space<vmem>>, vector<128x128xbf16>
    %c0_1 = arith.constant 0 : index
    %c0_2 = arith.constant 0 : index
    %1 = vector.load %arg2[%c0_1, %c0_2] : memref<128x128xbf16, #tpu.memory_space<vmem>>, vector<128x128xbf16>
    %cst = arith.constant dense<0.000000e+00> : vector<128x128xf32>
    %2 = tpu.matmul %0, %1, %cst {dimension_numbers = #tpu.dot_dimension_numbers<[1], [0], [0], [1], [0, 0, 1, 1], [], []>} : vector<128x128xbf16>, vector<128x128xbf16>, vector<128x128xf32> -> vector<128x128xf32>
    %cst_3 = arith.constant dense<0.000000e+00> : vector<128xf32>
    %3 = vector.multi_reduction <add>, %2, %cst_3 [0] : vector<128x128xf32> to vector<128xf32>
    %4 = vector.shape_cast %3 : vector<128xf32> to vector<1x128xf32>
    %cst_4 = arith.constant 7.812500e-03 : f32
    %5 = vector.broadcast %cst_4 : f32 to vector<1x128xf32>
    %6 = arith.mulf %4, %5 : vector<1x128xf32>
    %7 = vector.broadcast %6 : vector<1x128xf32> to vector<128x128xf32>
    %8 = arith.subf %2, %7 : vector<128x128xf32>
    %9 = arith.mulf %8, %8 : vector<128x128xf32>
    %cst_5 = arith.constant dense<0.000000e+00> : vector<128xf32>
    %10 = vector.multi_reduction <add>, %9, %cst_5 [0] : vector<128x128xf32> to vector<128xf32>
    %11 = vector.shape_cast %10 : vector<128xf32> to vector<1x128xf32>
    %cst_6 = arith.constant 7.812500e-03 : f32
    %12 = vector.broadcast %cst_6 : f32 to vector<1x128xf32>
    %13 = arith.mulf %11, %12 : vector<1x128xf32>
    %c0_7 = arith.constant 0 : index
    %c0_8 = arith.constant 0 : index
    %14 = vector.load %arg3[%c0_7, %c0_8] : memref<1x128xf32, #tpu.memory_space<vmem>>, vector<1x128xf32>
    %cst_9 = arith.constant 9.99999974E-6 : f32
    %15 = vector.broadcast %cst_9 : f32 to vector<1x128xf32>
    %16 = arith.addf %13, %15 : vector<1x128xf32>
    %17 = math.rsqrt %16 : vector<1x128xf32>
    %18 = arith.mulf %14, %17 : vector<1x128xf32>
    %c0_10 = arith.constant 0 : index
    %c0_11 = arith.constant 0 : index
    %19 = vector.load %arg4[%c0_10, %c0_11] : memref<1x128xf32, #tpu.memory_space<vmem>>, vector<1x128xf32>
    %20 = arith.mulf %6, %18 : vector<1x128xf32>
    %21 = arith.subf %19, %20 : vector<1x128xf32>
    %22 = vector.broadcast %18 : vector<1x128xf32> to vector<128x128xf32>
    %23 = arith.mulf %2, %22 : vector<128x128xf32>
    %24 = vector.broadcast %21 : vector<1x128xf32> to vector<128x128xf32>
    %25 = arith.addf %23, %24 : vector<128x128xf32>
    %c0_12 = arith.constant 0 : index
    %c0_13 = arith.constant 0 : index
    %26 = vector.load %arg5[%c0_12, %c0_13] : memref<128x128xbf16, #tpu.memory_space<vmem>>, vector<128x128xbf16>
    %27 = arith.extf %26 : vector<128x128xbf16> to vector<128x128xf32>
    %28 = arith.addf %25, %27 : vector<128x128xf32>
    %cst_14 = arith.constant 0.000000e+00 : f32
    %29 = vector.broadcast %cst_14 : f32 to vector<128x128xf32>
    %30 = arith.maximumf %28, %29 : vector<128x128xf32>
    %31 = arith.truncf %30 : vector<128x128xf32> to vector<128x128xbf16>
    %c0_15 = arith.constant 0 : index
    %c0_16 = arith.constant 0 : index
    %32 = vector.load %arg6[%c0_15, %c0_16] : memref<128x128xbf16, #tpu.memory_space<vmem>>, vector<128x128xbf16>
    tpu.vector_store %arg6[%c0_15, %c0_16], %31 {strides = array<i32>} : memref<128x128xbf16, #tpu.memory_space<vmem>>, vector<128x128xbf16>,
    return
  }
  func.func @transform_0(%arg0: i32) -> (i32, i32) {
    %c0_i32 = arith.constant 0 : i32
    %c0_i32_0 = arith.constant 0 : i32
    %c0_i32_1 = arith.constant 0 : i32
    return %c0_i32, %c0_i32_0 : i32, i32
  }
  func.func @transform_1(%arg0: i32) -> (i32, i32) {
    %c0_i32 = arith.constant 0 : i32
    %c0_i32_0 = arith.constant 0 : i32
    return %c0_i32, %arg0 : i32, i32
  }
  func.func @transform_2(%arg0: i32) -> (i32, i32) {
    %c0_i32 = arith.constant 0 : i32
    %c0_i32_0 = arith.constant 0 : i32
    return %c0_i32, %arg0 : i32, i32
  }
  func.func @transform_3(%arg0: i32) -> (i32, i32) {
    %c0_i32 = arith.constant 0 : i32
    %c0_i32_0 = arith.constant 0 : i32
    return %c0_i32, %arg0 : i32, i32
  }
  func.func @transform_4(%arg0: i32) -> (i32, i32) {
    %c0_i32 = arith.constant 0 : i32
    %c0_i32_0 = arith.constant 0 : i32
    return %c0_i32, %arg0 : i32, i32
  }
  func.func @transform_5(%arg0: i32) -> (i32, i32) {
    %c0_i32 = arith.constant 0 : i32
    %c0_i32_0 = arith.constant 0 : i32
    return %c0_i32, %arg0 : i32, i32
  }
}

module attributes {stable_mosaic.version = 11 : i64} {
  func.func @_conv_bn_kernel(%arg0: i32, %arg1: memref<128x128xbf16, #tpu.memory_space<vmem>>, %arg2: memref<128x128xbf16, #tpu.memory_space<vmem>>, %arg3: memref<1x128xf32, #tpu.memory_space<vmem>>, %arg4: memref<1x128xf32, #tpu.memory_space<vmem>>, %arg5: memref<128x128xbf16, #tpu.memory_space<vmem>>) attributes {dimension_semantics = [#tpu.dimension_semantics<parallel>], iteration_bounds = array<i64: 1>, scalar_prefetch = 0 : i64, scratch_operands = 0 : i64, tpu.core_type = #tpu.core_type<tc>, window_params = [{pipeline_mode = #tpu.pipeline_mode<synchronous>, transform_indices = @transform_0, window_bounds = array<i64: 128, 128>}, {transform_indices = @transform_1, window_bounds = array<i64: 128, 128>}, {transform_indices = @transform_2, window_bounds = array<i64: 1, 128>}, {transform_indices = @transform_3, window_bounds = array<i64: 1, 128>}, {transform_indices = @transform_4, window_bounds = array<i64: 128, 128>}]} {
    %c0 = arith.constant 0 : index
    %c0_0 = arith.constant 0 : index
    %0 = vector.load %arg1[%c0, %c0_0] : memref<128x128xbf16, #tpu.memory_space<vmem>>, vector<128x128xbf16>
    %c0_1 = arith.constant 0 : index
    %c0_2 = arith.constant 0 : index
    %1 = vector.load %arg2[%c0_1, %c0_2] : memref<128x128xbf16, #tpu.memory_space<vmem>>, vector<128x128xbf16>
    %cst = arith.constant dense<0.000000e+00> : vector<128x128xf32>
    %2 = tpu.matmul %0, %1, %cst {dimension_numbers = #tpu.dot_dimension_numbers<[1], [0], [0], [1], [0, 0, 1, 1], [], []>} : vector<128x128xbf16>, vector<128x128xbf16>, vector<128x128xf32> -> vector<128x128xf32>
    %cst_3 = arith.constant dense<0.000000e+00> : vector<128xf32>
    %3 = vector.multi_reduction <add>, %2, %cst_3 [0] : vector<128x128xf32> to vector<128xf32>
    %4 = vector.shape_cast %3 : vector<128xf32> to vector<1x128xf32>
    %cst_4 = arith.constant 7.812500e-03 : f32
    %5 = vector.broadcast %cst_4 : f32 to vector<1x128xf32>
    %6 = arith.mulf %4, %5 : vector<1x128xf32>
    %7 = vector.broadcast %6 : vector<1x128xf32> to vector<128x128xf32>
    %8 = arith.subf %2, %7 : vector<128x128xf32>
    %9 = arith.mulf %8, %8 : vector<128x128xf32>
    %cst_5 = arith.constant dense<0.000000e+00> : vector<128xf32>
    %10 = vector.multi_reduction <add>, %9, %cst_5 [0] : vector<128x128xf32> to vector<128xf32>
    %11 = vector.shape_cast %10 : vector<128xf32> to vector<1x128xf32>
    %cst_6 = arith.constant 7.812500e-03 : f32
    %12 = vector.broadcast %cst_6 : f32 to vector<1x128xf32>
    %13 = arith.mulf %11, %12 : vector<1x128xf32>
    %c0_7 = arith.constant 0 : index
    %c0_8 = arith.constant 0 : index
    %14 = vector.load %arg3[%c0_7, %c0_8] : memref<1x128xf32, #tpu.memory_space<vmem>>, vector<1x128xf32>
    %cst_9 = arith.constant 9.99999974E-6 : f32
    %15 = vector.broadcast %cst_9 : f32 to vector<1x128xf32>
    %16 = arith.addf %13, %15 : vector<1x128xf32>
    %17 = math.rsqrt %16 : vector<1x128xf32>
    %18 = arith.mulf %14, %17 : vector<1x128xf32>
    %c0_10 = arith.constant 0 : index
    %c0_11 = arith.constant 0 : index
    %19 = vector.load %arg4[%c0_10, %c0_11] : memref<1x128xf32, #tpu.memory_space<vmem>>, vector<1x128xf32>
    %20 = arith.mulf %6, %18 : vector<1x128xf32>
    %21 = arith.subf %19, %20 : vector<1x128xf32>
    %22 = vector.broadcast %18 : vector<1x128xf32> to vector<128x128xf32>
    %23 = arith.mulf %2, %22 : vector<128x128xf32>
    %24 = vector.broadcast %21 : vector<1x128xf32> to vector<128x128xf32>
    %25 = arith.addf %23, %24 : vector<128x128xf32>
    %26 = arith.truncf %25 : vector<128x128xf32> to vector<128x128xbf16>
    %c0_12 = arith.constant 0 : index
    %c0_13 = arith.constant 0 : index
    %27 = vector.load %arg5[%c0_12, %c0_13] : memref<128x128xbf16, #tpu.memory_space<vmem>>, vector<128x128xbf16>
    tpu.vector_store %arg5[%c0_12, %c0_13], %26 {strides = array<i32>} : memref<128x128xbf16, #tpu.memory_space<vmem>>, vector<128x128xbf16>,
    return
  }
  func.func @transform_0(%arg0: i32) -> (i32, i32) {
    %c0_i32 = arith.constant 0 : i32
    %c0_i32_0 = arith.constant 0 : i32
    %c0_i32_1 = arith.constant 0 : i32
    return %c0_i32, %c0_i32_0 : i32, i32
  }
  func.func @transform_1(%arg0: i32) -> (i32, i32) {
    %c0_i32 = arith.constant 0 : i32
    %c0_i32_0 = arith.constant 0 : i32
    return %c0_i32, %arg0 : i32, i32
  }
  func.func @transform_2(%arg0: i32) -> (i32, i32) {
    %c0_i32 = arith.constant 0 : i32
    %c0_i32_0 = arith.constant 0 : i32
    return %c0_i32, %arg0 : i32, i32
  }
  func.func @transform_3(%arg0: i32) -> (i32, i32) {
    %c0_i32 = arith.constant 0 : i32
    %c0_i32_0 = arith.constant 0 : i32
    return %c0_i32, %arg0 : i32, i32
  }
  func.func @transform_4(%arg0: i32) -> (i32, i32) {
    %c0_i32 = arith.constant 0 : i32
    %c0_i32_0 = arith.constant 0 : i32
    return %c0_i32, %arg0 : i32, i32
  }
}

module attributes {stable_mosaic.version = 11 : i64} {
  func.func @_conv_bn_kernel(%arg0: i32, %arg1: memref<32x128xbf16, #tpu.memory_space<vmem>>, %arg2: memref<128x128xbf16, #tpu.memory_space<vmem>>, %arg3: memref<1x128xf32, #tpu.memory_space<vmem>>, %arg4: memref<1x128xf32, #tpu.memory_space<vmem>>, %arg5: memref<32x128xbf16, #tpu.memory_space<vmem>>) attributes {dimension_semantics = [#tpu.dimension_semantics<parallel>], iteration_bounds = array<i64: 1>, scalar_prefetch = 0 : i64, scratch_operands = 0 : i64, tpu.core_type = #tpu.core_type<tc>, window_params = [{pipeline_mode = #tpu.pipeline_mode<synchronous>, transform_indices = @transform_0, window_bounds = array<i64: 32, 128>}, {transform_indices = @transform_1, window_bounds = array<i64: 128, 128>}, {transform_indices = @transform_2, window_bounds = array<i64: 1, 128>}, {transform_indices = @transform_3, window_bounds = array<i64: 1, 128>}, {transform_indices = @transform_4, window_bounds = array<i64: 32, 128>}]} {
    %c0 = arith.constant 0 : index
    %c0_0 = arith.constant 0 : index
    %0 = vector.load %arg1[%c0, %c0_0] : memref<32x128xbf16, #tpu.memory_space<vmem>>, vector<32x128xbf16>
    %c0_1 = arith.constant 0 : index
    %c0_2 = arith.constant 0 : index
    %1 = vector.load %arg2[%c0_1, %c0_2] : memref<128x128xbf16, #tpu.memory_space<vmem>>, vector<128x128xbf16>
    %cst = arith.constant dense<0.000000e+00> : vector<32x128xf32>
    %2 = tpu.matmul %0, %1, %cst {dimension_numbers = #tpu.dot_dimension_numbers<[1], [0], [0], [1], [0, 0, 1, 1], [], []>} : vector<32x128xbf16>, vector<128x128xbf16>, vector<32x128xf32> -> vector<32x128xf32>
    %cst_3 = arith.constant dense<0.000000e+00> : vector<128xf32>
    %3 = vector.multi_reduction <add>, %2, %cst_3 [0] : vector<32x128xf32> to vector<128xf32>
    %4 = vector.shape_cast %3 : vector<128xf32> to vector<1x128xf32>
    %cst_4 = arith.constant 3.125000e-02 : f32
    %5 = vector.broadcast %cst_4 : f32 to vector<1x128xf32>
    %6 = arith.mulf %4, %5 : vector<1x128xf32>
    %7 = vector.broadcast %6 : vector<1x128xf32> to vector<32x128xf32>
    %8 = arith.subf %2, %7 : vector<32x128xf32>
    %9 = arith.mulf %8, %8 : vector<32x128xf32>
    %cst_5 = arith.constant dense<0.000000e+00> : vector<128xf32>
    %10 = vector.multi_reduction <add>, %9, %cst_5 [0] : vector<32x128xf32> to vector<128xf32>
    %11 = vector.shape_cast %10 : vector<128xf32> to vector<1x128xf32>
    %cst_6 = arith.constant 3.125000e-02 : f32
    %12 = vector.broadcast %cst_6 : f32 to vector<1x128xf32>
    %13 = arith.mulf %11, %12 : vector<1x128xf32>
    %c0_7 = arith.constant 0 : index
    %c0_8 = arith.constant 0 : index
    %14 = vector.load %arg3[%c0_7, %c0_8] : memref<1x128xf32, #tpu.memory_space<vmem>>, vector<1x128xf32>
    %cst_9 = arith.constant 9.99999974E-6 : f32
    %15 = vector.broadcast %cst_9 : f32 to vector<1x128xf32>
    %16 = arith.addf %13, %15 : vector<1x128xf32>
    %17 = math.rsqrt %16 : vector<1x128xf32>
    %18 = arith.mulf %14, %17 : vector<1x128xf32>
    %c0_10 = arith.constant 0 : index
    %c0_11 = arith.constant 0 : index
    %19 = vector.load %arg4[%c0_10, %c0_11] : memref<1x128xf32, #tpu.memory_space<vmem>>, vector<1x128xf32>
    %20 = arith.mulf %6, %18 : vector<1x128xf32>
    %21 = arith.subf %19, %20 : vector<1x128xf32>
    %22 = vector.broadcast %18 : vector<1x128xf32> to vector<32x128xf32>
    %23 = arith.mulf %2, %22 : vector<32x128xf32>
    %24 = vector.broadcast %21 : vector<1x128xf32> to vector<32x128xf32>
    %25 = arith.addf %23, %24 : vector<32x128xf32>
    %26 = arith.truncf %25 : vector<32x128xf32> to vector<32x128xbf16>
    %c0_12 = arith.constant 0 : index
    %c0_13 = arith.constant 0 : index
    %27 = vector.load %arg5[%c0_12, %c0_13] : memref<32x128xbf16, #tpu.memory_space<vmem>>, vector<32x128xbf16>
    tpu.vector_store %arg5[%c0_12, %c0_13], %26 {strides = array<i32>} : memref<32x128xbf16, #tpu.memory_space<vmem>>, vector<32x128xbf16>,
    return
  }
  func.func @transform_0(%arg0: i32) -> (i32, i32) {
    %c0_i32 = arith.constant 0 : i32
    %c0_i32_0 = arith.constant 0 : i32
    %c0_i32_1 = arith.constant 0 : i32
    return %c0_i32, %c0_i32_0 : i32, i32
  }
  func.func @transform_1(%arg0: i32) -> (i32, i32) {
    %c0_i32 = arith.constant 0 : i32
    %c0_i32_0 = arith.constant 0 : i32
    return %c0_i32, %arg0 : i32, i32
  }
  func.func @transform_2(%arg0: i32) -> (i32, i32) {
    %c0_i32 = arith.constant 0 : i32
    %c0_i32_0 = arith.constant 0 : i32
    return %c0_i32, %arg0 : i32, i32
  }
  func.func @transform_3(%arg0: i32) -> (i32, i32) {
    %c0_i32 = arith.constant 0 : i32
    %c0_i32_0 = arith.constant 0 : i32
    return %c0_i32, %arg0 : i32, i32
  }
  func.func @transform_4(%arg0: i32) -> (i32, i32) {
    %c0_i32 = arith.constant 0 : i32
    %c0_i32_0 = arith.constant 0 : i32
    return %c0_i32, %arg0 : i32, i32
  }
}

module attributes {stable_mosaic.version = 11 : i64} {
  func.func @_conv_bn_kernel(%arg0: i32, %arg1: memref<32x128xbf16, #tpu.memory_space<vmem>>, %arg2: memref<128x128xbf16, #tpu.memory_space<vmem>>, %arg3: memref<1x128xf32, #tpu.memory_space<vmem>>, %arg4: memref<1x128xf32, #tpu.memory_space<vmem>>, %arg5: memref<32x128xbf16, #tpu.memory_space<vmem>>, %arg6: memref<32x128xbf16, #tpu.memory_space<vmem>>) attributes {dimension_semantics = [#tpu.dimension_semantics<parallel>], iteration_bounds = array<i64: 1>, scalar_prefetch = 0 : i64, scratch_operands = 0 : i64, tpu.core_type = #tpu.core_type<tc>, window_params = [{pipeline_mode = #tpu.pipeline_mode<synchronous>, transform_indices = @transform_0, window_bounds = array<i64: 32, 128>}, {transform_indices = @transform_1, window_bounds = array<i64: 128, 128>}, {transform_indices = @transform_2, window_bounds = array<i64: 1, 128>}, {transform_indices = @transform_3, window_bounds = array<i64: 1, 128>}, {transform_indices = @transform_4, window_bounds = array<i64: 32, 128>}, {transform_indices = @transform_5, window_bounds = array<i64: 32, 128>}]} {
    %c0 = arith.constant 0 : index
    %c0_0 = arith.constant 0 : index
    %0 = vector.load %arg1[%c0, %c0_0] : memref<32x128xbf16, #tpu.memory_space<vmem>>, vector<32x128xbf16>
    %c0_1 = arith.constant 0 : index
    %c0_2 = arith.constant 0 : index
    %1 = vector.load %arg2[%c0_1, %c0_2] : memref<128x128xbf16, #tpu.memory_space<vmem>>, vector<128x128xbf16>
    %cst = arith.constant dense<0.000000e+00> : vector<32x128xf32>
    %2 = tpu.matmul %0, %1, %cst {dimension_numbers = #tpu.dot_dimension_numbers<[1], [0], [0], [1], [0, 0, 1, 1], [], []>} : vector<32x128xbf16>, vector<128x128xbf16>, vector<32x128xf32> -> vector<32x128xf32>
    %cst_3 = arith.constant dense<0.000000e+00> : vector<128xf32>
    %3 = vector.multi_reduction <add>, %2, %cst_3 [0] : vector<32x128xf32> to vector<128xf32>
    %4 = vector.shape_cast %3 : vector<128xf32> to vector<1x128xf32>
    %cst_4 = arith.constant 3.125000e-02 : f32
    %5 = vector.broadcast %cst_4 : f32 to vector<1x128xf32>
    %6 = arith.mulf %4, %5 : vector<1x128xf32>
    %7 = vector.broadcast %6 : vector<1x128xf32> to vector<32x128xf32>
    %8 = arith.subf %2, %7 : vector<32x128xf32>
    %9 = arith.mulf %8, %8 : vector<32x128xf32>
    %cst_5 = arith.constant dense<0.000000e+00> : vector<128xf32>
    %10 = vector.multi_reduction <add>, %9, %cst_5 [0] : vector<32x128xf32> to vector<128xf32>
    %11 = vector.shape_cast %10 : vector<128xf32> to vector<1x128xf32>
    %cst_6 = arith.constant 3.125000e-02 : f32
    %12 = vector.broadcast %cst_6 : f32 to vector<1x128xf32>
    %13 = arith.mulf %11, %12 : vector<1x128xf32>
    %c0_7 = arith.constant 0 : index
    %c0_8 = arith.constant 0 : index
    %14 = vector.load %arg3[%c0_7, %c0_8] : memref<1x128xf32, #tpu.memory_space<vmem>>, vector<1x128xf32>
    %cst_9 = arith.constant 9.99999974E-6 : f32
    %15 = vector.broadcast %cst_9 : f32 to vector<1x128xf32>
    %16 = arith.addf %13, %15 : vector<1x128xf32>
    %17 = math.rsqrt %16 : vector<1x128xf32>
    %18 = arith.mulf %14, %17 : vector<1x128xf32>
    %c0_10 = arith.constant 0 : index
    %c0_11 = arith.constant 0 : index
    %19 = vector.load %arg4[%c0_10, %c0_11] : memref<1x128xf32, #tpu.memory_space<vmem>>, vector<1x128xf32>
    %20 = arith.mulf %6, %18 : vector<1x128xf32>
    %21 = arith.subf %19, %20 : vector<1x128xf32>
    %22 = vector.broadcast %18 : vector<1x128xf32> to vector<32x128xf32>
    %23 = arith.mulf %2, %22 : vector<32x128xf32>
    %24 = vector.broadcast %21 : vector<1x128xf32> to vector<32x128xf32>
    %25 = arith.addf %23, %24 : vector<32x128xf32>
    %c0_12 = arith.constant 0 : index
    %c0_13 = arith.constant 0 : index
    %26 = vector.load %arg5[%c0_12, %c0_13] : memref<32x128xbf16, #tpu.memory_space<vmem>>, vector<32x128xbf16>
    %27 = arith.extf %26 : vector<32x128xbf16> to vector<32x128xf32>
    %28 = arith.addf %25, %27 : vector<32x128xf32>
    %cst_14 = arith.constant 0.000000e+00 : f32
    %29 = vector.broadcast %cst_14 : f32 to vector<32x128xf32>
    %30 = arith.maximumf %28, %29 : vector<32x128xf32>
    %31 = arith.truncf %30 : vector<32x128xf32> to vector<32x128xbf16>
    %c0_15 = arith.constant 0 : index
    %c0_16 = arith.constant 0 : index
    %32 = vector.load %arg6[%c0_15, %c0_16] : memref<32x128xbf16, #tpu.memory_space<vmem>>, vector<32x128xbf16>
    tpu.vector_store %arg6[%c0_15, %c0_16], %31 {strides = array<i32>} : memref<32x128xbf16, #tpu.memory_space<vmem>>, vector<32x128xbf16>,
    return
  }
  func.func @transform_0(%arg0: i32) -> (i32, i32) {
    %c0_i32 = arith.constant 0 : i32
    %c0_i32_0 = arith.constant 0 : i32
    %c0_i32_1 = arith.constant 0 : i32
    return %c0_i32, %c0_i32_0 : i32, i32
  }
  func.func @transform_1(%arg0: i32) -> (i32, i32) {
    %c0_i32 = arith.constant 0 : i32
    %c0_i32_0 = arith.constant 0 : i32
    return %c0_i32, %arg0 : i32, i32
  }
  func.func @transform_2(%arg0: i32) -> (i32, i32) {
    %c0_i32 = arith.constant 0 : i32
    %c0_i32_0 = arith.constant 0 : i32
    return %c0_i32, %arg0 : i32, i32
  }
  func.func @transform_3(%arg0: i32) -> (i32, i32) {
    %c0_i32 = arith.constant 0 : i32
    %c0_i32_0 = arith.constant 0 : i32
    return %c0_i32, %arg0 : i32, i32
  }
  func.func @transform_4(%arg0: i32) -> (i32, i32) {
    %c0_i32 = arith.constant 0 : i32
    %c0_i32_0 = arith.constant 0 : i32
    return %c0_i32, %arg0 : i32, i32
  }
  func.func @transform_5(%arg0: i32) -> (i32, i32) {
    %c0_i32 = arith.constant 0 : i32
    %c0_i32_0 = arith.constant 0 : i32
    return %c0_i32, %arg0 : i32, i32
  }
}

module attributes {stable_mosaic.version = 11 : i64} {
  func.func @_conv_bn_kernel(%arg0: i32, %arg1: memref<32x1152xbf16, #tpu.memory_space<vmem>>, %arg2: memref<1152x128xbf16, #tpu.memory_space<vmem>>, %arg3: memref<1x128xf32, #tpu.memory_space<vmem>>, %arg4: memref<1x128xf32, #tpu.memory_space<vmem>>, %arg5: memref<32x128xbf16, #tpu.memory_space<vmem>>) attributes {dimension_semantics = [#tpu.dimension_semantics<parallel>], iteration_bounds = array<i64: 1>, scalar_prefetch = 0 : i64, scratch_operands = 0 : i64, tpu.core_type = #tpu.core_type<tc>, window_params = [{pipeline_mode = #tpu.pipeline_mode<synchronous>, transform_indices = @transform_0, window_bounds = array<i64: 32, 1152>}, {transform_indices = @transform_1, window_bounds = array<i64: 1152, 128>}, {transform_indices = @transform_2, window_bounds = array<i64: 1, 128>}, {transform_indices = @transform_3, window_bounds = array<i64: 1, 128>}, {transform_indices = @transform_4, window_bounds = array<i64: 32, 128>}]} {
    %c0 = arith.constant 0 : index
    %c0_0 = arith.constant 0 : index
    %0 = vector.load %arg1[%c0, %c0_0] : memref<32x1152xbf16, #tpu.memory_space<vmem>>, vector<32x1152xbf16>
    %c0_1 = arith.constant 0 : index
    %c0_2 = arith.constant 0 : index
    %1 = vector.load %arg2[%c0_1, %c0_2] : memref<1152x128xbf16, #tpu.memory_space<vmem>>, vector<1152x128xbf16>
    %cst = arith.constant dense<0.000000e+00> : vector<32x128xf32>
    %2 = tpu.matmul %0, %1, %cst {dimension_numbers = #tpu.dot_dimension_numbers<[1], [0], [0], [1], [0, 0, 1, 1], [], []>} : vector<32x1152xbf16>, vector<1152x128xbf16>, vector<32x128xf32> -> vector<32x128xf32>
    %cst_3 = arith.constant dense<0.000000e+00> : vector<128xf32>
    %3 = vector.multi_reduction <add>, %2, %cst_3 [0] : vector<32x128xf32> to vector<128xf32>
    %4 = vector.shape_cast %3 : vector<128xf32> to vector<1x128xf32>
    %cst_4 = arith.constant 3.125000e-02 : f32
    %5 = vector.broadcast %cst_4 : f32 to vector<1x128xf32>
    %6 = arith.mulf %4, %5 : vector<1x128xf32>
    %7 = vector.broadcast %6 : vector<1x128xf32> to vector<32x128xf32>
    %8 = arith.subf %2, %7 : vector<32x128xf32>
    %9 = arith.mulf %8, %8 : vector<32x128xf32>
    %cst_5 = arith.constant dense<0.000000e+00> : vector<128xf32>
    %10 = vector.multi_reduction <add>, %9, %cst_5 [0] : vector<32x128xf32> to vector<128xf32>
    %11 = vector.shape_cast %10 : vector<128xf32> to vector<1x128xf32>
    %cst_6 = arith.constant 3.125000e-02 : f32
    %12 = vector.broadcast %cst_6 : f32 to vector<1x128xf32>
    %13 = arith.mulf %11, %12 : vector<1x128xf32>
    %c0_7 = arith.constant 0 : index
    %c0_8 = arith.constant 0 : index
    %14 = vector.load %arg3[%c0_7, %c0_8] : memref<1x128xf32, #tpu.memory_space<vmem>>, vector<1x128xf32>
    %cst_9 = arith.constant 9.99999974E-6 : f32
    %15 = vector.broadcast %cst_9 : f32 to vector<1x128xf32>
    %16 = arith.addf %13, %15 : vector<1x128xf32>
    %17 = math.rsqrt %16 : vector<1x128xf32>
    %18 = arith.mulf %14, %17 : vector<1x128xf32>
    %c0_10 = arith.constant 0 : index
    %c0_11 = arith.constant 0 : index
    %19 = vector.load %arg4[%c0_10, %c0_11] : memref<1x128xf32, #tpu.memory_space<vmem>>, vector<1x128xf32>
    %20 = arith.mulf %6, %18 : vector<1x128xf32>
    %21 = arith.subf %19, %20 : vector<1x128xf32>
    %22 = vector.broadcast %18 : vector<1x128xf32> to vector<32x128xf32>
    %23 = arith.mulf %2, %22 : vector<32x128xf32>
    %24 = vector.broadcast %21 : vector<1x128xf32> to vector<32x128xf32>
    %25 = arith.addf %23, %24 : vector<32x128xf32>
    %cst_12 = arith.constant 0.000000e+00 : f32
    %26 = vector.broadcast %cst_12 : f32 to vector<32x128xf32>
    %27 = arith.maximumf %25, %26 : vector<32x128xf32>
    %28 = arith.truncf %27 : vector<32x128xf32> to vector<32x128xbf16>
    %c0_13 = arith.constant 0 : index
    %c0_14 = arith.constant 0 : index
    %29 = vector.load %arg5[%c0_13, %c0_14] : memref<32x128xbf16, #tpu.memory_space<vmem>>, vector<32x128xbf16>
    tpu.vector_store %arg5[%c0_13, %c0_14], %28 {strides = array<i32>} : memref<32x128xbf16, #tpu.memory_space<vmem>>, vector<32x128xbf16>,
    return
  }
  func.func @transform_0(%arg0: i32) -> (i32, i32) {
    %c0_i32 = arith.constant 0 : i32
    %c0_i32_0 = arith.constant 0 : i32
    %c0_i32_1 = arith.constant 0 : i32
    return %c0_i32, %c0_i32_0 : i32, i32
  }
  func.func @transform_1(%arg0: i32) -> (i32, i32) {
    %c0_i32 = arith.constant 0 : i32
    %c0_i32_0 = arith.constant 0 : i32
    return %c0_i32, %arg0 : i32, i32
  }
  func.func @transform_2(%arg0: i32) -> (i32, i32) {
    %c0_i32 = arith.constant 0 : i32
    %c0_i32_0 = arith.constant 0 : i32
    return %c0_i32, %arg0 : i32, i32
  }
  func.func @transform_3(%arg0: i32) -> (i32, i32) {
    %c0_i32 = arith.constant 0 : i32
    %c0_i32_0 = arith.constant 0 : i32
    return %c0_i32, %arg0 : i32, i32
  }
  func.func @transform_4(%arg0: i32) -> (i32, i32) {
    %c0_i32 = arith.constant 0 : i32
    %c0_i32_0 = arith.constant 0 : i32
    return %c0_i32, %arg0 : i32, i32
  }
}

module attributes {stable_mosaic.version = 11 : i64} {
  func.func @_conv_bn_kernel(%arg0: i32, %arg1: memref<32x128xbf16, #tpu.memory_space<vmem>>, %arg2: memref<128x128xbf16, #tpu.memory_space<vmem>>, %arg3: memref<1x128xf32, #tpu.memory_space<vmem>>, %arg4: memref<1x128xf32, #tpu.memory_space<vmem>>, %arg5: memref<32x128xbf16, #tpu.memory_space<vmem>>) attributes {dimension_semantics = [#tpu.dimension_semantics<parallel>], iteration_bounds = array<i64: 1>, scalar_prefetch = 0 : i64, scratch_operands = 0 : i64, tpu.core_type = #tpu.core_type<tc>, window_params = [{pipeline_mode = #tpu.pipeline_mode<synchronous>, transform_indices = @transform_0, window_bounds = array<i64: 32, 128>}, {transform_indices = @transform_1, window_bounds = array<i64: 128, 128>}, {transform_indices = @transform_2, window_bounds = array<i64: 1, 128>}, {transform_indices = @transform_3, window_bounds = array<i64: 1, 128>}, {transform_indices = @transform_4, window_bounds = array<i64: 32, 128>}]} {
    %c0 = arith.constant 0 : index
    %c0_0 = arith.constant 0 : index
    %0 = vector.load %arg1[%c0, %c0_0] : memref<32x128xbf16, #tpu.memory_space<vmem>>, vector<32x128xbf16>
    %c0_1 = arith.constant 0 : index
    %c0_2 = arith.constant 0 : index
    %1 = vector.load %arg2[%c0_1, %c0_2] : memref<128x128xbf16, #tpu.memory_space<vmem>>, vector<128x128xbf16>
    %cst = arith.constant dense<0.000000e+00> : vector<32x128xf32>
    %2 = tpu.matmul %0, %1, %cst {dimension_numbers = #tpu.dot_dimension_numbers<[1], [0], [0], [1], [0, 0, 1, 1], [], []>} : vector<32x128xbf16>, vector<128x128xbf16>, vector<32x128xf32> -> vector<32x128xf32>
    %cst_3 = arith.constant dense<0.000000e+00> : vector<128xf32>
    %3 = vector.multi_reduction <add>, %2, %cst_3 [0] : vector<32x128xf32> to vector<128xf32>
    %4 = vector.shape_cast %3 : vector<128xf32> to vector<1x128xf32>
    %cst_4 = arith.constant 3.125000e-02 : f32
    %5 = vector.broadcast %cst_4 : f32 to vector<1x128xf32>
    %6 = arith.mulf %4, %5 : vector<1x128xf32>
    %7 = vector.broadcast %6 : vector<1x128xf32> to vector<32x128xf32>
    %8 = arith.subf %2, %7 : vector<32x128xf32>
    %9 = arith.mulf %8, %8 : vector<32x128xf32>
    %cst_5 = arith.constant dense<0.000000e+00> : vector<128xf32>
    %10 = vector.multi_reduction <add>, %9, %cst_5 [0] : vector<32x128xf32> to vector<128xf32>
    %11 = vector.shape_cast %10 : vector<128xf32> to vector<1x128xf32>
    %cst_6 = arith.constant 3.125000e-02 : f32
    %12 = vector.broadcast %cst_6 : f32 to vector<1x128xf32>
    %13 = arith.mulf %11, %12 : vector<1x128xf32>
    %c0_7 = arith.constant 0 : index
    %c0_8 = arith.constant 0 : index
    %14 = vector.load %arg3[%c0_7, %c0_8] : memref<1x128xf32, #tpu.memory_space<vmem>>, vector<1x128xf32>
    %cst_9 = arith.constant 9.99999974E-6 : f32
    %15 = vector.broadcast %cst_9 : f32 to vector<1x128xf32>
    %16 = arith.addf %13, %15 : vector<1x128xf32>
    %17 = math.rsqrt %16 : vector<1x128xf32>
    %18 = arith.mulf %14, %17 : vector<1x128xf32>
    %c0_10 = arith.constant 0 : index
    %c0_11 = arith.constant 0 : index
    %19 = vector.load %arg4[%c0_10, %c0_11] : memref<1x128xf32, #tpu.memory_space<vmem>>, vector<1x128xf32>
    %20 = arith.mulf %6, %18 : vector<1x128xf32>
    %21 = arith.subf %19, %20 : vector<1x128xf32>
    %22 = vector.broadcast %18 : vector<1x128xf32> to vector<32x128xf32>
    %23 = arith.mulf %2, %22 : vector<32x128xf32>
    %24 = vector.broadcast %21 : vector<1x128xf32> to vector<32x128xf32>
    %25 = arith.addf %23, %24 : vector<32x128xf32>
    %cst_12 = arith.constant 0.000000e+00 : f32
    %26 = vector.broadcast %cst_12 : f32 to vector<32x128xf32>
    %27 = arith.maximumf %25, %26 : vector<32x128xf32>
    %28 = arith.truncf %27 : vector<32x128xf32> to vector<32x128xbf16>
    %c0_13 = arith.constant 0 : index
    %c0_14 = arith.constant 0 : index
    %29 = vector.load %arg5[%c0_13, %c0_14] : memref<32x128xbf16, #tpu.memory_space<vmem>>, vector<32x128xbf16>
    tpu.vector_store %arg5[%c0_13, %c0_14], %28 {strides = array<i32>} : memref<32x128xbf16, #tpu.memory_space<vmem>>, vector<32x128xbf16>,
    return
  }
  func.func @transform_0(%arg0: i32) -> (i32, i32) {
    %c0_i32 = arith.constant 0 : i32
    %c0_i32_0 = arith.constant 0 : i32
    %c0_i32_1 = arith.constant 0 : i32
    return %c0_i32, %c0_i32_0 : i32, i32
  }
  func.func @transform_1(%arg0: i32) -> (i32, i32) {
    %c0_i32 = arith.constant 0 : i32
    %c0_i32_0 = arith.constant 0 : i32
    return %c0_i32, %arg0 : i32, i32
  }
  func.func @transform_2(%arg0: i32) -> (i32, i32) {
    %c0_i32 = arith.constant 0 : i32
    %c0_i32_0 = arith.constant 0 : i32
    return %c0_i32, %arg0 : i32, i32
  }
  func.func @transform_3(%arg0: i32) -> (i32, i32) {
    %c0_i32 = arith.constant 0 : i32
    %c0_i32_0 = arith.constant 0 : i32
    return %c0_i32, %arg0 : i32, i32
  }
  func.func @transform_4(%arg0: i32) -> (i32, i32) {
    %c0_i32 = arith.constant 0 : i32
    %c0_i32_0 = arith.constant 0 : i32
    return %c0_i32, %arg0 : i32, i32
  }
}

module attributes {stable_mosaic.version = 11 : i64} {
  func.func @_conv_bn_kernel(%arg0: i32, %arg1: memref<8x128xbf16, #tpu.memory_space<vmem>>, %arg2: memref<128x128xbf16, #tpu.memory_space<vmem>>, %arg3: memref<1x128xf32, #tpu.memory_space<vmem>>, %arg4: memref<1x128xf32, #tpu.memory_space<vmem>>, %arg5: memref<8x128xbf16, #tpu.memory_space<vmem>>) attributes {dimension_semantics = [#tpu.dimension_semantics<parallel>], iteration_bounds = array<i64: 1>, scalar_prefetch = 0 : i64, scratch_operands = 0 : i64, tpu.core_type = #tpu.core_type<tc>, window_params = [{pipeline_mode = #tpu.pipeline_mode<synchronous>, transform_indices = @transform_0, window_bounds = array<i64: 8, 128>}, {transform_indices = @transform_1, window_bounds = array<i64: 128, 128>}, {transform_indices = @transform_2, window_bounds = array<i64: 1, 128>}, {transform_indices = @transform_3, window_bounds = array<i64: 1, 128>}, {transform_indices = @transform_4, window_bounds = array<i64: 8, 128>}]} {
    %c0 = arith.constant 0 : index
    %c0_0 = arith.constant 0 : index
    %0 = vector.load %arg1[%c0, %c0_0] : memref<8x128xbf16, #tpu.memory_space<vmem>>, vector<8x128xbf16>
    %c0_1 = arith.constant 0 : index
    %c0_2 = arith.constant 0 : index
    %1 = vector.load %arg2[%c0_1, %c0_2] : memref<128x128xbf16, #tpu.memory_space<vmem>>, vector<128x128xbf16>
    %cst = arith.constant dense<0.000000e+00> : vector<8x128xf32>
    %2 = tpu.matmul %0, %1, %cst {dimension_numbers = #tpu.dot_dimension_numbers<[1], [0], [0], [1], [0, 0, 1, 1], [], []>} : vector<8x128xbf16>, vector<128x128xbf16>, vector<8x128xf32> -> vector<8x128xf32>
    %cst_3 = arith.constant dense<0.000000e+00> : vector<128xf32>
    %3 = vector.multi_reduction <add>, %2, %cst_3 [0] : vector<8x128xf32> to vector<128xf32>
    %4 = vector.shape_cast %3 : vector<128xf32> to vector<1x128xf32>
    %cst_4 = arith.constant 1.250000e-01 : f32
    %5 = vector.broadcast %cst_4 : f32 to vector<1x128xf32>
    %6 = arith.mulf %4, %5 : vector<1x128xf32>
    %7 = vector.broadcast %6 : vector<1x128xf32> to vector<8x128xf32>
    %8 = arith.subf %2, %7 : vector<8x128xf32>
    %9 = arith.mulf %8, %8 : vector<8x128xf32>
    %cst_5 = arith.constant dense<0.000000e+00> : vector<128xf32>
    %10 = vector.multi_reduction <add>, %9, %cst_5 [0] : vector<8x128xf32> to vector<128xf32>
    %11 = vector.shape_cast %10 : vector<128xf32> to vector<1x128xf32>
    %cst_6 = arith.constant 1.250000e-01 : f32
    %12 = vector.broadcast %cst_6 : f32 to vector<1x128xf32>
    %13 = arith.mulf %11, %12 : vector<1x128xf32>
    %c0_7 = arith.constant 0 : index
    %c0_8 = arith.constant 0 : index
    %14 = vector.load %arg3[%c0_7, %c0_8] : memref<1x128xf32, #tpu.memory_space<vmem>>, vector<1x128xf32>
    %cst_9 = arith.constant 9.99999974E-6 : f32
    %15 = vector.broadcast %cst_9 : f32 to vector<1x128xf32>
    %16 = arith.addf %13, %15 : vector<1x128xf32>
    %17 = math.rsqrt %16 : vector<1x128xf32>
    %18 = arith.mulf %14, %17 : vector<1x128xf32>
    %c0_10 = arith.constant 0 : index
    %c0_11 = arith.constant 0 : index
    %19 = vector.load %arg4[%c0_10, %c0_11] : memref<1x128xf32, #tpu.memory_space<vmem>>, vector<1x128xf32>
    %20 = arith.mulf %6, %18 : vector<1x128xf32>
    %21 = arith.subf %19, %20 : vector<1x128xf32>
    %22 = vector.broadcast %18 : vector<1x128xf32> to vector<8x128xf32>
    %23 = arith.mulf %2, %22 : vector<8x128xf32>
    %24 = vector.broadcast %21 : vector<1x128xf32> to vector<8x128xf32>
    %25 = arith.addf %23, %24 : vector<8x128xf32>
    %cst_12 = arith.constant 0.000000e+00 : f32
    %26 = vector.broadcast %cst_12 : f32 to vector<8x128xf32>
    %27 = arith.maximumf %25, %26 : vector<8x128xf32>
    %28 = arith.truncf %27 : vector<8x128xf32> to vector<8x128xbf16>
    %c0_13 = arith.constant 0 : index
    %c0_14 = arith.constant 0 : index
    %29 = vector.load %arg5[%c0_13, %c0_14] : memref<8x128xbf16, #tpu.memory_space<vmem>>, vector<8x128xbf16>
    tpu.vector_store %arg5[%c0_13, %c0_14], %28 {strides = array<i32>} : memref<8x128xbf16, #tpu.memory_space<vmem>>, vector<8x128xbf16>,
    return
  }
  func.func @transform_0(%arg0: i32) -> (i32, i32) {
    %c0_i32 = arith.constant 0 : i32
    %c0_i32_0 = arith.constant 0 : i32
    %c0_i32_1 = arith.constant 0 : i32
    return %c0_i32, %c0_i32_0 : i32, i32
  }
  func.func @transform_1(%arg0: i32) -> (i32, i32) {
    %c0_i32 = arith.constant 0 : i32
    %c0_i32_0 = arith.constant 0 : i32
    return %c0_i32, %arg0 : i32, i32
  }
  func.func @transform_2(%arg0: i32) -> (i32, i32) {
    %c0_i32 = arith.constant 0 : i32
    %c0_i32_0 = arith.constant 0 : i32
    return %c0_i32, %arg0 : i32, i32
  }
  func.func @transform_3(%arg0: i32) -> (i32, i32) {
    %c0_i32 = arith.constant 0 : i32
    %c0_i32_0 = arith.constant 0 : i32
    return %c0_i32, %arg0 : i32, i32
  }
  func.func @transform_4(%arg0: i32) -> (i32, i32) {
    %c0_i32 = arith.constant 0 : i32
    %c0_i32_0 = arith.constant 0 : i32
    return %c0_i32, %arg0 : i32, i32
  }
}

module attributes {stable_mosaic.version = 11 : i64} {
  func.func @_conv_bn_kernel(%arg0: i32, %arg1: memref<8x1152xbf16, #tpu.memory_space<vmem>>, %arg2: memref<1152x128xbf16, #tpu.memory_space<vmem>>, %arg3: memref<1x128xf32, #tpu.memory_space<vmem>>, %arg4: memref<1x128xf32, #tpu.memory_space<vmem>>, %arg5: memref<8x128xbf16, #tpu.memory_space<vmem>>) attributes {dimension_semantics = [#tpu.dimension_semantics<parallel>], iteration_bounds = array<i64: 1>, scalar_prefetch = 0 : i64, scratch_operands = 0 : i64, tpu.core_type = #tpu.core_type<tc>, window_params = [{pipeline_mode = #tpu.pipeline_mode<synchronous>, transform_indices = @transform_0, window_bounds = array<i64: 8, 1152>}, {transform_indices = @transform_1, window_bounds = array<i64: 1152, 128>}, {transform_indices = @transform_2, window_bounds = array<i64: 1, 128>}, {transform_indices = @transform_3, window_bounds = array<i64: 1, 128>}, {transform_indices = @transform_4, window_bounds = array<i64: 8, 128>}]} {
    %c0 = arith.constant 0 : index
    %c0_0 = arith.constant 0 : index
    %0 = vector.load %arg1[%c0, %c0_0] : memref<8x1152xbf16, #tpu.memory_space<vmem>>, vector<8x1152xbf16>
    %c0_1 = arith.constant 0 : index
    %c0_2 = arith.constant 0 : index
    %1 = vector.load %arg2[%c0_1, %c0_2] : memref<1152x128xbf16, #tpu.memory_space<vmem>>, vector<1152x128xbf16>
    %cst = arith.constant dense<0.000000e+00> : vector<8x128xf32>
    %2 = tpu.matmul %0, %1, %cst {dimension_numbers = #tpu.dot_dimension_numbers<[1], [0], [0], [1], [0, 0, 1, 1], [], []>} : vector<8x1152xbf16>, vector<1152x128xbf16>, vector<8x128xf32> -> vector<8x128xf32>
    %cst_3 = arith.constant dense<0.000000e+00> : vector<128xf32>
    %3 = vector.multi_reduction <add>, %2, %cst_3 [0] : vector<8x128xf32> to vector<128xf32>
    %4 = vector.shape_cast %3 : vector<128xf32> to vector<1x128xf32>
    %cst_4 = arith.constant 1.250000e-01 : f32
    %5 = vector.broadcast %cst_4 : f32 to vector<1x128xf32>
    %6 = arith.mulf %4, %5 : vector<1x128xf32>
    %7 = vector.broadcast %6 : vector<1x128xf32> to vector<8x128xf32>
    %8 = arith.subf %2, %7 : vector<8x128xf32>
    %9 = arith.mulf %8, %8 : vector<8x128xf32>
    %cst_5 = arith.constant dense<0.000000e+00> : vector<128xf32>
    %10 = vector.multi_reduction <add>, %9, %cst_5 [0] : vector<8x128xf32> to vector<128xf32>
    %11 = vector.shape_cast %10 : vector<128xf32> to vector<1x128xf32>
    %cst_6 = arith.constant 1.250000e-01 : f32
    %12 = vector.broadcast %cst_6 : f32 to vector<1x128xf32>
    %13 = arith.mulf %11, %12 : vector<1x128xf32>
    %c0_7 = arith.constant 0 : index
    %c0_8 = arith.constant 0 : index
    %14 = vector.load %arg3[%c0_7, %c0_8] : memref<1x128xf32, #tpu.memory_space<vmem>>, vector<1x128xf32>
    %cst_9 = arith.constant 9.99999974E-6 : f32
    %15 = vector.broadcast %cst_9 : f32 to vector<1x128xf32>
    %16 = arith.addf %13, %15 : vector<1x128xf32>
    %17 = math.rsqrt %16 : vector<1x128xf32>
    %18 = arith.mulf %14, %17 : vector<1x128xf32>
    %c0_10 = arith.constant 0 : index
    %c0_11 = arith.constant 0 : index
    %19 = vector.load %arg4[%c0_10, %c0_11] : memref<1x128xf32, #tpu.memory_space<vmem>>, vector<1x128xf32>
    %20 = arith.mulf %6, %18 : vector<1x128xf32>
    %21 = arith.subf %19, %20 : vector<1x128xf32>
    %22 = vector.broadcast %18 : vector<1x128xf32> to vector<8x128xf32>
    %23 = arith.mulf %2, %22 : vector<8x128xf32>
    %24 = vector.broadcast %21 : vector<1x128xf32> to vector<8x128xf32>
    %25 = arith.addf %23, %24 : vector<8x128xf32>
    %cst_12 = arith.constant 0.000000e+00 : f32
    %26 = vector.broadcast %cst_12 : f32 to vector<8x128xf32>
    %27 = arith.maximumf %25, %26 : vector<8x128xf32>
    %28 = arith.truncf %27 : vector<8x128xf32> to vector<8x128xbf16>
    %c0_13 = arith.constant 0 : index
    %c0_14 = arith.constant 0 : index
    %29 = vector.load %arg5[%c0_13, %c0_14] : memref<8x128xbf16, #tpu.memory_space<vmem>>, vector<8x128xbf16>
    tpu.vector_store %arg5[%c0_13, %c0_14], %28 {strides = array<i32>} : memref<8x128xbf16, #tpu.memory_space<vmem>>, vector<8x128xbf16>,
    return
  }
  func.func @transform_0(%arg0: i32) -> (i32, i32) {
    %c0_i32 = arith.constant 0 : i32
    %c0_i32_0 = arith.constant 0 : i32
    %c0_i32_1 = arith.constant 0 : i32
    return %c0_i32, %c0_i32_0 : i32, i32
  }
  func.func @transform_1(%arg0: i32) -> (i32, i32) {
    %c0_i32 = arith.constant 0 : i32
    %c0_i32_0 = arith.constant 0 : i32
    return %c0_i32, %arg0 : i32, i32
  }
  func.func @transform_2(%arg0: i32) -> (i32, i32) {
    %c0_i32 = arith.constant 0 : i32
    %c0_i32_0 = arith.constant 0 : i32
    return %c0_i32, %arg0 : i32, i32
  }
  func.func @transform_3(%arg0: i32) -> (i32, i32) {
    %c0_i32 = arith.constant 0 : i32
    %c0_i32_0 = arith.constant 0 : i32
    return %c0_i32, %arg0 : i32, i32
  }
  func.func @transform_4(%arg0: i32) -> (i32, i32) {
    %c0_i32 = arith.constant 0 : i32
    %c0_i32_0 = arith.constant 0 : i32
    return %c0_i32, %arg0 : i32, i32
  }
}

module attributes {stable_mosaic.version = 11 : i64} {
  func.func @_conv_bn_kernel(%arg0: i32, %arg1: memref<8x128xbf16, #tpu.memory_space<vmem>>, %arg2: memref<128x128xbf16, #tpu.memory_space<vmem>>, %arg3: memref<1x128xf32, #tpu.memory_space<vmem>>, %arg4: memref<1x128xf32, #tpu.memory_space<vmem>>, %arg5: memref<8x128xbf16, #tpu.memory_space<vmem>>, %arg6: memref<8x128xbf16, #tpu.memory_space<vmem>>) attributes {dimension_semantics = [#tpu.dimension_semantics<parallel>], iteration_bounds = array<i64: 1>, scalar_prefetch = 0 : i64, scratch_operands = 0 : i64, tpu.core_type = #tpu.core_type<tc>, window_params = [{pipeline_mode = #tpu.pipeline_mode<synchronous>, transform_indices = @transform_0, window_bounds = array<i64: 8, 128>}, {transform_indices = @transform_1, window_bounds = array<i64: 128, 128>}, {transform_indices = @transform_2, window_bounds = array<i64: 1, 128>}, {transform_indices = @transform_3, window_bounds = array<i64: 1, 128>}, {transform_indices = @transform_4, window_bounds = array<i64: 8, 128>}, {transform_indices = @transform_5, window_bounds = array<i64: 8, 128>}]} {
    %c0 = arith.constant 0 : index
    %c0_0 = arith.constant 0 : index
    %0 = vector.load %arg1[%c0, %c0_0] : memref<8x128xbf16, #tpu.memory_space<vmem>>, vector<8x128xbf16>
    %c0_1 = arith.constant 0 : index
    %c0_2 = arith.constant 0 : index
    %1 = vector.load %arg2[%c0_1, %c0_2] : memref<128x128xbf16, #tpu.memory_space<vmem>>, vector<128x128xbf16>
    %cst = arith.constant dense<0.000000e+00> : vector<8x128xf32>
    %2 = tpu.matmul %0, %1, %cst {dimension_numbers = #tpu.dot_dimension_numbers<[1], [0], [0], [1], [0, 0, 1, 1], [], []>} : vector<8x128xbf16>, vector<128x128xbf16>, vector<8x128xf32> -> vector<8x128xf32>
    %cst_3 = arith.constant dense<0.000000e+00> : vector<128xf32>
    %3 = vector.multi_reduction <add>, %2, %cst_3 [0] : vector<8x128xf32> to vector<128xf32>
    %4 = vector.shape_cast %3 : vector<128xf32> to vector<1x128xf32>
    %cst_4 = arith.constant 1.250000e-01 : f32
    %5 = vector.broadcast %cst_4 : f32 to vector<1x128xf32>
    %6 = arith.mulf %4, %5 : vector<1x128xf32>
    %7 = vector.broadcast %6 : vector<1x128xf32> to vector<8x128xf32>
    %8 = arith.subf %2, %7 : vector<8x128xf32>
    %9 = arith.mulf %8, %8 : vector<8x128xf32>
    %cst_5 = arith.constant dense<0.000000e+00> : vector<128xf32>
    %10 = vector.multi_reduction <add>, %9, %cst_5 [0] : vector<8x128xf32> to vector<128xf32>
    %11 = vector.shape_cast %10 : vector<128xf32> to vector<1x128xf32>
    %cst_6 = arith.constant 1.250000e-01 : f32
    %12 = vector.broadcast %cst_6 : f32 to vector<1x128xf32>
    %13 = arith.mulf %11, %12 : vector<1x128xf32>
    %c0_7 = arith.constant 0 : index
    %c0_8 = arith.constant 0 : index
    %14 = vector.load %arg3[%c0_7, %c0_8] : memref<1x128xf32, #tpu.memory_space<vmem>>, vector<1x128xf32>
    %cst_9 = arith.constant 9.99999974E-6 : f32
    %15 = vector.broadcast %cst_9 : f32 to vector<1x128xf32>
    %16 = arith.addf %13, %15 : vector<1x128xf32>
    %17 = math.rsqrt %16 : vector<1x128xf32>
    %18 = arith.mulf %14, %17 : vector<1x128xf32>
    %c0_10 = arith.constant 0 : index
    %c0_11 = arith.constant 0 : index
    %19 = vector.load %arg4[%c0_10, %c0_11] : memref<1x128xf32, #tpu.memory_space<vmem>>, vector<1x128xf32>
    %20 = arith.mulf %6, %18 : vector<1x128xf32>
    %21 = arith.subf %19, %20 : vector<1x128xf32>
    %22 = vector.broadcast %18 : vector<1x128xf32> to vector<8x128xf32>
    %23 = arith.mulf %2, %22 : vector<8x128xf32>
    %24 = vector.broadcast %21 : vector<1x128xf32> to vector<8x128xf32>
    %25 = arith.addf %23, %24 : vector<8x128xf32>
    %c0_12 = arith.constant 0 : index
    %c0_13 = arith.constant 0 : index
    %26 = vector.load %arg5[%c0_12, %c0_13] : memref<8x128xbf16, #tpu.memory_space<vmem>>, vector<8x128xbf16>
    %27 = arith.extf %26 : vector<8x128xbf16> to vector<8x128xf32>
    %28 = arith.addf %25, %27 : vector<8x128xf32>
    %cst_14 = arith.constant 0.000000e+00 : f32
    %29 = vector.broadcast %cst_14 : f32 to vector<8x128xf32>
    %30 = arith.maximumf %28, %29 : vector<8x128xf32>
    %31 = arith.truncf %30 : vector<8x128xf32> to vector<8x128xbf16>
    %c0_15 = arith.constant 0 : index
    %c0_16 = arith.constant 0 : index
    %32 = vector.load %arg6[%c0_15, %c0_16] : memref<8x128xbf16, #tpu.memory_space<vmem>>, vector<8x128xbf16>
    tpu.vector_store %arg6[%c0_15, %c0_16], %31 {strides = array<i32>} : memref<8x128xbf16, #tpu.memory_space<vmem>>, vector<8x128xbf16>,
    return
  }
  func.func @transform_0(%arg0: i32) -> (i32, i32) {
    %c0_i32 = arith.constant 0 : i32
    %c0_i32_0 = arith.constant 0 : i32
    %c0_i32_1 = arith.constant 0 : i32
    return %c0_i32, %c0_i32_0 : i32, i32
  }
  func.func @transform_1(%arg0: i32) -> (i32, i32) {
    %c0_i32 = arith.constant 0 : i32
    %c0_i32_0 = arith.constant 0 : i32
    return %c0_i32, %arg0 : i32, i32
  }
  func.func @transform_2(%arg0: i32) -> (i32, i32) {
    %c0_i32 = arith.constant 0 : i32
    %c0_i32_0 = arith.constant 0 : i32
    return %c0_i32, %arg0 : i32, i32
  }
  func.func @transform_3(%arg0: i32) -> (i32, i32) {
    %c0_i32 = arith.constant 0 : i32
    %c0_i32_0 = arith.constant 0 : i32
    return %c0_i32, %arg0 : i32, i32
  }
  func.func @transform_4(%arg0: i32) -> (i32, i32) {
    %c0_i32 = arith.constant 0 : i32
    %c0_i32_0 = arith.constant 0 : i32
    return %c0_i32, %arg0 : i32, i32
  }
  func.func @transform_5(%arg0: i32) -> (i32, i32) {
    %c0_i32 = arith.constant 0 : i32
    %c0_i32_0 = arith.constant 0 : i32
    return %c0_i32, %arg0 : i32, i32
  }
}

module attributes {stable_mosaic.version = 11 : i64} {
  func.func @_conv_bn_kernel(%arg0: i32, %arg1: memref<8x128xbf16, #tpu.memory_space<vmem>>, %arg2: memref<128x128xbf16, #tpu.memory_space<vmem>>, %arg3: memref<1x128xf32, #tpu.memory_space<vmem>>, %arg4: memref<1x128xf32, #tpu.memory_space<vmem>>, %arg5: memref<8x128xbf16, #tpu.memory_space<vmem>>) attributes {dimension_semantics = [#tpu.dimension_semantics<parallel>], iteration_bounds = array<i64: 1>, scalar_prefetch = 0 : i64, scratch_operands = 0 : i64, tpu.core_type = #tpu.core_type<tc>, window_params = [{pipeline_mode = #tpu.pipeline_mode<synchronous>, transform_indices = @transform_0, window_bounds = array<i64: 8, 128>}, {transform_indices = @transform_1, window_bounds = array<i64: 128, 128>}, {transform_indices = @transform_2, window_bounds = array<i64: 1, 128>}, {transform_indices = @transform_3, window_bounds = array<i64: 1, 128>}, {transform_indices = @transform_4, window_bounds = array<i64: 8, 128>}]} {
    %c0 = arith.constant 0 : index
    %c0_0 = arith.constant 0 : index
    %0 = vector.load %arg1[%c0, %c0_0] : memref<8x128xbf16, #tpu.memory_space<vmem>>, vector<8x128xbf16>
    %c0_1 = arith.constant 0 : index
    %c0_2 = arith.constant 0 : index
    %1 = vector.load %arg2[%c0_1, %c0_2] : memref<128x128xbf16, #tpu.memory_space<vmem>>, vector<128x128xbf16>
    %cst = arith.constant dense<0.000000e+00> : vector<8x128xf32>
    %2 = tpu.matmul %0, %1, %cst {dimension_numbers = #tpu.dot_dimension_numbers<[1], [0], [0], [1], [0, 0, 1, 1], [], []>} : vector<8x128xbf16>, vector<128x128xbf16>, vector<8x128xf32> -> vector<8x128xf32>
    %cst_3 = arith.constant dense<0.000000e+00> : vector<128xf32>
    %3 = vector.multi_reduction <add>, %2, %cst_3 [0] : vector<8x128xf32> to vector<128xf32>
    %4 = vector.shape_cast %3 : vector<128xf32> to vector<1x128xf32>
    %cst_4 = arith.constant 1.250000e-01 : f32
    %5 = vector.broadcast %cst_4 : f32 to vector<1x128xf32>
    %6 = arith.mulf %4, %5 : vector<1x128xf32>
    %7 = vector.broadcast %6 : vector<1x128xf32> to vector<8x128xf32>
    %8 = arith.subf %2, %7 : vector<8x128xf32>
    %9 = arith.mulf %8, %8 : vector<8x128xf32>
    %cst_5 = arith.constant dense<0.000000e+00> : vector<128xf32>
    %10 = vector.multi_reduction <add>, %9, %cst_5 [0] : vector<8x128xf32> to vector<128xf32>
    %11 = vector.shape_cast %10 : vector<128xf32> to vector<1x128xf32>
    %cst_6 = arith.constant 1.250000e-01 : f32
    %12 = vector.broadcast %cst_6 : f32 to vector<1x128xf32>
    %13 = arith.mulf %11, %12 : vector<1x128xf32>
    %c0_7 = arith.constant 0 : index
    %c0_8 = arith.constant 0 : index
    %14 = vector.load %arg3[%c0_7, %c0_8] : memref<1x128xf32, #tpu.memory_space<vmem>>, vector<1x128xf32>
    %cst_9 = arith.constant 9.99999974E-6 : f32
    %15 = vector.broadcast %cst_9 : f32 to vector<1x128xf32>
    %16 = arith.addf %13, %15 : vector<1x128xf32>
    %17 = math.rsqrt %16 : vector<1x128xf32>
    %18 = arith.mulf %14, %17 : vector<1x128xf32>
    %c0_10 = arith.constant 0 : index
    %c0_11 = arith.constant 0 : index
    %19 = vector.load %arg4[%c0_10, %c0_11] : memref<1x128xf32, #tpu.memory_space<vmem>>, vector<1x128xf32>
    %20 = arith.mulf %6, %18 : vector<1x128xf32>
    %21 = arith.subf %19, %20 : vector<1x128xf32>
    %22 = vector.broadcast %18 : vector<1x128xf32> to vector<8x128xf32>
    %23 = arith.mulf %2, %22 : vector<8x128xf32>
    %24 = vector.broadcast %21 : vector<1x128xf32> to vector<8x128xf32>
    %25 = arith.addf %23, %24 : vector<8x128xf32>
    %26 = arith.truncf %25 : vector<8x128xf32> to vector<8x128xbf16>
    %c0_12 = arith.constant 0 : index
    %c0_13 = arith.constant 0 : index
    %27 = vector.load %arg5[%c0_12, %c0_13] : memref<8x128xbf16, #tpu.memory_space<vmem>>, vector<8x128xbf16>
    tpu.vector_store %arg5[%c0_12, %c0_13], %26 {strides = array<i32>} : memref<8x128xbf16, #tpu.memory_space<vmem>>, vector<8x128xbf16>,
    return
  }
  func.func @transform_0(%arg0: i32) -> (i32, i32) {
    %c0_i32 = arith.constant 0 : i32
    %c0_i32_0 = arith.constant 0 : i32
    %c0_i32_1 = arith.constant 0 : i32
    return %c0_i32, %c0_i32_0 : i32, i32
  }
  func.func @transform_1(%arg0: i32) -> (i32, i32) {
    %c0_i32 = arith.constant 0 : i32
    %c0_i32_0 = arith.constant 0 : i32
    return %c0_i32, %arg0 : i32, i32
  }
  func.func @transform_2(%arg0: i32) -> (i32, i32) {
    %c0_i32 = arith.constant 0 : i32
    %c0_i32_0 = arith.constant 0 : i32
    return %c0_i32, %arg0 : i32, i32
  }
  func.func @transform_3(%arg0: i32) -> (i32, i32) {
    %c0_i32 = arith.constant 0 : i32
    %c0_i32_0 = arith.constant 0 : i32
    return %c0_i32, %arg0 : i32, i32
  }
  func.func @transform_4(%arg0: i32) -> (i32, i32) {
    %c0_i32 = arith.constant 0 : i32
    %c0_i32_0 = arith.constant 0 : i32
    return %c0_i32, %arg0 : i32, i32
  }
}

module attributes {stable_mosaic.version = 11 : i64} {
  func.func @_conv_bn_kernel(%arg0: i32, %arg1: memref<8x1152xbf16, #tpu.memory_space<vmem>>, %arg2: memref<1152x128xbf16, #tpu.memory_space<vmem>>, %arg3: memref<1x128xf32, #tpu.memory_space<vmem>>, %arg4: memref<1x128xf32, #tpu.memory_space<vmem>>, %arg5: memref<8x128xbf16, #tpu.memory_space<vmem>>) attributes {dimension_semantics = [#tpu.dimension_semantics<parallel>], iteration_bounds = array<i64: 1>, scalar_prefetch = 0 : i64, scratch_operands = 0 : i64, tpu.core_type = #tpu.core_type<tc>, window_params = [{pipeline_mode = #tpu.pipeline_mode<synchronous>, transform_indices = @transform_0, window_bounds = array<i64: 8, 1152>}, {transform_indices = @transform_1, window_bounds = array<i64: 1152, 128>}, {transform_indices = @transform_2, window_bounds = array<i64: 1, 128>}, {transform_indices = @transform_3, window_bounds = array<i64: 1, 128>}, {transform_indices = @transform_4, window_bounds = array<i64: 8, 128>}]} {
    %c0 = arith.constant 0 : index
    %c0_0 = arith.constant 0 : index
    %0 = vector.load %arg1[%c0, %c0_0] : memref<8x1152xbf16, #tpu.memory_space<vmem>>, vector<8x1152xbf16>
    %c0_1 = arith.constant 0 : index
    %c0_2 = arith.constant 0 : index
    %1 = vector.load %arg2[%c0_1, %c0_2] : memref<1152x128xbf16, #tpu.memory_space<vmem>>, vector<1152x128xbf16>
    %cst = arith.constant dense<0.000000e+00> : vector<8x128xf32>
    %2 = tpu.matmul %0, %1, %cst {dimension_numbers = #tpu.dot_dimension_numbers<[1], [0], [0], [1], [0, 0, 1, 1], [], []>} : vector<8x1152xbf16>, vector<1152x128xbf16>, vector<8x128xf32> -> vector<8x128xf32>
    %3 = tpu.iota {dimensions = array<i32: 0>} : vector<8x128xi32>
    %c2_i32 = arith.constant 2 : i32
    %4 = vector.broadcast %c2_i32 : i32 to vector<8x128xi32>
    %5 = arith.cmpi slt, %3, %4 : vector<8x128xi32>
    %6 = arith.extui %5 : vector<8x128xi1> to vector<8x128xi32>
    %7 = arith.sitofp %6 : vector<8x128xi32> to vector<8x128xf32>
    %8 = arith.mulf %2, %7 : vector<8x128xf32>
    %cst_3 = arith.constant dense<0.000000e+00> : vector<128xf32>
    %9 = vector.multi_reduction <add>, %8, %cst_3 [0] : vector<8x128xf32> to vector<128xf32>
    %10 = vector.shape_cast %9 : vector<128xf32> to vector<1x128xf32>
    %cst_4 = arith.constant 5.000000e-01 : f32
    %11 = vector.broadcast %cst_4 : f32 to vector<1x128xf32>
    %12 = arith.mulf %10, %11 : vector<1x128xf32>
    %13 = vector.broadcast %12 : vector<1x128xf32> to vector<8x128xf32>
    %14 = arith.subf %2, %13 : vector<8x128xf32>
    %15 = arith.mulf %14, %14 : vector<8x128xf32>
    %16 = arith.mulf %15, %7 : vector<8x128xf32>
    %cst_5 = arith.constant dense<0.000000e+00> : vector<128xf32>
    %17 = vector.multi_reduction <add>, %16, %cst_5 [0] : vector<8x128xf32> to vector<128xf32>
    %18 = vector.shape_cast %17 : vector<128xf32> to vector<1x128xf32>
    %cst_6 = arith.constant 5.000000e-01 : f32
    %19 = vector.broadcast %cst_6 : f32 to vector<1x128xf32>
    %20 = arith.mulf %18, %19 : vector<1x128xf32>
    %c0_7 = arith.constant 0 : index
    %c0_8 = arith.constant 0 : index
    %21 = vector.load %arg3[%c0_7, %c0_8] : memref<1x128xf32, #tpu.memory_space<vmem>>, vector<1x128xf32>
    %cst_9 = arith.constant 9.99999974E-6 : f32
    %22 = vector.broadcast %cst_9 : f32 to vector<1x128xf32>
    %23 = arith.addf %20, %22 : vector<1x128xf32>
    %24 = math.rsqrt %23 : vector<1x128xf32>
    %25 = arith.mulf %21, %24 : vector<1x128xf32>
    %c0_10 = arith.constant 0 : index
    %c0_11 = arith.constant 0 : index
    %26 = vector.load %arg4[%c0_10, %c0_11] : memref<1x128xf32, #tpu.memory_space<vmem>>, vector<1x128xf32>
    %27 = arith.mulf %12, %25 : vector<1x128xf32>
    %28 = arith.subf %26, %27 : vector<1x128xf32>
    %29 = vector.broadcast %25 : vector<1x128xf32> to vector<8x128xf32>
    %30 = arith.mulf %2, %29 : vector<8x128xf32>
    %31 = vector.broadcast %28 : vector<1x128xf32> to vector<8x128xf32>
    %32 = arith.addf %30, %31 : vector<8x128xf32>
    %cst_12 = arith.constant 0.000000e+00 : f32
    %33 = vector.broadcast %cst_12 : f32 to vector<8x128xf32>
    %34 = arith.maximumf %32, %33 : vector<8x128xf32>
    %35 = arith.truncf %34 : vector<8x128xf32> to vector<8x128xbf16>
    %c0_13 = arith.constant 0 : index
    %c0_14 = arith.constant 0 : index
    %36 = vector.load %arg5[%c0_13, %c0_14] : memref<8x128xbf16, #tpu.memory_space<vmem>>, vector<8x128xbf16>
    tpu.vector_store %arg5[%c0_13, %c0_14], %35 {strides = array<i32>} : memref<8x128xbf16, #tpu.memory_space<vmem>>, vector<8x128xbf16>,
    return
  }
  func.func @transform_0(%arg0: i32) -> (i32, i32) {
    %c0_i32 = arith.constant 0 : i32
    %c0_i32_0 = arith.constant 0 : i32
    %c0_i32_1 = arith.constant 0 : i32
    return %c0_i32, %c0_i32_0 : i32, i32
  }
  func.func @transform_1(%arg0: i32) -> (i32, i32) {
    %c0_i32 = arith.constant 0 : i32
    %c0_i32_0 = arith.constant 0 : i32
    return %c0_i32, %arg0 : i32, i32
  }
  func.func @transform_2(%arg0: i32) -> (i32, i32) {
    %c0_i32 = arith.constant 0 : i32
    %c0_i32_0 = arith.constant 0 : i32
    return %c0_i32, %arg0 : i32, i32
  }
  func.func @transform_3(%arg0: i32) -> (i32, i32) {
    %c0_i32 = arith.constant 0 : i32
    %c0_i32_0 = arith.constant 0 : i32
    return %c0_i32, %arg0 : i32, i32
  }
  func.func @transform_4(%arg0: i32) -> (i32, i32) {
    %c0_i32 = arith.constant 0 : i32
    %c0_i32_0 = arith.constant 0 : i32
    return %c0_i32, %arg0 : i32, i32
  }
}

module attributes {stable_mosaic.version = 11 : i64} {
  func.func @_conv_bn_kernel(%arg0: i32, %arg1: memref<8x128xbf16, #tpu.memory_space<vmem>>, %arg2: memref<128x128xbf16, #tpu.memory_space<vmem>>, %arg3: memref<1x128xf32, #tpu.memory_space<vmem>>, %arg4: memref<1x128xf32, #tpu.memory_space<vmem>>, %arg5: memref<8x128xbf16, #tpu.memory_space<vmem>>) attributes {dimension_semantics = [#tpu.dimension_semantics<parallel>], iteration_bounds = array<i64: 2>, scalar_prefetch = 0 : i64, scratch_operands = 0 : i64, tpu.core_type = #tpu.core_type<tc>, window_params = [{pipeline_mode = #tpu.pipeline_mode<synchronous>, transform_indices = @transform_0, window_bounds = array<i64: 8, 128>}, {transform_indices = @transform_1, window_bounds = array<i64: 128, 128>}, {transform_indices = @transform_2, window_bounds = array<i64: 1, 128>}, {transform_indices = @transform_3, window_bounds = array<i64: 1, 128>}, {transform_indices = @transform_4, window_bounds = array<i64: 8, 128>}]} {
    %c0 = arith.constant 0 : index
    %c0_0 = arith.constant 0 : index
    %0 = vector.load %arg1[%c0, %c0_0] : memref<8x128xbf16, #tpu.memory_space<vmem>>, vector<8x128xbf16>
    %c0_1 = arith.constant 0 : index
    %c0_2 = arith.constant 0 : index
    %1 = vector.load %arg2[%c0_1, %c0_2] : memref<128x128xbf16, #tpu.memory_space<vmem>>, vector<128x128xbf16>
    %cst = arith.constant dense<0.000000e+00> : vector<8x128xf32>
    %2 = tpu.matmul %0, %1, %cst {dimension_numbers = #tpu.dot_dimension_numbers<[1], [0], [0], [1], [0, 0, 1, 1], [], []>} : vector<8x128xbf16>, vector<128x128xbf16>, vector<8x128xf32> -> vector<8x128xf32>
    %3 = tpu.iota {dimensions = array<i32: 0>} : vector<8x128xi32>
    %c2_i32 = arith.constant 2 : i32
    %4 = vector.broadcast %c2_i32 : i32 to vector<8x128xi32>
    %5 = arith.cmpi slt, %3, %4 : vector<8x128xi32>
    %6 = arith.extui %5 : vector<8x128xi1> to vector<8x128xi32>
    %7 = arith.sitofp %6 : vector<8x128xi32> to vector<8x128xf32>
    %8 = arith.mulf %2, %7 : vector<8x128xf32>
    %cst_3 = arith.constant dense<0.000000e+00> : vector<128xf32>
    %9 = vector.multi_reduction <add>, %8, %cst_3 [0] : vector<8x128xf32> to vector<128xf32>
    %10 = vector.shape_cast %9 : vector<128xf32> to vector<1x128xf32>
    %cst_4 = arith.constant 5.000000e-01 : f32
    %11 = vector.broadcast %cst_4 : f32 to vector<1x128xf32>
    %12 = arith.mulf %10, %11 : vector<1x128xf32>
    %13 = vector.broadcast %12 : vector<1x128xf32> to vector<8x128xf32>
    %14 = arith.subf %2, %13 : vector<8x128xf32>
    %15 = arith.mulf %14, %14 : vector<8x128xf32>
    %16 = arith.mulf %15, %7 : vector<8x128xf32>
    %cst_5 = arith.constant dense<0.000000e+00> : vector<128xf32>
    %17 = vector.multi_reduction <add>, %16, %cst_5 [0] : vector<8x128xf32> to vector<128xf32>
    %18 = vector.shape_cast %17 : vector<128xf32> to vector<1x128xf32>
    %cst_6 = arith.constant 5.000000e-01 : f32
    %19 = vector.broadcast %cst_6 : f32 to vector<1x128xf32>
    %20 = arith.mulf %18, %19 : vector<1x128xf32>
    %c0_7 = arith.constant 0 : index
    %c0_8 = arith.constant 0 : index
    %21 = vector.load %arg3[%c0_7, %c0_8] : memref<1x128xf32, #tpu.memory_space<vmem>>, vector<1x128xf32>
    %cst_9 = arith.constant 9.99999974E-6 : f32
    %22 = vector.broadcast %cst_9 : f32 to vector<1x128xf32>
    %23 = arith.addf %20, %22 : vector<1x128xf32>
    %24 = math.rsqrt %23 : vector<1x128xf32>
    %25 = arith.mulf %21, %24 : vector<1x128xf32>
    %c0_10 = arith.constant 0 : index
    %c0_11 = arith.constant 0 : index
    %26 = vector.load %arg4[%c0_10, %c0_11] : memref<1x128xf32, #tpu.memory_space<vmem>>, vector<1x128xf32>
    %27 = arith.mulf %12, %25 : vector<1x128xf32>
    %28 = arith.subf %26, %27 : vector<1x128xf32>
    %29 = vector.broadcast %25 : vector<1x128xf32> to vector<8x128xf32>
    %30 = arith.mulf %2, %29 : vector<8x128xf32>
    %31 = vector.broadcast %28 : vector<1x128xf32> to vector<8x128xf32>
    %32 = arith.addf %30, %31 : vector<8x128xf32>
    %33 = arith.truncf %32 : vector<8x128xf32> to vector<8x128xbf16>
    %c0_12 = arith.constant 0 : index
    %c0_13 = arith.constant 0 : index
    %34 = vector.load %arg5[%c0_12, %c0_13] : memref<8x128xbf16, #tpu.memory_space<vmem>>, vector<8x128xbf16>
    tpu.vector_store %arg5[%c0_12, %c0_13], %33 {strides = array<i32>} : memref<8x128xbf16, #tpu.memory_space<vmem>>, vector<8x128xbf16>,
    return
  }
  func.func @transform_0(%arg0: i32) -> (i32, i32) {
    %c0_i32 = arith.constant 0 : i32
    %c0_i32_0 = arith.constant 0 : i32
    %c0_i32_1 = arith.constant 0 : i32
    return %c0_i32, %c0_i32_0 : i32, i32
  }
  func.func @transform_1(%arg0: i32) -> (i32, i32) {
    %c0_i32 = arith.constant 0 : i32
    %c0_i32_0 = arith.constant 0 : i32
    return %c0_i32, %arg0 : i32, i32
  }
  func.func @transform_2(%arg0: i32) -> (i32, i32) {
    %c0_i32 = arith.constant 0 : i32
    %c0_i32_0 = arith.constant 0 : i32
    return %c0_i32, %arg0 : i32, i32
  }
  func.func @transform_3(%arg0: i32) -> (i32, i32) {
    %c0_i32 = arith.constant 0 : i32
    %c0_i32_0 = arith.constant 0 : i32
    return %c0_i32, %arg0 : i32, i32
  }
  func.func @transform_4(%arg0: i32) -> (i32, i32) {
    %c0_i32 = arith.constant 0 : i32
    %c0_i32_0 = arith.constant 0 : i32
    return %c0_i32, %arg0 : i32, i32
  }
}

module attributes {stable_mosaic.version = 11 : i64} {
  func.func @_conv_bn_kernel(%arg0: i32, %arg1: memref<8x128xbf16, #tpu.memory_space<vmem>>, %arg2: memref<128x128xbf16, #tpu.memory_space<vmem>>, %arg3: memref<1x128xf32, #tpu.memory_space<vmem>>, %arg4: memref<1x128xf32, #tpu.memory_space<vmem>>, %arg5: memref<8x128xbf16, #tpu.memory_space<vmem>>, %arg6: memref<8x128xbf16, #tpu.memory_space<vmem>>) attributes {dimension_semantics = [#tpu.dimension_semantics<parallel>], iteration_bounds = array<i64: 2>, scalar_prefetch = 0 : i64, scratch_operands = 0 : i64, tpu.core_type = #tpu.core_type<tc>, window_params = [{pipeline_mode = #tpu.pipeline_mode<synchronous>, transform_indices = @transform_0, window_bounds = array<i64: 8, 128>}, {transform_indices = @transform_1, window_bounds = array<i64: 128, 128>}, {transform_indices = @transform_2, window_bounds = array<i64: 1, 128>}, {transform_indices = @transform_3, window_bounds = array<i64: 1, 128>}, {transform_indices = @transform_4, window_bounds = array<i64: 8, 128>}, {transform_indices = @transform_5, window_bounds = array<i64: 8, 128>}]} {
    %c0 = arith.constant 0 : index
    %c0_0 = arith.constant 0 : index
    %0 = vector.load %arg1[%c0, %c0_0] : memref<8x128xbf16, #tpu.memory_space<vmem>>, vector<8x128xbf16>
    %c0_1 = arith.constant 0 : index
    %c0_2 = arith.constant 0 : index
    %1 = vector.load %arg2[%c0_1, %c0_2] : memref<128x128xbf16, #tpu.memory_space<vmem>>, vector<128x128xbf16>
    %cst = arith.constant dense<0.000000e+00> : vector<8x128xf32>
    %2 = tpu.matmul %0, %1, %cst {dimension_numbers = #tpu.dot_dimension_numbers<[1], [0], [0], [1], [0, 0, 1, 1], [], []>} : vector<8x128xbf16>, vector<128x128xbf16>, vector<8x128xf32> -> vector<8x128xf32>
    %3 = tpu.iota {dimensions = array<i32: 0>} : vector<8x128xi32>
    %c2_i32 = arith.constant 2 : i32
    %4 = vector.broadcast %c2_i32 : i32 to vector<8x128xi32>
    %5 = arith.cmpi slt, %3, %4 : vector<8x128xi32>
    %6 = arith.extui %5 : vector<8x128xi1> to vector<8x128xi32>
    %7 = arith.sitofp %6 : vector<8x128xi32> to vector<8x128xf32>
    %8 = arith.mulf %2, %7 : vector<8x128xf32>
    %cst_3 = arith.constant dense<0.000000e+00> : vector<128xf32>
    %9 = vector.multi_reduction <add>, %8, %cst_3 [0] : vector<8x128xf32> to vector<128xf32>
    %10 = vector.shape_cast %9 : vector<128xf32> to vector<1x128xf32>
    %cst_4 = arith.constant 5.000000e-01 : f32
    %11 = vector.broadcast %cst_4 : f32 to vector<1x128xf32>
    %12 = arith.mulf %10, %11 : vector<1x128xf32>
    %13 = vector.broadcast %12 : vector<1x128xf32> to vector<8x128xf32>
    %14 = arith.subf %2, %13 : vector<8x128xf32>
    %15 = arith.mulf %14, %14 : vector<8x128xf32>
    %16 = arith.mulf %15, %7 : vector<8x128xf32>
    %cst_5 = arith.constant dense<0.000000e+00> : vector<128xf32>
    %17 = vector.multi_reduction <add>, %16, %cst_5 [0] : vector<8x128xf32> to vector<128xf32>
    %18 = vector.shape_cast %17 : vector<128xf32> to vector<1x128xf32>
    %cst_6 = arith.constant 5.000000e-01 : f32
    %19 = vector.broadcast %cst_6 : f32 to vector<1x128xf32>
    %20 = arith.mulf %18, %19 : vector<1x128xf32>
    %c0_7 = arith.constant 0 : index
    %c0_8 = arith.constant 0 : index
    %21 = vector.load %arg3[%c0_7, %c0_8] : memref<1x128xf32, #tpu.memory_space<vmem>>, vector<1x128xf32>
    %cst_9 = arith.constant 9.99999974E-6 : f32
    %22 = vector.broadcast %cst_9 : f32 to vector<1x128xf32>
    %23 = arith.addf %20, %22 : vector<1x128xf32>
    %24 = math.rsqrt %23 : vector<1x128xf32>
    %25 = arith.mulf %21, %24 : vector<1x128xf32>
    %c0_10 = arith.constant 0 : index
    %c0_11 = arith.constant 0 : index
    %26 = vector.load %arg4[%c0_10, %c0_11] : memref<1x128xf32, #tpu.memory_space<vmem>>, vector<1x128xf32>
    %27 = arith.mulf %12, %25 : vector<1x128xf32>
    %28 = arith.subf %26, %27 : vector<1x128xf32>
    %29 = vector.broadcast %25 : vector<1x128xf32> to vector<8x128xf32>
    %30 = arith.mulf %2, %29 : vector<8x128xf32>
    %31 = vector.broadcast %28 : vector<1x128xf32> to vector<8x128xf32>
    %32 = arith.addf %30, %31 : vector<8x128xf32>
    %c0_12 = arith.constant 0 : index
    %c0_13 = arith.constant 0 : index
    %33 = vector.load %arg5[%c0_12, %c0_13] : memref<8x128xbf16, #tpu.memory_space<vmem>>, vector<8x128xbf16>
    %34 = arith.extf %33 : vector<8x128xbf16> to vector<8x128xf32>
    %35 = arith.addf %32, %34 : vector<8x128xf32>
    %cst_14 = arith.constant 0.000000e+00 : f32
    %36 = vector.broadcast %cst_14 : f32 to vector<8x128xf32>
    %37 = arith.maximumf %35, %36 : vector<8x128xf32>
    %38 = arith.truncf %37 : vector<8x128xf32> to vector<8x128xbf16>
    %c0_15 = arith.constant 0 : index
    %c0_16 = arith.constant 0 : index
    %39 = vector.load %arg6[%c0_15, %c0_16] : memref<8x128xbf16, #tpu.memory_space<vmem>>, vector<8x128xbf16>
    tpu.vector_store %arg6[%c0_15, %c0_16], %38 {strides = array<i32>} : memref<8x128xbf16, #tpu.memory_space<vmem>>, vector<8x128xbf16>,
    return
  }
  func.func @transform_0(%arg0: i32) -> (i32, i32) {
    %c0_i32 = arith.constant 0 : i32
    %c0_i32_0 = arith.constant 0 : i32
    %c0_i32_1 = arith.constant 0 : i32
    return %c0_i32, %c0_i32_0 : i32, i32
  }
  func.func @transform_1(%arg0: i32) -> (i32, i32) {
    %c0_i32 = arith.constant 0 : i32
    %c0_i32_0 = arith.constant 0 : i32
    return %c0_i32, %arg0 : i32, i32
  }
  func.func @transform_2(%arg0: i32) -> (i32, i32) {
    %c0_i32 = arith.constant 0 : i32
    %c0_i32_0 = arith.constant 0 : i32
    return %c0_i32, %arg0 : i32, i32
  }
  func.func @transform_3(%arg0: i32) -> (i32, i32) {
    %c0_i32 = arith.constant 0 : i32
    %c0_i32_0 = arith.constant 0 : i32
    return %c0_i32, %arg0 : i32, i32
  }
  func.func @transform_4(%arg0: i32) -> (i32, i32) {
    %c0_i32 = arith.constant 0 : i32
    %c0_i32_0 = arith.constant 0 : i32
    return %c0_i32, %arg0 : i32, i32
  }
  func.func @transform_5(%arg0: i32) -> (i32, i32) {
    %c0_i32 = arith.constant 0 : i32
    %c0_i32_0 = arith.constant 0 : i32
    return %c0_i32, %arg0 : i32, i32
  }
}

module attributes {stable_mosaic.version = 11 : i64} {
  func.func @_conv_bn_kernel(%arg0: i32, %arg1: memref<8x256xbf16, #tpu.memory_space<vmem>>, %arg2: memref<256x128xbf16, #tpu.memory_space<vmem>>, %arg3: memref<1x128xf32, #tpu.memory_space<vmem>>, %arg4: memref<1x128xf32, #tpu.memory_space<vmem>>, %arg5: memref<8x128xbf16, #tpu.memory_space<vmem>>) attributes {dimension_semantics = [#tpu.dimension_semantics<parallel>], iteration_bounds = array<i64: 1>, scalar_prefetch = 0 : i64, scratch_operands = 0 : i64, tpu.core_type = #tpu.core_type<tc>, window_params = [{pipeline_mode = #tpu.pipeline_mode<synchronous>, transform_indices = @transform_0, window_bounds = array<i64: 8, 256>}, {transform_indices = @transform_1, window_bounds = array<i64: 256, 128>}, {transform_indices = @transform_2, window_bounds = array<i64: 1, 128>}, {transform_indices = @transform_3, window_bounds = array<i64: 1, 128>}, {transform_indices = @transform_4, window_bounds = array<i64: 8, 128>}]} {
    %c0 = arith.constant 0 : index
    %c0_0 = arith.constant 0 : index
    %0 = vector.load %arg1[%c0, %c0_0] : memref<8x256xbf16, #tpu.memory_space<vmem>>, vector<8x256xbf16>
    %c0_1 = arith.constant 0 : index
    %c0_2 = arith.constant 0 : index
    %1 = vector.load %arg2[%c0_1, %c0_2] : memref<256x128xbf16, #tpu.memory_space<vmem>>, vector<256x128xbf16>
    %cst = arith.constant dense<0.000000e+00> : vector<8x128xf32>
    %2 = tpu.matmul %0, %1, %cst {dimension_numbers = #tpu.dot_dimension_numbers<[1], [0], [0], [1], [0, 0, 1, 1], [], []>} : vector<8x256xbf16>, vector<256x128xbf16>, vector<8x128xf32> -> vector<8x128xf32>
    %3 = tpu.iota {dimensions = array<i32: 0>} : vector<8x128xi32>
    %c2_i32 = arith.constant 2 : i32
    %4 = vector.broadcast %c2_i32 : i32 to vector<8x128xi32>
    %5 = arith.cmpi slt, %3, %4 : vector<8x128xi32>
    %6 = arith.extui %5 : vector<8x128xi1> to vector<8x128xi32>
    %7 = arith.sitofp %6 : vector<8x128xi32> to vector<8x128xf32>
    %8 = arith.mulf %2, %7 : vector<8x128xf32>
    %cst_3 = arith.constant dense<0.000000e+00> : vector<128xf32>
    %9 = vector.multi_reduction <add>, %8, %cst_3 [0] : vector<8x128xf32> to vector<128xf32>
    %10 = vector.shape_cast %9 : vector<128xf32> to vector<1x128xf32>
    %cst_4 = arith.constant 5.000000e-01 : f32
    %11 = vector.broadcast %cst_4 : f32 to vector<1x128xf32>
    %12 = arith.mulf %10, %11 : vector<1x128xf32>
    %13 = vector.broadcast %12 : vector<1x128xf32> to vector<8x128xf32>
    %14 = arith.subf %2, %13 : vector<8x128xf32>
    %15 = arith.mulf %14, %14 : vector<8x128xf32>
    %16 = arith.mulf %15, %7 : vector<8x128xf32>
    %cst_5 = arith.constant dense<0.000000e+00> : vector<128xf32>
    %17 = vector.multi_reduction <add>, %16, %cst_5 [0] : vector<8x128xf32> to vector<128xf32>
    %18 = vector.shape_cast %17 : vector<128xf32> to vector<1x128xf32>
    %cst_6 = arith.constant 5.000000e-01 : f32
    %19 = vector.broadcast %cst_6 : f32 to vector<1x128xf32>
    %20 = arith.mulf %18, %19 : vector<1x128xf32>
    %c0_7 = arith.constant 0 : index
    %c0_8 = arith.constant 0 : index
    %21 = vector.load %arg3[%c0_7, %c0_8] : memref<1x128xf32, #tpu.memory_space<vmem>>, vector<1x128xf32>
    %cst_9 = arith.constant 9.99999974E-6 : f32
    %22 = vector.broadcast %cst_9 : f32 to vector<1x128xf32>
    %23 = arith.addf %20, %22 : vector<1x128xf32>
    %24 = math.rsqrt %23 : vector<1x128xf32>
    %25 = arith.mulf %21, %24 : vector<1x128xf32>
    %c0_10 = arith.constant 0 : index
    %c0_11 = arith.constant 0 : index
    %26 = vector.load %arg4[%c0_10, %c0_11] : memref<1x128xf32, #tpu.memory_space<vmem>>, vector<1x128xf32>
    %27 = arith.mulf %12, %25 : vector<1x128xf32>
    %28 = arith.subf %26, %27 : vector<1x128xf32>
    %29 = vector.broadcast %25 : vector<1x128xf32> to vector<8x128xf32>
    %30 = arith.mulf %2, %29 : vector<8x128xf32>
    %31 = vector.broadcast %28 : vector<1x128xf32> to vector<8x128xf32>
    %32 = arith.addf %30, %31 : vector<8x128xf32>
    %cst_12 = arith.constant 0.000000e+00 : f32
    %33 = vector.broadcast %cst_12 : f32 to vector<8x128xf32>
    %34 = arith.maximumf %32, %33 : vector<8x128xf32>
    %35 = arith.truncf %34 : vector<8x128xf32> to vector<8x128xbf16>
    %c0_13 = arith.constant 0 : index
    %c0_14 = arith.constant 0 : index
    %36 = vector.load %arg5[%c0_13, %c0_14] : memref<8x128xbf16, #tpu.memory_space<vmem>>, vector<8x128xbf16>
    tpu.vector_store %arg5[%c0_13, %c0_14], %35 {strides = array<i32>} : memref<8x128xbf16, #tpu.memory_space<vmem>>, vector<8x128xbf16>,
    return
  }
  func.func @transform_0(%arg0: i32) -> (i32, i32) {
    %c0_i32 = arith.constant 0 : i32
    %c0_i32_0 = arith.constant 0 : i32
    %c0_i32_1 = arith.constant 0 : i32
    return %c0_i32, %c0_i32_0 : i32, i32
  }
  func.func @transform_1(%arg0: i32) -> (i32, i32) {
    %c0_i32 = arith.constant 0 : i32
    %c0_i32_0 = arith.constant 0 : i32
    return %c0_i32, %arg0 : i32, i32
  }
  func.func @transform_2(%arg0: i32) -> (i32, i32) {
    %c0_i32 = arith.constant 0 : i32
    %c0_i32_0 = arith.constant 0 : i32
    return %c0_i32, %arg0 : i32, i32
  }
  func.func @transform_3(%arg0: i32) -> (i32, i32) {
    %c0_i32 = arith.constant 0 : i32
    %c0_i32_0 = arith.constant 0 : i32
    return %c0_i32, %arg0 : i32, i32
  }
  func.func @transform_4(%arg0: i32) -> (i32, i32) {
    %c0_i32 = arith.constant 0 : i32
    %c0_i32_0 = arith.constant 0 : i32
    return %c0_i32, %arg0 : i32, i32
  }
}

module attributes {stable_mosaic.version = 11 : i64} {
  func.func @_loss_kernel(%arg0: memref<2x128xf32, #tpu.memory_space<vmem>>, %arg1: memref<2x128xf32, #tpu.memory_space<vmem>>, %arg2: memref<128x128xf32, #tpu.memory_space<vmem>>, %arg3: memref<2x1xi32, #tpu.memory_space<vmem>>, %arg4: memref<2x1xf32, #tpu.memory_space<vmem>>, %arg5: memref<1x1xf32, #tpu.memory_space<vmem>>) attributes {dimension_semantics = [], scalar_prefetch = 0 : i64, scratch_operands = 0 : i64, tpu.core_type = #tpu.core_type<tc>} {
    %c0 = arith.constant 0 : index
    %c0_0 = arith.constant 0 : index
    %0 = vector.load %arg0[%c0, %c0_0] : memref<2x128xf32, #tpu.memory_space<vmem>>, vector<2x128xf32>
    %c0_1 = arith.constant 0 : index
    %c0_2 = arith.constant 0 : index
    %1 = vector.load %arg1[%c0_1, %c0_2] : memref<2x128xf32, #tpu.memory_space<vmem>>, vector<2x128xf32>
    %c0_3 = arith.constant 0 : index
    %c0_4 = arith.constant 0 : index
    %2 = vector.load %arg3[%c0_3, %c0_4] : memref<2x1xi32, #tpu.memory_space<vmem>>, vector<2x1xi32>
    %3 = tpu.iota {dimensions = array<i32: 1>} : vector<2x128xi32>
    %c5_i32 = arith.constant 5 : i32
    %4 = vector.broadcast %c5_i32 : i32 to vector<2x128xi32>
    %5 = arith.cmpi slt, %3, %4 : vector<2x128xi32>
    %cst = arith.constant -1.000000e+30 : f32
    %6 = vector.broadcast %cst : f32 to vector<2x128xf32>
    %7 = arith.select %5, %1, %6 : vector<2x128xi1>, vector<2x128xf32>
    %cst_5 = arith.constant dense<0xFF800000> : vector<2xf32>
    %8 = vector.multi_reduction <maximumf>, %7, %cst_5 [1] : vector<2x128xf32> to vector<2xf32>
    %9 = vector.shape_cast %8 : vector<2xf32> to vector<2x1xf32>
    %10 = vector.broadcast %9 : vector<2x1xf32> to vector<2x128xf32>
    %11 = arith.subf %7, %10 : vector<2x128xf32>
    %12 = math.exp %11 : vector<2x128xf32>
    %cst_6 = arith.constant dense<0.000000e+00> : vector<2xf32>
    %13 = vector.multi_reduction <add>, %12, %cst_6 [1] : vector<2x128xf32> to vector<2xf32>
    %14 = vector.shape_cast %13 : vector<2xf32> to vector<2x1xf32>
    %15 = math.log %14 : vector<2x1xf32>
    %16 = arith.addf %15, %9 : vector<2x1xf32>
    %17 = vector.broadcast %2 : vector<2x1xi32> to vector<2x128xi32>
    %18 = arith.cmpi eq, %3, %17 : vector<2x128xi32>
    %19 = arith.extui %18 : vector<2x128xi1> to vector<2x128xi32>
    %20 = arith.sitofp %19 : vector<2x128xi32> to vector<2x128xf32>
    %21 = arith.mulf %1, %20 : vector<2x128xf32>
    %cst_7 = arith.constant dense<0.000000e+00> : vector<2xf32>
    %22 = vector.multi_reduction <add>, %21, %cst_7 [1] : vector<2x128xf32> to vector<2xf32>
    %23 = vector.shape_cast %22 : vector<2xf32> to vector<2x1xf32>
    %24 = arith.subf %16, %23 : vector<2x1xf32>
    %25 = vector.broadcast %14 : vector<2x1xf32> to vector<2x128xf32>
    %26 = arith.divf %12, %25 : vector<2x128xf32>
    %27 = arith.mulf %26, %20 : vector<2x128xf32>
    %cst_8 = arith.constant dense<0.000000e+00> : vector<2xf32>
    %28 = vector.multi_reduction <add>, %27, %cst_8 [1] : vector<2x128xf32> to vector<2xf32>
    %29 = vector.shape_cast %28 : vector<2xf32> to vector<2x1xf32>
    %c0_9 = arith.constant 0 : index
    %c0_10 = arith.constant 0 : index
    %30 = vector.load %arg2[%c0_9, %c0_10] : memref<128x128xf32, #tpu.memory_space<vmem>>, vector<128x128xf32>
    %31 = vector.shape_cast %1 : vector<2x128xf32> to vector<2x1x128xf32>
    %32 = vector.shape_cast %0 : vector<2x128xf32> to vector<2x128x1xf32>
    %33 = vector.shape_cast %30 : vector<128x128xf32> to vector<1x128x128xf32>
    %34 = vector.broadcast %32 : vector<2x128x1xf32> to vector<2x128x128xf32>
    %35 = vector.broadcast %33 : vector<1x128x128xf32> to vector<2x128x128xf32>
    %36 = arith.mulf %34, %35 : vector<2x128x128xf32>
    %37 = vector.broadcast %31 : vector<2x1x128xf32> to vector<2x128x128xf32>
    %38 = arith.subf %37, %36 : vector<2x128x128xf32>
    %39 = tpu.iota {dimensions = array<i32: 2>} : vector<2x128x128xi32>
    %c5_i32_11 = arith.constant 5 : i32
    %40 = vector.broadcast %c5_i32_11 : i32 to vector<2x128x128xi32>
    %41 = arith.cmpi slt, %39, %40 : vector<2x128x128xi32>
    %cst_12 = arith.constant -1.000000e+30 : f32
    %42 = vector.broadcast %cst_12 : f32 to vector<2x128x128xf32>
    %43 = arith.select %41, %38, %42 : vector<2x128x128xi1>, vector<2x128x128xf32>
    %cst_13 = arith.constant dense<0xFF800000> : vector<2x128xf32>
    %44 = vector.multi_reduction <maximumf>, %43, %cst_13 [2] : vector<2x128x128xf32> to vector<2x128xf32>
    %45 = vector.shape_cast %44 : vector<2x128xf32> to vector<2x128x1xf32>
    %46 = vector.broadcast %45 : vector<2x128x1xf32> to vector<2x128x128xf32>
    %47 = arith.subf %43, %46 : vector<2x128x128xf32>
    %48 = math.exp %47 : vector<2x128x128xf32>
    %cst_14 = arith.constant dense<0.000000e+00> : vector<2x128xf32>
    %49 = vector.multi_reduction <add>, %48, %cst_14 [2] : vector<2x128x128xf32> to vector<2x128xf32>
    %50 = vector.shape_cast %49 : vector<2x128xf32> to vector<2x128x1xf32>
    %51 = vector.broadcast %50 : vector<2x128x1xf32> to vector<2x128x128xf32>
    %52 = arith.divf %48, %51 : vector<2x128x128xf32>
    %53 = vector.shape_cast %2 : vector<2x1xi32> to vector<2x1x1xi32>
    %54 = vector.broadcast %53 : vector<2x1x1xi32> to vector<2x128x128xi32>
    %55 = arith.cmpi eq, %39, %54 : vector<2x128x128xi32>
    %56 = arith.extui %55 : vector<2x128x128xi1> to vector<2x128x128xi32>
    %57 = arith.sitofp %56 : vector<2x128x128xi32> to vector<2x128x128xf32>
    %58 = arith.mulf %52, %57 : vector<2x128x128xf32>
    %cst_15 = arith.constant dense<0.000000e+00> : vector<2x128xf32>
    %59 = vector.multi_reduction <add>, %58, %cst_15 [2] : vector<2x128x128xf32> to vector<2x128xf32>
    %60 = vector.broadcast %29 : vector<2x1xf32> to vector<2x128xf32>
    %61 = arith.subf %60, %59 : vector<2x128xf32>
    %cst_16 = arith.constant 1.000000e+00 : f32
    %62 = vector.broadcast %cst_16 : f32 to vector<2x128xf32>
    %63 = arith.addf %61, %62 : vector<2x128xf32>
    %cst_17 = arith.constant 1.000000e+00 : f32
    %64 = vector.broadcast %cst_17 : f32 to vector<2x128xf32>
    %65 = arith.maximumf %63, %64 : vector<2x128xf32>
    %66 = tpu.iota {dimensions = array<i32: 1>} : vector<2x128xi32>
    %c32_i32 = arith.constant 32 : i32
    %67 = vector.broadcast %c32_i32 : i32 to vector<2x128xi32>
    %68 = arith.cmpi slt, %66, %67 : vector<2x128xi32>
    %69 = arith.extui %68 : vector<2x128xi1> to vector<2x128xi32>
    %70 = arith.sitofp %69 : vector<2x128xi32> to vector<2x128xf32>
    %71 = math.log %65 : vector<2x128xf32>
    %72 = arith.mulf %71, %70 : vector<2x128xf32>
    %cst_18 = arith.constant dense<0.000000e+00> : vector<2xf32>
    %73 = vector.multi_reduction <add>, %72, %cst_18 [1] : vector<2x128xf32> to vector<2xf32>
    %74 = vector.shape_cast %73 : vector<2xf32> to vector<2x1xf32>
    %cst_19 = arith.constant 3.125000e-02 : f32
    %75 = vector.broadcast %cst_19 : f32 to vector<2x1xf32>
    %76 = arith.mulf %74, %75 : vector<2x1xf32>
    %cst_20 = arith.constant 0.000000e+00 : f32
    %77 = vector.broadcast %cst_20 : f32 to vector<2x1xf32>
    %78 = arith.subf %77, %76 : vector<2x1xf32>
    %cst_21 = arith.constant 5.000000e-02 : f32
    %79 = vector.broadcast %cst_21 : f32 to vector<2x1xf32>
    %80 = arith.mulf %79, %78 : vector<2x1xf32>
    %81 = arith.addf %24, %80 : vector<2x1xf32>
    %c0_22 = arith.constant 0 : index
    %c0_23 = arith.constant 0 : index
    %82 = vector.load %arg4[%c0_22, %c0_23] : memref<2x1xf32, #tpu.memory_space<vmem>>, vector<2x1xf32>
    %83 = arith.mulf %81, %82 : vector<2x1xf32>
    %84 = vector.shape_cast %83 : vector<2x1xf32> to vector<1x2x1xf32>
    %cst_24 = arith.constant dense<0.000000e+00> : vector<1xf32>
    %85 = vector.multi_reduction <add>, %84, %cst_24 [1, 2] : vector<1x2x1xf32> to vector<1xf32>
    %86 = vector.shape_cast %85 : vector<1xf32> to vector<1x1x1xf32>
    %87 = vector.extract %86[0, 0, 0] : f32 from vector<1x1x1xf32>
    %cst_25 = arith.constant 5.000000e-01 : f32
    %88 = arith.mulf %87, %cst_25 : f32
    %cst_26 = arith.constant dense<0.000000e+00> : vector<128xf32>
    %89 = vector.multi_reduction <add>, %0, %cst_26 [0] : vector<2x128xf32> to vector<128xf32>
    %90 = vector.shape_cast %89 : vector<128xf32> to vector<1x128xf32>
    %cst_27 = arith.constant 5.000000e-01 : f32
    %91 = vector.broadcast %cst_27 : f32 to vector<1x128xf32>
    %92 = arith.mulf %90, %91 : vector<1x128xf32>
    %93 = vector.broadcast %92 : vector<1x128xf32> to vector<2x128xf32>
    %94 = arith.subf %0, %93 : vector<2x128xf32>
    %cst_28 = arith.constant dense<0.000000e+00> : vector<128x128xf32>
    %95 = tpu.matmul %94, %94, %cst_28 {dimension_numbers = #tpu.dot_dimension_numbers<[0], [0], [1], [1], [0, 1, 1, 1], [], []>} : vector<2x128xf32>, vector<2x128xf32>, vector<128x128xf32> -> vector<128x128xf32>
    %cst_29 = arith.constant 1.000000e+00 : f32
    %96 = vector.broadcast %cst_29 : f32 to vector<128x128xf32>
    %97 = arith.mulf %95, %96 : vector<128x128xf32>
    %98 = tpu.iota {dimensions = array<i32: 0>} : vector<128x128xi32>
    %99 = tpu.iota {dimensions = array<i32: 1>} : vector<128x128xi32>
    %100 = arith.cmpi eq, %98, %99 : vector<128x128xi32>
    %cst_30 = arith.constant 0.000000e+00 : f32
    %101 = vector.broadcast %cst_30 : f32 to vector<128x128xf32>
    %102 = arith.select %100, %101, %97 : vector<128x128xi1>, vector<128x128xf32>
    %103 = arith.mulf %102, %102 : vector<128x128xf32>
    %104 = vector.shape_cast %103 : vector<128x128xf32> to vector<1x128x128xf32>
    %cst_31 = arith.constant dense<0.000000e+00> : vector<1xf32>
    %105 = vector.multi_reduction <add>, %104, %cst_31 [1, 2] : vector<1x128x128xf32> to vector<1xf32>
    %106 = vector.shape_cast %105 : vector<1xf32> to vector<1x1x1xf32>
    %107 = vector.extract %106[0, 0, 0] : f32 from vector<1x1x1xf32>
    %108 = math.sqrt %107 : f32
    %cst_32 = arith.constant 1.000000e-01 : f32
    %109 = arith.mulf %cst_32, %108 : f32
    %110 = arith.addf %88, %109 : f32
    %111 = vector.broadcast %110 : f32 to vector<1x1xf32>
    %c0_33 = arith.constant 0 : index
    %c0_34 = arith.constant 0 : index
    %112 = vector.load %arg5[%c0_33, %c0_34] : memref<1x1xf32, #tpu.memory_space<vmem>>, vector<1x1xf32>
    tpu.vector_store %arg5[%c0_33, %c0_34], %111 {strides = array<i32>} : memref<1x1xf32, #tpu.memory_space<vmem>>, vector<1x1xf32>,
    return
  }
}

module attributes {stable_mosaic.version = 11 : i64} {
  func.func @_head_kernel(%arg0: memref<2x1x256xbf16, #tpu.memory_space<vmem>>, %arg1: memref<256x128xf32, #tpu.memory_space<vmem>>, %arg2: memref<1x128xf32, #tpu.memory_space<vmem>>, %arg3: memref<128x128xf32, #tpu.memory_space<vmem>>, %arg4: memref<1x128xf32, #tpu.memory_space<vmem>>, %arg5: memref<2x128xf32, #tpu.memory_space<vmem>>, %arg6: memref<2x128xf32, #tpu.memory_space<vmem>>) attributes {dimension_semantics = [], scalar_prefetch = 0 : i64, scratch_operands = 0 : i64, tpu.core_type = #tpu.core_type<tc>} {
    %c0 = arith.constant 0 : index
    %c0_0 = arith.constant 0 : index
    %c0_1 = arith.constant 0 : index
    %0 = vector.load %arg0[%c0, %c0_0, %c0_1] : memref<2x1x256xbf16, #tpu.memory_space<vmem>>, vector<2x1x256xbf16>
    %1 = arith.extf %0 : vector<2x1x256xbf16> to vector<2x1x256xf32>
    %cst = arith.constant dense<0.000000e+00> : vector<2x256xf32>
    %2 = vector.multi_reduction <add>, %1, %cst [1] : vector<2x1x256xf32> to vector<2x256xf32>
    %cst_2 = arith.constant 1.000000e+00 : f32
    %3 = vector.broadcast %cst_2 : f32 to vector<2x256xf32>
    %4 = arith.divf %2, %3 : vector<2x256xf32>
    %c0_3 = arith.constant 0 : index
    %c0_4 = arith.constant 0 : index
    %5 = vector.load %arg1[%c0_3, %c0_4] : memref<256x128xf32, #tpu.memory_space<vmem>>, vector<256x128xf32>
    %cst_5 = arith.constant dense<0.000000e+00> : vector<2x128xf32>
    %6 = tpu.matmul %4, %5, %cst_5 {dimension_numbers = #tpu.dot_dimension_numbers<[1], [0], [0], [1], [0, 0, 1, 1], [], []>} : vector<2x256xf32>, vector<256x128xf32>, vector<2x128xf32> -> vector<2x128xf32>
    %c0_6 = arith.constant 0 : index
    %c0_7 = arith.constant 0 : index
    %7 = vector.load %arg2[%c0_6, %c0_7] : memref<1x128xf32, #tpu.memory_space<vmem>>, vector<1x128xf32>
    %8 = vector.broadcast %7 : vector<1x128xf32> to vector<2x128xf32>
    %9 = arith.addf %6, %8 : vector<2x128xf32>
    %10 = math.tanh %9 : vector<2x128xf32>
    %c0_8 = arith.constant 0 : index
    %c0_9 = arith.constant 0 : index
    %11 = vector.load %arg3[%c0_8, %c0_9] : memref<128x128xf32, #tpu.memory_space<vmem>>, vector<128x128xf32>
    %cst_10 = arith.constant dense<0.000000e+00> : vector<2x128xf32>
    %12 = tpu.matmul %10, %11, %cst_10 {dimension_numbers = #tpu.dot_dimension_numbers<[1], [0], [0], [1], [0, 0, 1, 1], [], []>} : vector<2x128xf32>, vector<128x128xf32>, vector<2x128xf32> -> vector<2x128xf32>
    %c0_11 = arith.constant 0 : index
    %c0_12 = arith.constant 0 : index
    %13 = vector.load %arg4[%c0_11, %c0_12] : memref<1x128xf32, #tpu.memory_space<vmem>>, vector<1x128xf32>
    %14 = vector.broadcast %13 : vector<1x128xf32> to vector<2x128xf32>
    %15 = arith.addf %12, %14 : vector<2x128xf32>
    %c0_13 = arith.constant 0 : index
    %c0_14 = arith.constant 0 : index
    %16 = vector.load %arg5[%c0_13, %c0_14] : memref<2x128xf32, #tpu.memory_space<vmem>>, vector<2x128xf32>
    tpu.vector_store %arg5[%c0_13, %c0_14], %10 {strides = array<i32>} : memref<2x128xf32, #tpu.memory_space<vmem>>, vector<2x128xf32>,
    %c0_15 = arith.constant 0 : index
    %c0_16 = arith.constant 0 : index
    %17 = vector.load %arg6[%c0_15, %c0_16] : memref<2x128xf32, #tpu.memory_space<vmem>>, vector<2x128xf32>
    tpu.vector_store %arg6[%c0_15, %c0_16], %15 {strides = array<i32>} : memref<2x128xf32, #tpu.memory_space<vmem>>, vector<2x128xf32>,
    return
  }
}

</mosaic_0001>

<bundles_post_ra>
// kernel: resnet_forward.57
= control target key start
LH: loop header
LB: loop body
LE: loop exit
PB: predicated region body
PF: predicated region fallthrough
CT: control target
= control target key end

     0   :  { %s885_s0 = inlined_call_operand.vmem [shape: bf16[128,128], index: 0, kind: input, shape index: {}]   ;;  %s886_s1 = inlined_call_operand.vmem [shape: bf16[128,128], index: 1, kind: input, shape index: {}]   ;;  %s887_s2 = inlined_call_operand.vmem [shape: bf16[128,128], index: 2, kind: input, shape index: {}]   ;;  %s888_s3 = inlined_call_operand.vmem [shape: bf16[128,128], index: 3, kind: input, shape index: {}]   ;;  %s889_s4 = inlined_call_operand.vmem [shape: bf16[128,128], index: 4, kind: input, shape index: {}]   ;;  %s890_s5 = inlined_call_operand.vmem [shape: bf16[128,128], index: 5, kind: input, shape index: {}]   ;;  %s891_s6 = inlined_call_operand.vmem [shape: bf16[128,128], index: 6, kind: input, shape index: {}]   ;;  %s892_s7 = inlined_call_operand.vmem [shape: bf16[128,128], index: 7, kind: input, shape index: {}]   ;;  %s893_s8 = inlined_call_operand.vmem [shape: bf16[128,128], index: 8, kind: input, shape index: {}]   ;;  %s894_s9 = inlined_call_operand.vmem [shape: bf16[128,128], index: 9, kind: output, shape index: {}]  }
   0x1   :  { %v32_v0 = vld [vmem:[%s885_s0] sm:$0xf]  ;;  %v33_v1 = vld [vmem:[%s885_s0 + $0x4] sm:$0xf]  ;;  %v34_v18 = vld [vmem:[%s885_s0 + $0x8] sm:$0xf] }
   0x2   :  { %v48_v2 = vld [vmem:[%s886_s1] sm:$0xf]  ;;  %v49_v3 = vld [vmem:[%s886_s1 + $0x4] sm:$0xf]  ;;  %v35_v19 = vld [vmem:[%s885_s0 + $0xc] sm:$0xf] }
   0x3   :  { %v64_v4 = vmax.bf16 %v48_v2, %v32_v0  ;;  %v80_v5 = vld [vmem:[%s887_s2] sm:$0xf]  ;;  %v81_v6 = vld [vmem:[%s887_s2 + $0x4] sm:$0xf]  ;;  %v65_v7 = vmax.bf16 %v49_v3, %v33_v1  ;;  %v50_v20 = vld [vmem:[%s886_s1 + $0x8] sm:$0xf] }
   0x4   :  { %v112_v8 = vld [vmem:[%s888_s3] sm:$0xf]  ;;  %v113_v10 = vld [vmem:[%s888_s3 + $0x4] sm:$0xf]  ;;  %v51_v22 = vld [vmem:[%s886_s1 + $0xc] sm:$0xf]  ;;  %v66_v23 = vmax.bf16 %v50_v20, %v34_v18 }
   0x5   :  { %v96_v9 = vmax.bf16 %v80_v5, %v64_v4  ;;  %v97_v11 = vmax.bf16 %v81_v6, %v65_v7  ;;  %v144_v12 = vld [vmem:[%s889_s4] sm:$0xf]  ;;  %v145_v14 = vld [vmem:[%s889_s4 + $0x4] sm:$0xf]  ;;  %v82_v24 = vld [vmem:[%s887_s2 + $0x8] sm:$0xf]  ;;  %v67_v28 = vmax.bf16 %v51_v22, %v35_v19 }
   0x6   :  { %v176_v15 = vld [vmem:[%s890_s5] sm:$0xf]  ;;  %v177_v16 = vld [vmem:[%s890_s5 + $0x4] sm:$0xf]  ;;  %v83_v25 = vld [vmem:[%s887_s2 + $0xc] sm:$0xf]  ;;  %v98_v33 = vmax.bf16 %v82_v24, %v66_v23 }
   0x7   :  { %v128_v13 = vmax.bf16 %v112_v8, %v96_v9  ;;  %v129_v17 = vmax.bf16 %v113_v10, %v97_v11  ;;  %v208_v27 = vld [vmem:[%s891_s6] sm:$0xf]  ;;  %v114_v29 = vld [vmem:[%s888_s3 + $0x8] sm:$0xf]  ;;  %v209_v31 = vld [vmem:[%s891_s6 + $0x4] sm:$0xf]  ;;  %v99_v38 = vmax.bf16 %v83_v25, %v67_v28 }
   0x8   :  { %v240_v32 = vld [vmem:[%s892_s7] sm:$0xf]  ;;  %v115_v34 = vld [vmem:[%s888_s3 + $0xc] sm:$0xf]  ;;  %v241_v36 = vld [vmem:[%s892_s7 + $0x4] sm:$0xf]  ;;  %v130_v42 = vmax.bf16 %v114_v29, %v98_v33 }
   0x9   :  { %v160_v21 = vmax.bf16 %v144_v12, %v128_v13  ;;  %v161_v26 = vmax.bf16 %v145_v14, %v129_v17  ;;  %v272_v37 = vld [vmem:[%s893_s8] sm:$0xf]  ;;  %v146_v39 = vld [vmem:[%s889_s4 + $0x8] sm:$0xf]  ;;  %v273_v41 = vld [vmem:[%s893_s8 + $0x4] sm:$0xf]  ;;  %v131_v47 = vmax.bf16 %v115_v34, %v99_v38 }
   0xa   :  { %v147_v43 = vld [vmem:[%s889_s4 + $0xc] sm:$0xf]  ;;  %v178_v44 = vld [vmem:[%s890_s5 + $0x8] sm:$0xf]  ;;  %v36_v48 = vld [vmem:[%s885_s0 + $0x10] sm:$0xf]  ;;  %v162_v52 = vmax.bf16 %v146_v39, %v130_v42 }
   0xb   :  { %v192_v30 = vmax.bf16 %v176_v15, %v160_v21  ;;  %v193_v35 = vmax.bf16 %v177_v16, %v161_v26  ;;  %v179_v45 = vld [vmem:[%s890_s5 + $0xc] sm:$0xf]  ;;  %v37_v49 = vld [vmem:[%s885_s0 + $0x14] sm:$0xf]  ;;  %v52_v50 = vld [vmem:[%s886_s1 + $0x10] sm:$0xf]  ;;  %v163_v58 = vmax.bf16 %v147_v43, %v131_v47 }
   0xc   :  { %v53_v53 = vld [vmem:[%s886_s1 + $0x14] sm:$0xf]  ;;  %v68_v54 = vmax.bf16 %v52_v50, %v36_v48  ;;  %v84_v55 = vld [vmem:[%s887_s2 + $0x10] sm:$0xf]  ;;  %v210_v59 = vld [vmem:[%s891_s6 + $0x8] sm:$0xf]  ;;  %v194_v63 = vmax.bf16 %v178_v44, %v162_v52 }
   0xd   :  { %v224_v40 = vmax.bf16 %v208_v27, %v192_v30  ;;  %v225_v46 = vmax.bf16 %v209_v31, %v193_v35  ;;  %v85_v56 = vld [vmem:[%s887_s2 + $0x14] sm:$0xf]  ;;  %v69_v60 = vmax.bf16 %v53_v53, %v37_v49  ;;  %v116_v61 = vld [vmem:[%s888_s3 + $0x10] sm:$0xf]  ;;  %v211_v0 = vld [vmem:[%s891_s6 + $0xc] sm:$0xf]  ;;  %v195_v5 = vmax.bf16 %v179_v45, %v163_v58 }
   0xe   :  { %v242_v1 = vld [vmem:[%s892_s7 + $0x8] sm:$0xf]  ;;  %v100_v2 = vmax.bf16 %v84_v55, %v68_v54  ;;  %v117_v3 = vld [vmem:[%s888_s3 + $0x14] sm:$0xf]  ;;  %v243_v6 = vld [vmem:[%s892_s7 + $0xc] sm:$0xf]  ;;  %v226_v10 = vmax.bf16 %v210_v59, %v194_v63 }
   0xf   :  { %v256_v51 = vmax.bf16 %v240_v32, %v224_v40  ;;  %v257_v57 = vmax.bf16 %v241_v36, %v225_v46  ;;  %v274_v7 = vld [vmem:[%s893_s8 + $0x8] sm:$0xf]  ;;  %v101_v8 = vmax.bf16 %v85_v56, %v69_v60  ;;  %v148_v9 = vld [vmem:[%s889_s4 + $0x10] sm:$0xf]  ;;  %v275_v11 = vld [vmem:[%s893_s8 + $0xc] sm:$0xf]  ;;  %v227_v17 = vmax.bf16 %v211_v0, %v195_v5 }
  0x10   :  { %v132_v12 = vmax.bf16 %v116_v61, %v100_v2  ;;  %v149_v13 = vld [vmem:[%s889_s4 + $0x14] sm:$0xf]  ;;  %v180_v14 = vld [vmem:[%s890_s5 + $0x10] sm:$0xf]  ;;  %v38_v19 = vld [vmem:[%s885_s0 + $0x18] sm:$0xf]  ;;  %v258_v22 = vmax.bf16 %v242_v1, %v226_v10 }
  0x11   :  { %v288_v62 = vmax.bf16 %v272_v37, %v256_v51  ;;  %v289_v4 = vmax.bf16 %v273_v41, %v257_v57  ;;  %v181_v15 = vld [vmem:[%s890_s5 + $0x14] sm:$0xf]  ;;  %v133_v18 = vmax.bf16 %v117_v3, %v101_v8  ;;  %v39_v20 = vld [vmem:[%s885_s0 + $0x1c] sm:$0xf]  ;;  %v54_v21 = vld [vmem:[%s886_s1 + $0x18] sm:$0xf]  ;;  %v259_v28 = vmax.bf16 %v243_v6, %v227_v17 }
  0x12   :  { %v164_v23 = vmax.bf16 %v148_v9, %v132_v12  ;;  %v55_v24 = vld [vmem:[%s886_s1 + $0x1c] sm:$0xf]  ;;  %v70_v25 = vmax.bf16 %v54_v21, %v38_v19  ;;  %v86_v26 = vld [vmem:[%s887_s2 + $0x18] sm:$0xf]  ;;  %v212_v30 = vld [vmem:[%s891_s6 + $0x10] sm:$0xf]  ;;  %v290_v33 = vmax.bf16 %v274_v7, %v258_v22 }
  0x13   :  { %v364_v16 = vcombine.low %v288_v62, %v289_v4  ;;  %v87_v27 = vld [vmem:[%s887_s2 + $0x1c] sm:$0xf]  ;;  %v165_v29 = vmax.bf16 %v149_v13, %v133_v18  ;;  %v71_v31 = vmax.bf16 %v55_v24, %v39_v20  ;;  %v118_v32 = vld [vmem:[%s888_s3 + $0x18] sm:$0xf]  ;;  %v213_v35 = vld [vmem:[%s891_s6 + $0x14] sm:$0xf]  ;;  %v291_v39 = vmax.bf16 %v275_v11, %v259_v28 }
  0x14   :  { %v196_v34 = vmax.bf16 %v180_v14, %v164_v23  ;;  %v244_v36 = vld [vmem:[%s892_s7 + $0x10] sm:$0xf]  ;;  %v102_v37 = vmax.bf16 %v86_v26, %v70_v25  ;;  %v119_v38 = vld [vmem:[%s888_s3 + $0x1c] sm:$0xf]  ;;  %v245_v41 = vld [vmem:[%s892_s7 + $0x14] sm:$0xf] }
  0x15   :  { %328 = vst [vmem:[%s894_s9] sm:$0xff] %v364_v16   ;;  %v197_v40 = vmax.bf16 %v181_v15, %v165_v29  ;;  %v276_v42 = vld [vmem:[%s893_s8 + $0x10] sm:$0xf]  ;;  %v103_v43 = vmax.bf16 %v87_v27, %v71_v31  ;;  %v150_v44 = vld [vmem:[%s889_s4 + $0x18] sm:$0xf]  ;;  %v277_v46 = vld [vmem:[%s893_s8 + $0x14] sm:$0xf]  ;;  %v365_v51 = vcombine.low %v290_v33, %v291_v39 }
  0x16   :  { %v228_v45 = vmax.bf16 %v212_v30, %v196_v34  ;;  %v134_v47 = vmax.bf16 %v118_v32, %v102_v37  ;;  %v151_v48 = vld [vmem:[%s889_s4 + $0x1c] sm:$0xf]  ;;  %v182_v49 = vld [vmem:[%s890_s5 + $0x18] sm:$0xf]  ;;  %v40_v54 = vld [vmem:[%s885_s0 + $0x20] sm:$0xf] }
  0x17   :  { %v183_v50 = vld [vmem:[%s890_s5 + $0x1c] sm:$0xf]  ;;  %v229_v52 = vmax.bf16 %v213_v35, %v197_v40  ;;  %v135_v53 = vmax.bf16 %v119_v38, %v103_v43  ;;  %v41_v55 = vld [vmem:[%s885_s0 + $0x24] sm:$0xf]  ;;  %v56_v56 = vld [vmem:[%s886_s1 + $0x20] sm:$0xf] }
  0x18   :  { %v260_v57 = vmax.bf16 %v244_v36, %v228_v45  ;;  %v166_v58 = vmax.bf16 %v150_v44, %v134_v47  ;;  %v57_v59 = vld [vmem:[%s886_s1 + $0x24] sm:$0xf]  ;;  %v72_v60 = vmax.bf16 %v56_v56, %v40_v54  ;;  %v88_v61 = vld [vmem:[%s887_s2 + $0x20] sm:$0xf]  ;;  %366 = vst [vmem:[%s894_s9 + $0x8] sm:$0xff] %v365_v51  }
  0x19   :  { %v89_v62 = vld [vmem:[%s887_s2 + $0x24] sm:$0xf]  ;;  %v261_v63 = vmax.bf16 %v245_v41, %v229_v52  ;;  %v167_v0 = vmax.bf16 %v151_v48, %v135_v53  ;;  %v214_v1 = vld [vmem:[%s891_s6 + $0x18] sm:$0xf]  ;;  %v73_v2 = vmax.bf16 %v57_v59, %v41_v55  ;;  %v120_v3 = vld [vmem:[%s888_s3 + $0x20] sm:$0xf] }
  0x1a   :  { %v292_v4 = vmax.bf16 %v276_v42, %v260_v57  ;;  %v198_v5 = vmax.bf16 %v182_v49, %v166_v58  ;;  %v215_v6 = vld [vmem:[%s891_s6 + $0x1c] sm:$0xf]  ;;  %v246_v7 = vld [vmem:[%s892_s7 + $0x18] sm:$0xf]  ;;  %v104_v8 = vmax.bf16 %v88_v61, %v72_v60  ;;  %v121_v9 = vld [vmem:[%s888_s3 + $0x24] sm:$0xf] }
  0x1b   :  { %v293_v10 = vmax.bf16 %v277_v46, %v261_v63  ;;  %v199_v11 = vmax.bf16 %v183_v50, %v167_v0  ;;  %v247_v12 = vld [vmem:[%s892_s7 + $0x1c] sm:$0xf]  ;;  %v278_v13 = vld [vmem:[%s893_s8 + $0x18] sm:$0xf]  ;;  %v105_v14 = vmax.bf16 %v89_v62, %v73_v2  ;;  %v152_v15 = vld [vmem:[%s889_s4 + $0x20] sm:$0xf] }
  0x1c   :  { %v230_v16 = vmax.bf16 %v214_v1, %v198_v5  ;;  %v279_v17 = vld [vmem:[%s893_s8 + $0x1c] sm:$0xf]  ;;  %v136_v18 = vmax.bf16 %v120_v3, %v104_v8  ;;  %v153_v19 = vld [vmem:[%s889_s4 + $0x24] sm:$0xf]  ;;  %v184_v20 = vld [vmem:[%s890_s5 + $0x20] sm:$0xf] }
  0x1d   :  { %v185_v21 = vld [vmem:[%s890_s5 + $0x24] sm:$0xf]  ;;  %v367_v22 = vcombine.low %v292_v4, %v293_v10  ;;  %v231_v23 = vmax.bf16 %v215_v6, %v199_v11  ;;  %v137_v24 = vmax.bf16 %v121_v9, %v105_v14  ;;  %v42_v25 = vld [vmem:[%s885_s0 + $0x28] sm:$0xf]  ;;  %v43_v26 = vld [vmem:[%s885_s0 + $0x2c] sm:$0xf] }
  0x1e   :  { %v58_v27 = vld [vmem:[%s886_s1 + $0x28] sm:$0xf]  ;;  %v262_v28 = vmax.bf16 %v246_v7, %v230_v16  ;;  %v168_v29 = vmax.bf16 %v152_v15, %v136_v18  ;;  %v59_v30 = vld [vmem:[%s886_s1 + $0x2c] sm:$0xf]  ;;  %v216_v36 = vld [vmem:[%s891_s6 + $0x20] sm:$0xf] }
  0x1f   :  { %v74_v31 = vmax.bf16 %v58_v27, %v42_v25  ;;  %v90_v32 = vld [vmem:[%s887_s2 + $0x28] sm:$0xf]  ;;  %v91_v33 = vld [vmem:[%s887_s2 + $0x2c] sm:$0xf]  ;;  %368 = vst [vmem:[%s894_s9 + $0x10] sm:$0xff] %v367_v22   ;;  %v263_v34 = vmax.bf16 %v247_v12, %v231_v23  ;;  %v169_v35 = vmax.bf16 %v153_v19, %v137_v24  ;;  %v75_v37 = vmax.bf16 %v59_v30, %v43_v26 }
  0x20   :  { %v122_v38 = vld [vmem:[%s888_s3 + $0x28] sm:$0xf]  ;;  %v294_v39 = vmax.bf16 %v278_v13, %v262_v28  ;;  %v200_v40 = vmax.bf16 %v184_v20, %v168_v29  ;;  %v217_v41 = vld [vmem:[%s891_s6 + $0x24] sm:$0xf]  ;;  %v248_v42 = vld [vmem:[%s892_s7 + $0x20] sm:$0xf] }
  0x21   :  { %v106_v43 = vmax.bf16 %v90_v32, %v74_v31  ;;  %v123_v44 = vld [vmem:[%s888_s3 + $0x2c] sm:$0xf]  ;;  %v295_v45 = vmax.bf16 %v279_v17, %v263_v34  ;;  %v201_v46 = vmax.bf16 %v185_v21, %v169_v35  ;;  %v249_v47 = vld [vmem:[%s892_s7 + $0x24] sm:$0xf]  ;;  %v280_v48 = vld [vmem:[%s893_s8 + $0x20] sm:$0xf]  ;;  %v107_v49 = vmax.bf16 %v91_v33, %v75_v37 }
  0x22   :  { %v154_v50 = vld [vmem:[%s889_s4 + $0x28] sm:$0xf]  ;;  %v232_v51 = vmax.bf16 %v216_v36, %v200_v40  ;;  %v281_v52 = vld [vmem:[%s893_s8 + $0x24] sm:$0xf]  ;;  %v155_v54 = vld [vmem:[%s889_s4 + $0x2c] sm:$0xf] }
  0x23   :  { %v138_v53 = vmax.bf16 %v122_v38, %v106_v43  ;;  %v186_v55 = vld [vmem:[%s890_s5 + $0x28] sm:$0xf]  ;;  %v187_v56 = vld [vmem:[%s890_s5 + $0x2c] sm:$0xf]  ;;  %v369_v57 = vcombine.low %v294_v39, %v295_v45  ;;  %v233_v58 = vmax.bf16 %v217_v41, %v201_v46  ;;  %v139_v59 = vmax.bf16 %v123_v44, %v107_v49  ;;  %v44_v60 = vld [vmem:[%s885_s0 + $0x30] sm:$0xf] }
  0x24   :  { %v45_v61 = vld [vmem:[%s885_s0 + $0x34] sm:$0xf]  ;;  %v60_v62 = vld [vmem:[%s886_s1 + $0x30] sm:$0xf]  ;;  %v264_v63 = vmax.bf16 %v248_v42, %v232_v51  ;;  %v218_v7 = vld [vmem:[%s891_s6 + $0x28] sm:$0xf] }
  0x25   :  { %v170_v0 = vmax.bf16 %v154_v50, %v138_v53  ;;  %v61_v1 = vld [vmem:[%s886_s1 + $0x34] sm:$0xf]  ;;  %v76_v2 = vmax.bf16 %v60_v62, %v44_v60  ;;  %v92_v3 = vld [vmem:[%s887_s2 + $0x30] sm:$0xf]  ;;  %370 = vst [vmem:[%s894_s9 + $0x18] sm:$0xff] %v369_v57   ;;  %v265_v5 = vmax.bf16 %v249_v47, %v233_v58  ;;  %v171_v6 = vmax.bf16 %v155_v54, %v139_v59 }
  0x26   :  { %v93_v4 = vld [vmem:[%s887_s2 + $0x34] sm:$0xf]  ;;  %v77_v8 = vmax.bf16 %v61_v1, %v45_v61  ;;  %v124_v9 = vld [vmem:[%s888_s3 + $0x30] sm:$0xf]  ;;  %v296_v10 = vmax.bf16 %v280_v48, %v264_v63  ;;  %v219_v12 = vld [vmem:[%s891_s6 + $0x2c] sm:$0xf] }
  0x27   :  { %v202_v11 = vmax.bf16 %v186_v55, %v170_v0  ;;  %v250_v13 = vld [vmem:[%s892_s7 + $0x28] sm:$0xf]  ;;  %v108_v14 = vmax.bf16 %v92_v3, %v76_v2  ;;  %v125_v15 = vld [vmem:[%s888_s3 + $0x34] sm:$0xf]  ;;  %v297_v16 = vmax.bf16 %v281_v52, %v265_v5  ;;  %v203_v17 = vmax.bf16 %v187_v56, %v171_v6  ;;  %v251_v18 = vld [vmem:[%s892_s7 + $0x2c] sm:$0xf] }
  0x28   :  { %v282_v19 = vld [vmem:[%s893_s8 + $0x28] sm:$0xf]  ;;  %v109_v20 = vmax.bf16 %v93_v4, %v77_v8  ;;  %v156_v21 = vld [vmem:[%s889_s4 + $0x30] sm:$0xf]  ;;  %v283_v23 = vld [vmem:[%s893_s8 + $0x2c] sm:$0xf] }
  0x29   :  { %v234_v22 = vmax.bf16 %v218_v7, %v202_v11  ;;  %v140_v24 = vmax.bf16 %v124_v9, %v108_v14  ;;  %v157_v25 = vld [vmem:[%s889_s4 + $0x34] sm:$0xf]  ;;  %v188_v26 = vld [vmem:[%s890_s5 + $0x30] sm:$0xf]  ;;  %v371_v28 = vcombine.low %v296_v10, %v297_v16  ;;  %v235_v29 = vmax.bf16 %v219_v12, %v203_v17  ;;  %v46_v31 = vld [vmem:[%s885_s0 + $0x38] sm:$0xf] }
  0x2a   :  { %v189_v27 = vld [vmem:[%s890_s5 + $0x34] sm:$0xf]  ;;  %v141_v30 = vmax.bf16 %v125_v15, %v109_v20  ;;  %v47_v32 = vld [vmem:[%s885_s0 + $0x3c] sm:$0xf]  ;;  %v62_v33 = vld [vmem:[%s886_s1 + $0x38] sm:$0xf] }
  0x2b   :  { %v266_v34 = vmax.bf16 %v250_v13, %v234_v22  ;;  %v172_v35 = vmax.bf16 %v156_v21, %v140_v24  ;;  %v63_v36 = vld [vmem:[%s886_s1 + $0x3c] sm:$0xf]  ;;  %v78_v37 = vmax.bf16 %v62_v33, %v46_v31  ;;  %v94_v38 = vld [vmem:[%s887_s2 + $0x38] sm:$0xf]  ;;  %372 = vst [vmem:[%s894_s9 + $0x20] sm:$0xff] %v371_v28   ;;  %v267_v40 = vmax.bf16 %v251_v18, %v235_v29 }
  0x2c   :  { %v95_v39 = vld [vmem:[%s887_s2 + $0x3c] sm:$0xf]  ;;  %v173_v41 = vmax.bf16 %v157_v25, %v141_v30  ;;  %v220_v42 = vld [vmem:[%s891_s6 + $0x30] sm:$0xf]  ;;  %v79_v43 = vmax.bf16 %v63_v36, %v47_v32  ;;  %v126_v44 = vld [vmem:[%s888_s3 + $0x38] sm:$0xf] }
  0x2d   :  { %v298_v45 = vmax.bf16 %v282_v19, %v266_v34  ;;  %v204_v46 = vmax.bf16 %v188_v26, %v172_v35  ;;  %v221_v47 = vld [vmem:[%s891_s6 + $0x34] sm:$0xf]  ;;  %v110_v48 = vmax.bf16 %v94_v38, %v78_v37  ;;  %v127_v49 = vld [vmem:[%s888_s3 + $0x3c] sm:$0xf]  ;;  %v299_v50 = vmax.bf16 %v283_v23, %v267_v40  ;;  %v252_v52 = vld [vmem:[%s892_s7 + $0x30] sm:$0xf] }
  0x2e   :  { %v205_v51 = vmax.bf16 %v189_v27, %v173_v41  ;;  %v111_v53 = vmax.bf16 %v95_v39, %v79_v43  ;;  %v158_v54 = vld [vmem:[%s889_s4 + $0x38] sm:$0xf]  ;;  %v253_v56 = vld [vmem:[%s892_s7 + $0x34] sm:$0xf]  ;;  %v159_v58 = vld [vmem:[%s889_s4 + $0x3c] sm:$0xf] }
  0x2f   :  { %v236_v55 = vmax.bf16 %v220_v42, %v204_v46  ;;  %v142_v57 = vmax.bf16 %v126_v44, %v110_v48  ;;  %v373_v59 = vcombine.low %v298_v45, %v299_v50  ;;  %v284_v61 = vld [vmem:[%s893_s8 + $0x30] sm:$0xf]  ;;  %v190_v63 = vld [vmem:[%s890_s5 + $0x38] sm:$0xf]  ;;  %v285_v1 = vld [vmem:[%s893_s8 + $0x34] sm:$0xf] }
  0x30   :  { %v237_v60 = vmax.bf16 %v221_v47, %v205_v51  ;;  %v143_v62 = vmax.bf16 %v127_v49, %v111_v53  ;;  %v191_v3 = vld [vmem:[%s890_s5 + $0x3c] sm:$0xf]  ;;  %v222_v6 = vld [vmem:[%s891_s6 + $0x38] sm:$0xf] }
  0x31   :  { %v268_v0 = vmax.bf16 %v252_v52, %v236_v55  ;;  %v174_v2 = vmax.bf16 %v158_v54, %v142_v57  ;;  %374 = vst [vmem:[%s894_s9 + $0x28] sm:$0xff] %v373_v59   ;;  %v223_v9 = vld [vmem:[%s891_s6 + $0x3c] sm:$0xf]  ;;  %v254_v12 = vld [vmem:[%s892_s7 + $0x38] sm:$0xf] }
  0x32   :  { %v269_v4 = vmax.bf16 %v253_v56, %v237_v60  ;;  %v175_v5 = vmax.bf16 %v159_v58, %v143_v62  ;;  %v255_v14 = vld [vmem:[%s892_s7 + $0x3c] sm:$0xf]  ;;  %v286_v17 = vld [vmem:[%s893_s8 + $0x38] sm:$0xf] }
  0x33   :  { %v300_v7 = vmax.bf16 %v284_v61, %v268_v0  ;;  %v206_v8 = vmax.bf16 %v190_v63, %v174_v2  ;;  %v287_v19 = vld [vmem:[%s893_s8 + $0x3c] sm:$0xf] }
  0x34   :  { %v301_v10 = vmax.bf16 %v285_v1, %v269_v4  ;;  %v207_v11 = vmax.bf16 %v191_v3, %v175_v5 }
  0x35   :  { %v238_v13 = vmax.bf16 %v222_v6, %v206_v8 }
  0x36   :  { %v375_v15 = vcombine.low %v300_v7, %v301_v10  ;;  %v239_v16 = vmax.bf16 %v223_v9, %v207_v11 }
  0x37   :  { %v270_v18 = vmax.bf16 %v254_v12, %v238_v13 }
  0x38   :  { %376 = vst [vmem:[%s894_s9 + $0x30] sm:$0xff] %v375_v15   ;;  %v271_v20 = vmax.bf16 %v255_v14, %v239_v16 }
  0x39   :  { %v302_v21 = vmax.bf16 %v286_v17, %v270_v18 }
  0x3a   :  { %v303_v22 = vmax.bf16 %v287_v19, %v271_v20 }
  0x3c   :  { %v377_v23 = vcombine.low %v302_v21, %v303_v22 }
  0x3e   :  { %378 = vst [vmem:[%s894_s9 + $0x38] sm:$0xff] %v377_v23  }

// kernel: resnet_forward.58
= control target key start
LH: loop header
LB: loop body
LE: loop exit
PB: predicated region body
PF: predicated region fallthrough
CT: control target
= control target key end

     0   :  { %s849_s1 = inlined_call_operand.vmem [shape: bf16[128,128], index: 1, kind: input, shape index: {}]   ;;  %s850_s0 = inlined_call_operand.vmem [shape: bf16[128,128], index: 0, kind: input, shape index: {}]   ;;  %s851_s2 = inlined_call_operand.vmem [shape: f32[1,128], index: 2, kind: input, shape index: {}]   ;;  %s852_s3 = inlined_call_operand.vmem [shape: f32[1,128], index: 3, kind: input, shape index: {}]   ;;  %s853_s4 = inlined_call_operand.vmem [shape: bf16[128,128], index: 4, kind: output, shape index: {}]  }
   0x1   :  { %v629_v0 = vld [vmem:[%s849_s1] sm:$0xff]   ;;  %v630_v1 = vld [vmem:[%s849_s1 + $0x8] sm:$0xff]   ;;  %v631_v2 = vld [vmem:[%s849_s1 + $0x10] sm:$0xff]  }
   0x2   :  { %581 = vmatprep.subr.bf16.mxu0 %v629_v0  ;;  %613 = vmatprep.subr.bf16.mxu1 %v629_v0  ;;  %v632_v3 = vld [vmem:[%s849_s1 + $0x18] sm:$0xff]   ;;  %v637_v4 = vld [vmem:[%s850_s0] sm:$0xff]   ;;  %v634_v7 = vld [vmem:[%s849_s1 + $0x28] sm:$0xff]  }
   0x3   :  { %582 = vmatpush3.bf16.msra.mxu0 %v629_v0  ;;  %621 = vmatpush3.bf16.msra.mxu1 %v629_v0  ;;  %v633_v5 = vld [vmem:[%s849_s1 + $0x20] sm:$0xff]   ;;  %v635_v8 = vld [vmem:[%s849_s1 + $0x30] sm:$0xff]   ;;  %v636_v9 = vld [vmem:[%s849_s1 + $0x38] sm:$0xff]  }
   0x4   :  { %583 = vmatprep.subr.bf16.mxu0 %v630_v1  ;;  %614 = vmatprep.subr.bf16.mxu1 %v630_v1  ;;  %v641_v6 = vld [vmem:[%s850_s0 + $0x20] sm:$0xff]   ;;  %v638_v10 = vld [vmem:[%s850_s0 + $0x8] sm:$0xff]   ;;  %v639_v12 = vld [vmem:[%s850_s0 + $0x10] sm:$0xff]  }
   0x5   :  { %597 = vmatprep.mubr.bf16.mxu0 %v637_v4  ;;  %605 = vmatprep.mubr.bf16.mxu1 %v641_v6  ;;  %v642_v11 = vld [vmem:[%s850_s0 + $0x28] sm:$0xff]   ;;  %v643_v13 = vld [vmem:[%s850_s0 + $0x30] sm:$0xff]   ;;  %v640_v14 = vld [vmem:[%s850_s0 + $0x18] sm:$0xff]  }
   0x6   :  { %v644_v15 = vld [vmem:[%s850_s0 + $0x38] sm:$0xff]  }
   0x7   :  { %584 = vmatpush3.bf16.msra.mxu0 %v630_v1  ;;  %622 = vmatpush3.bf16.msra.mxu1 %v630_v1 }
   0x8   :  { %585 = vmatprep.subr.bf16.mxu0 %v631_v2  ;;  %615 = vmatprep.subr.bf16.mxu1 %v631_v2 }
   0xb   :  { %586 = vmatpush3.bf16.msra.mxu0 %v631_v2  ;;  %623 = vmatpush3.bf16.msra.mxu1 %v631_v2 }
   0xc   :  { %587 = vmatprep.subr.bf16.mxu0 %v632_v3  ;;  %616 = vmatprep.subr.bf16.mxu1 %v632_v3 }
   0xf   :  { %588 = vmatpush3.bf16.msra.mxu0 %v632_v3  ;;  %624 = vmatpush3.bf16.msra.mxu1 %v632_v3 }
  0x10   :  { %589 = vmatprep.subr.bf16.mxu0 %v633_v5  ;;  %617 = vmatprep.subr.bf16.mxu1 %v633_v5 }
  0x13   :  { %590 = vmatpush3.bf16.msra.mxu0 %v633_v5  ;;  %625 = vmatpush3.bf16.msra.mxu1 %v633_v5 }
  0x14   :  { %591 = vmatprep.subr.bf16.mxu0 %v634_v7  ;;  %618 = vmatprep.subr.bf16.mxu1 %v634_v7 }
  0x17   :  { %592 = vmatpush3.bf16.msra.mxu0 %v634_v7  ;;  %626 = vmatpush3.bf16.msra.mxu1 %v634_v7 }
  0x18   :  { %593 = vmatprep.subr.bf16.mxu0 %v635_v8  ;;  %619 = vmatprep.subr.bf16.mxu1 %v635_v8 }
  0x1b   :  { %594 = vmatpush3.bf16.msra.mxu0 %v635_v8  ;;  %627 = vmatpush3.bf16.msra.mxu1 %v635_v8 }
  0x1c   :  { %595 = vmatprep.subr.bf16.mxu0 %v636_v9  ;;  %620 = vmatprep.subr.bf16.mxu1 %v636_v9 }
  0x1f   :  { %596 = vmatpush3.bf16.msra.mxu0 %v636_v9  ;;  %628 = vmatpush3.bf16.msra.mxu1 %v636_v9 }
  0x22   :  { %598 = vmatmul.mubr.bf16.vlgmr.msra.gmra.mrb[0].mxu0 %v638_v10  ;;  %606 = vmatmul.mubr.bf16.vlgmr.msra.gmra.mrb[0].mxu1 %v642_v11 }
  0x23   :  { %601 = vmatprep.mubr.bf16.mxu0 %v639_v12  ;;  %609 = vmatprep.mubr.bf16.mxu1 %v643_v13 }
  0x2a   :  { %602 = vmatmul.mubr.bf16.gmra.mrb[4].mxu0 %v640_v14  ;;  %610 = vmatmul.mubr.bf16.gmra.mrb[4].mxu1 %v644_v15 }
  0xf5   :  { %v720_v16 = vpop.f32.mrb[0].mxu0  ;;  %v722_v17 = vpop.f32.mrb[0].mxu1 }
  0xf6   :  { %v724_v18 = vpop.f32.mrb[1].mxu0  ;;  %v726_v19 = vpop.f32.mrb[1].mxu1 }
  0xf7   :  { %v728_v20 = vpop.f32.mrb[2].mxu0  ;;  %v730_v21 = vpop.f32.mrb[2].mxu1 }
  0xf8   :  { %v732_v22 = vpop.f32.mrb[3].mxu0  ;;  %v734_v23 = vpop.f32.mrb[3].mxu1 }
  0xf9   :  { %v243_v24 = vadd.f32 %v732_v22, %v724_v18 }
  0xfb   :  { %v244_v25 = vadd.f32 %v720_v16, %v243_v24 }
  0xfd   :  { %v739_v26 = vpop.f32.mrb[4].mxu0  ;;  %v245_v27 = vadd.f32 %v728_v20, %v244_v25  ;;  %v742_v28 = vpop.f32.mrb[4].mxu1 }
  0xfe   :  { %v744_v29 = vpop.f32.mrb[5].mxu0  ;;  %v746_v30 = vpop.f32.mrb[5].mxu1 }
  0xff   :  { %v246_v31 = vadd.f32 %v245_v27, %v744_v29  ;;  %v749_v32 = vpop.f32.mrb[6].mxu0  ;;  %v751_v33 = vpop.f32.mrb[6].mxu1 }
 0x100   :  { %v753_v34 = vpop.f32.mrb[7].mxu0  ;;  %v755_v35 = vpop.f32.mrb[7].mxu1 }
 0x101   :  { %v247_v36 = vadd.f32 %v246_v31, %v753_v34 }
 0x103   :  { %v248_v37 = vadd.f32 %v739_v26, %v247_v36 }
 0x105   :  { %v249_v38 = vadd.f32 %v749_v32, %v248_v37 }
 0x107   :  { %v250_v39 = vadd.f32 %v249_v38, %v726_v19 }
 0x109   :  { %v251_v40 = vadd.f32 %v250_v39, %v734_v23 }
 0x10b   :  { %v252_v41 = vadd.f32 %v722_v17, %v251_v40 }
 0x10d   :  { %v253_v42 = vadd.f32 %v730_v21, %v252_v41 }
 0x10f   :  { %v254_v43 = vadd.f32 %v253_v42, %v746_v30 }
 0x111   :  { %v255_v44 = vadd.f32 %v254_v43, %v755_v35 }
 0x113   :  { %v256_v45 = vadd.f32 %v742_v28, %v255_v44 }
 0x115   :  { %v257_v46 = vadd.f32 %v751_v33, %v256_v45 }
 0x117   :  { %v258_v47 = vrot.slane %v257_v46, 4 }
 0x119   :  { %v259_v48 = vadd.f32 %v258_v47, %v257_v46 }
 0x11b   :  { %v260_v49 = vrot.slane %v259_v48, 2 }
 0x11d   :  { %v261_v50 = vadd.f32 %v260_v49, %v259_v48 }
 0x11f   :  { %v262_v51 = vrot.slane %v261_v50, 1 }
 0x121   :  { %v263_v52 = vadd.f32 %v262_v51, %v261_v50 }
 0x123   :  { %v768_v53 = vmul.f32 0.0078125, %v263_v52 }
 0x125   :  { %v265_v54 = vsub.f32 %v724_v18, %v768_v53  ;;  %v266_v55 = vsub.f32 %v732_v22, %v768_v53  ;;  %v267_v56 = vsub.f32 %v720_v16, %v768_v53  ;;  %v268_v57 = vsub.f32 %v728_v20, %v768_v53 }
 0x126   :  { %v269_v58 = vsub.f32 %v744_v29, %v768_v53  ;;  %v270_v59 = vsub.f32 %v753_v34, %v768_v53  ;;  %v271_v60 = vsub.f32 %v739_v26, %v768_v53  ;;  %v272_v61 = vsub.f32 %v749_v32, %v768_v53 }
 0x127   :  { %v273_v62 = vsub.f32 %v726_v19, %v768_v53  ;;  %v274_v63 = vsub.f32 %v734_v23, %v768_v53  ;;  %v275_v0 = vsub.f32 %v722_v17, %v768_v53  ;;  %v276_v1 = vsub.f32 %v730_v21, %v768_v53 }
 0x128   :  { %v277_v2 = vsub.f32 %v746_v30, %v768_v53  ;;  %v278_v3 = vsub.f32 %v755_v35, %v768_v53  ;;  %v279_v4 = vsub.f32 %v742_v28, %v768_v53  ;;  %v280_v5 = vsub.f32 %v751_v33, %v768_v53 }
 0x129   :  { %v281_v6 = vmul.f32 %v265_v54, %v265_v54  ;;  %v282_v7 = vmul.f32 %v266_v55, %v266_v55  ;;  %v283_v8 = vmul.f32 %v267_v56, %v267_v56  ;;  %v284_v10 = vmul.f32 %v268_v57, %v268_v57 }
 0x12a   :  { %v285_v12 = vmul.f32 %v269_v58, %v269_v58  ;;  %v286_v14 = vmul.f32 %v270_v59, %v270_v59  ;;  %v287_v24 = vmul.f32 %v271_v60, %v271_v60  ;;  %v288_v27 = vmul.f32 %v272_v61, %v272_v61 }
 0x12b   :  { %v297_v9 = vadd.f32 %v282_v7, %v281_v6  ;;  %v289_v36 = vmul.f32 %v273_v62, %v273_v62  ;;  %v290_v38 = vmul.f32 %v274_v63, %v274_v63  ;;  %v291_v40 = vmul.f32 %v275_v0, %v275_v0  ;;  %v319_v0 = vld [vmem:[%s851_s2] sm:$0x1] }
 0x12c   :  { %v292_v42 = vmul.f32 %v276_v1, %v276_v1  ;;  %v293_v44 = vmul.f32 %v277_v2, %v277_v2  ;;  %v294_v46 = vmul.f32 %v278_v3, %v278_v3  ;;  %v295_v48 = vmul.f32 %v279_v4, %v279_v4  ;;  %v323_v4 = vld [vmem:[%s852_s3] sm:$0x1] }
 0x12d   :  { %v298_v11 = vadd.f32 %v297_v9, %v283_v8  ;;  %v296_v50 = vmul.f32 %v280_v5, %v280_v5  ;;  %v327_v62 = vlaneseq }
 0x12f   :  { %v299_v13 = vadd.f32 %v298_v11, %v284_v10  ;;  %v328_v63 = vshrl.u32 %v327_v62, 7 }
 0x131   :  { %v300_v15 = vadd.f32 %v299_v13, %v285_v12  ;;  %v329_v1 = vsub.s32 0, %v328_v63 }
 0x133   :  { %v301_v25 = vadd.f32 %v300_v15, %v286_v14 }
 0x135   :  { %v302_v31 = vadd.f32 %v301_v25, %v287_v24 }
 0x137   :  { %v303_v37 = vadd.f32 %v302_v31, %v288_v27 }
 0x139   :  { %v304_v39 = vadd.f32 %v303_v37, %v289_v36 }
 0x13b   :  { %v305_v41 = vadd.f32 %v304_v39, %v290_v38 }
 0x13d   :  { %v306_v43 = vadd.f32 %v305_v41, %v291_v40 }
 0x13f   :  { %v307_v45 = vadd.f32 %v306_v43, %v292_v42 }
 0x141   :  { %v308_v47 = vadd.f32 %v307_v45, %v293_v44 }
 0x143   :  { %v309_v49 = vadd.f32 %v308_v47, %v294_v46 }
 0x145   :  { %v310_v51 = vadd.f32 %v309_v49, %v295_v48 }
 0x147   :  { %v311_v52 = vadd.f32 %v310_v51, %v296_v50 }
 0x149   :  { %v312_v54 = vrot.slane %v311_v52, 4 }
 0x14b   :  { %v313_v55 = vadd.f32 %v312_v54, %v311_v52 }
 0x14d   :  { %v314_v56 = vrot.slane %v313_v55, 2 }
 0x14f   :  { %v315_v57 = vadd.f32 %v314_v56, %v313_v55 }
 0x151   :  { %v316_v58 = vrot.slane %v315_v57, 1 }
 0x153   :  { %v317_v59 = vadd.f32 %v316_v58, %v315_v57 }
 0x155   :  { %v318_v60 = vmul.f32 0.0078125, %v317_v59 }
 0x157   :  { %v320_v61 = vadd.f32 1e-05, %v318_v60 }
 0x159   :  { %645 = vrsqrt.f32 %v320_v61 }
 0x163   :  { %v646_v2 = vpop.eup %645 }
 0x164   :  { %v322_v3 = vmul.f32 %v646_v2, %v319_v0 }
 0x166   :  { %v324_v5 = vmul.f32 %v322_v3, %v768_v53  ;;  %v330_v6 = vrot.slane %v322_v3, %v329_v1 }
 0x168   :  { %v325_v7 = vsub.f32 %v323_v4, %v324_v5  ;;  %v332_v8 = vmul.f32 %v330_v6, %v724_v18  ;;  %v333_v9 = vmul.f32 %v330_v6, %v732_v22  ;;  %v334_v10 = vmul.f32 %v720_v16, %v330_v6 }
 0x169   :  { %v335_v11 = vmul.f32 %v728_v20, %v330_v6  ;;  %v336_v12 = vmul.f32 %v330_v6, %v744_v29  ;;  %v337_v13 = vmul.f32 %v330_v6, %v753_v34  ;;  %v338_v14 = vmul.f32 %v739_v26, %v330_v6 }
 0x16a   :  { %v339_v15 = vmul.f32 %v749_v32, %v330_v6  ;;  %v340_v53 = vmul.f32 %v330_v6, %v726_v19  ;;  %v341_v24 = vmul.f32 %v330_v6, %v734_v23  ;;  %v342_v18 = vmul.f32 %v722_v17, %v330_v6 }
 0x16b   :  { %v343_v22 = vmul.f32 %v730_v21, %v330_v6  ;;  %v344_v16 = vmul.f32 %v330_v6, %v746_v30  ;;  %v345_v20 = vmul.f32 %v330_v6, %v755_v35  ;;  %v346_v29 = vmul.f32 %v742_v28, %v330_v6 }
 0x16c   :  { %v347_v34 = vmul.f32 %v751_v33, %v330_v6  ;;  %v352_v25 = vrot.slane %v325_v7, %v329_v1 }
 0x16e   :  { %v354_v26 = vadd.f32 %v352_v25, %v332_v8  ;;  %v355_v27 = vadd.f32 %v352_v25, %v333_v9  ;;  %v356_v32 = vadd.f32 %v352_v25, %v334_v10  ;;  %v357_v31 = vadd.f32 %v352_v25, %v335_v11 }
 0x16f   :  { %v358_v19 = vadd.f32 %v352_v25, %v336_v12  ;;  %v359_v36 = vadd.f32 %v352_v25, %v337_v13  ;;  %v360_v23 = vadd.f32 %v352_v25, %v338_v14  ;;  %v361_v37 = vadd.f32 %v352_v25, %v339_v15 }
 0x170   :  { %v362_v17 = vadd.f32 %v352_v25, %v340_v53  ;;  %v363_v38 = vadd.f32 %v352_v25, %v341_v24  ;;  %v364_v21 = vadd.f32 %v352_v25, %v342_v18  ;;  %v365_v39 = vadd.f32 %v352_v25, %v343_v22 }
 0x171   :  { %v366_v30 = vadd.f32 %v352_v25, %v344_v16  ;;  %v367_v40 = vadd.f32 %v352_v25, %v345_v20  ;;  %v368_v35 = vadd.f32 %v352_v25, %v346_v29  ;;  %v369_v41 = vadd.f32 %v352_v25, %v347_v34 }
 0x172   :  { %v370_v28 = vmax.f32 %v354_v26, 0.0  ;;  %v371_v42 = vmax.f32 %v355_v27, 0.0  ;;  %v372_v33 = vmax.f32 %v356_v32, 0.0  ;;  %v373_v43 = vmax.f32 %v357_v31, 0.0 }
 0x173   :  { %v374_v44 = vmax.f32 %v358_v19, 0.0  ;;  %v375_v45 = vmax.f32 %v359_v36, 0.0  ;;  %v376_v46 = vmax.f32 %v360_v23, 0.0  ;;  %v377_v47 = vmax.f32 %v361_v37, 0.0 }
 0x174   :  { %v378_v48 = vmax.f32 %v362_v17, 0.0  ;;  %v379_v49 = vmax.f32 %v363_v38, 0.0  ;;  %v380_v50 = vmax.f32 %v364_v21, 0.0  ;;  %v381_v51 = vmax.f32 %v365_v39, 0.0 }
 0x175   :  { %v382_v52 = vmax.f32 %v366_v30, 0.0  ;;  %v383_v54 = vmax.f32 %v367_v40, 0.0  ;;  %v384_v55 = vmax.f32 %v368_v35, 0.0  ;;  %v385_v56 = vmax.f32 %v369_v41, 0.0 }
 0x176   :  { %v521_v57 = vpack.c.bf16 %v371_v42, %v370_v28  ;;  %v526_v58 = vpack.c.bf16 %v373_v43, %v372_v33  ;;  %v531_v59 = vpack.c.bf16 %v375_v45, %v374_v44  ;;  %v536_v60 = vpack.c.bf16 %v377_v47, %v376_v46 }
 0x177   :  { %v541_v61 = vpack.c.bf16 %v379_v49, %v378_v48  ;;  %v546_v62 = vpack.c.bf16 %v381_v51, %v380_v50  ;;  %v551_v63 = vpack.c.bf16 %v383_v54, %v382_v52  ;;  %v556_v0 = vpack.c.bf16 %v385_v56, %v384_v55 }
 0x178   :  { %522 = vst [vmem:[%s853_s4] sm:$0xff] %v521_v57   ;;  %558 = vst [vmem:[%s853_s4 + $0x8] sm:$0xff] %v526_v58  }
 0x179   :  { %559 = vst [vmem:[%s853_s4 + $0x10] sm:$0xff] %v531_v59   ;;  %560 = vst [vmem:[%s853_s4 + $0x18] sm:$0xff] %v536_v60  }
 0x17a   :  { %561 = vst [vmem:[%s853_s4 + $0x20] sm:$0xff] %v541_v61   ;;  %562 = vst [vmem:[%s853_s4 + $0x28] sm:$0xff] %v546_v62  }
 0x17b   :  { %563 = vst [vmem:[%s853_s4 + $0x30] sm:$0xff] %v551_v63   ;;  %564 = vst [vmem:[%s853_s4 + $0x38] sm:$0xff] %v556_v0  }

// kernel: resnet_forward.56
= control target key start
LH: loop header
LB: loop body
LE: loop exit
PB: predicated region body
PF: predicated region fallthrough
CT: control target
= control target key end

     0   :  { %v2168_v0 = vmov 0   ;;  %s3497_s1 = inlined_call_operand.vmem [shape: bf16[256,128], index: 1, kind: input, shape index: {}]   ;;  %s3498_s0 = inlined_call_operand.vmem [shape: bf16[512,256], index: 0, kind: input, shape index: {}]   ;;  %s3499_s2 = inlined_call_operand.vmem [shape: f32[1,128], index: 2, kind: input, shape index: {}]   ;;  %s3500_s3 = inlined_call_operand.vmem [shape: f32[1,128], index: 3, kind: input, shape index: {}]   ;;  %s3501_s4 = inlined_call_operand.vmem [shape: bf16[512,128], index: 4, kind: output, shape index: {}]  }
   0x1   :  { %530 = vmatprep.subr.bf16.mxu0 %v2168_v0  ;;  %v2054_v1 = vld [vmem:[%s3497_s1] sm:$0xff]   ;;  %2021 = vmatprep.subr.bf16.mxu1 %v2168_v0  ;;  %v2055_v2 = vld [vmem:[%s3497_s1 + $0x8] sm:$0xff]   ;;  %v2056_v3 = vld [vmem:[%s3497_s1 + $0x10] sm:$0xff]  }
   0x2   :  { %531 = vmatpush1.bf16.msra.mxu0 %v2054_v1  ;;  %2037 = vmatpush1.bf16.msra.mxu1 %v2054_v1  ;;  %v2057_v4 = vld [vmem:[%s3497_s1 + $0x18] sm:$0xff]   ;;  %v2058_v5 = vld [vmem:[%s3497_s1 + $0x20] sm:$0xff]   ;;  %v2059_v7 = vld [vmem:[%s3497_s1 + $0x28] sm:$0xff]  }
   0x3   :  { %532 = vmatprep.subr.bf16.mxu0 %v2168_v0  ;;  %2022 = vmatprep.subr.bf16.mxu1 %v2168_v0  ;;  %v2072_v6 = vld [vmem:[%s3498_s0 + $0x4] ss:$8 sps:$4 sm:$0xff]   ;;  %v2060_v8 = vld [vmem:[%s3497_s1 + $0x30] sm:$0xff]   ;;  %v2061_v9 = vld [vmem:[%s3497_s1 + $0x38] sm:$0xff]  }
   0x4   :  { %562 = vmatprep.mubr.bf16.mxu0 %v2072_v6  ;;  %v2096_v10 = vld [vmem:[%s3498_s0 + $0x104] ss:$8 sps:$4 sm:$0xff]   ;;  %v2064_v13 = vld [vmem:[%s3497_s1 + $0x50] sm:$0xff]   ;;  %v2065_v14 = vld [vmem:[%s3497_s1 + $0x58] sm:$0xff]  }
   0x5   :  { %690 = vmatprep.mubr.bf16.mxu1 %v2096_v10  ;;  %v2062_v11 = vld [vmem:[%s3497_s1 + $0x40] sm:$0xff]   ;;  %v2063_v12 = vld [vmem:[%s3497_s1 + $0x48] sm:$0xff]   ;;  %v2068_v17 = vld [vmem:[%s3497_s1 + $0x70] sm:$0xff]  }
   0x6   :  { %533 = vmatpush1.bf16.msra.mxu0 %v2055_v2  ;;  %2038 = vmatpush1.bf16.msra.mxu1 %v2055_v2  ;;  %v2066_v15 = vld [vmem:[%s3497_s1 + $0x60] sm:$0xff]   ;;  %v2067_v16 = vld [vmem:[%s3497_s1 + $0x68] sm:$0xff]   ;;  %v2069_v18 = vld [vmem:[%s3497_s1 + $0x78] sm:$0xff]  }
   0x7   :  { %534 = vmatprep.subr.bf16.mxu0 %v2168_v0  ;;  %2023 = vmatprep.subr.bf16.mxu1 %v2168_v0  ;;  %v2070_v19 = vld [vmem:[%s3498_s0] ss:$8 sps:$4 sm:$0xff]   ;;  %v2073_v21 = vld [vmem:[%s3498_s0 + $0x14] ss:$8 sps:$4 sm:$0xff]   ;;  %v2075_v23 = vld [vmem:[%s3498_s0 + $0x10] ss:$8 sps:$4 sm:$0xff]  }
   0x8   :  { %v2094_v20 = vld [vmem:[%s3498_s0 + $0x100] ss:$8 sps:$4 sm:$0xff]   ;;  %v2100_v22 = vld [vmem:[%s3498_s0 + $0x114] ss:$8 sps:$4 sm:$0xff]   ;;  %v2102_v24 = vld [vmem:[%s3498_s0 + $0x110] ss:$8 sps:$4 sm:$0xff]  }
   0x9   :  { %v2076_v25 = vld [vmem:[%s3498_s0 + $0x24] ss:$8 sps:$4 sm:$0xff]   ;;  %v2078_v27 = vld [vmem:[%s3498_s0 + $0x20] ss:$8 sps:$4 sm:$0xff]   ;;  %v2079_v29 = vld [vmem:[%s3498_s0 + $0x34] ss:$8 sps:$4 sm:$0xff]  }
   0xa   :  { %535 = vmatpush1.bf16.msra.mxu0 %v2056_v3  ;;  %2039 = vmatpush1.bf16.msra.mxu1 %v2056_v3  ;;  %v2106_v26 = vld [vmem:[%s3498_s0 + $0x124] ss:$8 sps:$4 sm:$0xff]   ;;  %v2108_v28 = vld [vmem:[%s3498_s0 + $0x120] ss:$8 sps:$4 sm:$0xff]   ;;  %v2112_v30 = vld [vmem:[%s3498_s0 + $0x134] ss:$8 sps:$4 sm:$0xff]  }
   0xb   :  { %536 = vmatprep.subr.bf16.mxu0 %v2168_v0  ;;  %2024 = vmatprep.subr.bf16.mxu1 %v2168_v0  ;;  %v2081_v31 = vld [vmem:[%s3498_s0 + $0x30] ss:$8 sps:$4 sm:$0xff]   ;;  %v2082_v33 = vld [vmem:[%s3498_s0 + $0x44] ss:$8 sps:$4 sm:$0xff]   ;;  %v2084_v35 = vld [vmem:[%s3498_s0 + $0x40] ss:$8 sps:$4 sm:$0xff]  }
   0xc   :  { %v2114_v32 = vld [vmem:[%s3498_s0 + $0x130] ss:$8 sps:$4 sm:$0xff]   ;;  %v2118_v34 = vld [vmem:[%s3498_s0 + $0x144] ss:$8 sps:$4 sm:$0xff]   ;;  %v2120_v36 = vld [vmem:[%s3498_s0 + $0x140] ss:$8 sps:$4 sm:$0xff]  }
   0xd   :  { %v2085_v37 = vld [vmem:[%s3498_s0 + $0x54] ss:$8 sps:$4 sm:$0xff]   ;;  %v2087_v39 = vld [vmem:[%s3498_s0 + $0x50] ss:$8 sps:$4 sm:$0xff]   ;;  %v2088_v41 = vld [vmem:[%s3498_s0 + $0x64] ss:$8 sps:$4 sm:$0xff]  }
   0xe   :  { %537 = vmatpush1.bf16.msra.mxu0 %v2057_v4  ;;  %2040 = vmatpush1.bf16.msra.mxu1 %v2057_v4  ;;  %v2124_v38 = vld [vmem:[%s3498_s0 + $0x154] ss:$8 sps:$4 sm:$0xff]   ;;  %v2126_v40 = vld [vmem:[%s3498_s0 + $0x150] ss:$8 sps:$4 sm:$0xff]   ;;  %v2130_v42 = vld [vmem:[%s3498_s0 + $0x164] ss:$8 sps:$4 sm:$0xff]  }
   0xf   :  { %538 = vmatprep.subr.bf16.mxu0 %v2168_v0  ;;  %2025 = vmatprep.subr.bf16.mxu1 %v2168_v0  ;;  %v2090_v43 = vld [vmem:[%s3498_s0 + $0x60] ss:$8 sps:$4 sm:$0xff]   ;;  %v2091_v45 = vld [vmem:[%s3498_s0 + $0x74] ss:$8 sps:$4 sm:$0xff]   ;;  %v2093_v47 = vld [vmem:[%s3498_s0 + $0x70] ss:$8 sps:$4 sm:$0xff]  }
  0x10   :  { %v2132_v44 = vld [vmem:[%s3498_s0 + $0x160] ss:$8 sps:$4 sm:$0xff]   ;;  %v2136_v46 = vld [vmem:[%s3498_s0 + $0x174] ss:$8 sps:$4 sm:$0xff]   ;;  %v2138_v48 = vld [vmem:[%s3498_s0 + $0x170] ss:$8 sps:$4 sm:$0xff]  }
  0x11   :  { %v2097_v49 = vld [vmem:[%s3498_s0 + $0x84] ss:$8 sps:$4 sm:$0xff]   ;;  %v2099_v51 = vld [vmem:[%s3498_s0 + $0x80] ss:$8 sps:$4 sm:$0xff]   ;;  %v2103_v53 = vld [vmem:[%s3498_s0 + $0x94] ss:$8 sps:$4 sm:$0xff]  }
  0x12   :  { %539 = vmatpush1.bf16.msra.mxu0 %v2058_v5  ;;  %2041 = vmatpush1.bf16.msra.mxu1 %v2058_v5  ;;  %v2142_v50 = vld [vmem:[%s3498_s0 + $0x184] ss:$8 sps:$4 sm:$0xff]   ;;  %v2144_v52 = vld [vmem:[%s3498_s0 + $0x180] ss:$8 sps:$4 sm:$0xff]   ;;  %v2145_v54 = vld [vmem:[%s3498_s0 + $0x194] ss:$8 sps:$4 sm:$0xff]  }
  0x13   :  { %540 = vmatprep.subr.bf16.mxu0 %v2168_v0  ;;  %2026 = vmatprep.subr.bf16.mxu1 %v2168_v0  ;;  %v2105_v55 = vld [vmem:[%s3498_s0 + $0x90] ss:$8 sps:$4 sm:$0xff]   ;;  %v2109_v57 = vld [vmem:[%s3498_s0 + $0xa4] ss:$8 sps:$4 sm:$0xff]   ;;  %v2111_v59 = vld [vmem:[%s3498_s0 + $0xa0] ss:$8 sps:$4 sm:$0xff]  }
  0x14   :  { %v2147_v56 = vld [vmem:[%s3498_s0 + $0x190] ss:$8 sps:$4 sm:$0xff]   ;;  %v2148_v58 = vld [vmem:[%s3498_s0 + $0x1a4] ss:$8 sps:$4 sm:$0xff]   ;;  %v2150_v60 = vld [vmem:[%s3498_s0 + $0x1a0] ss:$8 sps:$4 sm:$0xff]  }
  0x15   :  { %v2115_v61 = vld [vmem:[%s3498_s0 + $0xb4] ss:$8 sps:$4 sm:$0xff]   ;;  %v2117_v63 = vld [vmem:[%s3498_s0 + $0xb0] ss:$8 sps:$4 sm:$0xff]   ;;  %v2121_v1 = vld [vmem:[%s3498_s0 + $0xc4] ss:$8 sps:$4 sm:$0xff]  }
  0x16   :  { %541 = vmatpush1.bf16.msra.mxu0 %v2059_v7  ;;  %2042 = vmatpush1.bf16.msra.mxu1 %v2059_v7  ;;  %v2151_v62 = vld [vmem:[%s3498_s0 + $0x1b4] ss:$8 sps:$4 sm:$0xff]   ;;  %v2154_v2 = vld [vmem:[%s3498_s0 + $0x1c4] ss:$8 sps:$4 sm:$0xff]   ;;  %v2123_v3 = vld [vmem:[%s3498_s0 + $0xc0] ss:$8 sps:$4 sm:$0xff]  }
  0x17   :  { %542 = vmatprep.subr.bf16.mxu0 %v2168_v0  ;;  %2027 = vmatprep.subr.bf16.mxu1 %v2168_v0  ;;  %v2156_v4 = vld [vmem:[%s3498_s0 + $0x1c0] ss:$8 sps:$4 sm:$0xff]   ;;  %v2127_v5 = vld [vmem:[%s3498_s0 + $0xd4] ss:$8 sps:$4 sm:$0xff]   ;;  %v2129_v7 = vld [vmem:[%s3498_s0 + $0xd0] ss:$8 sps:$4 sm:$0xff]  }
  0x18   :  { %v2157_v6 = vld [vmem:[%s3498_s0 + $0x1d4] ss:$8 sps:$4 sm:$0xff]   ;;  %v2160_v10 = vld [vmem:[%s3498_s0 + $0x1e4] ss:$8 sps:$4 sm:$0xff]  }
  0x1a   :  { %543 = vmatpush1.bf16.msra.mxu0 %v2060_v8  ;;  %2043 = vmatpush1.bf16.msra.mxu1 %v2060_v8  ;;  %v2159_v8 = vld [vmem:[%s3498_s0 + $0x1d0] ss:$8 sps:$4 sm:$0xff]  }
  0x1b   :  { %544 = vmatprep.subr.bf16.mxu0 %v2168_v0  ;;  %2028 = vmatprep.subr.bf16.mxu1 %v2168_v0 }
  0x1e   :  { %545 = vmatpush1.bf16.msra.mxu0 %v2061_v9  ;;  %2044 = vmatpush1.bf16.msra.mxu1 %v2061_v9  ;;  %v2133_v9 = vld [vmem:[%s3498_s0 + $0xe4] ss:$8 sps:$4 sm:$0xff]  }
  0x1f   :  { %546 = vmatprep.subr.bf16.mxu0 %v2168_v0  ;;  %2029 = vmatprep.subr.bf16.mxu1 %v2168_v0 }
  0x22   :  { %547 = vmatpush1.bf16.msra.mxu0 %v2062_v11  ;;  %2045 = vmatpush1.bf16.msra.mxu1 %v2062_v11  ;;  %v2135_v11 = vld [vmem:[%s3498_s0 + $0xe0] ss:$8 sps:$4 sm:$0xff]  }
  0x23   :  { %548 = vmatprep.subr.bf16.mxu0 %v2168_v0  ;;  %2030 = vmatprep.subr.bf16.mxu1 %v2168_v0 }
  0x26   :  { %549 = vmatpush1.bf16.msra.mxu0 %v2063_v12  ;;  %2046 = vmatpush1.bf16.msra.mxu1 %v2063_v12  ;;  %v2162_v12 = vld [vmem:[%s3498_s0 + $0x1e0] ss:$8 sps:$4 sm:$0xff]  }
  0x27   :  { %550 = vmatprep.subr.bf16.mxu0 %v2168_v0  ;;  %2031 = vmatprep.subr.bf16.mxu1 %v2168_v0 }
  0x2a   :  { %551 = vmatpush1.bf16.msra.mxu0 %v2064_v13  ;;  %2047 = vmatpush1.bf16.msra.mxu1 %v2064_v13  ;;  %v2139_v13 = vld [vmem:[%s3498_s0 + $0xf4] ss:$8 sps:$4 sm:$0xff]  }
  0x2b   :  { %552 = vmatprep.subr.bf16.mxu0 %v2168_v0  ;;  %2032 = vmatprep.subr.bf16.mxu1 %v2168_v0 }
  0x2e   :  { %553 = vmatpush1.bf16.msra.mxu0 %v2065_v14  ;;  %2048 = vmatpush1.bf16.msra.mxu1 %v2065_v14  ;;  %v2163_v14 = vld [vmem:[%s3498_s0 + $0x1f4] ss:$8 sps:$4 sm:$0xff]  }
  0x2f   :  { %554 = vmatprep.subr.bf16.mxu0 %v2168_v0  ;;  %2033 = vmatprep.subr.bf16.mxu1 %v2168_v0 }
  0x32   :  { %555 = vmatpush1.bf16.msra.mxu0 %v2066_v15  ;;  %2049 = vmatpush1.bf16.msra.mxu1 %v2066_v15  ;;  %v2141_v15 = vld [vmem:[%s3498_s0 + $0xf0] ss:$8 sps:$4 sm:$0xff]  }
  0x33   :  { %556 = vmatprep.subr.bf16.mxu0 %v2168_v0  ;;  %2034 = vmatprep.subr.bf16.mxu1 %v2168_v0 }
  0x36   :  { %557 = vmatpush1.bf16.msra.mxu0 %v2067_v16  ;;  %2050 = vmatpush1.bf16.msra.mxu1 %v2067_v16  ;;  %v2165_v16 = vld [vmem:[%s3498_s0 + $0x1f0] ss:$8 sps:$4 sm:$0xff]  }
  0x37   :  { %558 = vmatprep.subr.bf16.mxu0 %v2168_v0  ;;  %2035 = vmatprep.subr.bf16.mxu1 %v2168_v0 }
  0x3a   :  { %559 = vmatpush1.bf16.msra.mxu0 %v2068_v17  ;;  %2051 = vmatpush1.bf16.msra.mxu1 %v2068_v17 }
  0x3b   :  { %560 = vmatprep.subr.bf16.mxu0 %v2168_v0  ;;  %2036 = vmatprep.subr.bf16.mxu1 %v2168_v0  ;;  %v2153_v0 = vld [vmem:[%s3498_s0 + $0x1b0] ss:$8 sps:$4 sm:$0xff]  }
  0x3e   :  { %561 = vmatpush1.bf16.msra.mxu0 %v2069_v18  ;;  %2052 = vmatpush1.bf16.msra.mxu1 %v2069_v18 }
  0x41   :  { %563 = vmatmul.mubr.bf16.vlgmr.msra.gmra.mrb[0].mxu0 %v2070_v19  ;;  %691 = vmatmul.mubr.bf16.vlgmr.msra.gmra.mrb[0].mxu1 %v2094_v20 }
  0x42   :  { %570 = vmatprep.mubr.bf16.mxu0 %v2073_v21  ;;  %698 = vmatprep.mubr.bf16.mxu1 %v2100_v22 }
  0x49   :  { %571 = vmatmul.mubr.bf16.gmra.mrb[4].mxu0 %v2075_v23  ;;  %699 = vmatmul.mubr.bf16.gmra.mrb[4].mxu1 %v2102_v24 }
  0x4a   :  { %578 = vmatprep.mubr.bf16.mxu0 %v2076_v25  ;;  %706 = vmatprep.mubr.bf16.mxu1 %v2106_v26 }
  0x51   :  { %579 = vmatmul.mubr.bf16.gmra.mrb[8].mxu0 %v2078_v27  ;;  %707 = vmatmul.mubr.bf16.gmra.mrb[8].mxu1 %v2108_v28 }
  0x52   :  { %586 = vmatprep.mubr.bf16.mxu0 %v2079_v29  ;;  %714 = vmatprep.mubr.bf16.mxu1 %v2112_v30 }
  0x59   :  { %587 = vmatmul.mubr.bf16.gmra.mrb[12].mxu0 %v2081_v31  ;;  %715 = vmatmul.mubr.bf16.gmra.mrb[12].mxu1 %v2114_v32 }
  0x5a   :  { %594 = vmatprep.mubr.bf16.mxu0 %v2082_v33  ;;  %722 = vmatprep.mubr.bf16.mxu1 %v2118_v34 }
  0x61   :  { %595 = vmatmul.mubr.bf16.gmra.mrb[16].mxu0 %v2084_v35  ;;  %723 = vmatmul.mubr.bf16.gmra.mrb[16].mxu1 %v2120_v36 }
  0x62   :  { %602 = vmatprep.mubr.bf16.mxu0 %v2085_v37  ;;  %730 = vmatprep.mubr.bf16.mxu1 %v2124_v38 }
  0x69   :  { %603 = vmatmul.mubr.bf16.gmra.mrb[20].mxu0 %v2087_v39  ;;  %731 = vmatmul.mubr.bf16.gmra.mrb[20].mxu1 %v2126_v40 }
  0x6a   :  { %610 = vmatprep.mubr.bf16.mxu0 %v2088_v41  ;;  %738 = vmatprep.mubr.bf16.mxu1 %v2130_v42 }
  0x71   :  { %611 = vmatmul.mubr.bf16.gmra.mrb[24].mxu0 %v2090_v43  ;;  %739 = vmatmul.mubr.bf16.gmra.mrb[24].mxu1 %v2132_v44 }
  0x72   :  { %618 = vmatprep.mubr.bf16.mxu0 %v2091_v45  ;;  %746 = vmatprep.mubr.bf16.mxu1 %v2136_v46 }
  0x79   :  { %619 = vmatmul.mubr.bf16.gmra.mrb[28].mxu0 %v2093_v47  ;;  %747 = vmatmul.mubr.bf16.gmra.mrb[28].mxu1 %v2138_v48 }
  0x7a   :  { %626 = vmatprep.mubr.bf16.mxu0 %v2097_v49  ;;  %754 = vmatprep.mubr.bf16.mxu1 %v2142_v50 }
  0x81   :  { %627 = vmatmul.mubr.bf16.gmra.mrb[32].mxu0 %v2099_v51  ;;  %755 = vmatmul.mubr.bf16.gmra.mrb[32].mxu1 %v2144_v52 }
  0x82   :  { %634 = vmatprep.mubr.bf16.mxu0 %v2103_v53  ;;  %762 = vmatprep.mubr.bf16.mxu1 %v2145_v54 }
  0x89   :  { %635 = vmatmul.mubr.bf16.gmra.mrb[36].mxu0 %v2105_v55  ;;  %763 = vmatmul.mubr.bf16.gmra.mrb[36].mxu1 %v2147_v56 }
  0x8a   :  { %642 = vmatprep.mubr.bf16.mxu0 %v2109_v57  ;;  %770 = vmatprep.mubr.bf16.mxu1 %v2148_v58 }
  0x91   :  { %643 = vmatmul.mubr.bf16.gmra.mrb[40].mxu0 %v2111_v59  ;;  %771 = vmatmul.mubr.bf16.gmra.mrb[40].mxu1 %v2150_v60 }
  0x92   :  { %650 = vmatprep.mubr.bf16.mxu0 %v2115_v61  ;;  %778 = vmatprep.mubr.bf16.mxu1 %v2151_v62 }
  0x99   :  { %651 = vmatmul.mubr.bf16.gmra.mrb[44].mxu0 %v2117_v63  ;;  %779 = vmatmul.mubr.bf16.gmra.mrb[44].mxu1 %v2153_v0 }
  0x9a   :  { %658 = vmatprep.mubr.bf16.mxu0 %v2121_v1  ;;  %786 = vmatprep.mubr.bf16.mxu1 %v2154_v2 }
  0xa1   :  { %659 = vmatmul.mubr.bf16.gmra.mrb[48].mxu0 %v2123_v3  ;;  %787 = vmatmul.mubr.bf16.gmra.mrb[48].mxu1 %v2156_v4 }
  0xa2   :  { %666 = vmatprep.mubr.bf16.mxu0 %v2127_v5  ;;  %794 = vmatprep.mubr.bf16.mxu1 %v2157_v6 }
  0xa9   :  { %667 = vmatmul.mubr.bf16.gmra.mrb[52].mxu0 %v2129_v7  ;;  %795 = vmatmul.mubr.bf16.gmra.mrb[52].mxu1 %v2159_v8 }
  0xaa   :  { %674 = vmatprep.mubr.bf16.mxu0 %v2133_v9  ;;  %802 = vmatprep.mubr.bf16.mxu1 %v2160_v10 }
  0xb1   :  { %675 = vmatmul.mubr.bf16.gmra.mrb[56].mxu0 %v2135_v11  ;;  %803 = vmatmul.mubr.bf16.gmra.mrb[56].mxu1 %v2162_v12 }
  0xb2   :  { %682 = vmatprep.mubr.bf16.mxu0 %v2139_v13  ;;  %810 = vmatprep.mubr.bf16.mxu1 %v2163_v14 }
  0xb9   :  { %683 = vmatmul.mubr.bf16.gmra.mrb[60].mxu0 %v2141_v15  ;;  %811 = vmatmul.mubr.bf16.gmra.mrb[60].mxu1 %v2165_v16 }
 0x114   :  { %v2466_v17 = vpop.f32.mrb[0].mxu0  ;;  %v2468_v18 = vpop.f32.mrb[0].mxu1 }
 0x115   :  { %v566_v19 = vpop.f32.mrb[1].mxu0  ;;  %v694_v20 = vpop.f32.mrb[1].mxu1 }
 0x116   :  { %v2470_v21 = vpop.f32.mrb[2].mxu0  ;;  %v2472_v22 = vpop.f32.mrb[2].mxu1 }
 0x117   :  { %v819_v23 = vadd.f32 %v2470_v21, %v2466_v17  ;;  %v569_v24 = vpop.f32.mrb[3].mxu0  ;;  %v697_v25 = vpop.f32.mrb[3].mxu1 }
 0x11c   :  { %v2476_v26 = vpop.f32.mrb[4].mxu0  ;;  %v2478_v27 = vpop.f32.mrb[4].mxu1 }
 0x11d   :  { %3554 = vst [vmem:[#allocation2_spill] sm:$0xff] %v2476_v26  ;;  %v820_v28 = vadd.f32 %v819_v23, %v2476_v26  ;;  %v574_v29 = vpop.f32.mrb[5].mxu0  ;;  %v702_v30 = vpop.f32.mrb[5].mxu1 }
 0x11e   :  { %v2481_v31 = vpop.f32.mrb[6].mxu0  ;;  %v2483_v32 = vpop.f32.mrb[6].mxu1 }
 0x11f   :  { %3555 = vst [vmem:[#allocation3_spill] sm:$0xff] %v2481_v31  ;;  %v821_v33 = vadd.f32 %v820_v28, %v2481_v31  ;;  %v577_v34 = vpop.f32.mrb[7].mxu0  ;;  %v705_v35 = vpop.f32.mrb[7].mxu1 }
 0x124   :  { %v2486_v36 = vpop.f32.mrb[8].mxu0  ;;  %v2488_v37 = vpop.f32.mrb[8].mxu1 }
 0x125   :  { %3556 = vst [vmem:[#allocation4_spill] sm:$0xff] %v2486_v36  ;;  %v822_v38 = vadd.f32 %v821_v33, %v2486_v36  ;;  %v582_v39 = vpop.f32.mrb[9].mxu0  ;;  %v710_v40 = vpop.f32.mrb[9].mxu1 }
 0x126   :  { %v2491_v41 = vpop.f32.mrb[10].mxu0  ;;  %v2493_v42 = vpop.f32.mrb[10].mxu1 }
 0x127   :  { %v823_v43 = vadd.f32 %v822_v38, %v2491_v41  ;;  %v585_v44 = vpop.f32.mrb[11].mxu0  ;;  %v713_v45 = vpop.f32.mrb[11].mxu1 }
 0x12c   :  { %v2496_v46 = vpop.f32.mrb[12].mxu0  ;;  %v2498_v47 = vpop.f32.mrb[12].mxu1 }
 0x12d   :  { %v824_v48 = vadd.f32 %v823_v43, %v2496_v46  ;;  %v590_v49 = vpop.f32.mrb[13].mxu0  ;;  %v718_v50 = vpop.f32.mrb[13].mxu1 }
 0x12e   :  { %v2501_v51 = vpop.f32.mrb[14].mxu0  ;;  %v2503_v52 = vpop.f32.mrb[14].mxu1 }
 0x12f   :  { %v825_v53 = vadd.f32 %v824_v48, %v2501_v51  ;;  %v593_v54 = vpop.f32.mrb[15].mxu0  ;;  %v721_v55 = vpop.f32.mrb[15].mxu1 }
 0x134   :  { %v2506_v56 = vpop.f32.mrb[16].mxu0  ;;  %v2508_v57 = vpop.f32.mrb[16].mxu1 }
 0x135   :  { %v826_v58 = vadd.f32 %v825_v53, %v2506_v56  ;;  %v598_v59 = vpop.f32.mrb[17].mxu0  ;;  %v726_v60 = vpop.f32.mrb[17].mxu1 }
 0x136   :  { %v2511_v61 = vpop.f32.mrb[18].mxu0  ;;  %v2513_v62 = vpop.f32.mrb[18].mxu1 }
 0x137   :  { %v827_v63 = vadd.f32 %v826_v58, %v2511_v61  ;;  %v601_v0 = vpop.f32.mrb[19].mxu0  ;;  %v729_v1 = vpop.f32.mrb[19].mxu1 }
 0x13c   :  { %v2516_v2 = vpop.f32.mrb[20].mxu0  ;;  %v2518_v3 = vpop.f32.mrb[20].mxu1 }
 0x13d   :  { %v828_v4 = vadd.f32 %v827_v63, %v2516_v2  ;;  %v606_v5 = vpop.f32.mrb[21].mxu0  ;;  %v734_v6 = vpop.f32.mrb[21].mxu1 }
 0x13e   :  { %v2521_v7 = vpop.f32.mrb[22].mxu0  ;;  %v2523_v8 = vpop.f32.mrb[22].mxu1 }
 0x13f   :  { %v829_v9 = vadd.f32 %v828_v4, %v2521_v7  ;;  %v609_v10 = vpop.f32.mrb[23].mxu0  ;;  %v737_v11 = vpop.f32.mrb[23].mxu1 }
 0x144   :  { %v2526_v12 = vpop.f32.mrb[24].mxu0  ;;  %v2528_v13 = vpop.f32.mrb[24].mxu1 }
 0x145   :  { %v830_v14 = vadd.f32 %v829_v9, %v2526_v12  ;;  %v614_v15 = vpop.f32.mrb[25].mxu0  ;;  %v742_v16 = vpop.f32.mrb[25].mxu1 }
 0x146   :  { %v2531_v19 = vpop.f32.mrb[26].mxu0  ;;  %v2533_v20 = vpop.f32.mrb[26].mxu1 }
 0x147   :  { %v831_v23 = vadd.f32 %v830_v14, %v2531_v19  ;;  %v617_v24 = vpop.f32.mrb[27].mxu0  ;;  %v745_v25 = vpop.f32.mrb[27].mxu1 }
 0x14c   :  { %v2536_v28 = vpop.f32.mrb[28].mxu0  ;;  %v2538_v29 = vpop.f32.mrb[28].mxu1 }
 0x14d   :  { %v832_v30 = vadd.f32 %v831_v23, %v2536_v28  ;;  %v622_v33 = vpop.f32.mrb[29].mxu0  ;;  %v750_v34 = vpop.f32.mrb[29].mxu1 }
 0x14e   :  { %v2541_v35 = vpop.f32.mrb[30].mxu0  ;;  %v2543_v38 = vpop.f32.mrb[30].mxu1 }
 0x14f   :  { %3557 = vst [vmem:[#allocation5_spill] sm:$0xff] %v2541_v35  ;;  %v833_v39 = vadd.f32 %v832_v30, %v2541_v35  ;;  %v625_v40 = vpop.f32.mrb[31].mxu0  ;;  %v753_v43 = vpop.f32.mrb[31].mxu1 }
 0x154   :  { %v2546_v44 = vpop.f32.mrb[32].mxu0  ;;  %v2548_v45 = vpop.f32.mrb[32].mxu1 }
 0x155   :  { %3558 = vst [vmem:[#allocation6_spill] sm:$0xff] %v2546_v44  ;;  %v834_v48 = vadd.f32 %v833_v39, %v2546_v44  ;;  %v630_v49 = vpop.f32.mrb[33].mxu0  ;;  %v758_v50 = vpop.f32.mrb[33].mxu1 }
 0x156   :  { %v2551_v53 = vpop.f32.mrb[34].mxu0  ;;  %v2553_v54 = vpop.f32.mrb[34].mxu1 }
 0x157   :  { %3559 = vst [vmem:[#allocation7_spill] sm:$0xff] %v2551_v53  ;;  %v835_v55 = vadd.f32 %v834_v48, %v2551_v53  ;;  %v633_v58 = vpop.f32.mrb[35].mxu0  ;;  %v761_v59 = vpop.f32.mrb[35].mxu1 }
 0x15c   :  { %v2556_v60 = vpop.f32.mrb[36].mxu0  ;;  %v2558_v63 = vpop.f32.mrb[36].mxu1 }
 0x15d   :  { %3560 = vst [vmem:[#allocation8_spill] sm:$0xff] %v2556_v60  ;;  %3561 = vst [vmem:[#allocation9_spill] sm:$0xff] %v2558_v63  ;;  %v836_v0 = vadd.f32 %v835_v55, %v2556_v60  ;;  %v638_v1 = vpop.f32.mrb[37].mxu0  ;;  %v766_v4 = vpop.f32.mrb[37].mxu1 }
 0x15e   :  { %v2561_v5 = vpop.f32.mrb[38].mxu0  ;;  %v2563_v6 = vpop.f32.mrb[38].mxu1 }
 0x15f   :  { %3562 = vst [vmem:[#allocation10_spill] sm:$0xff] %v2561_v5  ;;  %3563 = vst [vmem:[#allocation11_spill] sm:$0xff] %v2563_v6  ;;  %v837_v9 = vadd.f32 %v836_v0, %v2561_v5  ;;  %v641_v10 = vpop.f32.mrb[39].mxu0  ;;  %v769_v11 = vpop.f32.mrb[39].mxu1 }
 0x164   :  { %v2566_v14 = vpop.f32.mrb[40].mxu0  ;;  %v2568_v15 = vpop.f32.mrb[40].mxu1 }
 0x165   :  { %3564 = vst [vmem:[#allocation12_spill] sm:$0xff] %v2566_v14  ;;  %3565 = vst [vmem:[#allocation13_spill] sm:$0xff] %v2568_v15  ;;  %v838_v16 = vadd.f32 %v837_v9, %v2566_v14  ;;  %v646_v23 = vpop.f32.mrb[41].mxu0  ;;  %v774_v24 = vpop.f32.mrb[41].mxu1 }
 0x166   :  { %v2571_v25 = vpop.f32.mrb[42].mxu0  ;;  %v2573_v30 = vpop.f32.mrb[42].mxu1 }
 0x167   :  { %3566 = vst [vmem:[#allocation14_spill] sm:$0xff] %v2571_v25  ;;  %v839_v33 = vadd.f32 %v838_v16, %v2571_v25  ;;  %v649_v34 = vpop.f32.mrb[43].mxu0  ;;  %v777_v39 = vpop.f32.mrb[43].mxu1 }
 0x16c   :  { %v2576_v40 = vpop.f32.mrb[44].mxu0  ;;  %v2578_v43 = vpop.f32.mrb[44].mxu1 }
 0x16d   :  { %3567 = vst [vmem:[#allocation15_spill] sm:$0xff] %v2576_v40  ;;  %3568 = vst [vmem:[#allocation16_spill] sm:$0xff] %v2578_v43  ;;  %v840_v48 = vadd.f32 %v839_v33, %v2576_v40  ;;  %v654_v49 = vpop.f32.mrb[45].mxu0  ;;  %v782_v50 = vpop.f32.mrb[45].mxu1 }
 0x16e   :  { %v2581_v55 = vpop.f32.mrb[46].mxu0  ;;  %v2583_v58 = vpop.f32.mrb[46].mxu1 }
 0x16f   :  { %3569 = vst [vmem:[#allocation17_spill] sm:$0xff] %v2581_v55  ;;  %3570 = vst [vmem:[#allocation18_spill] sm:$0xff] %v2583_v58  ;;  %v841_v59 = vadd.f32 %v840_v48, %v2581_v55  ;;  %v657_v0 = vpop.f32.mrb[47].mxu0  ;;  %v785_v1 = vpop.f32.mrb[47].mxu1 }
 0x174   :  { %v2586_v4 = vpop.f32.mrb[48].mxu0  ;;  %v2588_v9 = vpop.f32.mrb[48].mxu1 }
 0x175   :  { %3571 = vst [vmem:[#allocation19_spill] sm:$0xff] %v2586_v4  ;;  %3572 = vst [vmem:[#allocation20_spill] sm:$0xff] %v2588_v9  ;;  %v842_v10 = vadd.f32 %v841_v59, %v2586_v4  ;;  %v662_v11 = vpop.f32.mrb[49].mxu0  ;;  %v790_v16 = vpop.f32.mrb[49].mxu1 }
 0x176   :  { %v2591_v23 = vpop.f32.mrb[50].mxu0  ;;  %v2593_v24 = vpop.f32.mrb[50].mxu1 }
 0x177   :  { %3573 = vst [vmem:[#allocation21_spill] sm:$0xff] %v2591_v23  ;;  %3574 = vst [vmem:[#allocation22_spill] sm:$0xff] %v2593_v24  ;;  %v843_v33 = vadd.f32 %v842_v10, %v2591_v23  ;;  %v665_v34 = vpop.f32.mrb[51].mxu0  ;;  %v793_v39 = vpop.f32.mrb[51].mxu1 }
 0x17c   :  { %v2596_v49 = vpop.f32.mrb[52].mxu0  ;;  %v2598_v48 = vpop.f32.mrb[52].mxu1 }
 0x17d   :  { %3575 = vst [vmem:[#allocation23_spill] sm:$0xff] %v2596_v49  ;;  %3576 = vst [vmem:[#allocation24_spill] sm:$0xff] %v2598_v48  ;;  %v844_v50 = vadd.f32 %v843_v33, %v2596_v49  ;;  %v670_v0 = vpop.f32.mrb[53].mxu0  ;;  %v798_v1 = vpop.f32.mrb[53].mxu1 }
 0x17e   :  { %v2601_v55 = vpop.f32.mrb[54].mxu0  ;;  %v2603_v59 = vpop.f32.mrb[54].mxu1 }
 0x17f   :  { %3577 = vst [vmem:[#allocation25_spill] sm:$0xff] %v2601_v55  ;;  %3578 = vst [vmem:[#allocation26_spill] sm:$0xff] %v2603_v59  ;;  %v845_v11 = vadd.f32 %v844_v50, %v2601_v55  ;;  %v673_v16 = vpop.f32.mrb[55].mxu0  ;;  %v801_v4 = vpop.f32.mrb[55].mxu1 }
 0x184   :  { %v2606_v40 = vpop.f32.mrb[56].mxu0  ;;  %v2608_v10 = vpop.f32.mrb[56].mxu1 }
 0x185   :  { %3579 = vst [vmem:[#allocation27_spill] sm:$0xff] %v2606_v40  ;;  %3580 = vst [vmem:[#allocation28_spill] sm:$0xff] %v2608_v10  ;;  %v846_v34 = vadd.f32 %v845_v11, %v2606_v40  ;;  %v678_v39 = vpop.f32.mrb[57].mxu0  ;;  %v806_v23 = vpop.f32.mrb[57].mxu1 }
 0x186   :  { %v2611_v25 = vpop.f32.mrb[58].mxu0  ;;  %v2613_v33 = vpop.f32.mrb[58].mxu1 }
 0x187   :  { %3581 = vst [vmem:[#allocation29_spill] sm:$0xff] %v2611_v25  ;;  %3582 = vst [vmem:[#allocation30_spill] sm:$0xff] %v2613_v33  ;;  %v847_v0 = vadd.f32 %v846_v34, %v2611_v25  ;;  %v681_v1 = vpop.f32.mrb[59].mxu0  ;;  %v809_v49 = vpop.f32.mrb[59].mxu1 }
 0x18c   :  { %v2616_v14 = vpop.f32.mrb[60].mxu0  ;;  %v2618_v50 = vpop.f32.mrb[60].mxu1 }
 0x18d   :  { %3583 = vst [vmem:[#allocation31_spill] sm:$0xff] %v2616_v14  ;;  %3584 = vst [vmem:[#allocation32_spill] sm:$0xff] %v2618_v50  ;;  %v848_v4 = vadd.f32 %v847_v0, %v2616_v14  ;;  %v686_v16 = vpop.f32.mrb[61].mxu0  ;;  %v814_v55 = vpop.f32.mrb[61].mxu1 }
 0x18e   :  { %v2621_v5 = vpop.f32.mrb[62].mxu0  ;;  %v2623_v11 = vpop.f32.mrb[62].mxu1 }
 0x18f   :  { %v849_v23 = vadd.f32 %v848_v4, %v2621_v5  ;;  %v689_v39 = vpop.f32.mrb[63].mxu0  ;;  %v817_v40 = vpop.f32.mrb[63].mxu1 }
 0x191   :  { %v850_v34 = vadd.f32 %v849_v23, %v2468_v18 }
 0x193   :  { %v851_v49 = vadd.f32 %v850_v34, %v2472_v22 }
 0x195   :  { %v852_v1 = vadd.f32 %v851_v49, %v2478_v27 }
 0x197   :  { %v853_v25 = vadd.f32 %v852_v1, %v2483_v32 }
 0x199   :  { %v854_v0 = vadd.f32 %v853_v25, %v2488_v37 }
 0x19b   :  { %v855_v55 = vadd.f32 %v854_v0, %v2493_v42 }
 0x19d   :  { %v856_v16 = vadd.f32 %v855_v55, %v2498_v47 }
 0x19f   :  { %v857_v14 = vadd.f32 %v856_v16, %v2503_v52 }
 0x1a1   :  { %v858_v4 = vadd.f32 %v857_v14, %v2508_v57 }
 0x1a3   :  { %v859_v40 = vadd.f32 %v858_v4, %v2513_v62 }
 0x1a5   :  { %v860_v23 = vadd.f32 %v859_v40, %v2518_v3 }
 0x1a7   :  { %v861_v39 = vadd.f32 %v860_v23, %v2523_v8 }
 0x1a9   :  { %v862_v34 = vadd.f32 %v861_v39, %v2528_v13 }
 0x1ab   :  { %v863_v49 = vadd.f32 %v862_v34, %v2533_v20 }
 0x1ad   :  { %v864_v25 = vadd.f32 %v863_v49, %v2538_v29 }
 0x1af   :  { %v865_v1 = vadd.f32 %v864_v25, %v2543_v38 }
 0x1b1   :  { %v866_v0 = vadd.f32 %v865_v1, %v2548_v45 }
 0x1b3   :  { %v867_v55 = vadd.f32 %v866_v0, %v2553_v54 }
 0x1b5   :  { %v868_v14 = vadd.f32 %v867_v55, %v2558_v63 }
 0x1b7   :  { %v869_v16 = vadd.f32 %v868_v14, %v2563_v6 }
 0x1b9   :  { %v870_v4 = vadd.f32 %v869_v16, %v2568_v15 }
 0x1bb   :  { %v871_v40 = vadd.f32 %v870_v4, %v2573_v30 }
 0x1bd   :  { %v872_v23 = vadd.f32 %v871_v40, %v2578_v43 }
 0x1bf   :  { %v873_v39 = vadd.f32 %v872_v23, %v2583_v58 }
 0x1c1   :  { %v874_v34 = vadd.f32 %v873_v39, %v2588_v9 }
 0x1c3   :  { %v875_v49 = vadd.f32 %v874_v34, %v2593_v24 }
 0x1c5   :  { %v876_v25 = vadd.f32 %v875_v49, %v2598_v48 }
 0x1c7   :  { %v877_v1 = vadd.f32 %v876_v25, %v2603_v59 }
 0x1c9   :  { %v878_v0 = vadd.f32 %v877_v1, %v2608_v10 }
 0x1cb   :  { %v879_v55 = vadd.f32 %v878_v0, %v2613_v33 }
 0x1cd   :  { %v880_v14 = vadd.f32 %v879_v55, %v2618_v50 }
 0x1cf   :  { %v881_v16 = vadd.f32 %v880_v14, %v2623_v11 }
 0x1d1   :  { %v882_v4 = vrot.slane %v881_v16, 4 }
 0x1d3   :  { %v883_v40 = vadd.f32 %v882_v4, %v881_v16 }
 0x1d5   :  { %v884_v43 = vrot.slane %v883_v40, 2 }
 0x1d7   :  { %v885_v23 = vadd.f32 %v884_v43, %v883_v40 }
 0x1d9   :  { %v886_v58 = vrot.slane %v885_v23, 1 }
 0x1db   :  { %v887_v39 = vadd.f32 %v886_v58, %v885_v23 }
 0x1dd   :  { %v2658_v9 = vmul.f32 0.001953125, %v887_v39 }
 0x1df   :  { %v889_v34 = vsub.f32 %v2466_v17, %v2658_v9  ;;  %v890_v49 = vsub.f32 %v2470_v21, %v2658_v9  ;;  %v891_v25 = vsub.f32 %v2476_v26, %v2658_v9  ;;  %v892_v55 = vsub.f32 %v2481_v31, %v2658_v9 }
 0x1e0   :  { %v893_v43 = vsub.f32 %v2486_v36, %v2658_v9  ;;  %v894_v16 = vsub.f32 %v2491_v41, %v2658_v9  ;;  %v895_v23 = vsub.f32 %v2496_v46, %v2658_v9  ;;  %v897_v36 = vsub.f32 %v2506_v56, %v2658_v9 }
 0x1e1   :  { %v953_v1 = vmul.f32 %v889_v34, %v889_v34  ;;  %v954_v0 = vmul.f32 %v890_v49, %v890_v49  ;;  %v955_v58 = vmul.f32 %v891_v25, %v891_v25  ;;  %v956_v4 = vmul.f32 %v892_v55, %v892_v55 }
 0x1e2   :  { %v957_v39 = vmul.f32 %v893_v43, %v893_v43  ;;  %v896_v34 = vsub.f32 %v2501_v51, %v2658_v9  ;;  %v958_v49 = vmul.f32 %v894_v16, %v894_v16  ;;  %v959_v25 = vmul.f32 %v895_v23, %v895_v23 }
 0x1e3   :  { %v1017_v14 = vadd.f32 %v954_v0, %v953_v1  ;;  %v898_v0 = vsub.f32 %v2511_v61, %v2658_v9  ;;  %v961_v43 = vmul.f32 %v897_v36, %v897_v36 }
 0x1e4   :  { %v960_v55 = vmul.f32 %v896_v34, %v896_v34 }
 0x1e5   :  { %v1018_v40 = vadd.f32 %v1017_v14, %v955_v58  ;;  %v899_v14 = vsub.f32 %v2516_v2, %v2658_v9  ;;  %v962_v16 = vmul.f32 %v898_v0, %v898_v0 }
 0x1e7   :  { %v1019_v26 = vadd.f32 %v1018_v40, %v956_v4  ;;  %v900_v40 = vsub.f32 %v2521_v7, %v2658_v9  ;;  %v963_v23 = vmul.f32 %v899_v14, %v899_v14 }
 0x1e9   :  { %v1020_v31 = vadd.f32 %v1019_v26, %v957_v39  ;;  %v901_v39 = vsub.f32 %v2526_v12, %v2658_v9  ;;  %v964_v34 = vmul.f32 %v900_v40, %v900_v40 }
 0x1eb   :  { %v1021_v1 = vadd.f32 %v1020_v31, %v958_v49  ;;  %v902_v49 = vsub.f32 %v2531_v19, %v2658_v9  ;;  %v965_v36 = vmul.f32 %v901_v39, %v901_v39 }
 0x1ed   :  { %v1022_v58 = vadd.f32 %v1021_v1, %v959_v25  ;;  %v903_v1 = vsub.f32 %v2536_v28, %v2658_v9  ;;  %v966_v0 = vmul.f32 %v902_v49, %v902_v49 }
 0x1ef   :  { %v1023_v4 = vadd.f32 %v1022_v58, %v960_v55  ;;  %v904_v58 = vsub.f32 %v2541_v35, %v2658_v9  ;;  %v967_v14 = vmul.f32 %v903_v1, %v903_v1 }
 0x1f1   :  { %v1024_v26 = vadd.f32 %v1023_v4, %v961_v43  ;;  %v905_v4 = vsub.f32 %v2546_v44, %v2658_v9  ;;  %v968_v40 = vmul.f32 %v904_v58, %v904_v58 }
 0x1f3   :  { %v1025_v31 = vadd.f32 %v1024_v26, %v962_v16  ;;  %v906_v26 = vsub.f32 %v2551_v53, %v2658_v9  ;;  %v969_v39 = vmul.f32 %v905_v4, %v905_v4 }
 0x1f5   :  { %v1026_v25 = vadd.f32 %v1025_v31, %v963_v23  ;;  %v907_v31 = vsub.f32 %v2556_v60, %v2658_v9  ;;  %v970_v49 = vmul.f32 %v906_v26, %v906_v26 }
 0x1f7   :  { %v1027_v55 = vadd.f32 %v1026_v25, %v964_v34  ;;  %v3585_v25 = vld [vmem:[#allocation10_spill] sm:$0xff]  ;;  %v971_v1 = vmul.f32 %v907_v31, %v907_v31 }
 0x1f8   :  { %v908_v35 = vsub.f32 %v3585_v25, %v2658_v9 }
 0x1f9   :  { %v1028_v43 = vadd.f32 %v1027_v55, %v965_v36  ;;  %v3586_v55 = vld [vmem:[#allocation12_spill] sm:$0xff] }
 0x1fa   :  { %v909_v44 = vsub.f32 %v3586_v55, %v2658_v9  ;;  %v972_v58 = vmul.f32 %v908_v35, %v908_v35 }
 0x1fb   :  { %v1029_v16 = vadd.f32 %v1028_v43, %v966_v0  ;;  %v3587_v43 = vld [vmem:[#allocation14_spill] sm:$0xff] }
 0x1fc   :  { %v910_v53 = vsub.f32 %v3587_v43, %v2658_v9  ;;  %v973_v4 = vmul.f32 %v909_v44, %v909_v44 }
 0x1fd   :  { %v1030_v23 = vadd.f32 %v1029_v16, %v967_v14  ;;  %v3588_v16 = vld [vmem:[#allocation15_spill] sm:$0xff] }
 0x1fe   :  { %v911_v60 = vsub.f32 %v3588_v16, %v2658_v9  ;;  %v974_v26 = vmul.f32 %v910_v53, %v910_v53 }
 0x1ff   :  { %v1031_v34 = vadd.f32 %v1030_v23, %v968_v40  ;;  %v3589_v23 = vld [vmem:[#allocation17_spill] sm:$0xff] }
 0x200   :  { %v912_v25 = vsub.f32 %v3589_v23, %v2658_v9  ;;  %v975_v31 = vmul.f32 %v911_v60, %v911_v60 }
 0x201   :  { %v1032_v36 = vadd.f32 %v1031_v34, %v969_v39  ;;  %v3590_v34 = vld [vmem:[#allocation19_spill] sm:$0xff] }
 0x202   :  { %v913_v55 = vsub.f32 %v3590_v34, %v2658_v9  ;;  %v976_v35 = vmul.f32 %v912_v25, %v912_v25 }
 0x203   :  { %v1033_v0 = vadd.f32 %v1032_v36, %v970_v49  ;;  %v3591_v36 = vld [vmem:[#allocation21_spill] sm:$0xff] }
 0x204   :  { %v914_v43 = vsub.f32 %v3591_v36, %v2658_v9  ;;  %v977_v44 = vmul.f32 %v913_v55, %v913_v55 }
 0x205   :  { %v1034_v14 = vadd.f32 %v1033_v0, %v971_v1  ;;  %v3592_v0 = vld [vmem:[#allocation23_spill] sm:$0xff] }
 0x206   :  { %v915_v16 = vsub.f32 %v3592_v0, %v2658_v9  ;;  %v978_v53 = vmul.f32 %v914_v43, %v914_v43 }
 0x207   :  { %v1035_v40 = vadd.f32 %v1034_v14, %v972_v58  ;;  %v3593_v14 = vld [vmem:[#allocation25_spill] sm:$0xff] }
 0x208   :  { %v916_v23 = vsub.f32 %v3593_v14, %v2658_v9  ;;  %v979_v60 = vmul.f32 %v915_v16, %v915_v16 }
 0x209   :  { %v1036_v39 = vadd.f32 %v1035_v40, %v973_v4  ;;  %v3594_v40 = vld [vmem:[#allocation27_spill] sm:$0xff] }
 0x20a   :  { %v917_v34 = vsub.f32 %v3594_v40, %v2658_v9  ;;  %v980_v25 = vmul.f32 %v916_v23, %v916_v23 }
 0x20b   :  { %v1037_v49 = vadd.f32 %v1036_v39, %v974_v26  ;;  %v3595_v39 = vld [vmem:[#allocation29_spill] sm:$0xff] }
 0x20c   :  { %v918_v36 = vsub.f32 %v3595_v39, %v2658_v9  ;;  %v981_v55 = vmul.f32 %v917_v34, %v917_v34 }
 0x20d   :  { %v1038_v1 = vadd.f32 %v1037_v49, %v975_v31  ;;  %v3596_v49 = vld [vmem:[#allocation31_spill] sm:$0xff] }
 0x20e   :  { %v919_v0 = vsub.f32 %v3596_v49, %v2658_v9  ;;  %v982_v43 = vmul.f32 %v918_v36, %v918_v36 }
 0x20f   :  { %v1039_v58 = vadd.f32 %v1038_v1, %v976_v35  ;;  %v920_v1 = vsub.f32 %v2621_v5, %v2658_v9 }
 0x210   :  { %v983_v16 = vmul.f32 %v919_v0, %v919_v0 }
 0x211   :  { %v1040_v4 = vadd.f32 %v1039_v58, %v977_v44  ;;  %v921_v58 = vsub.f32 %v2468_v18, %v2658_v9  ;;  %v984_v23 = vmul.f32 %v920_v1, %v920_v1 }
 0x213   :  { %v1041_v26 = vadd.f32 %v1040_v4, %v978_v53  ;;  %v922_v4 = vsub.f32 %v2472_v22, %v2658_v9  ;;  %v985_v34 = vmul.f32 %v921_v58, %v921_v58 }
 0x215   :  { %v1042_v31 = vadd.f32 %v1041_v26, %v979_v60  ;;  %v923_v26 = vsub.f32 %v2478_v27, %v2658_v9  ;;  %v986_v36 = vmul.f32 %v922_v4, %v922_v4 }
 0x217   :  { %v1043_v35 = vadd.f32 %v1042_v31, %v980_v25  ;;  %v924_v31 = vsub.f32 %v2483_v32, %v2658_v9  ;;  %v987_v0 = vmul.f32 %v923_v26, %v923_v26 }
 0x219   :  { %v1044_v44 = vadd.f32 %v1043_v35, %v981_v55  ;;  %v925_v35 = vsub.f32 %v2488_v37, %v2658_v9  ;;  %v988_v1 = vmul.f32 %v924_v31, %v924_v31 }
 0x21b   :  { %v1045_v53 = vadd.f32 %v1044_v44, %v982_v43  ;;  %v926_v44 = vsub.f32 %v2493_v42, %v2658_v9  ;;  %v989_v58 = vmul.f32 %v925_v35, %v925_v35 }
 0x21d   :  { %v1046_v60 = vadd.f32 %v1045_v53, %v983_v16  ;;  %v927_v53 = vsub.f32 %v2498_v47, %v2658_v9  ;;  %v990_v4 = vmul.f32 %v926_v44, %v926_v44 }
 0x21f   :  { %v1047_v25 = vadd.f32 %v1046_v60, %v984_v23  ;;  %v928_v60 = vsub.f32 %v2503_v52, %v2658_v9  ;;  %v991_v26 = vmul.f32 %v927_v53, %v927_v53 }
 0x221   :  { %v1048_v55 = vadd.f32 %v1047_v25, %v985_v34  ;;  %v929_v25 = vsub.f32 %v2508_v57, %v2658_v9  ;;  %v992_v31 = vmul.f32 %v928_v60, %v928_v60 }
 0x223   :  { %v1049_v43 = vadd.f32 %v1048_v55, %v986_v36  ;;  %v930_v55 = vsub.f32 %v2513_v62, %v2658_v9  ;;  %v993_v35 = vmul.f32 %v929_v25, %v929_v25 }
 0x225   :  { %v1050_v16 = vadd.f32 %v1049_v43, %v987_v0  ;;  %v931_v43 = vsub.f32 %v2518_v3, %v2658_v9  ;;  %v994_v44 = vmul.f32 %v930_v55, %v930_v55 }
 0x227   :  { %v1051_v23 = vadd.f32 %v1050_v16, %v988_v1  ;;  %v932_v16 = vsub.f32 %v2523_v8, %v2658_v9  ;;  %v995_v53 = vmul.f32 %v931_v43, %v931_v43 }
 0x229   :  { %v1052_v34 = vadd.f32 %v1051_v23, %v989_v58  ;;  %v933_v23 = vsub.f32 %v2528_v13, %v2658_v9  ;;  %v996_v60 = vmul.f32 %v932_v16, %v932_v16 }
 0x22b   :  { %v1053_v36 = vadd.f32 %v1052_v34, %v990_v4  ;;  %v934_v34 = vsub.f32 %v2533_v20, %v2658_v9  ;;  %v997_v25 = vmul.f32 %v933_v23, %v933_v23 }
 0x22d   :  { %v1054_v0 = vadd.f32 %v1053_v36, %v991_v26  ;;  %v935_v36 = vsub.f32 %v2538_v29, %v2658_v9  ;;  %v998_v55 = vmul.f32 %v934_v34, %v934_v34 }
 0x22f   :  { %v1055_v1 = vadd.f32 %v1054_v0, %v992_v31  ;;  %v936_v0 = vsub.f32 %v2543_v38, %v2658_v9  ;;  %v999_v43 = vmul.f32 %v935_v36, %v935_v36 }
 0x231   :  { %v1056_v58 = vadd.f32 %v1055_v1, %v993_v35  ;;  %v937_v1 = vsub.f32 %v2548_v45, %v2658_v9  ;;  %v1000_v16 = vmul.f32 %v936_v0, %v936_v0 }
 0x233   :  { %v1057_v4 = vadd.f32 %v1056_v58, %v994_v44  ;;  %v938_v58 = vsub.f32 %v2553_v54, %v2658_v9  ;;  %v1001_v23 = vmul.f32 %v937_v1, %v937_v1 }
 0x235   :  { %v1058_v26 = vadd.f32 %v1057_v4, %v995_v53  ;;  %v939_v4 = vsub.f32 %v2558_v63, %v2658_v9  ;;  %v1002_v34 = vmul.f32 %v938_v58, %v938_v58 }
 0x237   :  { %v1059_v31 = vadd.f32 %v1058_v26, %v996_v60  ;;  %v940_v26 = vsub.f32 %v2563_v6, %v2658_v9  ;;  %v1003_v36 = vmul.f32 %v939_v4, %v939_v4 }
 0x239   :  { %v1060_v35 = vadd.f32 %v1059_v31, %v997_v25  ;;  %v941_v31 = vsub.f32 %v2568_v15, %v2658_v9  ;;  %v1004_v0 = vmul.f32 %v940_v26, %v940_v26 }
 0x23b   :  { %v1061_v44 = vadd.f32 %v1060_v35, %v998_v55  ;;  %v942_v35 = vsub.f32 %v2573_v30, %v2658_v9  ;;  %v1005_v1 = vmul.f32 %v941_v31, %v941_v31 }
 0x23d   :  { %v1062_v53 = vadd.f32 %v1061_v44, %v999_v43  ;;  %v3597_v44 = vld [vmem:[#allocation16_spill] sm:$0xff]  ;;  %v1006_v58 = vmul.f32 %v942_v35, %v942_v35 }
 0x23e   :  { %v943_v63 = vsub.f32 %v3597_v44, %v2658_v9 }
 0x23f   :  { %v1063_v60 = vadd.f32 %v1062_v53, %v1000_v16  ;;  %v3598_v53 = vld [vmem:[#allocation18_spill] sm:$0xff] }
 0x240   :  { %v944_v6 = vsub.f32 %v3598_v53, %v2658_v9  ;;  %v1007_v4 = vmul.f32 %v943_v63, %v943_v63 }
 0x241   :  { %v1064_v25 = vadd.f32 %v1063_v60, %v1001_v23  ;;  %v3599_v60 = vld [vmem:[#allocation20_spill] sm:$0xff] }
 0x242   :  { %v945_v15 = vsub.f32 %v3599_v60, %v2658_v9  ;;  %v1008_v26 = vmul.f32 %v944_v6, %v944_v6 }
 0x243   :  { %v1065_v55 = vadd.f32 %v1064_v25, %v1002_v34  ;;  %v946_v25 = vsub.f32 %v2593_v24, %v2658_v9 }
 0x244   :  { %v1009_v31 = vmul.f32 %v945_v15, %v945_v15 }
 0x245   :  { %v1066_v43 = vadd.f32 %v1065_v55, %v1003_v36  ;;  %v947_v55 = vsub.f32 %v2598_v48, %v2658_v9  ;;  %v1010_v35 = vmul.f32 %v946_v25, %v946_v25 }
 0x247   :  { %v1067_v16 = vadd.f32 %v1066_v43, %v1004_v0  ;;  %v948_v43 = vsub.f32 %v2603_v59, %v2658_v9  ;;  %v1011_v63 = vmul.f32 %v947_v55, %v947_v55 }
 0x249   :  { %v1068_v23 = vadd.f32 %v1067_v16, %v1005_v1  ;;  %v949_v16 = vsub.f32 %v2608_v10, %v2658_v9  ;;  %v1012_v6 = vmul.f32 %v948_v43, %v948_v43 }
 0x24b   :  { %v1069_v34 = vadd.f32 %v1068_v23, %v1006_v58  ;;  %v950_v23 = vsub.f32 %v2613_v33, %v2658_v9  ;;  %v1013_v15 = vmul.f32 %v949_v16, %v949_v16  ;;  %v1095_v16 = vlaneseq }
 0x24d   :  { %v1070_v36 = vadd.f32 %v1069_v34, %v1007_v4  ;;  %v951_v34 = vsub.f32 %v2618_v50, %v2658_v9  ;;  %v1014_v25 = vmul.f32 %v950_v23, %v950_v23  ;;  %v1087_v23 = vld [vmem:[%s3499_s2] sm:$0x1] }
 0x24f   :  { %v1071_v0 = vadd.f32 %v1070_v36, %v1008_v26  ;;  %v952_v36 = vsub.f32 %v2623_v11, %v2658_v9 }
 0x251   :  { %v1072_v1 = vadd.f32 %v1071_v0, %v1009_v31  ;;  %v1015_v0 = vmul.f32 %v951_v34, %v951_v34  ;;  %v1016_v10 = vmul.f32 %v952_v36, %v952_v36 }
 0x253   :  { %v1073_v58 = vadd.f32 %v1072_v1, %v1010_v35 }
 0x255   :  { %v1074_v4 = vadd.f32 %v1073_v58, %v1011_v63 }
 0x257   :  { %v1075_v26 = vadd.f32 %v1074_v4, %v1012_v6  ;;  %v2788_v6 = vshrl.u32 %v1095_v16, 7  ;;  %v3606_v16 = vld [vmem:[#allocation8_spill] sm:$0xff] }
 0x259   :  { %v1076_v31 = vadd.f32 %v1075_v26, %v1013_v15  ;;  %v3548_v4 = vsub.s32 0, %v2788_v6  ;;  %v3600_v26 = vld [vmem:[#allocation2_spill] sm:$0xff] }
 0x25b   :  { %v1077_v59 = vadd.f32 %v1076_v31, %v1014_v25  ;;  %v3602_v31 = vld [vmem:[#allocation4_spill] sm:$0xff] }
 0x25d   :  { %v1078_v55 = vadd.f32 %v1077_v59, %v1015_v0 }
 0x25f   :  { %v1079_v35 = vadd.f32 %v1078_v55, %v1016_v10 }
 0x261   :  { %v1080_v1 = vrot.slane %v1079_v35, 4 }
 0x263   :  { %v1081_v48 = vadd.f32 %v1080_v1, %v1079_v35 }
 0x265   :  { %v1082_v33 = vrot.slane %v1081_v48, 2 }
 0x267   :  { %v1083_v43 = vadd.f32 %v1082_v33, %v1081_v48  ;;  %v2797_v48 = vld [vmem:[%s3500_s3] sm:$0x1] }
 0x269   :  { %v1084_v63 = vrot.slane %v1083_v43, 1 }
 0x26b   :  { %v1085_v58 = vadd.f32 %v1084_v63, %v1083_v43  ;;  %v3603_v43 = vld [vmem:[#allocation5_spill] sm:$0xff]  ;;  %v3604_v63 = vld [vmem:[#allocation6_spill] sm:$0xff] }
 0x26d   :  { %v1086_v24 = vmul.f32 0.001953125, %v1085_v58  ;;  %v3605_v58 = vld [vmem:[#allocation7_spill] sm:$0xff] }
 0x26f   :  { %v1088_v50 = vadd.f32 1e-05, %v1086_v24 }
 0x271   :  { %2166 = vrsqrt.f32 %v1088_v50  ;;  %v3613_v50 = vld [vmem:[#allocation21_spill] sm:$0xff] }
 0x27b   :  { %v2167_v59 = vpop.eup %2166 }
 0x27c   :  { %v1090_v10 = vmul.f32 %v2167_v59, %v1087_v23  ;;  %v3607_v23 = vld [vmem:[#allocation10_spill] sm:$0xff]  ;;  %v3608_v59 = vld [vmem:[#allocation12_spill] sm:$0xff] }
 0x27e   :  { %v2800_v33 = vmul.f32 %v1090_v10, %v2658_v9  ;;  %v2804_v24 = vrot.slane %v1090_v10, %v3548_v4  ;;  %v3601_v9 = vld [vmem:[#allocation3_spill] sm:$0xff] }
 0x27f   :  { %v3614_v4 = vld [vmem:[#allocation23_spill] sm:$0xff] }
 0x280   :  { %v2810_v34 = vmul.f32 %v2804_v24, %v2466_v17  ;;  %v2814_v15 = vmul.f32 %v2804_v24, %v2470_v21  ;;  %v2818_v36 = vmul.f32 %v2804_v24, %v3600_v26  ;;  %v2822_v25 = vmul.f32 %v2804_v24, %v3601_v9  ;;  %v3609_v26 = vld [vmem:[#allocation14_spill] sm:$0xff] }
 0x281   :  { %v2826_v0 = vmul.f32 %v2804_v24, %v3602_v31  ;;  %v2830_v17 = vmul.f32 %v2804_v24, %v2491_v41  ;;  %v2834_v21 = vmul.f32 %v2804_v24, %v2496_v46  ;;  %v2838_v55 = vmul.f32 %v2804_v24, %v2501_v51  ;;  %v3610_v31 = vld [vmem:[#allocation15_spill] sm:$0xff] }
 0x282   :  { %v2842_v35 = vmul.f32 %v2804_v24, %v2506_v56  ;;  %v2846_v1 = vmul.f32 %v2804_v24, %v2511_v61  ;;  %v2850_v41 = vmul.f32 %v2804_v24, %v2516_v2  ;;  %v2854_v46 = vmul.f32 %v2804_v24, %v2521_v7 }
 0x283   :  { %v2858_v51 = vmul.f32 %v2804_v24, %v2526_v12  ;;  %v2862_v56 = vmul.f32 %v2804_v24, %v2531_v19  ;;  %v2866_v61 = vmul.f32 %v2804_v24, %v2536_v28  ;;  %v2870_v2 = vmul.f32 %v2804_v24, %v3603_v43 }
 0x284   :  { %v2874_v7 = vmul.f32 %v2804_v24, %v3604_v63  ;;  %v2878_v12 = vmul.f32 %v2804_v24, %v3605_v58  ;;  %v2882_v19 = vmul.f32 %v2804_v24, %v3606_v16  ;;  %v2886_v28 = vmul.f32 %v2804_v24, %v3607_v23  ;;  %v3611_v63 = vld [vmem:[#allocation17_spill] sm:$0xff]  ;;  %v3612_v16 = vld [vmem:[#allocation19_spill] sm:$0xff] }
 0x285   :  { %v2890_v10 = vmul.f32 %v2804_v24, %v3608_v59  ;;  %v2894_v9 = vmul.f32 %v2804_v24, %v3609_v26  ;;  %v2898_v43 = vmul.f32 %v2804_v24, %v3610_v31  ;;  %v2902_v58 = vmul.f32 %v2804_v24, %v3611_v63 }
 0x286   :  { %v2906_v23 = vmul.f32 %v2804_v24, %v3612_v16  ;;  %v2910_v59 = vmul.f32 %v2804_v24, %v3613_v50  ;;  %v2914_v26 = vmul.f32 %v2804_v24, %v3614_v4  ;;  %v2918_v31 = vmul.f32 %v2804_v24, %v3593_v14 }
 0x287   :  { %v2922_v63 = vmul.f32 %v2804_v24, %v3594_v40  ;;  %v2926_v16 = vmul.f32 %v2804_v24, %v3595_v39  ;;  %v2930_v50 = vmul.f32 %v2804_v24, %v3596_v49  ;;  %v2934_v4 = vmul.f32 %v2804_v24, %v2621_v5 }
 0x288   :  { %v2938_v14 = vmul.f32 %v2804_v24, %v2468_v18  ;;  %v2942_v40 = vmul.f32 %v2804_v24, %v2472_v22  ;;  %v2946_v39 = vmul.f32 %v2804_v24, %v2478_v27  ;;  %v2950_v49 = vmul.f32 %v2804_v24, %v2483_v32 }
 0x289   :  { %v2954_v5 = vmul.f32 %v2804_v24, %v2488_v37  ;;  %v2958_v18 = vmul.f32 %v2804_v24, %v2493_v42  ;;  %v2962_v22 = vmul.f32 %v2804_v24, %v2498_v47  ;;  %v2966_v27 = vmul.f32 %v2804_v24, %v2503_v52 }
 0x28a   :  { %v2970_v32 = vmul.f32 %v2804_v24, %v2508_v57  ;;  %v2974_v37 = vmul.f32 %v2804_v24, %v2513_v62  ;;  %v2978_v42 = vmul.f32 %v2804_v24, %v2518_v3  ;;  %v2982_v47 = vmul.f32 %v2804_v24, %v2523_v8 }
 0x28b   :  { %v2986_v52 = vmul.f32 %v2804_v24, %v2528_v13  ;;  %v2990_v57 = vmul.f32 %v2804_v24, %v2533_v20  ;;  %v2994_v62 = vmul.f32 %v2804_v24, %v2538_v29  ;;  %v2998_v3 = vmul.f32 %v2804_v24, %v2543_v38 }
 0x28c   :  { %v3002_v8 = vmul.f32 %v2804_v24, %v2548_v45  ;;  %v3006_v13 = vmul.f32 %v2804_v24, %v2553_v54  ;;  %v3022_v45 = vmul.f32 %v2804_v24, %v2573_v30  ;;  %v3026_v54 = vmul.f32 %v2804_v24, %v3597_v44 }
 0x28d   :  { %3615 = vst [vmem:[#allocation25_spill] sm:$0xff] %v2986_v52  ;;  %3616 = vst [vmem:[#allocation27_spill] sm:$0xff] %v2990_v57  ;;  %v3618_v52 = vld [vmem:[#allocation9_spill] sm:$0xff]  ;;  %v3619_v57 = vld [vmem:[#allocation11_spill] sm:$0xff] }
 0x28e   :  { %3617 = vst [vmem:[#allocation29_spill] sm:$0xff] %v2994_v62  ;;  %v3010_v20 = vmul.f32 %v2804_v24, %v3618_v52  ;;  %v3014_v29 = vmul.f32 %v2804_v24, %v3619_v57  ;;  %v3621_v62 = vld [vmem:[#allocation13_spill] sm:$0xff]  ;;  %3623 = vst [vmem:[#allocation18_spill] sm:$0xff] %v3022_v45  ;;  %v3030_v52 = vmul.f32 %v2804_v24, %v3598_v53  ;;  %v3630_v45 = vld [vmem:[#allocation26_spill] sm:$0xff] }
 0x28f   :  { %v3018_v38 = vmul.f32 %v2804_v24, %v3621_v62  ;;  %3624 = vst [vmem:[#allocation20_spill] sm:$0xff] %v3026_v54  ;;  %v3034_v57 = vmul.f32 %v2804_v24, %v3599_v60  ;;  %v3046_v44 = vmul.f32 %v2804_v24, %v3630_v45  ;;  %v3632_v54 = vld [vmem:[#allocation28_spill] sm:$0xff]  ;;  %v3636_v45 = vsub.f32 %v2797_v48, %v2800_v33 }
 0x290   :  { %3620 = vst [vmem:[#allocation31_spill] sm:$0xff] %v3014_v29  ;;  %3625 = vst [vmem:[#allocation2_spill] sm:$0xff] %v3030_v52  ;;  %v3627_v29 = vld [vmem:[#allocation22_spill] sm:$0xff]  ;;  %v3050_v53 = vmul.f32 %v2804_v24, %v3632_v54 }
 0x291   :  { %3622 = vst [vmem:[#allocation16_spill] sm:$0xff] %v3018_v38  ;;  %3626 = vst [vmem:[#allocation3_spill] sm:$0xff] %v3034_v57  ;;  %v3038_v62 = vmul.f32 %v2804_v24, %v3627_v29  ;;  %v3628_v38 = vld [vmem:[#allocation24_spill] sm:$0xff]  ;;  %v3633_v52 = vld [vmem:[#allocation30_spill] sm:$0xff] }
 0x292   :  { %v3042_v30 = vmul.f32 %v2804_v24, %v3628_v38  ;;  %3631 = vst [vmem:[#allocation5_spill] sm:$0xff] %v3046_v44  ;;  %v3054_v60 = vmul.f32 %v2804_v24, %v3633_v52  ;;  %v3634_v57 = vld [vmem:[#allocation32_spill] sm:$0xff]  ;;  %v3062_v38 = vmul.f32 %v2804_v24, %v2623_v11 }
 0x293   :  { %v3058_v29 = vmul.f32 %v2804_v24, %v3634_v57 }
 0x294   :  { %3629 = vst [vmem:[#allocation4_spill] sm:$0xff] %v3042_v30  ;;  %v3635_v30 = vsub.s32 0, %v2788_v6 }
 0x296   :  { %v3069_v44 = vrot.slane %v3636_v45, %v3635_v30 }
 0x298   :  { %v3073_v54 = vadd.f32 %v3069_v44, %v2810_v34  ;;  %v3077_v52 = vadd.f32 %v3069_v44, %v2814_v15  ;;  %v3081_v57 = vadd.f32 %v3069_v44, %v2818_v36  ;;  %v3085_v11 = vadd.f32 %v3069_v44, %v2822_v25 }
 0x299   :  { %v3089_v6 = vadd.f32 %v3069_v44, %v2826_v0  ;;  %v3093_v48 = vadd.f32 %v3069_v44, %v2830_v17  ;;  %v3097_v33 = vadd.f32 %v3069_v44, %v2834_v21  ;;  %v3101_v24 = vadd.f32 %v3069_v44, %v2838_v55 }
 0x29a   :  { %3637 = vst [vmem:[#allocation6_spill] sm:$0xff] %v3073_v54  ;;  %3638 = vst [vmem:[#allocation7_spill] sm:$0xff] %v3077_v52  ;;  %v3105_v34 = vadd.f32 %v3069_v44, %v2842_v35  ;;  %v3109_v15 = vadd.f32 %v3069_v44, %v2846_v1  ;;  %v3113_v36 = vadd.f32 %v3069_v44, %v2850_v41 }
 0x29b   :  { %3639 = vst [vmem:[#allocation8_spill] sm:$0xff] %v3081_v57  ;;  %3640 = vst [vmem:[#allocation10_spill] sm:$0xff] %v3085_v11  ;;  %v3117_v25 = vadd.f32 %v3069_v44, %v2854_v46  ;;  %v3121_v0 = vadd.f32 %v3069_v44, %v2858_v51  ;;  %v3125_v17 = vadd.f32 %v3069_v44, %v2862_v56 }
 0x29c   :  { %3641 = vst [vmem:[#allocation12_spill] sm:$0xff] %v3089_v6  ;;  %v3129_v21 = vadd.f32 %v3069_v44, %v2866_v61  ;;  %v3133_v55 = vadd.f32 %v3069_v44, %v2870_v2  ;;  %v3137_v35 = vadd.f32 %v3069_v44, %v2874_v7  ;;  %v3141_v1 = vadd.f32 %v3069_v44, %v2878_v12 }
 0x29d   :  { %v3145_v41 = vadd.f32 %v3069_v44, %v2882_v19  ;;  %v3149_v46 = vadd.f32 %v3069_v44, %v2886_v28  ;;  %v3153_v51 = vadd.f32 %v3069_v44, %v2890_v10  ;;  %v3157_v56 = vadd.f32 %v3069_v44, %v2894_v9 }
 0x29e   :  { %v3161_v61 = vadd.f32 %v3069_v44, %v2898_v43  ;;  %v3165_v2 = vadd.f32 %v3069_v44, %v2902_v58  ;;  %v3169_v7 = vadd.f32 %v3069_v44, %v2906_v23  ;;  %v3173_v12 = vadd.f32 %v3069_v44, %v2910_v59 }
 0x29f   :  { %v3177_v19 = vadd.f32 %v3069_v44, %v2914_v26  ;;  %v3181_v28 = vadd.f32 %v3069_v44, %v2918_v31  ;;  %v3185_v10 = vadd.f32 %v3069_v44, %v2922_v63  ;;  %v3189_v9 = vadd.f32 %v3069_v44, %v2926_v16 }
 0x2a0   :  { %v3193_v43 = vadd.f32 %v3069_v44, %v2930_v50  ;;  %v3197_v58 = vadd.f32 %v3069_v44, %v2934_v4  ;;  %v3201_v23 = vadd.f32 %v3069_v44, %v2938_v14  ;;  %v3205_v59 = vadd.f32 %v3069_v44, %v2942_v40 }
 0x2a1   :  { %v3209_v26 = vadd.f32 %v3069_v44, %v2946_v39  ;;  %v3213_v31 = vadd.f32 %v3069_v44, %v2950_v49  ;;  %v3217_v63 = vadd.f32 %v3069_v44, %v2954_v5  ;;  %v3221_v16 = vadd.f32 %v3069_v44, %v2958_v18  ;;  %v3642_v5 = vld [vmem:[#allocation25_spill] sm:$0xff] }
 0x2a2   :  { %v3225_v50 = vadd.f32 %v3069_v44, %v2962_v22  ;;  %v3229_v4 = vadd.f32 %v3069_v44, %v2966_v27  ;;  %v3233_v14 = vadd.f32 %v3069_v44, %v2970_v32  ;;  %v3237_v40 = vadd.f32 %v3069_v44, %v2974_v37  ;;  %v3643_v22 = vld [vmem:[#allocation27_spill] sm:$0xff]  ;;  %v3644_v32 = vld [vmem:[#allocation29_spill] sm:$0xff] }
 0x2a3   :  { %v3241_v39 = vadd.f32 %v3069_v44, %v2978_v42  ;;  %v3245_v49 = vadd.f32 %v3069_v44, %v2982_v47  ;;  %v3249_v18 = vadd.f32 %v3069_v44, %v3642_v5  ;;  %v3253_v27 = vadd.f32 %v3069_v44, %v3643_v22  ;;  %v3649_v5 = vld [vmem:[#allocation31_spill] sm:$0xff] }
 0x2a4   :  { %v3257_v37 = vadd.f32 %v3069_v44, %v3644_v32  ;;  %v3261_v42 = vadd.f32 %v3069_v44, %v2998_v3  ;;  %v3265_v47 = vadd.f32 %v3069_v44, %v3002_v8  ;;  %v3269_v30 = vadd.f32 %v3069_v44, %v3006_v13  ;;  %v3650_v32 = vld [vmem:[#allocation16_spill] sm:$0xff] }
 0x2a5   :  { %v3273_v45 = vadd.f32 %v3069_v44, %v3010_v20  ;;  %v3277_v22 = vadd.f32 %v3069_v44, %v3649_v5  ;;  %v3281_v3 = vadd.f32 %v3069_v44, %v3650_v32  ;;  %v3301_v32 = vadd.f32 %v3069_v44, %v3038_v62 }
 0x2a6   :  { %3645 = vst [vmem:[#allocation14_spill] sm:$0xff] %v3261_v42  ;;  %3646 = vst [vmem:[#allocation15_spill] sm:$0xff] %v3265_v47  ;;  %v3652_v42 = vld [vmem:[#allocation18_spill] sm:$0xff]  ;;  %v3654_v47 = vld [vmem:[#allocation20_spill] sm:$0xff]  ;;  %v3321_v62 = vadd.f32 %v3069_v44, %v3058_v29  ;;  %v1241_v29 = vmax.f32 %v3101_v24, 0.0  ;;  %v1251_v24 = vmax.f32 %v3141_v1, 0.0 }
 0x2a7   :  { %3647 = vst [vmem:[#allocation17_spill] sm:$0xff] %v3269_v30  ;;  %3648 = vst [vmem:[#allocation19_spill] sm:$0xff] %v3273_v45  ;;  %v3285_v8 = vadd.f32 %v3069_v44, %v3652_v42  ;;  %v3289_v13 = vadd.f32 %v3069_v44, %v3654_v47  ;;  %v3655_v30 = vld [vmem:[#allocation2_spill] sm:$0xff]  ;;  %v3656_v45 = vld [vmem:[#allocation3_spill] sm:$0xff]  ;;  %v1261_v1 = vmax.f32 %v3181_v28, 0.0  ;;  %v1271_v28 = vmax.f32 %v3221_v16, 0.0 }
 0x2a8   :  { %3651 = vst [vmem:[#allocation21_spill] sm:$0xff] %v3281_v3  ;;  %v3293_v20 = vadd.f32 %v3069_v44, %v3655_v30  ;;  %v3297_v5 = vadd.f32 %v3069_v44, %v3656_v45  ;;  %v3657_v3 = vld [vmem:[#allocation4_spill] sm:$0xff]  ;;  %v3313_v30 = vadd.f32 %v3069_v44, %v3050_v53  ;;  %v3317_v45 = vadd.f32 %v3069_v44, %v3054_v60 }
 0x2a9   :  { %3653 = vst [vmem:[#allocation23_spill] sm:$0xff] %v3285_v8  ;;  %v3305_v42 = vadd.f32 %v3069_v44, %v3657_v3  ;;  %v3659_v8 = vld [vmem:[#allocation5_spill] sm:$0xff]  ;;  %3663 = vst [vmem:[#allocation24_spill] sm:$0xff] %v3321_v62  ;;  %v3325_v3 = vadd.f32 %v3069_v44, %v3062_v38  ;;  %v1239_v60 = vmax.f32 %v3093_v48, 0.0  ;;  %v1242_v62 = vmax.f32 %v3105_v34, 0.0 }
 0x2aa   :  { %v3309_v47 = vadd.f32 %v3069_v44, %v3659_v8  ;;  %3661 = vst [vmem:[#allocation13_spill] sm:$0xff] %v3313_v30  ;;  %3662 = vst [vmem:[#allocation22_spill] sm:$0xff] %v3317_v45  ;;  %v1240_v45 = vmax.f32 %v3097_v33, 0.0  ;;  %v1243_v44 = vmax.f32 %v3109_v15, 0.0  ;;  %v1244_v38 = vmax.f32 %v3113_v36, 0.0 }
 0x2ab   :  { %3658 = vst [vmem:[#allocation9_spill] sm:$0xff] %v3305_v42  ;;  %3664 = vst [vmem:[#allocation26_spill] sm:$0xff] %v3325_v3  ;;  %v1245_v8 = vmax.f32 %v3117_v25, 0.0  ;;  %v1247_v53 = vmax.f32 %v3125_v17, 0.0  ;;  %v1248_v30 = vmax.f32 %v3129_v21, 0.0  ;;  %v1249_v48 = vmax.f32 %v3133_v55, 0.0 }
 0x2ac   :  { %3660 = vst [vmem:[#allocation11_spill] sm:$0xff] %v3309_v47  ;;  %v1246_v47 = vmax.f32 %v3121_v0, 0.0  ;;  %v1250_v33 = vmax.f32 %v3137_v35, 0.0  ;;  %v1252_v34 = vmax.f32 %v3145_v41, 0.0  ;;  %v1253_v15 = vmax.f32 %v3149_v46, 0.0 }
 0x2ad   :  { %v1254_v36 = vmax.f32 %v3153_v51, 0.0  ;;  %v1255_v25 = vmax.f32 %v3157_v56, 0.0  ;;  %v1256_v0 = vmax.f32 %v3161_v61, 0.0  ;;  %v1257_v17 = vmax.f32 %v3165_v2, 0.0  ;;  %v3665_v42 = vld [vmem:[#allocation14_spill] sm:$0xff]  ;;  %v3666_v6 = vld [vmem:[#allocation15_spill] sm:$0xff] }
 0x2ae   :  { %v1258_v21 = vmax.f32 %v3169_v7, 0.0  ;;  %v1259_v55 = vmax.f32 %v3173_v12, 0.0  ;;  %v1260_v35 = vmax.f32 %v3177_v19, 0.0  ;;  %v1262_v41 = vmax.f32 %v3185_v10, 0.0  ;;  %v3667_v11 = vld [vmem:[#allocation17_spill] sm:$0xff]  ;;  %v3668_v57 = vld [vmem:[#allocation19_spill] sm:$0xff] }
 0x2af   :  { %v1263_v46 = vmax.f32 %v3189_v9, 0.0  ;;  %v1264_v51 = vmax.f32 %v3193_v43, 0.0  ;;  %v1265_v56 = vmax.f32 %v3197_v58, 0.0  ;;  %v1266_v61 = vmax.f32 %v3201_v23, 0.0  ;;  %v3669_v52 = vld [vmem:[#allocation21_spill] sm:$0xff] }
 0x2b0   :  { %v1267_v2 = vmax.f32 %v3205_v59, 0.0  ;;  %v1268_v7 = vmax.f32 %v3209_v26, 0.0  ;;  %v1269_v12 = vmax.f32 %v3213_v31, 0.0  ;;  %v1270_v19 = vmax.f32 %v3217_v63, 0.0  ;;  %v3670_v54 = vld [vmem:[#allocation23_spill] sm:$0xff] }
 0x2b1   :  { %v1272_v10 = vmax.f32 %v3225_v50, 0.0  ;;  %v1273_v9 = vmax.f32 %v3229_v4, 0.0  ;;  %v1274_v43 = vmax.f32 %v3233_v14, 0.0  ;;  %v1275_v58 = vmax.f32 %v3237_v40, 0.0 }
 0x2b2   :  { %v1276_v23 = vmax.f32 %v3241_v39, 0.0  ;;  %v1277_v59 = vmax.f32 %v3245_v49, 0.0  ;;  %v1278_v26 = vmax.f32 %v3249_v18, 0.0  ;;  %v1279_v31 = vmax.f32 %v3253_v27, 0.0  ;;  %v3671_v3 = vld [vmem:[#allocation9_spill] sm:$0xff] }
 0x2b3   :  { %v1280_v63 = vmax.f32 %v3257_v37, 0.0  ;;  %v1281_v16 = vmax.f32 %v3665_v42, 0.0  ;;  %v1282_v50 = vmax.f32 %v3666_v6, 0.0  ;;  %v1283_v4 = vmax.f32 %v3667_v11, 0.0  ;;  %v3672_v11 = vld [vmem:[#allocation11_spill] sm:$0xff] }
 0x2b4   :  { %v1284_v14 = vmax.f32 %v3668_v57, 0.0  ;;  %v1285_v40 = vmax.f32 %v3277_v22, 0.0  ;;  %v1286_v39 = vmax.f32 %v3669_v52, 0.0  ;;  %v1287_v49 = vmax.f32 %v3670_v54, 0.0  ;;  %v3673_v22 = vld [vmem:[#allocation13_spill] sm:$0xff]  ;;  %v3674_v54 = vld [vmem:[#allocation22_spill] sm:$0xff] }
 0x2b5   :  { %v1288_v18 = vmax.f32 %v3289_v13, 0.0  ;;  %v1289_v27 = vmax.f32 %v3293_v20, 0.0  ;;  %v1290_v37 = vmax.f32 %v3297_v5, 0.0  ;;  %v1291_v42 = vmax.f32 %v3301_v32, 0.0  ;;  %v3675_v20 = vld [vmem:[#allocation24_spill] sm:$0xff]  ;;  %v3676_v32 = vld [vmem:[#allocation26_spill] sm:$0xff] }
 0x2b6   :  { %v1292_v6 = vmax.f32 %v3671_v3, 0.0  ;;  %v1293_v57 = vmax.f32 %v3672_v11, 0.0  ;;  %v1294_v52 = vmax.f32 %v3673_v22, 0.0  ;;  %v1295_v13 = vmax.f32 %v3674_v54, 0.0  ;;  %v3677_v11 = vld [vmem:[#allocation6_spill] sm:$0xff]  ;;  %v3679_v54 = vld [vmem:[#allocation7_spill] sm:$0xff] }
 0x2b7   :  { %v1296_v5 = vmax.f32 %v3675_v20, 0.0  ;;  %v1297_v3 = vmax.f32 %v3676_v32, 0.0  ;;  %v3678_v22 = vmax.f32 %v3677_v11, 0.0  ;;  %v3680_v20 = vmax.f32 %v3679_v54, 0.0  ;;  %v3681_v11 = vld [vmem:[#allocation8_spill] sm:$0xff] }
 0x2b8   :  { %v3682_v54 = vmax.f32 %v3681_v11, 0.0 }
 0x2b9   :  { %v1833_v32 = vpack.c.bf16 %v3680_v20, %v3678_v22  ;;  %v3683_v20 = vld [vmem:[#allocation10_spill] sm:$0xff] }
 0x2ba   :  { %v3684_v22 = vmax.f32 %v3683_v20, 0.0  ;;  %v3685_v20 = vld [vmem:[#allocation12_spill] sm:$0xff] }
 0x2bb   :  { %1834 = vst [vmem:[%s3501_s4] sm:$0xff] %v1833_v32  }
 0x2bc   :  { %v1838_v11 = vpack.c.bf16 %v3684_v22, %v3682_v54  ;;  %v3686_v22 = vmax.f32 %v3685_v20, 0.0  ;;  %v1848_v20 = vpack.c.bf16 %v1241_v29, %v1240_v45  ;;  %v1863_v29 = vpack.c.bf16 %v1247_v53, %v1246_v47 }
 0x2bd   :  { %v1868_v45 = vpack.c.bf16 %v1249_v48, %v1248_v30  ;;  %v1883_v47 = vpack.c.bf16 %v1255_v25, %v1254_v36  ;;  %v1888_v30 = vpack.c.bf16 %v1257_v17, %v1256_v0  ;;  %v1893_v53 = vpack.c.bf16 %v1259_v55, %v1258_v21 }
 0x2be   :  { %v1843_v54 = vpack.c.bf16 %v1239_v60, %v3686_v22  ;;  %v1853_v22 = vpack.c.bf16 %v1243_v44, %v1242_v62  ;;  %v1858_v60 = vpack.c.bf16 %v1245_v8, %v1244_v38  ;;  %1990 = vst [vmem:[%s3501_s4 + $0x8] sm:$0xff] %v1838_v11   ;;  %1992 = vst [vmem:[%s3501_s4 + $0x18] sm:$0xff] %v1848_v20  }
 0x2bf   :  { %v1873_v62 = vpack.c.bf16 %v1251_v24, %v1250_v33  ;;  %v1878_v8 = vpack.c.bf16 %v1253_v15, %v1252_v34  ;;  %1995 = vst [vmem:[%s3501_s4 + $0x30] sm:$0xff] %v1863_v29   ;;  %1996 = vst [vmem:[%s3501_s4 + $0x38] sm:$0xff] %v1868_v45   ;;  %v1898_v44 = vpack.c.bf16 %v1261_v1, %v1260_v35 }
 0x2c0   :  { %1991 = vst [vmem:[%s3501_s4 + $0x10] sm:$0xff] %v1843_v54   ;;  %1993 = vst [vmem:[%s3501_s4 + $0x20] sm:$0xff] %v1853_v22   ;;  %v1903_v38 = vpack.c.bf16 %v1263_v46, %v1262_v41  ;;  %v1908_v48 = vpack.c.bf16 %v1265_v56, %v1264_v51  ;;  %v1913_v33 = vpack.c.bf16 %v1267_v2, %v1266_v61 }
 0x2c1   :  { %1994 = vst [vmem:[%s3501_s4 + $0x28] sm:$0xff] %v1858_v60   ;;  %1997 = vst [vmem:[%s3501_s4 + $0x40] sm:$0xff] %v1873_v62   ;;  %v1918_v24 = vpack.c.bf16 %v1269_v12, %v1268_v7  ;;  %v1923_v34 = vpack.c.bf16 %v1271_v28, %v1270_v19  ;;  %v1928_v15 = vpack.c.bf16 %v1273_v9, %v1272_v10 }
 0x2c2   :  { %1998 = vst [vmem:[%s3501_s4 + $0x48] sm:$0xff] %v1878_v8   ;;  %1999 = vst [vmem:[%s3501_s4 + $0x50] sm:$0xff] %v1883_v47   ;;  %v1933_v36 = vpack.c.bf16 %v1275_v58, %v1274_v43  ;;  %v1938_v25 = vpack.c.bf16 %v1277_v59, %v1276_v23  ;;  %v1943_v0 = vpack.c.bf16 %v1279_v31, %v1278_v26 }
 0x2c3   :  { %2000 = vst [vmem:[%s3501_s4 + $0x58] sm:$0xff] %v1888_v30   ;;  %2001 = vst [vmem:[%s3501_s4 + $0x60] sm:$0xff] %v1893_v53   ;;  %v1948_v17 = vpack.c.bf16 %v1281_v16, %v1280_v63  ;;  %v1953_v21 = vpack.c.bf16 %v1283_v4, %v1282_v50  ;;  %v1958_v55 = vpack.c.bf16 %v1285_v40, %v1284_v14 }
 0x2c4   :  { %2002 = vst [vmem:[%s3501_s4 + $0x68] sm:$0xff] %v1898_v44   ;;  %2003 = vst [vmem:[%s3501_s4 + $0x70] sm:$0xff] %v1903_v38   ;;  %v1963_v35 = vpack.c.bf16 %v1287_v49, %v1286_v39  ;;  %v1968_v1 = vpack.c.bf16 %v1289_v27, %v1288_v18  ;;  %v1973_v41 = vpack.c.bf16 %v1291_v42, %v1290_v37 }
 0x2c5   :  { %2004 = vst [vmem:[%s3501_s4 + $0x78] sm:$0xff] %v1908_v48   ;;  %2005 = vst [vmem:[%s3501_s4 + $0x80] sm:$0xff] %v1913_v33   ;;  %v1978_v46 = vpack.c.bf16 %v1293_v57, %v1292_v6  ;;  %v1983_v51 = vpack.c.bf16 %v1295_v13, %v1294_v52  ;;  %v1988_v56 = vpack.c.bf16 %v1297_v3, %v1296_v5 }
 0x2c6   :  { %2006 = vst [vmem:[%s3501_s4 + $0x88] sm:$0xff] %v1918_v24   ;;  %2007 = vst [vmem:[%s3501_s4 + $0x90] sm:$0xff] %v1923_v34  }
 0x2c7   :  { %2008 = vst [vmem:[%s3501_s4 + $0x98] sm:$0xff] %v1928_v15   ;;  %2009 = vst [vmem:[%s3501_s4 + $0xa0] sm:$0xff] %v1933_v36  }
 0x2c8   :  { %2010 = vst [vmem:[%s3501_s4 + $0xa8] sm:$0xff] %v1938_v25   ;;  %2011 = vst [vmem:[%s3501_s4 + $0xb0] sm:$0xff] %v1943_v0  }
 0x2c9   :  { %2012 = vst [vmem:[%s3501_s4 + $0xb8] sm:$0xff] %v1948_v17   ;;  %2013 = vst [vmem:[%s3501_s4 + $0xc0] sm:$0xff] %v1953_v21  }
 0x2ca   :  { %2014 = vst [vmem:[%s3501_s4 + $0xc8] sm:$0xff] %v1958_v55   ;;  %2015 = vst [vmem:[%s3501_s4 + $0xd0] sm:$0xff] %v1963_v35  }
 0x2cb   :  { %2016 = vst [vmem:[%s3501_s4 + $0xd8] sm:$0xff] %v1968_v1   ;;  %2017 = vst [vmem:[%s3501_s4 + $0xe0] sm:$0xff] %v1973_v41  }
 0x2cc   :  { %2018 = vst [vmem:[%s3501_s4 + $0xe8] sm:$0xff] %v1978_v46   ;;  %2019 = vst [vmem:[%s3501_s4 + $0xf0] sm:$0xff] %v1983_v51  }
 0x2cd   :  { %2020 = vst [vmem:[%s3501_s4 + $0xf8] sm:$0xff] %v1988_v56  }

// kernel: resnet_forward.61
= control target key start
LH: loop header
LB: loop body
LE: loop exit
PB: predicated region body
PF: predicated region fallthrough
CT: control target
= control target key end

     0   :  { %s988_s1 = inlined_call_operand.vmem [shape: bf16[128,128], index: 1, kind: input, shape index: {}]   ;;  %s989_s0 = inlined_call_operand.vmem [shape: bf16[128,128], index: 0, kind: input, shape index: {}]   ;;  %s990_s2 = inlined_call_operand.vmem [shape: f32[1,128], index: 2, kind: input, shape index: {}]   ;;  %s991_s4 = inlined_call_operand.vmem [shape: bf16[128,128], index: 4, kind: input, shape index: {}]   ;;  %s992_s3 = inlined_call_operand.vmem [shape: f32[1,128], index: 3, kind: input, shape index: {}]   ;;  %s993_s5 = inlined_call_operand.vmem [shape: bf16[128,128], index: 5, kind: output, shape index: {}]  }
   0x1   :  { %v719_v0 = vld [vmem:[%s988_s1] sm:$0xff]   ;;  %v720_v1 = vld [vmem:[%s988_s1 + $0x8] sm:$0xff]   ;;  %v721_v2 = vld [vmem:[%s988_s1 + $0x10] sm:$0xff]  }
   0x2   :  { %671 = vmatprep.subr.bf16.mxu0 %v719_v0  ;;  %703 = vmatprep.subr.bf16.mxu1 %v719_v0  ;;  %v722_v3 = vld [vmem:[%s988_s1 + $0x18] sm:$0xff]   ;;  %v727_v4 = vld [vmem:[%s989_s0] sm:$0xff]   ;;  %v724_v7 = vld [vmem:[%s988_s1 + $0x28] sm:$0xff]  }
   0x3   :  { %672 = vmatpush3.bf16.msra.mxu0 %v719_v0  ;;  %711 = vmatpush3.bf16.msra.mxu1 %v719_v0  ;;  %v723_v5 = vld [vmem:[%s988_s1 + $0x20] sm:$0xff]   ;;  %v725_v8 = vld [vmem:[%s988_s1 + $0x30] sm:$0xff]   ;;  %v726_v9 = vld [vmem:[%s988_s1 + $0x38] sm:$0xff]  }
   0x4   :  { %673 = vmatprep.subr.bf16.mxu0 %v720_v1  ;;  %704 = vmatprep.subr.bf16.mxu1 %v720_v1  ;;  %v731_v6 = vld [vmem:[%s989_s0 + $0x20] sm:$0xff]   ;;  %v728_v10 = vld [vmem:[%s989_s0 + $0x8] sm:$0xff]   ;;  %v729_v12 = vld [vmem:[%s989_s0 + $0x10] sm:$0xff]  }
   0x5   :  { %687 = vmatprep.mubr.bf16.mxu0 %v727_v4  ;;  %695 = vmatprep.mubr.bf16.mxu1 %v731_v6  ;;  %v732_v11 = vld [vmem:[%s989_s0 + $0x28] sm:$0xff]   ;;  %v733_v13 = vld [vmem:[%s989_s0 + $0x30] sm:$0xff]   ;;  %v730_v14 = vld [vmem:[%s989_s0 + $0x18] sm:$0xff]  }
   0x6   :  { %v734_v15 = vld [vmem:[%s989_s0 + $0x38] sm:$0xff]  }
   0x7   :  { %674 = vmatpush3.bf16.msra.mxu0 %v720_v1  ;;  %712 = vmatpush3.bf16.msra.mxu1 %v720_v1 }
   0x8   :  { %675 = vmatprep.subr.bf16.mxu0 %v721_v2  ;;  %705 = vmatprep.subr.bf16.mxu1 %v721_v2 }
   0xb   :  { %676 = vmatpush3.bf16.msra.mxu0 %v721_v2  ;;  %713 = vmatpush3.bf16.msra.mxu1 %v721_v2 }
   0xc   :  { %677 = vmatprep.subr.bf16.mxu0 %v722_v3  ;;  %706 = vmatprep.subr.bf16.mxu1 %v722_v3 }
   0xf   :  { %678 = vmatpush3.bf16.msra.mxu0 %v722_v3  ;;  %714 = vmatpush3.bf16.msra.mxu1 %v722_v3 }
  0x10   :  { %679 = vmatprep.subr.bf16.mxu0 %v723_v5  ;;  %707 = vmatprep.subr.bf16.mxu1 %v723_v5 }
  0x13   :  { %680 = vmatpush3.bf16.msra.mxu0 %v723_v5  ;;  %715 = vmatpush3.bf16.msra.mxu1 %v723_v5 }
  0x14   :  { %681 = vmatprep.subr.bf16.mxu0 %v724_v7  ;;  %708 = vmatprep.subr.bf16.mxu1 %v724_v7 }
  0x17   :  { %682 = vmatpush3.bf16.msra.mxu0 %v724_v7  ;;  %716 = vmatpush3.bf16.msra.mxu1 %v724_v7 }
  0x18   :  { %683 = vmatprep.subr.bf16.mxu0 %v725_v8  ;;  %709 = vmatprep.subr.bf16.mxu1 %v725_v8 }
  0x1b   :  { %684 = vmatpush3.bf16.msra.mxu0 %v725_v8  ;;  %717 = vmatpush3.bf16.msra.mxu1 %v725_v8 }
  0x1c   :  { %685 = vmatprep.subr.bf16.mxu0 %v726_v9  ;;  %710 = vmatprep.subr.bf16.mxu1 %v726_v9 }
  0x1f   :  { %686 = vmatpush3.bf16.msra.mxu0 %v726_v9  ;;  %718 = vmatpush3.bf16.msra.mxu1 %v726_v9 }
  0x22   :  { %688 = vmatmul.mubr.bf16.vlgmr.msra.gmra.mrb[0].mxu0 %v728_v10  ;;  %696 = vmatmul.mubr.bf16.vlgmr.msra.gmra.mrb[0].mxu1 %v732_v11 }
  0x23   :  { %691 = vmatprep.mubr.bf16.mxu0 %v729_v12  ;;  %699 = vmatprep.mubr.bf16.mxu1 %v733_v13 }
  0x2a   :  { %692 = vmatmul.mubr.bf16.gmra.mrb[4].mxu0 %v730_v14  ;;  %700 = vmatmul.mubr.bf16.gmra.mrb[4].mxu1 %v734_v15 }
  0xf5   :  { %v815_v16 = vpop.f32.mrb[0].mxu0  ;;  %v817_v17 = vpop.f32.mrb[0].mxu1 }
  0xf6   :  { %v819_v18 = vpop.f32.mrb[1].mxu0  ;;  %v821_v19 = vpop.f32.mrb[1].mxu1 }
  0xf7   :  { %v823_v20 = vpop.f32.mrb[2].mxu0  ;;  %v825_v21 = vpop.f32.mrb[2].mxu1 }
  0xf8   :  { %v827_v22 = vpop.f32.mrb[3].mxu0  ;;  %v829_v23 = vpop.f32.mrb[3].mxu1 }
  0xf9   :  { %v246_v24 = vadd.f32 %v827_v22, %v819_v18 }
  0xfb   :  { %v247_v25 = vadd.f32 %v815_v16, %v246_v24 }
  0xfd   :  { %v834_v26 = vpop.f32.mrb[4].mxu0  ;;  %v248_v27 = vadd.f32 %v823_v20, %v247_v25  ;;  %v837_v28 = vpop.f32.mrb[4].mxu1 }
  0xfe   :  { %v839_v29 = vpop.f32.mrb[5].mxu0  ;;  %v841_v30 = vpop.f32.mrb[5].mxu1 }
  0xff   :  { %v249_v31 = vadd.f32 %v248_v27, %v839_v29  ;;  %v844_v32 = vpop.f32.mrb[6].mxu0  ;;  %v846_v33 = vpop.f32.mrb[6].mxu1 }
 0x100   :  { %v848_v34 = vpop.f32.mrb[7].mxu0  ;;  %v850_v35 = vpop.f32.mrb[7].mxu1 }
 0x101   :  { %v250_v36 = vadd.f32 %v249_v31, %v848_v34 }
 0x103   :  { %v251_v37 = vadd.f32 %v834_v26, %v250_v36 }
 0x105   :  { %v252_v38 = vadd.f32 %v844_v32, %v251_v37 }
 0x107   :  { %v253_v39 = vadd.f32 %v252_v38, %v821_v19 }
 0x109   :  { %v254_v40 = vadd.f32 %v253_v39, %v829_v23 }
 0x10b   :  { %v255_v41 = vadd.f32 %v817_v17, %v254_v40 }
 0x10d   :  { %v256_v42 = vadd.f32 %v825_v21, %v255_v41 }
 0x10f   :  { %v257_v43 = vadd.f32 %v256_v42, %v841_v30 }
 0x111   :  { %v258_v44 = vadd.f32 %v257_v43, %v850_v35 }
 0x113   :  { %v259_v45 = vadd.f32 %v837_v28, %v258_v44 }
 0x115   :  { %v260_v46 = vadd.f32 %v846_v33, %v259_v45 }
 0x117   :  { %v261_v47 = vrot.slane %v260_v46, 4 }
 0x119   :  { %v262_v48 = vadd.f32 %v261_v47, %v260_v46 }
 0x11b   :  { %v263_v49 = vrot.slane %v262_v48, 2 }
 0x11d   :  { %v264_v50 = vadd.f32 %v263_v49, %v262_v48 }
 0x11f   :  { %v265_v51 = vrot.slane %v264_v50, 1 }
 0x121   :  { %v266_v52 = vadd.f32 %v265_v51, %v264_v50 }
 0x123   :  { %v863_v53 = vmul.f32 0.0078125, %v266_v52 }
 0x125   :  { %v268_v54 = vsub.f32 %v819_v18, %v863_v53  ;;  %v269_v55 = vsub.f32 %v827_v22, %v863_v53  ;;  %v270_v56 = vsub.f32 %v815_v16, %v863_v53  ;;  %v271_v57 = vsub.f32 %v823_v20, %v863_v53 }
 0x126   :  { %v272_v58 = vsub.f32 %v839_v29, %v863_v53  ;;  %v273_v59 = vsub.f32 %v848_v34, %v863_v53  ;;  %v274_v60 = vsub.f32 %v834_v26, %v863_v53  ;;  %v275_v61 = vsub.f32 %v844_v32, %v863_v53 }
 0x127   :  { %v276_v62 = vsub.f32 %v821_v19, %v863_v53  ;;  %v277_v63 = vsub.f32 %v829_v23, %v863_v53  ;;  %v278_v0 = vsub.f32 %v817_v17, %v863_v53  ;;  %v279_v1 = vsub.f32 %v825_v21, %v863_v53 }
 0x128   :  { %v280_v2 = vsub.f32 %v841_v30, %v863_v53  ;;  %v281_v3 = vsub.f32 %v850_v35, %v863_v53  ;;  %v282_v4 = vsub.f32 %v837_v28, %v863_v53  ;;  %v283_v5 = vsub.f32 %v846_v33, %v863_v53 }
 0x129   :  { %v284_v6 = vmul.f32 %v268_v54, %v268_v54  ;;  %v285_v7 = vmul.f32 %v269_v55, %v269_v55  ;;  %v286_v8 = vmul.f32 %v270_v56, %v270_v56  ;;  %v287_v10 = vmul.f32 %v271_v57, %v271_v57 }
 0x12a   :  { %v288_v12 = vmul.f32 %v272_v58, %v272_v58  ;;  %v289_v14 = vmul.f32 %v273_v59, %v273_v59  ;;  %v290_v24 = vmul.f32 %v274_v60, %v274_v60  ;;  %v291_v27 = vmul.f32 %v275_v61, %v275_v61 }
 0x12b   :  { %v300_v9 = vadd.f32 %v285_v7, %v284_v6  ;;  %v292_v36 = vmul.f32 %v276_v62, %v276_v62  ;;  %v293_v38 = vmul.f32 %v277_v63, %v277_v63  ;;  %v294_v40 = vmul.f32 %v278_v0, %v278_v0  ;;  %v322_v0 = vld [vmem:[%s990_s2] sm:$0x1]  ;;  %v918_v7 = vld [vmem:[%s991_s4 + $0x18] sm:$0xff]  }
 0x12c   :  { %v295_v42 = vmul.f32 %v279_v1, %v279_v1  ;;  %v296_v44 = vmul.f32 %v280_v2, %v280_v2  ;;  %v297_v46 = vmul.f32 %v281_v3, %v281_v3  ;;  %v298_v48 = vmul.f32 %v282_v4, %v282_v4  ;;  %v903_v2 = vld [vmem:[%s991_s4] sm:$0xff]   ;;  %v908_v3 = vld [vmem:[%s991_s4 + $0x8] sm:$0xff]  }
 0x12d   :  { %v301_v11 = vadd.f32 %v300_v9, %v286_v8  ;;  %v299_v50 = vmul.f32 %v283_v5, %v283_v5  ;;  %v330_v62 = vlaneseq  ;;  %v913_v5 = vld [vmem:[%s991_s4 + $0x10] sm:$0xff]   ;;  %v923_v8 = vld [vmem:[%s991_s4 + $0x20] sm:$0xff]  }
 0x12e   :  { %v326_v9 = vld [vmem:[%s992_s3] sm:$0x1] }
 0x12f   :  { %v302_v13 = vadd.f32 %v301_v11, %v287_v10  ;;  %v331_v63 = vshrl.u32 %v330_v62, 7  ;;  %v571_v10 = vunpack.c.l.bf16 %v903_v2  ;;  %v572_v11 = vunpack.c.h.bf16 %v903_v2 }
 0x131   :  { %v303_v15 = vadd.f32 %v302_v13, %v288_v12  ;;  %v332_v1 = vsub.s32 0, %v331_v63  ;;  %v575_v12 = vunpack.c.l.bf16 %v908_v3  ;;  %v576_v13 = vunpack.c.h.bf16 %v908_v3 }
 0x133   :  { %v304_v25 = vadd.f32 %v303_v15, %v289_v14 }
 0x135   :  { %v305_v31 = vadd.f32 %v304_v25, %v290_v24  ;;  %v579_v24 = vunpack.c.l.bf16 %v913_v5  ;;  %v580_v25 = vunpack.c.h.bf16 %v913_v5 }
 0x137   :  { %v306_v37 = vadd.f32 %v305_v31, %v291_v27  ;;  %v583_v27 = vunpack.c.l.bf16 %v918_v7  ;;  %v584_v31 = vunpack.c.h.bf16 %v918_v7 }
 0x139   :  { %v307_v39 = vadd.f32 %v306_v37, %v292_v36  ;;  %v587_v36 = vunpack.c.l.bf16 %v923_v8  ;;  %v588_v37 = vunpack.c.h.bf16 %v923_v8 }
 0x13b   :  { %v308_v41 = vadd.f32 %v307_v39, %v293_v38 }
 0x13d   :  { %v309_v43 = vadd.f32 %v308_v41, %v294_v40 }
 0x13f   :  { %v310_v45 = vadd.f32 %v309_v43, %v295_v42 }
 0x141   :  { %v311_v47 = vadd.f32 %v310_v45, %v296_v44  ;;  %v645_v45 = vld [vmem:[%s991_s4 + $0x28] sm:$0xff]  }
 0x143   :  { %v312_v49 = vadd.f32 %v311_v47, %v297_v46 }
 0x145   :  { %v313_v51 = vadd.f32 %v312_v49, %v298_v48  ;;  %v592_v48 = vunpack.c.h.bf16 %v645_v45 }
 0x147   :  { %v314_v52 = vadd.f32 %v313_v51, %v299_v50 }
 0x149   :  { %v315_v54 = vrot.slane %v314_v52, 4 }
 0x14b   :  { %v316_v55 = vadd.f32 %v315_v54, %v314_v52 }
 0x14d   :  { %v317_v56 = vrot.slane %v316_v55, 2 }
 0x14f   :  { %v318_v57 = vadd.f32 %v317_v56, %v316_v55 }
 0x151   :  { %v319_v58 = vrot.slane %v318_v57, 1 }
 0x153   :  { %v320_v59 = vadd.f32 %v319_v58, %v318_v57 }
 0x155   :  { %v321_v60 = vmul.f32 0.0078125, %v320_v59 }
 0x157   :  { %v323_v61 = vadd.f32 1e-05, %v321_v60 }
 0x159   :  { %735 = vrsqrt.f32 %v323_v61 }
 0x163   :  { %v736_v4 = vpop.eup %735 }
 0x164   :  { %v325_v6 = vmul.f32 %v736_v4, %v322_v0 }
 0x166   :  { %v327_v14 = vmul.f32 %v325_v6, %v863_v53  ;;  %v333_v15 = vrot.slane %v325_v6, %v332_v1 }
 0x168   :  { %v328_v38 = vsub.f32 %v326_v9, %v327_v14  ;;  %v335_v39 = vmul.f32 %v333_v15, %v819_v18  ;;  %v336_v40 = vmul.f32 %v333_v15, %v827_v22  ;;  %v337_v53 = vmul.f32 %v815_v16, %v333_v15 }
 0x169   :  { %v338_v41 = vmul.f32 %v823_v20, %v333_v15  ;;  %v339_v42 = vmul.f32 %v333_v15, %v839_v29  ;;  %v340_v43 = vmul.f32 %v333_v15, %v848_v34  ;;  %v341_v44 = vmul.f32 %v834_v26, %v333_v15  ;;  %v646_v20 = vld [vmem:[%s991_s4 + $0x30] sm:$0xff]   ;;  %v647_v26 = vld [vmem:[%s991_s4 + $0x38] sm:$0xff]  }
 0x16a   :  { %v342_v46 = vmul.f32 %v844_v32, %v333_v15  ;;  %v343_v18 = vmul.f32 %v333_v15, %v821_v19  ;;  %v344_v22 = vmul.f32 %v333_v15, %v829_v23  ;;  %v345_v16 = vmul.f32 %v817_v17, %v333_v15 }
 0x16b   :  { %v346_v29 = vmul.f32 %v825_v21, %v333_v15  ;;  %v347_v34 = vmul.f32 %v333_v15, %v841_v30  ;;  %v348_v32 = vmul.f32 %v333_v15, %v850_v35  ;;  %v349_v19 = vmul.f32 %v837_v28, %v333_v15 }
 0x16c   :  { %v350_v23 = vmul.f32 %v846_v33, %v333_v15  ;;  %v355_v47 = vrot.slane %v328_v38, %v332_v1  ;;  %v591_v17 = vunpack.c.l.bf16 %v645_v45  ;;  %v595_v49 = vunpack.c.l.bf16 %v646_v20 }
 0x16d   :  { %v596_v50 = vunpack.c.h.bf16 %v646_v20  ;;  %v599_v51 = vunpack.c.l.bf16 %v647_v26  ;;  %v600_v52 = vunpack.c.h.bf16 %v647_v26 }
 0x16e   :  { %v357_v54 = vadd.f32 %v355_v47, %v335_v39  ;;  %v358_v55 = vadd.f32 %v355_v47, %v336_v40  ;;  %v359_v56 = vadd.f32 %v355_v47, %v337_v53  ;;  %v360_v57 = vadd.f32 %v355_v47, %v338_v41 }
 0x16f   :  { %v361_v21 = vadd.f32 %v355_v47, %v339_v42  ;;  %v362_v58 = vadd.f32 %v355_v47, %v340_v43  ;;  %v363_v30 = vadd.f32 %v355_v47, %v341_v44  ;;  %v364_v59 = vadd.f32 %v355_v47, %v342_v46 }
 0x170   :  { %v365_v35 = vadd.f32 %v355_v47, %v343_v18  ;;  %v366_v60 = vadd.f32 %v355_v47, %v344_v22  ;;  %v367_v28 = vadd.f32 %v355_v47, %v345_v16  ;;  %v368_v61 = vadd.f32 %v355_v47, %v346_v29 }
 0x171   :  { %v369_v33 = vadd.f32 %v355_v47, %v347_v34  ;;  %v370_v62 = vadd.f32 %v355_v47, %v348_v32  ;;  %v371_v63 = vadd.f32 %v355_v47, %v349_v19  ;;  %v372_v0 = vadd.f32 %v355_v47, %v350_v23 }
 0x172   :  { %v405_v1 = vadd.f32 %v571_v10, %v357_v54  ;;  %v406_v2 = vadd.f32 %v572_v11, %v358_v55  ;;  %v407_v3 = vadd.f32 %v575_v12, %v359_v56  ;;  %v408_v4 = vadd.f32 %v576_v13, %v360_v57 }
 0x173   :  { %v409_v5 = vadd.f32 %v579_v24, %v361_v21  ;;  %v410_v6 = vadd.f32 %v580_v25, %v362_v58  ;;  %v411_v7 = vadd.f32 %v583_v27, %v363_v30  ;;  %v412_v8 = vadd.f32 %v584_v31, %v364_v59 }
 0x174   :  { %v413_v9 = vadd.f32 %v587_v36, %v365_v35  ;;  %v414_v14 = vadd.f32 %v588_v37, %v366_v60  ;;  %v415_v15 = vadd.f32 %v591_v17, %v367_v28  ;;  %v416_v38 = vadd.f32 %v592_v48, %v368_v61 }
 0x175   :  { %v417_v39 = vadd.f32 %v595_v49, %v369_v33  ;;  %v418_v40 = vadd.f32 %v596_v50, %v370_v62  ;;  %v419_v53 = vadd.f32 %v599_v51, %v371_v63  ;;  %v420_v41 = vadd.f32 %v600_v52, %v372_v0 }
 0x176   :  { %v421_v42 = vmax.f32 %v405_v1, 0.0  ;;  %v422_v43 = vmax.f32 %v406_v2, 0.0  ;;  %v423_v44 = vmax.f32 %v407_v3, 0.0  ;;  %v424_v45 = vmax.f32 %v408_v4, 0.0 }
 0x177   :  { %v425_v10 = vmax.f32 %v409_v5, 0.0  ;;  %v426_v11 = vmax.f32 %v410_v6, 0.0  ;;  %v427_v12 = vmax.f32 %v411_v7, 0.0  ;;  %v428_v13 = vmax.f32 %v412_v8, 0.0 }
 0x178   :  { %v429_v24 = vmax.f32 %v413_v9, 0.0  ;;  %v430_v25 = vmax.f32 %v414_v14, 0.0  ;;  %v431_v27 = vmax.f32 %v415_v15, 0.0  ;;  %v432_v31 = vmax.f32 %v416_v38, 0.0 }
 0x179   :  { %v433_v36 = vmax.f32 %v417_v39, 0.0  ;;  %v434_v37 = vmax.f32 %v418_v40, 0.0  ;;  %v435_v46 = vmax.f32 %v419_v53, 0.0  ;;  %v436_v18 = vmax.f32 %v420_v41, 0.0 }
 0x17a   :  { %v604_v22 = vpack.c.bf16 %v422_v43, %v421_v42  ;;  %v609_v16 = vpack.c.bf16 %v424_v45, %v423_v44  ;;  %v614_v20 = vpack.c.bf16 %v426_v11, %v425_v10  ;;  %v619_v26 = vpack.c.bf16 %v428_v13, %v427_v12 }
 0x17b   :  { %v624_v29 = vpack.c.bf16 %v430_v25, %v429_v24  ;;  %v629_v34 = vpack.c.bf16 %v432_v31, %v431_v27  ;;  %v634_v32 = vpack.c.bf16 %v434_v37, %v433_v36  ;;  %v639_v19 = vpack.c.bf16 %v436_v18, %v435_v46 }
 0x17c   :  { %605 = vst [vmem:[%s993_s5] sm:$0xff] %v604_v22   ;;  %648 = vst [vmem:[%s993_s5 + $0x8] sm:$0xff] %v609_v16  }
 0x17d   :  { %649 = vst [vmem:[%s993_s5 + $0x10] sm:$0xff] %v614_v20   ;;  %650 = vst [vmem:[%s993_s5 + $0x18] sm:$0xff] %v619_v26  }
 0x17e   :  { %651 = vst [vmem:[%s993_s5 + $0x20] sm:$0xff] %v624_v29   ;;  %652 = vst [vmem:[%s993_s5 + $0x28] sm:$0xff] %v629_v34  }
 0x17f   :  { %653 = vst [vmem:[%s993_s5 + $0x30] sm:$0xff] %v634_v32   ;;  %654 = vst [vmem:[%s993_s5 + $0x38] sm:$0xff] %v639_v19  }

// kernel: resnet_forward.60
= control target key start
LH: loop header
LB: loop body
LE: loop exit
PB: predicated region body
PF: predicated region fallthrough
CT: control target
= control target key end

     0   :  { %s833_s1 = inlined_call_operand.vmem [shape: bf16[128,128], index: 1, kind: input, shape index: {}]   ;;  %s834_s0 = inlined_call_operand.vmem [shape: bf16[128,128], index: 0, kind: input, shape index: {}]   ;;  %s835_s2 = inlined_call_operand.vmem [shape: f32[1,128], index: 2, kind: input, shape index: {}]   ;;  %s836_s3 = inlined_call_operand.vmem [shape: f32[1,128], index: 3, kind: input, shape index: {}]   ;;  %s837_s4 = inlined_call_operand.vmem [shape: bf16[128,128], index: 4, kind: output, shape index: {}]  }
   0x1   :  { %v613_v0 = vld [vmem:[%s833_s1] sm:$0xff]   ;;  %v614_v1 = vld [vmem:[%s833_s1 + $0x8] sm:$0xff]   ;;  %v615_v2 = vld [vmem:[%s833_s1 + $0x10] sm:$0xff]  }
   0x2   :  { %565 = vmatprep.subr.bf16.mxu0 %v613_v0  ;;  %597 = vmatprep.subr.bf16.mxu1 %v613_v0  ;;  %v616_v3 = vld [vmem:[%s833_s1 + $0x18] sm:$0xff]   ;;  %v621_v4 = vld [vmem:[%s834_s0] sm:$0xff]   ;;  %v618_v7 = vld [vmem:[%s833_s1 + $0x28] sm:$0xff]  }
   0x3   :  { %566 = vmatpush3.bf16.msra.mxu0 %v613_v0  ;;  %605 = vmatpush3.bf16.msra.mxu1 %v613_v0  ;;  %v617_v5 = vld [vmem:[%s833_s1 + $0x20] sm:$0xff]   ;;  %v619_v8 = vld [vmem:[%s833_s1 + $0x30] sm:$0xff]   ;;  %v620_v9 = vld [vmem:[%s833_s1 + $0x38] sm:$0xff]  }
   0x4   :  { %567 = vmatprep.subr.bf16.mxu0 %v614_v1  ;;  %598 = vmatprep.subr.bf16.mxu1 %v614_v1  ;;  %v625_v6 = vld [vmem:[%s834_s0 + $0x20] sm:$0xff]   ;;  %v622_v10 = vld [vmem:[%s834_s0 + $0x8] sm:$0xff]   ;;  %v623_v12 = vld [vmem:[%s834_s0 + $0x10] sm:$0xff]  }
   0x5   :  { %581 = vmatprep.mubr.bf16.mxu0 %v621_v4  ;;  %589 = vmatprep.mubr.bf16.mxu1 %v625_v6  ;;  %v626_v11 = vld [vmem:[%s834_s0 + $0x28] sm:$0xff]   ;;  %v627_v13 = vld [vmem:[%s834_s0 + $0x30] sm:$0xff]   ;;  %v624_v14 = vld [vmem:[%s834_s0 + $0x18] sm:$0xff]  }
   0x6   :  { %v628_v15 = vld [vmem:[%s834_s0 + $0x38] sm:$0xff]  }
   0x7   :  { %568 = vmatpush3.bf16.msra.mxu0 %v614_v1  ;;  %606 = vmatpush3.bf16.msra.mxu1 %v614_v1 }
   0x8   :  { %569 = vmatprep.subr.bf16.mxu0 %v615_v2  ;;  %599 = vmatprep.subr.bf16.mxu1 %v615_v2 }
   0xb   :  { %570 = vmatpush3.bf16.msra.mxu0 %v615_v2  ;;  %607 = vmatpush3.bf16.msra.mxu1 %v615_v2 }
   0xc   :  { %571 = vmatprep.subr.bf16.mxu0 %v616_v3  ;;  %600 = vmatprep.subr.bf16.mxu1 %v616_v3 }
   0xf   :  { %572 = vmatpush3.bf16.msra.mxu0 %v616_v3  ;;  %608 = vmatpush3.bf16.msra.mxu1 %v616_v3 }
  0x10   :  { %573 = vmatprep.subr.bf16.mxu0 %v617_v5  ;;  %601 = vmatprep.subr.bf16.mxu1 %v617_v5 }
  0x13   :  { %574 = vmatpush3.bf16.msra.mxu0 %v617_v5  ;;  %609 = vmatpush3.bf16.msra.mxu1 %v617_v5 }
  0x14   :  { %575 = vmatprep.subr.bf16.mxu0 %v618_v7  ;;  %602 = vmatprep.subr.bf16.mxu1 %v618_v7 }
  0x17   :  { %576 = vmatpush3.bf16.msra.mxu0 %v618_v7  ;;  %610 = vmatpush3.bf16.msra.mxu1 %v618_v7 }
  0x18   :  { %577 = vmatprep.subr.bf16.mxu0 %v619_v8  ;;  %603 = vmatprep.subr.bf16.mxu1 %v619_v8 }
  0x1b   :  { %578 = vmatpush3.bf16.msra.mxu0 %v619_v8  ;;  %611 = vmatpush3.bf16.msra.mxu1 %v619_v8 }
  0x1c   :  { %579 = vmatprep.subr.bf16.mxu0 %v620_v9  ;;  %604 = vmatprep.subr.bf16.mxu1 %v620_v9 }
  0x1f   :  { %580 = vmatpush3.bf16.msra.mxu0 %v620_v9  ;;  %612 = vmatpush3.bf16.msra.mxu1 %v620_v9 }
  0x22   :  { %582 = vmatmul.mubr.bf16.vlgmr.msra.gmra.mrb[0].mxu0 %v622_v10  ;;  %590 = vmatmul.mubr.bf16.vlgmr.msra.gmra.mrb[0].mxu1 %v626_v11 }
  0x23   :  { %585 = vmatprep.mubr.bf16.mxu0 %v623_v12  ;;  %593 = vmatprep.mubr.bf16.mxu1 %v627_v13 }
  0x2a   :  { %586 = vmatmul.mubr.bf16.gmra.mrb[4].mxu0 %v624_v14  ;;  %594 = vmatmul.mubr.bf16.gmra.mrb[4].mxu1 %v628_v15 }
  0xf5   :  { %v704_v16 = vpop.f32.mrb[0].mxu0  ;;  %v706_v17 = vpop.f32.mrb[0].mxu1 }
  0xf6   :  { %v708_v18 = vpop.f32.mrb[1].mxu0  ;;  %v710_v19 = vpop.f32.mrb[1].mxu1 }
  0xf7   :  { %v712_v20 = vpop.f32.mrb[2].mxu0  ;;  %v714_v21 = vpop.f32.mrb[2].mxu1 }
  0xf8   :  { %v716_v22 = vpop.f32.mrb[3].mxu0  ;;  %v718_v23 = vpop.f32.mrb[3].mxu1 }
  0xf9   :  { %v243_v24 = vadd.f32 %v716_v22, %v708_v18 }
  0xfb   :  { %v244_v25 = vadd.f32 %v704_v16, %v243_v24 }
  0xfd   :  { %v723_v26 = vpop.f32.mrb[4].mxu0  ;;  %v245_v27 = vadd.f32 %v712_v20, %v244_v25  ;;  %v726_v28 = vpop.f32.mrb[4].mxu1 }
  0xfe   :  { %v728_v29 = vpop.f32.mrb[5].mxu0  ;;  %v730_v30 = vpop.f32.mrb[5].mxu1 }
  0xff   :  { %v246_v31 = vadd.f32 %v245_v27, %v728_v29  ;;  %v733_v32 = vpop.f32.mrb[6].mxu0  ;;  %v735_v33 = vpop.f32.mrb[6].mxu1 }
 0x100   :  { %v737_v34 = vpop.f32.mrb[7].mxu0  ;;  %v739_v35 = vpop.f32.mrb[7].mxu1 }
 0x101   :  { %v247_v36 = vadd.f32 %v246_v31, %v737_v34 }
 0x103   :  { %v248_v37 = vadd.f32 %v723_v26, %v247_v36 }
 0x105   :  { %v249_v38 = vadd.f32 %v733_v32, %v248_v37 }
 0x107   :  { %v250_v39 = vadd.f32 %v249_v38, %v710_v19 }
 0x109   :  { %v251_v40 = vadd.f32 %v250_v39, %v718_v23 }
 0x10b   :  { %v252_v41 = vadd.f32 %v706_v17, %v251_v40 }
 0x10d   :  { %v253_v42 = vadd.f32 %v714_v21, %v252_v41 }
 0x10f   :  { %v254_v43 = vadd.f32 %v253_v42, %v730_v30 }
 0x111   :  { %v255_v44 = vadd.f32 %v254_v43, %v739_v35 }
 0x113   :  { %v256_v45 = vadd.f32 %v726_v28, %v255_v44 }
 0x115   :  { %v257_v46 = vadd.f32 %v735_v33, %v256_v45 }
 0x117   :  { %v258_v47 = vrot.slane %v257_v46, 4 }
 0x119   :  { %v259_v48 = vadd.f32 %v258_v47, %v257_v46 }
 0x11b   :  { %v260_v49 = vrot.slane %v259_v48, 2 }
 0x11d   :  { %v261_v50 = vadd.f32 %v260_v49, %v259_v48 }
 0x11f   :  { %v262_v51 = vrot.slane %v261_v50, 1 }
 0x121   :  { %v263_v52 = vadd.f32 %v262_v51, %v261_v50 }
 0x123   :  { %v752_v53 = vmul.f32 0.0078125, %v263_v52 }
 0x125   :  { %v265_v54 = vsub.f32 %v708_v18, %v752_v53  ;;  %v266_v55 = vsub.f32 %v716_v22, %v752_v53  ;;  %v267_v56 = vsub.f32 %v704_v16, %v752_v53  ;;  %v268_v57 = vsub.f32 %v712_v20, %v752_v53 }
 0x126   :  { %v269_v58 = vsub.f32 %v728_v29, %v752_v53  ;;  %v270_v59 = vsub.f32 %v737_v34, %v752_v53  ;;  %v271_v60 = vsub.f32 %v723_v26, %v752_v53  ;;  %v272_v61 = vsub.f32 %v733_v32, %v752_v53 }
 0x127   :  { %v273_v62 = vsub.f32 %v710_v19, %v752_v53  ;;  %v274_v63 = vsub.f32 %v718_v23, %v752_v53  ;;  %v275_v0 = vsub.f32 %v706_v17, %v752_v53  ;;  %v276_v1 = vsub.f32 %v714_v21, %v752_v53 }
 0x128   :  { %v277_v2 = vsub.f32 %v730_v30, %v752_v53  ;;  %v278_v3 = vsub.f32 %v739_v35, %v752_v53  ;;  %v279_v4 = vsub.f32 %v726_v28, %v752_v53  ;;  %v280_v5 = vsub.f32 %v735_v33, %v752_v53 }
 0x129   :  { %v281_v6 = vmul.f32 %v265_v54, %v265_v54  ;;  %v282_v7 = vmul.f32 %v266_v55, %v266_v55  ;;  %v283_v8 = vmul.f32 %v267_v56, %v267_v56  ;;  %v284_v10 = vmul.f32 %v268_v57, %v268_v57 }
 0x12a   :  { %v285_v12 = vmul.f32 %v269_v58, %v269_v58  ;;  %v286_v14 = vmul.f32 %v270_v59, %v270_v59  ;;  %v287_v24 = vmul.f32 %v271_v60, %v271_v60  ;;  %v288_v27 = vmul.f32 %v272_v61, %v272_v61 }
 0x12b   :  { %v297_v9 = vadd.f32 %v282_v7, %v281_v6  ;;  %v289_v36 = vmul.f32 %v273_v62, %v273_v62  ;;  %v290_v38 = vmul.f32 %v274_v63, %v274_v63  ;;  %v291_v40 = vmul.f32 %v275_v0, %v275_v0  ;;  %v319_v0 = vld [vmem:[%s835_s2] sm:$0x1] }
 0x12c   :  { %v292_v42 = vmul.f32 %v276_v1, %v276_v1  ;;  %v293_v44 = vmul.f32 %v277_v2, %v277_v2  ;;  %v294_v46 = vmul.f32 %v278_v3, %v278_v3  ;;  %v295_v48 = vmul.f32 %v279_v4, %v279_v4  ;;  %v323_v4 = vld [vmem:[%s836_s3] sm:$0x1] }
 0x12d   :  { %v298_v11 = vadd.f32 %v297_v9, %v283_v8  ;;  %v296_v50 = vmul.f32 %v280_v5, %v280_v5  ;;  %v327_v62 = vlaneseq }
 0x12f   :  { %v299_v13 = vadd.f32 %v298_v11, %v284_v10  ;;  %v328_v63 = vshrl.u32 %v327_v62, 7 }
 0x131   :  { %v300_v15 = vadd.f32 %v299_v13, %v285_v12  ;;  %v329_v1 = vsub.s32 0, %v328_v63 }
 0x133   :  { %v301_v25 = vadd.f32 %v300_v15, %v286_v14 }
 0x135   :  { %v302_v31 = vadd.f32 %v301_v25, %v287_v24 }
 0x137   :  { %v303_v37 = vadd.f32 %v302_v31, %v288_v27 }
 0x139   :  { %v304_v39 = vadd.f32 %v303_v37, %v289_v36 }
 0x13b   :  { %v305_v41 = vadd.f32 %v304_v39, %v290_v38 }
 0x13d   :  { %v306_v43 = vadd.f32 %v305_v41, %v291_v40 }
 0x13f   :  { %v307_v45 = vadd.f32 %v306_v43, %v292_v42 }
 0x141   :  { %v308_v47 = vadd.f32 %v307_v45, %v293_v44 }
 0x143   :  { %v309_v49 = vadd.f32 %v308_v47, %v294_v46 }
 0x145   :  { %v310_v51 = vadd.f32 %v309_v49, %v295_v48 }
 0x147   :  { %v311_v52 = vadd.f32 %v310_v51, %v296_v50 }
 0x149   :  { %v312_v54 = vrot.slane %v311_v52, 4 }
 0x14b   :  { %v313_v55 = vadd.f32 %v312_v54, %v311_v52 }
 0x14d   :  { %v314_v56 = vrot.slane %v313_v55, 2 }
 0x14f   :  { %v315_v57 = vadd.f32 %v314_v56, %v313_v55 }
 0x151   :  { %v316_v58 = vrot.slane %v315_v57, 1 }
 0x153   :  { %v317_v59 = vadd.f32 %v316_v58, %v315_v57 }
 0x155   :  { %v318_v60 = vmul.f32 0.0078125, %v317_v59 }
 0x157   :  { %v320_v61 = vadd.f32 1e-05, %v318_v60 }
 0x159   :  { %629 = vrsqrt.f32 %v320_v61 }
 0x163   :  { %v630_v2 = vpop.eup %629 }
 0x164   :  { %v322_v3 = vmul.f32 %v630_v2, %v319_v0 }
 0x166   :  { %v324_v5 = vmul.f32 %v322_v3, %v752_v53  ;;  %v330_v6 = vrot.slane %v322_v3, %v329_v1 }
 0x168   :  { %v325_v7 = vsub.f32 %v323_v4, %v324_v5  ;;  %v332_v8 = vmul.f32 %v330_v6, %v708_v18  ;;  %v333_v9 = vmul.f32 %v330_v6, %v716_v22  ;;  %v334_v10 = vmul.f32 %v704_v16, %v330_v6 }
 0x169   :  { %v335_v11 = vmul.f32 %v712_v20, %v330_v6  ;;  %v336_v12 = vmul.f32 %v330_v6, %v728_v29  ;;  %v337_v13 = vmul.f32 %v330_v6, %v737_v34  ;;  %v338_v14 = vmul.f32 %v723_v26, %v330_v6 }
 0x16a   :  { %v339_v15 = vmul.f32 %v733_v32, %v330_v6  ;;  %v340_v53 = vmul.f32 %v330_v6, %v710_v19  ;;  %v341_v24 = vmul.f32 %v330_v6, %v718_v23  ;;  %v342_v18 = vmul.f32 %v706_v17, %v330_v6 }
 0x16b   :  { %v343_v22 = vmul.f32 %v714_v21, %v330_v6  ;;  %v344_v16 = vmul.f32 %v330_v6, %v730_v30  ;;  %v345_v20 = vmul.f32 %v330_v6, %v739_v35  ;;  %v346_v29 = vmul.f32 %v726_v28, %v330_v6 }
 0x16c   :  { %v347_v34 = vmul.f32 %v735_v33, %v330_v6  ;;  %v352_v25 = vrot.slane %v325_v7, %v329_v1 }
 0x16e   :  { %v354_v26 = vadd.f32 %v352_v25, %v332_v8  ;;  %v355_v27 = vadd.f32 %v352_v25, %v333_v9  ;;  %v356_v32 = vadd.f32 %v352_v25, %v334_v10  ;;  %v357_v31 = vadd.f32 %v352_v25, %v335_v11 }
 0x16f   :  { %v358_v19 = vadd.f32 %v352_v25, %v336_v12  ;;  %v359_v36 = vadd.f32 %v352_v25, %v337_v13  ;;  %v360_v23 = vadd.f32 %v352_v25, %v338_v14  ;;  %v361_v37 = vadd.f32 %v352_v25, %v339_v15 }
 0x170   :  { %v362_v17 = vadd.f32 %v352_v25, %v340_v53  ;;  %v363_v38 = vadd.f32 %v352_v25, %v341_v24  ;;  %v364_v21 = vadd.f32 %v352_v25, %v342_v18  ;;  %v365_v39 = vadd.f32 %v352_v25, %v343_v22 }
 0x171   :  { %v366_v30 = vadd.f32 %v352_v25, %v344_v16  ;;  %v367_v40 = vadd.f32 %v352_v25, %v345_v20  ;;  %v368_v35 = vadd.f32 %v352_v25, %v346_v29  ;;  %v369_v41 = vadd.f32 %v352_v25, %v347_v34 }
 0x172   :  { %v505_v28 = vpack.c.bf16 %v355_v27, %v354_v26  ;;  %v510_v42 = vpack.c.bf16 %v357_v31, %v356_v32  ;;  %v515_v33 = vpack.c.bf16 %v359_v36, %v358_v19  ;;  %v520_v43 = vpack.c.bf16 %v361_v37, %v360_v23 }
 0x173   :  { %v525_v44 = vpack.c.bf16 %v363_v38, %v362_v17  ;;  %v530_v45 = vpack.c.bf16 %v365_v39, %v364_v21  ;;  %v535_v46 = vpack.c.bf16 %v367_v40, %v366_v30  ;;  %v540_v47 = vpack.c.bf16 %v369_v41, %v368_v35 }
 0x174   :  { %506 = vst [vmem:[%s837_s4] sm:$0xff] %v505_v28   ;;  %542 = vst [vmem:[%s837_s4 + $0x8] sm:$0xff] %v510_v42  }
 0x175   :  { %543 = vst [vmem:[%s837_s4 + $0x10] sm:$0xff] %v515_v33   ;;  %544 = vst [vmem:[%s837_s4 + $0x18] sm:$0xff] %v520_v43  }
 0x176   :  { %545 = vst [vmem:[%s837_s4 + $0x20] sm:$0xff] %v525_v44   ;;  %546 = vst [vmem:[%s837_s4 + $0x28] sm:$0xff] %v530_v45  }
 0x177   :  { %547 = vst [vmem:[%s837_s4 + $0x30] sm:$0xff] %v535_v46   ;;  %548 = vst [vmem:[%s837_s4 + $0x38] sm:$0xff] %v540_v47  }

// kernel: resnet_forward.59
= control target key start
LH: loop header
LB: loop body
LE: loop exit
PB: predicated region body
PF: predicated region fallthrough
CT: control target
= control target key end

     0   :  { %s3136_s1 = inlined_call_operand.vmem [shape: bf16[1152,128], index: 1, kind: input, shape index: {}]   ;;  %s3137_s0 = inlined_call_operand.vmem [shape: bf16[128,1152], index: 0, kind: input, shape index: {}]   ;;  %s3138_s2 = inlined_call_operand.vmem [shape: f32[1,128], index: 2, kind: input, shape index: {}]   ;;  %s3139_s3 = inlined_call_operand.vmem [shape: f32[1,128], index: 3, kind: input, shape index: {}]   ;;  %s3140_s4 = inlined_call_operand.vmem [shape: bf16[128,128], index: 4, kind: output, shape index: {}]  }
   0x1   :  { %v2297_v0 = vld [vmem:[%s3136_s1 + $0x40] sm:$0xff]   ;;  %v2301_v4 = vld [vmem:[%s3136_s1 + $0x48] sm:$0xff]   ;;  %v2305_v8 = vld [vmem:[%s3136_s1 + $0x50] sm:$0xff]  }
   0x2   :  { %v2298_v1 = vld [vmem:[%s3136_s1 + $0xc0] sm:$0xff]   ;;  %1977 = vmatprep.subr.bf16.mxu0 %v2297_v0  ;;  %v2302_v5 = vld [vmem:[%s3136_s1 + $0xc8] sm:$0xff]   ;;  %v2306_v9 = vld [vmem:[%s3136_s1 + $0xd0] sm:$0xff]  }
   0x3   :  { %v2299_v2 = vld [vmem:[%s3136_s1] sm:$0xff]   ;;  %2041 = vmatprep.subr.bf16.mxu1 %v2298_v1  ;;  %v2303_v6 = vld [vmem:[%s3136_s1 + $0x8] sm:$0xff]   ;;  %v2307_v10 = vld [vmem:[%s3136_s1 + $0x10] sm:$0xff]  }
   0x4   :  { %v2300_v3 = vld [vmem:[%s3136_s1 + $0x80] sm:$0xff]   ;;  %1978 = vmatpush3.bf16.msra.mxu0 %v2299_v2  ;;  %v2304_v7 = vld [vmem:[%s3136_s1 + $0x88] sm:$0xff]   ;;  %v2308_v11 = vld [vmem:[%s3136_s1 + $0x90] sm:$0xff]  }
   0x5   :  { %2042 = vmatpush3.bf16.msra.mxu1 %v2300_v3  ;;  %1979 = vmatprep.subr.bf16.mxu0 %v2301_v4  ;;  %v2309_v12 = vld [vmem:[%s3136_s1 + $0x58] sm:$0xff]   ;;  %v2313_v16 = vld [vmem:[%s3136_s1 + $0x60] sm:$0xff]   ;;  %v2317_v20 = vld [vmem:[%s3136_s1 + $0x68] sm:$0xff]  }
   0x6   :  { %2043 = vmatprep.subr.bf16.mxu1 %v2302_v5  ;;  %v2310_v13 = vld [vmem:[%s3136_s1 + $0xd8] sm:$0xff]   ;;  %v2314_v17 = vld [vmem:[%s3136_s1 + $0xe0] sm:$0xff]   ;;  %v2318_v21 = vld [vmem:[%s3136_s1 + $0xe8] sm:$0xff]  }
   0x7   :  { %v2311_v14 = vld [vmem:[%s3136_s1 + $0x18] sm:$0xff]   ;;  %v2315_v18 = vld [vmem:[%s3136_s1 + $0x20] sm:$0xff]   ;;  %v2319_v22 = vld [vmem:[%s3136_s1 + $0x28] sm:$0xff]  }
   0x8   :  { %1980 = vmatpush3.bf16.msra.mxu0 %v2303_v6  ;;  %v2312_v15 = vld [vmem:[%s3136_s1 + $0x98] sm:$0xff]   ;;  %v2316_v19 = vld [vmem:[%s3136_s1 + $0xa0] sm:$0xff]   ;;  %v2320_v23 = vld [vmem:[%s3136_s1 + $0xa8] sm:$0xff]  }
   0x9   :  { %2044 = vmatpush3.bf16.msra.mxu1 %v2304_v7  ;;  %1981 = vmatprep.subr.bf16.mxu0 %v2305_v8  ;;  %v2321_v24 = vld [vmem:[%s3136_s1 + $0x70] sm:$0xff]   ;;  %v2325_v28 = vld [vmem:[%s3136_s1 + $0x78] sm:$0xff]   ;;  %v2329_v32 = vld [vmem:[%s3137_s0] ss:$36 sps:$4 sm:$0xff]  }
   0xa   :  { %2045 = vmatprep.subr.bf16.mxu1 %v2306_v9  ;;  %v2322_v25 = vld [vmem:[%s3136_s1 + $0xf0] sm:$0xff]   ;;  %v2326_v29 = vld [vmem:[%s3136_s1 + $0xf8] sm:$0xff]   ;;  %v2331_v33 = vld [vmem:[%s3137_s0 + $0x4] ss:$36 sps:$4 sm:$0xff]  }
   0xb   :  { %v2323_v26 = vld [vmem:[%s3136_s1 + $0x30] sm:$0xff]   ;;  %v2327_v30 = vld [vmem:[%s3136_s1 + $0x38] sm:$0xff]   ;;  %v2332_v34 = vld [vmem:[%s3137_s0 + $0x8] ss:$36 sps:$4 sm:$0xff]   ;;  %1074 = vmatprep.mubr.bf16.mxu0 %v2331_v33 }
   0xc   :  { %1982 = vmatpush3.bf16.msra.mxu0 %v2307_v10  ;;  %v2324_v27 = vld [vmem:[%s3136_s1 + $0xb0] sm:$0xff]   ;;  %v2328_v31 = vld [vmem:[%s3136_s1 + $0xb8] sm:$0xff]   ;;  %v2335_v36 = vld [vmem:[%s3136_s1 + $0x140] sm:$0xff]  }
   0xd   :  { %2046 = vmatpush3.bf16.msra.mxu1 %v2308_v11  ;;  %1983 = vmatprep.subr.bf16.mxu0 %v2309_v12  ;;  %v2334_v35 = vld [vmem:[%s3137_s0 + $0xc] ss:$36 sps:$4 sm:$0xff]   ;;  %v2336_v37 = vld [vmem:[%s3136_s1 + $0x100] sm:$0xff]   ;;  %v2339_v39 = vld [vmem:[%s3137_s0 + $0x54] ss:$36 sps:$4 sm:$0xff]  }
   0xe   :  { %2047 = vmatprep.subr.bf16.mxu1 %v2310_v13  ;;  %1171 = vmatprep.mubr.bf16.mxu1 %v2334_v35  ;;  %v2337_v38 = vld [vmem:[%s3137_s0 + $0x4c] ss:$36 sps:$4 sm:$0xff]   ;;  %v2345_v44 = vld [vmem:[%s3137_s0 + $0x94] ss:$36 sps:$4 sm:$0xff]   ;;  %v2347_v45 = vld [vmem:[%s3137_s0 + $0x9c] ss:$36 sps:$4 sm:$0xff]  }
   0xf   :  { %v2341_v40 = vld [vmem:[%s3137_s0 + $0x48] ss:$36 sps:$4 sm:$0xff]   ;;  %v2342_v41 = vld [vmem:[%s3137_s0 + $0x50] ss:$36 sps:$4 sm:$0xff]   ;;  %v2352_v47 = vld [vmem:[%s3136_s1 + $0x1c0] sm:$0xff]  }
  0x10   :  { %1984 = vmatpush3.bf16.msra.mxu0 %v2311_v14  ;;  %v2343_v42 = vld [vmem:[%s3136_s1 + $0x148] sm:$0xff]   ;;  %v2351_v46 = vld [vmem:[%s3136_s1 + $0x150] sm:$0xff]   ;;  %v2354_v50 = vld [vmem:[%s3136_s1 + $0x180] sm:$0xff]  }
  0x11   :  { %2048 = vmatpush3.bf16.msra.mxu1 %v2312_v15  ;;  %1985 = vmatprep.subr.bf16.mxu0 %v2313_v16  ;;  %v2344_v43 = vld [vmem:[%s3136_s1 + $0x108] sm:$0xff]   ;;  %v2349_v48 = vld [vmem:[%s3137_s0 + $0x90] ss:$36 sps:$4 sm:$0xff]   ;;  %v2350_v51 = vld [vmem:[%s3137_s0 + $0x98] ss:$36 sps:$4 sm:$0xff]  }
  0x12   :  { %2049 = vmatprep.subr.bf16.mxu1 %v2314_v17  ;;  %v2353_v49 = vld [vmem:[%s3136_s1 + $0x110] sm:$0xff]   ;;  %v2355_v52 = vld [vmem:[%s3137_s0 + $0xdc] ss:$36 sps:$4 sm:$0xff]   ;;  %v2357_v53 = vld [vmem:[%s3137_s0 + $0xe4] ss:$36 sps:$4 sm:$0xff]  }
  0x13   :  { %v2361_v54 = vld [vmem:[%s3136_s1 + $0x158] sm:$0xff]   ;;  %v2362_v55 = vld [vmem:[%s3136_s1 + $0x1c8] sm:$0xff]   ;;  %v2360_v59 = vld [vmem:[%s3137_s0 + $0xe0] ss:$36 sps:$4 sm:$0xff]  }
  0x14   :  { %1986 = vmatpush3.bf16.msra.mxu0 %v2315_v18  ;;  %v2363_v56 = vld [vmem:[%s3136_s1 + $0x118] sm:$0xff]   ;;  %v2364_v57 = vld [vmem:[%s3136_s1 + $0x188] sm:$0xff]   ;;  %v2371_v62 = vld [vmem:[%s3136_s1 + $0x160] sm:$0xff]  }
  0x15   :  { %2050 = vmatpush3.bf16.msra.mxu1 %v2316_v19  ;;  %1987 = vmatprep.subr.bf16.mxu0 %v2317_v20  ;;  %v2359_v58 = vld [vmem:[%s3137_s0 + $0xd8] ss:$36 sps:$4 sm:$0xff]   ;;  %v2365_v60 = vld [vmem:[%s3137_s0 + $0x124] ss:$36 sps:$4 sm:$0xff]   ;;  %v2367_v61 = vld [vmem:[%s3137_s0 + $0x12c] ss:$36 sps:$4 sm:$0xff]  }
  0x16   :  { %2051 = vmatprep.subr.bf16.mxu1 %v2318_v21  ;;  %v2372_v63 = vld [vmem:[%s3136_s1 + $0x1d0] sm:$0xff]   ;;  %v2373_v0 = vld [vmem:[%s3136_s1 + $0x120] sm:$0xff]   ;;  %v2370_v3 = vld [vmem:[%s3137_s0 + $0x128] ss:$36 sps:$4 sm:$0xff]  }
  0x17   :  { %v2374_v1 = vld [vmem:[%s3136_s1 + $0x190] sm:$0xff]   ;;  %v2369_v2 = vld [vmem:[%s3137_s0 + $0x120] ss:$36 sps:$4 sm:$0xff]   ;;  %v2381_v6 = vld [vmem:[%s3136_s1 + $0x168] sm:$0xff]  }
  0x18   :  { %1988 = vmatpush3.bf16.msra.mxu0 %v2319_v22  ;;  %v2375_v4 = vld [vmem:[%s3137_s0 + $0x16c] ss:$36 sps:$4 sm:$0xff]   ;;  %v2377_v5 = vld [vmem:[%s3137_s0 + $0x174] ss:$36 sps:$4 sm:$0xff]   ;;  %v2387_v14 = vld [vmem:[%s3137_s0 + $0x1bc] ss:$36 sps:$4 sm:$0xff]  }
  0x19   :  { %2052 = vmatpush3.bf16.msra.mxu1 %v2320_v23  ;;  %1989 = vmatprep.subr.bf16.mxu0 %v2321_v24  ;;  %v2382_v7 = vld [vmem:[%s3136_s1 + $0x1d8] sm:$0xff]   ;;  %v2383_v8 = vld [vmem:[%s3136_s1 + $0x128] sm:$0xff]   ;;  %v2380_v11 = vld [vmem:[%s3137_s0 + $0x170] ss:$36 sps:$4 sm:$0xff]  }
  0x1a   :  { %2053 = vmatprep.subr.bf16.mxu1 %v2322_v25  ;;  %v2384_v9 = vld [vmem:[%s3136_s1 + $0x198] sm:$0xff]   ;;  %v2379_v10 = vld [vmem:[%s3137_s0 + $0x168] ss:$36 sps:$4 sm:$0xff]   ;;  %v2391_v13 = vld [vmem:[%s3136_s1 + $0x170] sm:$0xff]  }
  0x1b   :  { %v2385_v12 = vld [vmem:[%s3137_s0 + $0x1b4] ss:$36 sps:$4 sm:$0xff]   ;;  %v2392_v15 = vld [vmem:[%s3136_s1 + $0x1e0] sm:$0xff]   ;;  %v2395_v18 = vld [vmem:[%s3136_s1 + $0x1e8] sm:$0xff]  }
  0x1c   :  { %1990 = vmatpush3.bf16.msra.mxu0 %v2323_v26  ;;  %v2393_v16 = vld [vmem:[%s3136_s1 + $0x130] sm:$0xff]   ;;  %v2394_v17 = vld [vmem:[%s3136_s1 + $0x1a0] sm:$0xff]   ;;  %v2396_v19 = vld [vmem:[%s3136_s1 + $0x1a8] sm:$0xff]  }
  0x1d   :  { %2054 = vmatpush3.bf16.msra.mxu1 %v2324_v27  ;;  %1991 = vmatprep.subr.bf16.mxu0 %v2325_v28  ;;  %v2389_v20 = vld [vmem:[%s3137_s0 + $0x1b0] ss:$36 sps:$4 sm:$0xff]   ;;  %v2390_v21 = vld [vmem:[%s3137_s0 + $0x1b8] ss:$36 sps:$4 sm:$0xff]   ;;  %v2399_v23 = vld [vmem:[%s3137_s0 + $0x204] ss:$36 sps:$4 sm:$0xff]  }
  0x1e   :  { %2055 = vmatprep.subr.bf16.mxu1 %v2326_v29  ;;  %v2397_v22 = vld [vmem:[%s3137_s0 + $0x1fc] ss:$36 sps:$4 sm:$0xff]   ;;  %v2404_v25 = vld [vmem:[%s3136_s1 + $0x1f0] sm:$0xff]  }
  0x1f   :  { %v2403_v24 = vld [vmem:[%s3136_s1 + $0x178] sm:$0xff]   ;;  %v2406_v27 = vld [vmem:[%s3136_s1 + $0x1b0] sm:$0xff]  }
  0x20   :  { %1992 = vmatpush3.bf16.msra.mxu0 %v2327_v30  ;;  %v2405_v26 = vld [vmem:[%s3136_s1 + $0x138] sm:$0xff]   ;;  %v2402_v30 = vld [vmem:[%s3137_s0 + $0x200] ss:$36 sps:$4 sm:$0xff]   ;;  %v2409_v35 = vld [vmem:[%s3137_s0 + $0x10] ss:$36 sps:$4 sm:$0xff]  }
  0x21   :  { %2056 = vmatpush3.bf16.msra.mxu1 %v2328_v31  ;;  %2105 = vmatprep.subr.bf16.mxu0 %v2335_v36  ;;  %v2407_v28 = vld [vmem:[%s3136_s1 + $0x1f8] sm:$0xff]  }
  0x22   :  { %2169 = vmatprep.subr.bf16.mxu1 %v2352_v47  ;;  %v2401_v29 = vld [vmem:[%s3137_s0 + $0x1f8] ss:$36 sps:$4 sm:$0xff]   ;;  %v2427_v47 = vld [vmem:[%s3137_s0 + $0xa0] ss:$36 sps:$4 sm:$0xff]  }
  0x23   :  { %1075 = vmatmul.mubr.bf16.vlgmr.msra.gmra.mrb[0].mxu0 %v2329_v32  ;;  %v2408_v31 = vld [vmem:[%s3136_s1 + $0x1b8] sm:$0xff]   ;;  %v2415_v32 = vld [vmem:[%s3136_s1 + $0x200] sm:$0xff]  }
  0x24   :  { %1172 = vmatmul.mubr.bf16.vlgmr.msra.gmra.mrb[0].mxu1 %v2332_v34  ;;  %2106 = vmatpush3.bf16.msra.mxu0 %v2336_v37  ;;  %v2411_v33 = vld [vmem:[%s3137_s0 + $0x14] ss:$36 sps:$4 sm:$0xff]   ;;  %v2414_v34 = vld [vmem:[%s3137_s0 + $0x1c] ss:$36 sps:$4 sm:$0xff]  }
  0x25   :  { %1082 = vmatprep.mubr.bf16.mxu0 %v2337_v38  ;;  %1179 = vmatprep.mubr.bf16.mxu1 %v2339_v39  ;;  %v2412_v36 = vld [vmem:[%s3137_s0 + $0x18] ss:$36 sps:$4 sm:$0xff]   ;;  %v2418_v38 = vld [vmem:[%s3137_s0 + $0x64] ss:$36 sps:$4 sm:$0xff]  }
  0x26   :  { %2107 = vmatprep.subr.bf16.mxu0 %v2343_v42  ;;  %2170 = vmatpush3.bf16.msra.mxu1 %v2354_v50  ;;  %v2416_v37 = vld [vmem:[%s3137_s0 + $0x5c] ss:$36 sps:$4 sm:$0xff]   ;;  %v2422_v39 = vld [vmem:[%s3136_s1 + $0x208] sm:$0xff]   ;;  %v2432_v50 = vld [vmem:[%s3137_s0 + $0xf4] ss:$36 sps:$4 sm:$0xff]  }
  0x27   :  { %2171 = vmatprep.subr.bf16.mxu1 %v2362_v55  ;;  %v2421_v42 = vld [vmem:[%s3137_s0 + $0x60] ss:$36 sps:$4 sm:$0xff]   ;;  %v2437_v55 = vld [vmem:[%s3137_s0 + $0x134] ss:$36 sps:$4 sm:$0xff]  }
  0x28   :  { %2108 = vmatpush3.bf16.msra.mxu0 %v2344_v43  ;;  %v2423_v43 = vld [vmem:[%s3137_s0 + $0xa4] ss:$36 sps:$4 sm:$0xff]  }
  0x29   :  { %2109 = vmatprep.subr.bf16.mxu0 %v2351_v46  ;;  %v2443_v46 = vld [vmem:[%s3136_s1 + $0x220] sm:$0xff]  }
  0x2a   :  { %2172 = vmatpush3.bf16.msra.mxu1 %v2364_v57  ;;  %v2464_v57 = vld [vmem:[%s3136_s1 + $0x238] sm:$0xff]  }
  0x2b   :  { %1083 = vmatmul.mubr.bf16.gmra.mrb[4].mxu0 %v2341_v40  ;;  %2173 = vmatprep.subr.bf16.mxu1 %v2372_v63  ;;  %v2429_v40 = vld [vmem:[%s3136_s1 + $0x210] sm:$0xff]   ;;  %v2449_v63 = vld [vmem:[%s3137_s0 + $0x180] ss:$36 sps:$4 sm:$0xff]  }
  0x2c   :  { %1180 = vmatmul.mubr.bf16.gmra.mrb[4].mxu1 %v2342_v41  ;;  %1090 = vmatprep.mubr.bf16.mxu0 %v2345_v44  ;;  %v2420_v41 = vld [vmem:[%s3137_s0 + $0x58] ss:$36 sps:$4 sm:$0xff]   ;;  %v2425_v44 = vld [vmem:[%s3137_s0 + $0xac] ss:$36 sps:$4 sm:$0xff]  }
  0x2d   :  { %1187 = vmatprep.mubr.bf16.mxu1 %v2347_v45  ;;  %2110 = vmatpush3.bf16.msra.mxu0 %v2353_v49  ;;  %v2436_v45 = vld [vmem:[%s3136_s1 + $0x218] sm:$0xff]   ;;  %v2430_v49 = vld [vmem:[%s3137_s0 + $0xec] ss:$36 sps:$4 sm:$0xff]  }
  0x2e   :  { %2111 = vmatprep.subr.bf16.mxu0 %v2361_v54  ;;  %2174 = vmatpush3.bf16.msra.mxu1 %v2374_v1  ;;  %v2435_v54 = vld [vmem:[%s3137_s0 + $0xf0] ss:$36 sps:$4 sm:$0xff]  }
  0x2f   :  { %2175 = vmatprep.subr.bf16.mxu1 %v2382_v7  ;;  %v2453_v1 = vld [vmem:[%s3137_s0 + $0x1cc] ss:$36 sps:$4 sm:$0xff]  }
  0x30   :  { %v2463_v7 = vld [vmem:[%s3137_s0 + $0x210] ss:$36 sps:$4 sm:$0xff]  }
  0x31   :  { %2112 = vmatpush3.bf16.msra.mxu0 %v2363_v56  ;;  %v2439_v56 = vld [vmem:[%s3137_s0 + $0x13c] ss:$36 sps:$4 sm:$0xff]  }
  0x32   :  { %2113 = vmatprep.subr.bf16.mxu0 %v2371_v62  ;;  %2176 = vmatpush3.bf16.msra.mxu1 %v2384_v9  ;;  %v2448_v62 = vld [vmem:[%s3137_s0 + $0x178] ss:$36 sps:$4 sm:$0xff]   ;;  %v2466_v9 = vld [vmem:[%s3137_s0 + $0x140] ss:$36 sps:$4 sm:$0xff]  }
  0x33   :  { %1091 = vmatmul.mubr.bf16.gmra.mrb[8].mxu0 %v2349_v48  ;;  %2177 = vmatprep.subr.bf16.mxu1 %v2392_v15  ;;  %v2428_v48 = vld [vmem:[%s3137_s0 + $0xa8] ss:$36 sps:$4 sm:$0xff]   ;;  %v2472_v15 = vld [vmem:[%s3137_s0 + $0x218] ss:$36 sps:$4 sm:$0xff]  }
  0x34   :  { %1188 = vmatmul.mubr.bf16.gmra.mrb[8].mxu1 %v2350_v51  ;;  %1098 = vmatprep.mubr.bf16.mxu0 %v2355_v52  ;;  %v2450_v51 = vld [vmem:[%s3136_s1 + $0x228] sm:$0xff]  }
  0x35   :  { %1195 = vmatprep.mubr.bf16.mxu1 %v2357_v53  ;;  %2114 = vmatpush3.bf16.msra.mxu0 %v2373_v0  ;;  %v2434_v52 = vld [vmem:[%s3137_s0 + $0xe8] ss:$36 sps:$4 sm:$0xff]   ;;  %v2457_v53 = vld [vmem:[%s3136_s1 + $0x230] sm:$0xff]  }
  0x36   :  { %2115 = vmatprep.subr.bf16.mxu0 %v2381_v6  ;;  %2178 = vmatpush3.bf16.msra.mxu1 %v2394_v17  ;;  %v2451_v0 = vld [vmem:[%s3137_s0 + $0x1c4] ss:$36 sps:$4 sm:$0xff]  }
  0x37   :  { %2179 = vmatprep.subr.bf16.mxu1 %v2395_v18  ;;  %v2462_v6 = vld [vmem:[%s3137_s0 + $0x208] ss:$36 sps:$4 sm:$0xff]  }
  0x39   :  { %2116 = vmatpush3.bf16.msra.mxu0 %v2383_v8  ;;  %v2465_v8 = vld [vmem:[%s3137_s0 + $0x20] ss:$36 sps:$4 sm:$0xff]  }
  0x3a   :  { %2117 = vmatprep.subr.bf16.mxu0 %v2391_v13  ;;  %2180 = vmatpush3.bf16.msra.mxu1 %v2396_v19  ;;  %v2470_v13 = vld [vmem:[%s3137_s0 + $0x1d0] ss:$36 sps:$4 sm:$0xff]  }
  0x3b   :  { %1099 = vmatmul.mubr.bf16.gmra.mrb[12].mxu0 %v2359_v58  ;;  %2181 = vmatprep.subr.bf16.mxu1 %v2404_v25  ;;  %v2441_v58 = vld [vmem:[%s3137_s0 + $0x130] ss:$36 sps:$4 sm:$0xff]  }
  0x3c   :  { %1196 = vmatmul.mubr.bf16.gmra.mrb[12].mxu1 %v2360_v59  ;;  %1106 = vmatprep.mubr.bf16.mxu0 %v2365_v60  ;;  %v2442_v59 = vld [vmem:[%s3137_s0 + $0x138] ss:$36 sps:$4 sm:$0xff]  }
  0x3d   :  { %1203 = vmatprep.mubr.bf16.mxu1 %v2367_v61  ;;  %2118 = vmatpush3.bf16.msra.mxu0 %v2393_v16  ;;  %v2444_v60 = vld [vmem:[%s3137_s0 + $0x17c] ss:$36 sps:$4 sm:$0xff]   ;;  %v2446_v61 = vld [vmem:[%s3137_s0 + $0x184] ss:$36 sps:$4 sm:$0xff]  }
  0x3e   :  { %2119 = vmatprep.subr.bf16.mxu0 %v2403_v24  ;;  %2182 = vmatpush3.bf16.msra.mxu1 %v2406_v27 }
  0x3f   :  { %2183 = vmatprep.subr.bf16.mxu1 %v2407_v28 }
  0x41   :  { %2120 = vmatpush3.bf16.msra.mxu0 %v2405_v26 }
  0x42   :  { %2249 = vmatprep.subr.bf16.mxu0 %v2415_v32  ;;  %2184 = vmatpush3.bf16.msra.mxu1 %v2408_v31 }
  0x43   :  { %1107 = vmatmul.mubr.bf16.gmra.mrb[16].mxu0 %v2369_v2  ;;  %2281 = vmatprep.subr.bf16.mxu1 %v2415_v32  ;;  %v2455_v2 = vld [vmem:[%s3137_s0 + $0x1c0] ss:$36 sps:$4 sm:$0xff]  }
  0x44   :  { %1204 = vmatmul.mubr.bf16.gmra.mrb[16].mxu1 %v2370_v3  ;;  %1114 = vmatprep.mubr.bf16.mxu0 %v2375_v4  ;;  %v2456_v3 = vld [vmem:[%s3137_s0 + $0x1c8] ss:$36 sps:$4 sm:$0xff]  }
  0x45   :  { %1211 = vmatprep.mubr.bf16.mxu1 %v2377_v5  ;;  %v2458_v4 = vld [vmem:[%s3137_s0 + $0x20c] ss:$36 sps:$4 sm:$0xff]   ;;  %v2460_v5 = vld [vmem:[%s3137_s0 + $0x214] ss:$36 sps:$4 sm:$0xff]  }
  0x4b   :  { %1115 = vmatmul.mubr.bf16.gmra.mrb[20].mxu0 %v2379_v10  ;;  %v2467_v10 = vld [vmem:[%s3137_s0 + $0x68] ss:$36 sps:$4 sm:$0xff]  }
  0x4c   :  { %1212 = vmatmul.mubr.bf16.gmra.mrb[20].mxu1 %v2380_v11  ;;  %1122 = vmatprep.mubr.bf16.mxu0 %v2385_v12  ;;  %v2468_v11 = vld [vmem:[%s3137_s0 + $0x188] ss:$36 sps:$4 sm:$0xff]   ;;  %v2469_v12 = vld [vmem:[%s3137_s0 + $0xb0] ss:$36 sps:$4 sm:$0xff]  }
  0x4d   :  { %1219 = vmatprep.mubr.bf16.mxu1 %v2387_v14  ;;  %v2471_v14 = vld [vmem:[%s3137_s0 + $0xf8] ss:$36 sps:$4 sm:$0xff]  }
  0x53   :  { %1123 = vmatmul.mubr.bf16.gmra.mrb[24].mxu0 %v2389_v20 }
  0x54   :  { %1220 = vmatmul.mubr.bf16.gmra.mrb[24].mxu1 %v2390_v21  ;;  %1130 = vmatprep.mubr.bf16.mxu0 %v2397_v22 }
  0x55   :  { %1227 = vmatprep.mubr.bf16.mxu1 %v2399_v23 }
  0x5b   :  { %1131 = vmatmul.mubr.bf16.gmra.mrb[28].mxu0 %v2401_v29 }
  0x5c   :  { %1228 = vmatmul.mubr.bf16.gmra.mrb[28].mxu1 %v2402_v30  ;;  %1268 = vmatprep.mubr.bf16.mxu0 %v2411_v33 }
  0x5d   :  { %1365 = vmatprep.mubr.bf16.mxu1 %v2414_v34 }
  0x63   :  { %1269 = vmatmul.mubr.bf16.vlgmr.msra.gmra.mrb[32].mxu0 %v2409_v35 }
  0x64   :  { %1366 = vmatmul.mubr.bf16.vlgmr.msra.gmra.mrb[32].mxu1 %v2412_v36  ;;  %2250 = vmatpush3.bf16.msra.mxu0 %v2415_v32 }
  0x65   :  { %1276 = vmatprep.mubr.bf16.mxu0 %v2416_v37  ;;  %1373 = vmatprep.mubr.bf16.mxu1 %v2418_v38 }
  0x66   :  { %2251 = vmatprep.subr.bf16.mxu0 %v2422_v39  ;;  %2289 = vmatpush3.bf16.msra.mxu1 %v2415_v32 }
  0x67   :  { %2282 = vmatprep.subr.bf16.mxu1 %v2422_v39 }
  0x68   :  { %2252 = vmatpush3.bf16.msra.mxu0 %v2422_v39 }
  0x69   :  { %2253 = vmatprep.subr.bf16.mxu0 %v2429_v40 }
  0x6a   :  { %2290 = vmatpush3.bf16.msra.mxu1 %v2422_v39 }
  0x6b   :  { %1277 = vmatmul.mubr.bf16.gmra.mrb[36].mxu0 %v2420_v41  ;;  %2283 = vmatprep.subr.bf16.mxu1 %v2429_v40 }
  0x6c   :  { %1374 = vmatmul.mubr.bf16.gmra.mrb[36].mxu1 %v2421_v42  ;;  %1284 = vmatprep.mubr.bf16.mxu0 %v2423_v43 }
  0x6d   :  { %1381 = vmatprep.mubr.bf16.mxu1 %v2425_v44  ;;  %2254 = vmatpush3.bf16.msra.mxu0 %v2429_v40 }
  0x6e   :  { %2255 = vmatprep.subr.bf16.mxu0 %v2436_v45  ;;  %2291 = vmatpush3.bf16.msra.mxu1 %v2429_v40 }
  0x6f   :  { %2284 = vmatprep.subr.bf16.mxu1 %v2436_v45 }
  0x71   :  { %2256 = vmatpush3.bf16.msra.mxu0 %v2436_v45 }
  0x72   :  { %2257 = vmatprep.subr.bf16.mxu0 %v2443_v46  ;;  %2292 = vmatpush3.bf16.msra.mxu1 %v2436_v45 }
  0x73   :  { %1285 = vmatmul.mubr.bf16.gmra.mrb[40].mxu0 %v2427_v47  ;;  %2285 = vmatprep.subr.bf16.mxu1 %v2443_v46 }
  0x74   :  { %1382 = vmatmul.mubr.bf16.gmra.mrb[40].mxu1 %v2428_v48  ;;  %1292 = vmatprep.mubr.bf16.mxu0 %v2430_v49 }
  0x75   :  { %1389 = vmatprep.mubr.bf16.mxu1 %v2432_v50  ;;  %2258 = vmatpush3.bf16.msra.mxu0 %v2443_v46 }
  0x76   :  { %2259 = vmatprep.subr.bf16.mxu0 %v2450_v51  ;;  %2293 = vmatpush3.bf16.msra.mxu1 %v2443_v46 }
  0x77   :  { %2286 = vmatprep.subr.bf16.mxu1 %v2450_v51 }
  0x79   :  { %2260 = vmatpush3.bf16.msra.mxu0 %v2450_v51 }
  0x7a   :  { %2261 = vmatprep.subr.bf16.mxu0 %v2457_v53  ;;  %2294 = vmatpush3.bf16.msra.mxu1 %v2450_v51 }
  0x7b   :  { %1293 = vmatmul.mubr.bf16.gmra.mrb[44].mxu0 %v2434_v52  ;;  %2287 = vmatprep.subr.bf16.mxu1 %v2457_v53 }
  0x7c   :  { %1390 = vmatmul.mubr.bf16.gmra.mrb[44].mxu1 %v2435_v54  ;;  %1300 = vmatprep.mubr.bf16.mxu0 %v2437_v55 }
  0x7d   :  { %1397 = vmatprep.mubr.bf16.mxu1 %v2439_v56  ;;  %2262 = vmatpush3.bf16.msra.mxu0 %v2457_v53 }
  0x7e   :  { %2263 = vmatprep.subr.bf16.mxu0 %v2464_v57  ;;  %2295 = vmatpush3.bf16.msra.mxu1 %v2457_v53 }
  0x7f   :  { %2288 = vmatprep.subr.bf16.mxu1 %v2464_v57 }
  0x81   :  { %2264 = vmatpush3.bf16.msra.mxu0 %v2464_v57 }
  0x82   :  { %2296 = vmatpush3.bf16.msra.mxu1 %v2464_v57 }
  0x83   :  { %1301 = vmatmul.mubr.bf16.gmra.mrb[48].mxu0 %v2441_v58 }
  0x84   :  { %1398 = vmatmul.mubr.bf16.gmra.mrb[48].mxu1 %v2442_v59  ;;  %1308 = vmatprep.mubr.bf16.mxu0 %v2444_v60 }
  0x85   :  { %1405 = vmatprep.mubr.bf16.mxu1 %v2446_v61 }
  0x8b   :  { %1309 = vmatmul.mubr.bf16.gmra.mrb[52].mxu0 %v2448_v62 }
  0x8c   :  { %1406 = vmatmul.mubr.bf16.gmra.mrb[52].mxu1 %v2449_v63  ;;  %1316 = vmatprep.mubr.bf16.mxu0 %v2451_v0 }
  0x8d   :  { %1413 = vmatprep.mubr.bf16.mxu1 %v2453_v1 }
  0x93   :  { %1317 = vmatmul.mubr.bf16.gmra.mrb[56].mxu0 %v2455_v2 }
  0x94   :  { %1414 = vmatmul.mubr.bf16.gmra.mrb[56].mxu1 %v2456_v3  ;;  %1324 = vmatprep.mubr.bf16.mxu0 %v2458_v4 }
  0x95   :  { %1421 = vmatprep.mubr.bf16.mxu1 %v2460_v5 }
  0x9b   :  { %1325 = vmatmul.mubr.bf16.gmra.mrb[60].mxu0 %v2462_v6 }
  0x9c   :  { %1422 = vmatmul.mubr.bf16.gmra.mrb[60].mxu1 %v2463_v7  ;;  %2265 = vmatprep.mubr.bf16.mxu0 %v2465_v8 }
  0x9d   :  { %2273 = vmatprep.mubr.bf16.mxu1 %v2466_v9 }
  0xa3   :  { %2266 = vmatmul.mubr.bf16.vlgmr.msra.gmra.mrb[64].mxu0 %v2467_v10 }
  0xa4   :  { %2274 = vmatmul.mubr.bf16.vlgmr.msra.gmra.mrb[64].mxu1 %v2468_v11  ;;  %2269 = vmatprep.mubr.bf16.mxu0 %v2469_v12 }
  0xa5   :  { %2277 = vmatprep.mubr.bf16.mxu1 %v2470_v13 }
  0xab   :  { %2270 = vmatmul.mubr.bf16.gmra.mrb[68].mxu0 %v2471_v14 }
  0xac   :  { %2278 = vmatmul.mubr.bf16.gmra.mrb[68].mxu1 %v2472_v15 }
  0xf6   :  { %v1993_v16 = vpop.f32.mrb[0].mxu0 }
  0xf7   :  { %v2057_v17 = vpop.f32.mrb[0].mxu1  ;;  %v1994_v18 = vpop.f32.mrb[1].mxu0 }
  0xf8   :  { %v1995_v19 = vadd.f32 %v1994_v18, %v1993_v16  ;;  %v2058_v20 = vpop.f32.mrb[1].mxu1  ;;  %v1996_v21 = vpop.f32.mrb[2].mxu0 }
  0xf9   :  { %v2059_v22 = vadd.f32 %v2058_v20, %v2057_v17  ;;  %v2060_v23 = vpop.f32.mrb[2].mxu1  ;;  %v1997_v24 = vpop.f32.mrb[3].mxu0 }
  0xfa   :  { %v1998_v25 = vadd.f32 %v1997_v24, %v1996_v21  ;;  %v2061_v26 = vpop.f32.mrb[3].mxu1 }
  0xfb   :  { %v2932_v27 = vadd.f32 %v2059_v22, %v1995_v19  ;;  %v2062_v28 = vadd.f32 %v2061_v26, %v2060_v23 }
  0xfd   :  { %v2934_v29 = vadd.f32 %v2062_v28, %v1998_v25 }
  0xfe   :  { %v1999_v30 = vpop.f32.mrb[4].mxu0 }
  0xff   :  { %v2063_v31 = vpop.f32.mrb[4].mxu1  ;;  %v2000_v32 = vpop.f32.mrb[5].mxu0 }
 0x100   :  { %v2001_v33 = vadd.f32 %v2000_v32, %v1999_v30  ;;  %v2064_v34 = vpop.f32.mrb[5].mxu1  ;;  %v2002_v35 = vpop.f32.mrb[6].mxu0 }
 0x101   :  { %v2065_v36 = vadd.f32 %v2064_v34, %v2063_v31  ;;  %v2066_v37 = vpop.f32.mrb[6].mxu1  ;;  %v2003_v38 = vpop.f32.mrb[7].mxu0 }
 0x102   :  { %v2004_v39 = vadd.f32 %v2003_v38, %v2002_v35  ;;  %v2067_v40 = vpop.f32.mrb[7].mxu1 }
 0x103   :  { %v2936_v41 = vadd.f32 %v2065_v36, %v2001_v33  ;;  %v2068_v42 = vadd.f32 %v2067_v40, %v2066_v37 }
 0x105   :  { %v2938_v43 = vadd.f32 %v2068_v42, %v2004_v39 }
 0x106   :  { %v2005_v44 = vpop.f32.mrb[8].mxu0 }
 0x107   :  { %v2069_v45 = vpop.f32.mrb[8].mxu1  ;;  %v2006_v46 = vpop.f32.mrb[9].mxu0 }
 0x108   :  { %v2007_v47 = vadd.f32 %v2006_v46, %v2005_v44  ;;  %v2070_v48 = vpop.f32.mrb[9].mxu1  ;;  %v2008_v49 = vpop.f32.mrb[10].mxu0 }
 0x109   :  { %v2071_v50 = vadd.f32 %v2070_v48, %v2069_v45  ;;  %v2072_v51 = vpop.f32.mrb[10].mxu1  ;;  %v2009_v52 = vpop.f32.mrb[11].mxu0 }
 0x10a   :  { %v2010_v53 = vadd.f32 %v2009_v52, %v2008_v49  ;;  %v2073_v54 = vpop.f32.mrb[11].mxu1 }
 0x10b   :  { %v2940_v55 = vadd.f32 %v2071_v50, %v2007_v47  ;;  %v2074_v56 = vadd.f32 %v2073_v54, %v2072_v51 }
 0x10d   :  { %v2942_v57 = vadd.f32 %v2074_v56, %v2010_v53 }
 0x10e   :  { %v2011_v58 = vpop.f32.mrb[12].mxu0 }
 0x10f   :  { %v2075_v59 = vpop.f32.mrb[12].mxu1  ;;  %v2012_v60 = vpop.f32.mrb[13].mxu0 }
 0x110   :  { %v2013_v61 = vadd.f32 %v2012_v60, %v2011_v58  ;;  %v2076_v62 = vpop.f32.mrb[13].mxu1  ;;  %v2014_v63 = vpop.f32.mrb[14].mxu0 }
 0x111   :  { %v2077_v0 = vadd.f32 %v2076_v62, %v2075_v59  ;;  %v2078_v1 = vpop.f32.mrb[14].mxu1  ;;  %v2015_v2 = vpop.f32.mrb[15].mxu0 }
 0x112   :  { %v2016_v3 = vadd.f32 %v2015_v2, %v2014_v63  ;;  %v2079_v4 = vpop.f32.mrb[15].mxu1 }
 0x113   :  { %v2944_v5 = vadd.f32 %v2077_v0, %v2013_v61  ;;  %v2080_v6 = vadd.f32 %v2079_v4, %v2078_v1 }
 0x115   :  { %v2946_v7 = vadd.f32 %v2080_v6, %v2016_v3 }
 0x116   :  { %v2017_v8 = vpop.f32.mrb[16].mxu0 }
 0x117   :  { %v2081_v9 = vpop.f32.mrb[16].mxu1  ;;  %v2018_v10 = vpop.f32.mrb[17].mxu0 }
 0x118   :  { %v2019_v11 = vadd.f32 %v2018_v10, %v2017_v8  ;;  %v2082_v12 = vpop.f32.mrb[17].mxu1  ;;  %v2020_v13 = vpop.f32.mrb[18].mxu0 }
 0x119   :  { %v2083_v14 = vadd.f32 %v2082_v12, %v2081_v9  ;;  %v2084_v15 = vpop.f32.mrb[18].mxu1  ;;  %v2021_v16 = vpop.f32.mrb[19].mxu0 }
 0x11a   :  { %v2022_v17 = vadd.f32 %v2021_v16, %v2020_v13  ;;  %v2085_v18 = vpop.f32.mrb[19].mxu1 }
 0x11b   :  { %v2948_v19 = vadd.f32 %v2083_v14, %v2019_v11  ;;  %v2086_v20 = vadd.f32 %v2085_v18, %v2084_v15 }
 0x11d   :  { %v2950_v21 = vadd.f32 %v2086_v20, %v2022_v17 }
 0x11e   :  { %v2023_v22 = vpop.f32.mrb[20].mxu0 }
 0x11f   :  { %v2087_v23 = vpop.f32.mrb[20].mxu1  ;;  %v2024_v24 = vpop.f32.mrb[21].mxu0 }
 0x120   :  { %v2025_v25 = vadd.f32 %v2024_v24, %v2023_v22  ;;  %v2088_v26 = vpop.f32.mrb[21].mxu1  ;;  %v2026_v28 = vpop.f32.mrb[22].mxu0 }
 0x121   :  { %v2089_v30 = vadd.f32 %v2088_v26, %v2087_v23  ;;  %v2090_v31 = vpop.f32.mrb[22].mxu1  ;;  %v2027_v32 = vpop.f32.mrb[23].mxu0 }
 0x122   :  { %v2028_v33 = vadd.f32 %v2027_v32, %v2026_v28  ;;  %v2091_v34 = vpop.f32.mrb[23].mxu1 }
 0x123   :  { %v2952_v35 = vadd.f32 %v2089_v30, %v2025_v25  ;;  %v2092_v36 = vadd.f32 %v2091_v34, %v2090_v31 }
 0x125   :  { %v2954_v37 = vadd.f32 %v2092_v36, %v2028_v33 }
 0x126   :  { %v2029_v38 = vpop.f32.mrb[24].mxu0 }
 0x127   :  { %v2093_v39 = vpop.f32.mrb[24].mxu1  ;;  %v2030_v40 = vpop.f32.mrb[25].mxu0 }
 0x128   :  { %v2031_v42 = vadd.f32 %v2030_v40, %v2029_v38  ;;  %v2094_v44 = vpop.f32.mrb[25].mxu1  ;;  %v2032_v45 = vpop.f32.mrb[26].mxu0 }
 0x129   :  { %v2095_v46 = vadd.f32 %v2094_v44, %v2093_v39  ;;  %v2096_v47 = vpop.f32.mrb[26].mxu1  ;;  %v2033_v48 = vpop.f32.mrb[27].mxu0 }
 0x12a   :  { %v2034_v49 = vadd.f32 %v2033_v48, %v2032_v45  ;;  %v2097_v50 = vpop.f32.mrb[27].mxu1 }
 0x12b   :  { %v2956_v51 = vadd.f32 %v2095_v46, %v2031_v42  ;;  %v2098_v52 = vadd.f32 %v2097_v50, %v2096_v47 }
 0x12d   :  { %v2958_v53 = vadd.f32 %v2098_v52, %v2034_v49 }
 0x12e   :  { %v2035_v54 = vpop.f32.mrb[28].mxu0 }
 0x12f   :  { %v2099_v56 = vpop.f32.mrb[28].mxu1  ;;  %v2036_v58 = vpop.f32.mrb[29].mxu0 }
 0x130   :  { %v2037_v59 = vadd.f32 %v2036_v58, %v2035_v54  ;;  %v2100_v60 = vpop.f32.mrb[29].mxu1  ;;  %v2038_v61 = vpop.f32.mrb[30].mxu0 }
 0x131   :  { %v2101_v62 = vadd.f32 %v2100_v60, %v2099_v56  ;;  %v2102_v63 = vpop.f32.mrb[30].mxu1  ;;  %v2039_v0 = vpop.f32.mrb[31].mxu0 }
 0x132   :  { %v2040_v1 = vadd.f32 %v2039_v0, %v2038_v61  ;;  %v2103_v2 = vpop.f32.mrb[31].mxu1 }
 0x133   :  { %v2960_v3 = vadd.f32 %v2101_v62, %v2037_v59  ;;  %v2104_v4 = vadd.f32 %v2103_v2, %v2102_v63 }
 0x135   :  { %v2962_v6 = vadd.f32 %v2104_v4, %v2040_v1 }
 0x136   :  { %v2121_v8 = vpop.f32.mrb[32].mxu0 }
 0x137   :  { %v2122_v9 = vpop.f32.mrb[33].mxu0  ;;  %v2185_v10 = vpop.f32.mrb[32].mxu1 }
 0x138   :  { %v2123_v11 = vadd.f32 %v2122_v9, %v2121_v8  ;;  %v2124_v12 = vpop.f32.mrb[34].mxu0  ;;  %v2186_v13 = vpop.f32.mrb[33].mxu1 }
 0x139   :  { %v2125_v14 = vpop.f32.mrb[35].mxu0  ;;  %v2187_v15 = vadd.f32 %v2186_v13, %v2185_v10  ;;  %v2188_v16 = vpop.f32.mrb[34].mxu1 }
 0x13a   :  { %v1271_v17 = vadd.f32 %v2123_v11, %v2932_v27  ;;  %v2126_v18 = vadd.f32 %v2125_v14, %v2124_v12  ;;  %v2189_v20 = vpop.f32.mrb[35].mxu1 }
 0x13b   :  { %v2190_v22 = vadd.f32 %v2189_v20, %v2188_v16 }
 0x13c   :  { %v1274_v23 = vadd.f32 %v2126_v18, %v2934_v29  ;;  %v2966_v24 = vadd.f32 %v2187_v15, %v1271_v17 }
 0x13e   :  { %v2127_v25 = vpop.f32.mrb[36].mxu0  ;;  %v2968_v26 = vadd.f32 %v2190_v22, %v1274_v23 }
 0x13f   :  { %v2128_v28 = vpop.f32.mrb[37].mxu0  ;;  %v2191_v30 = vpop.f32.mrb[36].mxu1 }
 0x140   :  { %v2129_v31 = vadd.f32 %v2128_v28, %v2127_v25  ;;  %v2130_v32 = vpop.f32.mrb[38].mxu0  ;;  %v2192_v33 = vpop.f32.mrb[37].mxu1 }
 0x141   :  { %v2131_v34 = vpop.f32.mrb[39].mxu0  ;;  %v2193_v36 = vadd.f32 %v2192_v33, %v2191_v30  ;;  %v2194_v38 = vpop.f32.mrb[38].mxu1 }
 0x142   :  { %v1279_v27 = vadd.f32 %v2129_v31, %v2936_v41  ;;  %v2132_v39 = vadd.f32 %v2131_v34, %v2130_v32  ;;  %v2195_v40 = vpop.f32.mrb[39].mxu1 }
 0x143   :  { %v2196_v42 = vadd.f32 %v2195_v40, %v2194_v38 }
 0x144   :  { %v1282_v29 = vadd.f32 %v2132_v39, %v2938_v43  ;;  %v2972_v44 = vadd.f32 %v2193_v36, %v1279_v27 }
 0x146   :  { %v2133_v45 = vpop.f32.mrb[40].mxu0  ;;  %v2974_v46 = vadd.f32 %v2196_v42, %v1282_v29 }
 0x147   :  { %v2134_v47 = vpop.f32.mrb[41].mxu0  ;;  %v2197_v48 = vpop.f32.mrb[40].mxu1 }
 0x148   :  { %v2135_v49 = vadd.f32 %v2134_v47, %v2133_v45  ;;  %v2136_v50 = vpop.f32.mrb[42].mxu0  ;;  %v2198_v52 = vpop.f32.mrb[41].mxu1 }
 0x149   :  { %v2137_v54 = vpop.f32.mrb[43].mxu0  ;;  %v2199_v56 = vadd.f32 %v2198_v52, %v2197_v48  ;;  %v2200_v58 = vpop.f32.mrb[42].mxu1 }
 0x14a   :  { %v1287_v41 = vadd.f32 %v2135_v49, %v2940_v55  ;;  %v2138_v59 = vadd.f32 %v2137_v54, %v2136_v50  ;;  %v2201_v60 = vpop.f32.mrb[43].mxu1 }
 0x14b   :  { %v2202_v61 = vadd.f32 %v2201_v60, %v2200_v58 }
 0x14c   :  { %v1290_v43 = vadd.f32 %v2138_v59, %v2942_v57  ;;  %v2978_v62 = vadd.f32 %v2199_v56, %v1287_v41 }
 0x14e   :  { %v2139_v63 = vpop.f32.mrb[44].mxu0  ;;  %v2980_v0 = vadd.f32 %v2202_v61, %v1290_v43 }
 0x14f   :  { %v2140_v1 = vpop.f32.mrb[45].mxu0  ;;  %v2203_v2 = vpop.f32.mrb[44].mxu1 }
 0x150   :  { %v2141_v4 = vadd.f32 %v2140_v1, %v2139_v63  ;;  %v2142_v8 = vpop.f32.mrb[46].mxu0  ;;  %v2204_v9 = vpop.f32.mrb[45].mxu1 }
 0x151   :  { %v2143_v10 = vpop.f32.mrb[47].mxu0  ;;  %v2205_v11 = vadd.f32 %v2204_v9, %v2203_v2  ;;  %v2206_v12 = vpop.f32.mrb[46].mxu1 }
 0x152   :  { %v1295_v55 = vadd.f32 %v2141_v4, %v2944_v5  ;;  %v2144_v13 = vadd.f32 %v2143_v10, %v2142_v8  ;;  %v2207_v14 = vpop.f32.mrb[47].mxu1 }
 0x153   :  { %v2208_v15 = vadd.f32 %v2207_v14, %v2206_v12 }
 0x154   :  { %v1298_v57 = vadd.f32 %v2144_v13, %v2946_v7  ;;  %v2984_v16 = vadd.f32 %v2205_v11, %v1295_v55 }
 0x156   :  { %v2145_v17 = vpop.f32.mrb[48].mxu0  ;;  %v2986_v18 = vadd.f32 %v2208_v15, %v1298_v57 }
 0x157   :  { %v2146_v20 = vpop.f32.mrb[49].mxu0  ;;  %v2209_v22 = vpop.f32.mrb[48].mxu1 }
 0x158   :  { %v2147_v23 = vadd.f32 %v2146_v20, %v2145_v17  ;;  %v2148_v25 = vpop.f32.mrb[50].mxu0  ;;  %v2210_v28 = vpop.f32.mrb[49].mxu1 }
 0x159   :  { %v2149_v30 = vpop.f32.mrb[51].mxu0  ;;  %v2211_v31 = vadd.f32 %v2210_v28, %v2209_v22  ;;  %v2212_v32 = vpop.f32.mrb[50].mxu1 }
 0x15a   :  { %v1303_v5 = vadd.f32 %v2147_v23, %v2948_v19  ;;  %v2150_v33 = vadd.f32 %v2149_v30, %v2148_v25  ;;  %v2213_v34 = vpop.f32.mrb[51].mxu1 }
 0x15b   :  { %v2214_v36 = vadd.f32 %v2213_v34, %v2212_v32 }
 0x15c   :  { %v1306_v7 = vadd.f32 %v2150_v33, %v2950_v21  ;;  %v1400_v38 = vadd.f32 %v2211_v31, %v1303_v5 }
 0x15e   :  { %v2151_v27 = vpop.f32.mrb[52].mxu0  ;;  %v2990_v39 = vadd.f32 %v2214_v36, %v1306_v7 }
 0x15f   :  { %v2152_v40 = vpop.f32.mrb[53].mxu0  ;;  %v2215_v42 = vpop.f32.mrb[52].mxu1 }
 0x160   :  { %v2153_v29 = vadd.f32 %v2152_v40, %v2151_v27  ;;  %v2154_v45 = vpop.f32.mrb[54].mxu0  ;;  %v2216_v47 = vpop.f32.mrb[53].mxu1 }
 0x161   :  { %v2155_v48 = vpop.f32.mrb[55].mxu0  ;;  %v2217_v49 = vadd.f32 %v2216_v47, %v2215_v42  ;;  %v2218_v50 = vpop.f32.mrb[54].mxu1 }
 0x162   :  { %v1311_v52 = vadd.f32 %v2153_v29, %v2952_v35  ;;  %v2156_v19 = vadd.f32 %v2155_v48, %v2154_v45  ;;  %v2219_v54 = vpop.f32.mrb[55].mxu1 }
 0x163   :  { %v2220_v56 = vadd.f32 %v2219_v54, %v2218_v50 }
 0x164   :  { %v1314_v58 = vadd.f32 %v2156_v19, %v2954_v37  ;;  %v1408_v21 = vadd.f32 %v2217_v49, %v1311_v52 }
 0x166   :  { %v2157_v41 = vpop.f32.mrb[56].mxu0  ;;  %v1411_v59 = vadd.f32 %v2220_v56, %v1314_v58 }
 0x167   :  { %v2158_v60 = vpop.f32.mrb[57].mxu0  ;;  %v2221_v61 = vpop.f32.mrb[56].mxu1 }
 0x168   :  { %v2159_v43 = vadd.f32 %v2158_v60, %v2157_v41  ;;  %v2160_v63 = vpop.f32.mrb[58].mxu0  ;;  %v2222_v1 = vpop.f32.mrb[57].mxu1 }
 0x169   :  { %v2161_v2 = vpop.f32.mrb[59].mxu0  ;;  %v2223_v4 = vadd.f32 %v2222_v1, %v2221_v61  ;;  %v2224_v8 = vpop.f32.mrb[58].mxu1 }
 0x16a   :  { %v1319_v9 = vadd.f32 %v2159_v43, %v2956_v51  ;;  %v2162_v10 = vadd.f32 %v2161_v2, %v2160_v63  ;;  %v2225_v35 = vpop.f32.mrb[59].mxu1 }
 0x16b   :  { %v2226_v11 = vadd.f32 %v2225_v35, %v2224_v8 }
 0x16c   :  { %v1322_v12 = vadd.f32 %v2162_v10, %v2958_v53  ;;  %v1416_v55 = vadd.f32 %v2223_v4, %v1319_v9 }
 0x16e   :  { %v2163_v37 = vpop.f32.mrb[60].mxu0  ;;  %v1419_v13 = vadd.f32 %v2226_v11, %v1322_v12 }
 0x16f   :  { %v2164_v14 = vpop.f32.mrb[61].mxu0  ;;  %v2227_v15 = vpop.f32.mrb[60].mxu1 }
 0x170   :  { %v2165_v57 = vadd.f32 %v2164_v14, %v2163_v37  ;;  %v2166_v17 = vpop.f32.mrb[62].mxu0  ;;  %v2228_v20 = vpop.f32.mrb[61].mxu1 }
 0x171   :  { %v2167_v22 = vpop.f32.mrb[63].mxu0  ;;  %v2229_v23 = vadd.f32 %v2228_v20, %v2227_v15  ;;  %v2230_v25 = vpop.f32.mrb[62].mxu1 }
 0x172   :  { %v1327_v28 = vadd.f32 %v2165_v57, %v2960_v3  ;;  %v2168_v30 = vadd.f32 %v2167_v22, %v2166_v17  ;;  %v2231_v51 = vpop.f32.mrb[63].mxu1 }
 0x173   :  { %v2232_v31 = vadd.f32 %v2231_v51, %v2230_v25 }
 0x174   :  { %v1330_v32 = vadd.f32 %v2168_v30, %v2962_v6  ;;  %v1424_v5 = vadd.f32 %v2229_v23, %v1327_v28 }
 0x176   :  { %v2267_v53 = vpop.f32.mrb[64].mxu0  ;;  %v1427_v33 = vadd.f32 %v2232_v31, %v1330_v32 }
 0x177   :  { %v2999_v34 = vadd.f32 %v2267_v53, %v2972_v44  ;;  %v2275_v36 = vpop.f32.mrb[64].mxu1  ;;  %v1464_v7 = vpop.f32.mrb[65].mxu0 }
 0x178   :  { %v3001_v27 = vadd.f32 %v2275_v36, %v1408_v21  ;;  %v3004_v40 = vadd.f32 %v1464_v7, %v2966_v24  ;;  %v1496_v42 = vpop.f32.mrb[65].mxu1  ;;  %v2268_v3 = vpop.f32.mrb[66].mxu0 }
 0x179   :  { %v3006_v29 = vadd.f32 %v1496_v42, %v1400_v38  ;;  %v3009_v45 = vadd.f32 %v2268_v3, %v2974_v46  ;;  %v2276_v6 = vpop.f32.mrb[66].mxu1  ;;  %v1467_v47 = vpop.f32.mrb[67].mxu0 }
 0x17a   :  { %v3011_v48 = vadd.f32 %v2276_v6, %v1411_v59  ;;  %v3014_v44 = vadd.f32 %v1467_v47, %v2968_v26  ;;  %v1499_v49 = vpop.f32.mrb[67].mxu1 }
 0x17b   :  { %v3017_v50 = vadd.f32 %v1499_v49, %v2990_v39 }
 0x17c   :  { %v1527_v24 = vadd.f32 %v3014_v44, %v3004_v40 }
 0x17e   :  { %v1528_v38 = vadd.f32 %v1527_v24, %v2999_v34  ;;  %v2271_v52 = vpop.f32.mrb[68].mxu0 }
 0x17f   :  { %v3023_v46 = vadd.f32 %v2271_v52, %v2984_v16  ;;  %v2279_v19 = vpop.f32.mrb[68].mxu1  ;;  %v1480_v54 = vpop.f32.mrb[69].mxu0 }
 0x180   :  { %v3025_v56 = vadd.f32 %v2279_v19, %v1424_v5  ;;  %v3028_v26 = vadd.f32 %v1480_v54, %v2978_v62  ;;  %v1529_v58 = vadd.f32 %v1528_v38, %v3009_v45  ;;  %v1512_v39 = vpop.f32.mrb[69].mxu1  ;;  %v2272_v21 = vpop.f32.mrb[70].mxu0 }
 0x181   :  { %v3031_v41 = vadd.f32 %v1512_v39, %v1416_v55  ;;  %v3034_v59 = vadd.f32 %v2272_v21, %v2986_v18  ;;  %v2280_v60 = vpop.f32.mrb[70].mxu1  ;;  %v1483_v61 = vpop.f32.mrb[71].mxu0 }
 0x182   :  { %v1530_v16 = vadd.f32 %v1529_v58, %v3028_v26  ;;  %v3037_v43 = vadd.f32 %v2280_v60, %v1427_v33  ;;  %v3040_v63 = vadd.f32 %v1483_v61, %v2980_v0  ;;  %v1515_v62 = vpop.f32.mrb[71].mxu1 }
 0x183   :  { %v3042_v1 = vadd.f32 %v1515_v62, %v1419_v13 }
 0x184   :  { %v1531_v2 = vadd.f32 %v1530_v16, %v3040_v63 }
 0x186   :  { %v1532_v4 = vadd.f32 %v1531_v2, %v3023_v46 }
 0x188   :  { %v1533_v8 = vadd.f32 %v1532_v4, %v3034_v59 }
 0x18a   :  { %v1534_v18 = vadd.f32 %v1533_v8, %v3006_v29 }
 0x18c   :  { %v1535_v9 = vadd.f32 %v1534_v18, %v3017_v50 }
 0x18e   :  { %v1536_v10 = vadd.f32 %v1535_v9, %v3001_v27 }
 0x190   :  { %v1537_v35 = vadd.f32 %v1536_v10, %v3011_v48 }
 0x192   :  { %v1538_v0 = vadd.f32 %v1537_v35, %v3031_v41 }
 0x194   :  { %v1539_v11 = vadd.f32 %v1538_v0, %v3042_v1 }
 0x196   :  { %v1540_v12 = vadd.f32 %v1539_v11, %v3025_v56 }
 0x198   :  { %v1541_v55 = vadd.f32 %v1540_v12, %v3037_v43 }
 0x19a   :  { %v1542_v37 = vrot.slane %v1541_v55, 4 }
 0x19c   :  { %v1543_v13 = vadd.f32 %v1542_v37, %v1541_v55 }
 0x19e   :  { %v1544_v14 = vrot.slane %v1543_v13, 2 }
 0x1a0   :  { %v1545_v15 = vadd.f32 %v1544_v14, %v1543_v13 }
 0x1a2   :  { %v1546_v57 = vrot.slane %v1545_v15, 1 }
 0x1a4   :  { %v1547_v17 = vadd.f32 %v1546_v57, %v1545_v15 }
 0x1a6   :  { %v3055_v20 = vmul.f32 0.0078125, %v1547_v17 }
 0x1a8   :  { %v1549_v22 = vsub.f32 %v3004_v40, %v3055_v20  ;;  %v1550_v23 = vsub.f32 %v3014_v44, %v3055_v20  ;;  %v1551_v25 = vsub.f32 %v2999_v34, %v3055_v20  ;;  %v1552_v51 = vsub.f32 %v3009_v45, %v3055_v20 }
 0x1a9   :  { %v1553_v31 = vsub.f32 %v3028_v26, %v3055_v20  ;;  %v1554_v53 = vsub.f32 %v3040_v63, %v3055_v20  ;;  %v1555_v7 = vsub.f32 %v3023_v46, %v3055_v20  ;;  %v1556_v6 = vsub.f32 %v3034_v59, %v3055_v20 }
 0x1aa   :  { %v1565_v28 = vmul.f32 %v1549_v22, %v1549_v22  ;;  %v1566_v30 = vmul.f32 %v1550_v23, %v1550_v23  ;;  %v1567_v32 = vmul.f32 %v1551_v25, %v1551_v25  ;;  %v1568_v33 = vmul.f32 %v1552_v51, %v1552_v51 }
 0x1ab   :  { %v1569_v42 = vmul.f32 %v1553_v31, %v1553_v31  ;;  %v1570_v47 = vmul.f32 %v1554_v53, %v1554_v53  ;;  %v1557_v24 = vsub.f32 %v3006_v29, %v3055_v20  ;;  %v1571_v38 = vmul.f32 %v1555_v7, %v1555_v7 }
 0x1ac   :  { %v1581_v5 = vadd.f32 %v1566_v30, %v1565_v28  ;;  %v1558_v19 = vsub.f32 %v3017_v50, %v3055_v20  ;;  %v1572_v54 = vmul.f32 %v1556_v6, %v1556_v6  ;;  %v1559_v39 = vsub.f32 %v3001_v27, %v3055_v20 }
 0x1ad   :  { %v1573_v21 = vmul.f32 %v1557_v24, %v1557_v24  ;;  %v1560_v61 = vsub.f32 %v3011_v48, %v3055_v20  ;;  %v1561_v2 = vsub.f32 %v3031_v41, %v3055_v20  ;;  %v1562_v18 = vsub.f32 %v3042_v1, %v3055_v20 }
 0x1ae   :  { %v1582_v36 = vadd.f32 %v1581_v5, %v1567_v32  ;;  %v1574_v16 = vmul.f32 %v1558_v19, %v1558_v19  ;;  %v1575_v4 = vmul.f32 %v1559_v39, %v1559_v39  ;;  %v1563_v35 = vsub.f32 %v3025_v56, %v3055_v20 }
 0x1af   :  { %v1576_v9 = vmul.f32 %v1560_v61, %v1560_v61  ;;  %v1577_v0 = vmul.f32 %v1561_v2, %v1561_v2  ;;  %v1564_v12 = vsub.f32 %v3037_v43, %v3055_v20  ;;  %v1578_v55 = vmul.f32 %v1562_v18, %v1562_v18 }
 0x1b0   :  { %v1583_v3 = vadd.f32 %v1582_v36, %v1568_v33  ;;  %v1579_v13 = vmul.f32 %v1563_v35, %v1563_v35  ;;  %v1611_v5 = vlaneseq  ;;  %v1603_v33 = vld [vmem:[%s3138_s2] sm:$0x1] }
 0x1b1   :  { %v1580_v15 = vmul.f32 %v1564_v12, %v1564_v12 }
 0x1b2   :  { %v1584_v49 = vadd.f32 %v1583_v3, %v1569_v42  ;;  %v1612_v53 = vshrl.u32 %v1611_v5, 7  ;;  %v1607_v3 = vld [vmem:[%s3139_s3] sm:$0x1] }
 0x1b4   :  { %v1585_v52 = vadd.f32 %v1584_v49, %v1570_v47  ;;  %v1613_v36 = vsub.s32 0, %v1612_v53 }
 0x1b6   :  { %v1586_v58 = vadd.f32 %v1585_v52, %v1571_v38 }
 0x1b8   :  { %v1587_v60 = vadd.f32 %v1586_v58, %v1572_v54 }
 0x1ba   :  { %v1588_v62 = vadd.f32 %v1587_v60, %v1573_v21 }
 0x1bc   :  { %v1589_v8 = vadd.f32 %v1588_v62, %v1574_v16 }
 0x1be   :  { %v1590_v10 = vadd.f32 %v1589_v8, %v1575_v4 }
 0x1c0   :  { %v1591_v11 = vadd.f32 %v1590_v10, %v1576_v9 }
 0x1c2   :  { %v1592_v37 = vadd.f32 %v1591_v11, %v1577_v0 }
 0x1c4   :  { %v1593_v14 = vadd.f32 %v1592_v37, %v1578_v55 }
 0x1c6   :  { %v1594_v57 = vadd.f32 %v1593_v14, %v1579_v13 }
 0x1c8   :  { %v1595_v17 = vadd.f32 %v1594_v57, %v1580_v15 }
 0x1ca   :  { %v1596_v22 = vrot.slane %v1595_v17, 4 }
 0x1cc   :  { %v1597_v23 = vadd.f32 %v1596_v22, %v1595_v17 }
 0x1ce   :  { %v1598_v25 = vrot.slane %v1597_v23, 2 }
 0x1d0   :  { %v1599_v28 = vadd.f32 %v1598_v25, %v1597_v23 }
 0x1d2   :  { %v1600_v30 = vrot.slane %v1599_v28, 1 }
 0x1d4   :  { %v1601_v51 = vadd.f32 %v1600_v30, %v1599_v28 }
 0x1d6   :  { %v1602_v31 = vmul.f32 0.0078125, %v1601_v51 }
 0x1d8   :  { %v1604_v32 = vadd.f32 1e-05, %v1602_v31 }
 0x1da   :  { %2473 = vrsqrt.f32 %v1604_v32 }
 0x1e4   :  { %v2474_v7 = vpop.eup %2473 }
 0x1e5   :  { %v1606_v42 = vmul.f32 %v2474_v7, %v1603_v33 }
 0x1e7   :  { %v1608_v6 = vmul.f32 %v1606_v42, %v3055_v20  ;;  %v1614_v47 = vrot.slane %v1606_v42, %v1613_v36 }
 0x1e9   :  { %v1609_v49 = vsub.f32 %v1607_v3, %v1608_v6  ;;  %v1616_v24 = vmul.f32 %v1614_v47, %v3004_v40  ;;  %v1617_v38 = vmul.f32 %v1614_v47, %v3014_v44  ;;  %v1618_v52 = vmul.f32 %v1614_v47, %v2999_v34 }
 0x1ea   :  { %v1619_v19 = vmul.f32 %v1614_v47, %v3009_v45  ;;  %v1620_v54 = vmul.f32 %v1614_v47, %v3028_v26  ;;  %v1621_v58 = vmul.f32 %v1614_v47, %v3040_v63  ;;  %v1622_v39 = vmul.f32 %v1614_v47, %v3023_v46 }
 0x1eb   :  { %v1623_v21 = vmul.f32 %v1614_v47, %v3034_v59  ;;  %v1624_v20 = vmul.f32 %v1614_v47, %v3006_v29  ;;  %v1625_v60 = vmul.f32 %v1614_v47, %v3017_v50  ;;  %v1626_v40 = vmul.f32 %v1614_v47, %v3001_v27 }
 0x1ec   :  { %v1627_v44 = vmul.f32 %v1614_v47, %v3011_v48  ;;  %v1636_v61 = vrot.slane %v1609_v49, %v1613_v36  ;;  %v1628_v34 = vmul.f32 %v1614_v47, %v3031_v41  ;;  %v1629_v45 = vmul.f32 %v1614_v47, %v3042_v1 }
 0x1ed   :  { %v1630_v26 = vmul.f32 %v1614_v47, %v3025_v56  ;;  %v1631_v63 = vmul.f32 %v1614_v47, %v3037_v43 }
 0x1ee   :  { %v1638_v46 = vadd.f32 %v1636_v61, %v1616_v24  ;;  %v1639_v16 = vadd.f32 %v1636_v61, %v1617_v38  ;;  %v1640_v59 = vadd.f32 %v1636_v61, %v1618_v52  ;;  %v1641_v62 = vadd.f32 %v1636_v61, %v1619_v19 }
 0x1ef   :  { %v1642_v29 = vadd.f32 %v1636_v61, %v1620_v54  ;;  %v1643_v2 = vadd.f32 %v1636_v61, %v1621_v58  ;;  %v1644_v50 = vadd.f32 %v1636_v61, %v1622_v39  ;;  %v1645_v4 = vadd.f32 %v1636_v61, %v1623_v21 }
 0x1f0   :  { %v1646_v27 = vadd.f32 %v1636_v61, %v1624_v20  ;;  %v1647_v8 = vadd.f32 %v1636_v61, %v1625_v60  ;;  %v1648_v48 = vadd.f32 %v1636_v61, %v1626_v40  ;;  %v1649_v18 = vadd.f32 %v1636_v61, %v1627_v44 }
 0x1f1   :  { %v1650_v9 = vadd.f32 %v1636_v61, %v1628_v34  ;;  %v1651_v41 = vadd.f32 %v1636_v61, %v1629_v45  ;;  %v1652_v10 = vadd.f32 %v1636_v61, %v1630_v26  ;;  %v1653_v1 = vadd.f32 %v1636_v61, %v1631_v63 }
 0x1f2   :  { %v1654_v35 = vmax.f32 %v1638_v46, 0.0  ;;  %v1655_v56 = vmax.f32 %v1639_v16, 0.0  ;;  %v1656_v0 = vmax.f32 %v1640_v59, 0.0  ;;  %v1657_v43 = vmax.f32 %v1641_v62, 0.0 }
 0x1f3   :  { %v1658_v11 = vmax.f32 %v1642_v29, 0.0  ;;  %v1659_v12 = vmax.f32 %v1643_v2, 0.0  ;;  %v1660_v55 = vmax.f32 %v1644_v50, 0.0  ;;  %v1661_v37 = vmax.f32 %v1645_v4, 0.0 }
 0x1f4   :  { %v1662_v13 = vmax.f32 %v1646_v27, 0.0  ;;  %v1663_v14 = vmax.f32 %v1647_v8, 0.0  ;;  %v1664_v15 = vmax.f32 %v1648_v48, 0.0  ;;  %v1665_v57 = vmax.f32 %v1649_v18, 0.0 }
 0x1f5   :  { %v1666_v17 = vmax.f32 %v1650_v9, 0.0  ;;  %v1667_v22 = vmax.f32 %v1651_v41, 0.0  ;;  %v1668_v23 = vmax.f32 %v1652_v10, 0.0  ;;  %v1669_v25 = vmax.f32 %v1653_v1, 0.0 }
 0x1f6   :  { %v1933_v28 = vpack.c.bf16 %v1655_v56, %v1654_v35  ;;  %v1938_v30 = vpack.c.bf16 %v1657_v43, %v1656_v0  ;;  %v1943_v51 = vpack.c.bf16 %v1659_v12, %v1658_v11  ;;  %v1948_v31 = vpack.c.bf16 %v1661_v37, %v1660_v55 }
 0x1f7   :  { %v1953_v32 = vpack.c.bf16 %v1663_v14, %v1662_v13  ;;  %v1958_v5 = vpack.c.bf16 %v1665_v57, %v1664_v15  ;;  %v1963_v53 = vpack.c.bf16 %v1667_v22, %v1666_v17  ;;  %v1968_v33 = vpack.c.bf16 %v1669_v25, %v1668_v23 }
 0x1f8   :  { %1934 = vst [vmem:[%s3140_s4] sm:$0xff] %v1933_v28   ;;  %1970 = vst [vmem:[%s3140_s4 + $0x8] sm:$0xff] %v1938_v30  }
 0x1f9   :  { %1971 = vst [vmem:[%s3140_s4 + $0x10] sm:$0xff] %v1943_v51   ;;  %1972 = vst [vmem:[%s3140_s4 + $0x18] sm:$0xff] %v1948_v31  }
 0x1fa   :  { %1973 = vst [vmem:[%s3140_s4 + $0x20] sm:$0xff] %v1953_v32   ;;  %1974 = vst [vmem:[%s3140_s4 + $0x28] sm:$0xff] %v1958_v5  }
 0x1fb   :  { %1975 = vst [vmem:[%s3140_s4 + $0x30] sm:$0xff] %v1963_v53   ;;  %1976 = vst [vmem:[%s3140_s4 + $0x38] sm:$0xff] %v1968_v33  }

// kernel: resnet_forward.71
= control target key start
LH: loop header
LB: loop body
LE: loop exit
PB: predicated region body
PF: predicated region fallthrough
CT: control target
= control target key end

     0   :  { %v186_v43 = vlaneseq  ;;  %s403_s1 = inlined_call_operand.vmem [shape: bf16[128,128], index: 1, kind: input, shape index: {}]   ;;  %s404_s0 = inlined_call_operand.vmem [shape: bf16[32,128], index: 0, kind: input, shape index: {}]   ;;  %s405_s2 = inlined_call_operand.vmem [shape: f32[1,128], index: 2, kind: input, shape index: {}]   ;;  %s406_s3 = inlined_call_operand.vmem [shape: f32[1,128], index: 3, kind: input, shape index: {}]   ;;  %s407_s4 = inlined_call_operand.vmem [shape: bf16[32,128], index: 4, kind: input, shape index: {}]   ;;  %s408_s5 = inlined_call_operand.vmem [shape: bf16[32,128], index: 5, kind: output, shape index: {}]  }
   0x1   :  { %v313_v0 = vld [vmem:[%s403_s1] sm:$0xff]   ;;  %v314_v1 = vld [vmem:[%s403_s1 + $0x8] sm:$0xff]   ;;  %v315_v2 = vld [vmem:[%s403_s1 + $0x10] sm:$0xff]  }
   0x2   :  { %293 = vmatprep.subr.bf16.mxu0 %v313_v0  ;;  %v316_v3 = vld [vmem:[%s403_s1 + $0x18] sm:$0xff]   ;;  %v321_v4 = vld [vmem:[%s404_s0] sm:$0xff]   ;;  %v318_v6 = vld [vmem:[%s403_s1 + $0x28] sm:$0xff]   ;;  %v187_v44 = vshrl.u32 %v186_v43, 7 }
   0x3   :  { %294 = vmatpush3.bf16.msra.mxu0 %v313_v0  ;;  %309 = vmatprep.mubr.bf16.mxu0 %v321_v4  ;;  %v317_v5 = vld [vmem:[%s403_s1 + $0x20] sm:$0xff]   ;;  %v319_v7 = vld [vmem:[%s403_s1 + $0x30] sm:$0xff]   ;;  %v320_v8 = vld [vmem:[%s403_s1 + $0x38] sm:$0xff]  }
   0x4   :  { %295 = vmatprep.subr.bf16.mxu0 %v314_v1  ;;  %v322_v9 = vld [vmem:[%s404_s0 + $0x8] sm:$0xff]   ;;  %v178_v45 = vld [vmem:[%s405_s2] sm:$0x1]  ;;  %v188_v46 = vsub.s32 0, %v187_v44 }
   0x5   :  { %v182_v49 = vld [vmem:[%s406_s3] sm:$0x1]  ;;  %v281_v53 = vld [vmem:[%s407_s4 + $0x8] sm:$0xff]  }
   0x6   :  { %v264_v52 = vld [vmem:[%s407_s4] sm:$0xff]   ;;  %v269_v62 = vunpack.c.l.bf16 %v281_v53  ;;  %v270_v63 = vunpack.c.h.bf16 %v281_v53 }
   0x7   :  { %296 = vmatpush3.bf16.msra.mxu0 %v314_v1  ;;  %v265_v59 = vunpack.c.l.bf16 %v264_v52  ;;  %v266_v61 = vunpack.c.h.bf16 %v264_v52 }
   0x8   :  { %297 = vmatprep.subr.bf16.mxu0 %v315_v2 }
   0xb   :  { %298 = vmatpush3.bf16.msra.mxu0 %v315_v2 }
   0xc   :  { %299 = vmatprep.subr.bf16.mxu0 %v316_v3 }
   0xf   :  { %300 = vmatpush3.bf16.msra.mxu0 %v316_v3 }
  0x10   :  { %301 = vmatprep.subr.bf16.mxu0 %v317_v5 }
  0x13   :  { %302 = vmatpush3.bf16.msra.mxu0 %v317_v5 }
  0x14   :  { %303 = vmatprep.subr.bf16.mxu0 %v318_v6 }
  0x17   :  { %304 = vmatpush3.bf16.msra.mxu0 %v318_v6 }
  0x18   :  { %305 = vmatprep.subr.bf16.mxu0 %v319_v7 }
  0x1b   :  { %306 = vmatpush3.bf16.msra.mxu0 %v319_v7 }
  0x1c   :  { %307 = vmatprep.subr.bf16.mxu0 %v320_v8 }
  0x1f   :  { %308 = vmatpush3.bf16.msra.mxu0 %v320_v8 }
  0x22   :  { %310 = vmatmul.mubr.bf16.vlgmr.msra.gmra.mrb[0].mxu0 %v322_v9 }
  0xf5   :  { %v311_v10 = vpop.f32.mrb[0].mxu0 }
  0xf6   :  { %v135_v11 = vpop.f32.mrb[1].mxu0 }
  0xf7   :  { %v312_v12 = vpop.f32.mrb[2].mxu0 }
  0xf8   :  { %v138_v13 = vpop.f32.mrb[3].mxu0 }
  0xf9   :  { %v150_v14 = vadd.f32 %v138_v13, %v135_v11 }
  0xfb   :  { %v151_v15 = vadd.f32 %v311_v10, %v150_v14 }
  0xfd   :  { %v152_v16 = vadd.f32 %v312_v12, %v151_v15 }
  0xff   :  { %v153_v17 = vrot.slane %v152_v16, 4 }
 0x101   :  { %v154_v18 = vadd.f32 %v153_v17, %v152_v16 }
 0x103   :  { %v155_v19 = vrot.slane %v154_v18, 2 }
 0x105   :  { %v156_v20 = vadd.f32 %v155_v19, %v154_v18 }
 0x107   :  { %v157_v21 = vrot.slane %v156_v20, 1 }
 0x109   :  { %v158_v22 = vadd.f32 %v157_v21, %v156_v20 }
 0x10b   :  { %v159_v23 = vmul.f32 0.03125, %v158_v22 }
 0x10d   :  { %v160_v24 = vsub.f32 %v135_v11, %v159_v23  ;;  %v161_v25 = vsub.f32 %v138_v13, %v159_v23  ;;  %v162_v26 = vsub.f32 %v311_v10, %v159_v23  ;;  %v163_v27 = vsub.f32 %v312_v12, %v159_v23 }
 0x10f   :  { %v164_v28 = vmul.f32 %v160_v24, %v160_v24  ;;  %v165_v29 = vmul.f32 %v161_v25, %v161_v25  ;;  %v166_v30 = vmul.f32 %v162_v26, %v162_v26  ;;  %v167_v32 = vmul.f32 %v163_v27, %v163_v27 }
 0x111   :  { %v168_v31 = vadd.f32 %v165_v29, %v164_v28 }
 0x113   :  { %v169_v33 = vadd.f32 %v168_v31, %v166_v30 }
 0x115   :  { %v170_v34 = vadd.f32 %v169_v33, %v167_v32 }
 0x117   :  { %v171_v35 = vrot.slane %v170_v34, 4 }
 0x119   :  { %v172_v36 = vadd.f32 %v171_v35, %v170_v34 }
 0x11b   :  { %v173_v37 = vrot.slane %v172_v36, 2 }
 0x11d   :  { %v174_v38 = vadd.f32 %v173_v37, %v172_v36 }
 0x11f   :  { %v175_v39 = vrot.slane %v174_v38, 1 }
 0x121   :  { %v176_v40 = vadd.f32 %v175_v39, %v174_v38 }
 0x123   :  { %v177_v41 = vmul.f32 0.03125, %v176_v40 }
 0x125   :  { %v179_v42 = vadd.f32 1e-05, %v177_v41 }
 0x127   :  { %323 = vrsqrt.f32 %v179_v42 }
 0x131   :  { %v324_v47 = vpop.eup %323 }
 0x132   :  { %v181_v48 = vmul.f32 %v324_v47, %v178_v45 }
 0x134   :  { %v183_v50 = vmul.f32 %v181_v48, %v159_v23  ;;  %v189_v51 = vrot.slane %v181_v48, %v188_v46 }
 0x136   :  { %v184_v54 = vsub.f32 %v182_v49, %v183_v50  ;;  %v191_v55 = vmul.f32 %v189_v51, %v135_v11  ;;  %v192_v56 = vmul.f32 %v189_v51, %v138_v13  ;;  %v193_v57 = vmul.f32 %v311_v10, %v189_v51 }
 0x137   :  { %v194_v58 = vmul.f32 %v312_v12, %v189_v51 }
 0x138   :  { %v199_v60 = vrot.slane %v184_v54, %v188_v46 }
 0x13a   :  { %v201_v0 = vadd.f32 %v199_v60, %v191_v55  ;;  %v202_v1 = vadd.f32 %v199_v60, %v192_v56  ;;  %v203_v2 = vadd.f32 %v199_v60, %v193_v57  ;;  %v204_v3 = vadd.f32 %v199_v60, %v194_v58 }
 0x13c   :  { %v213_v4 = vadd.f32 %v265_v59, %v201_v0  ;;  %v214_v5 = vadd.f32 %v266_v61, %v202_v1  ;;  %v215_v6 = vadd.f32 %v269_v62, %v203_v2  ;;  %v216_v7 = vadd.f32 %v270_v63, %v204_v3 }
 0x13e   :  { %v217_v8 = vmax.f32 %v213_v4, 0.0  ;;  %v218_v9 = vmax.f32 %v214_v5, 0.0  ;;  %v219_v14 = vmax.f32 %v215_v6, 0.0  ;;  %v220_v11 = vmax.f32 %v216_v7, 0.0 }
 0x140   :  { %v274_v13 = vpack.c.bf16 %v218_v9, %v217_v8  ;;  %v279_v10 = vpack.c.bf16 %v220_v11, %v219_v14 }
 0x142   :  { %275 = vst [vmem:[%s408_s5] sm:$0xff] %v274_v13   ;;  %282 = vst [vmem:[%s408_s5 + $0x8] sm:$0xff] %v279_v10  }

// kernel: resnet_forward.70
= control target key start
LH: loop header
LB: loop body
LE: loop exit
PB: predicated region body
PF: predicated region fallthrough
CT: control target
= control target key end

     0   :  { %v183_v43 = vlaneseq  ;;  %s364_s1 = inlined_call_operand.vmem [shape: bf16[128,128], index: 1, kind: input, shape index: {}]   ;;  %s365_s0 = inlined_call_operand.vmem [shape: bf16[32,128], index: 0, kind: input, shape index: {}]   ;;  %s366_s2 = inlined_call_operand.vmem [shape: f32[1,128], index: 2, kind: input, shape index: {}]   ;;  %s367_s3 = inlined_call_operand.vmem [shape: f32[1,128], index: 3, kind: input, shape index: {}]   ;;  %s368_s4 = inlined_call_operand.vmem [shape: bf16[32,128], index: 4, kind: output, shape index: {}]  }
   0x1   :  { %v285_v0 = vld [vmem:[%s364_s1] sm:$0xff]   ;;  %v286_v1 = vld [vmem:[%s364_s1 + $0x8] sm:$0xff]   ;;  %v287_v2 = vld [vmem:[%s364_s1 + $0x10] sm:$0xff]  }
   0x2   :  { %265 = vmatprep.subr.bf16.mxu0 %v285_v0  ;;  %v288_v3 = vld [vmem:[%s364_s1 + $0x18] sm:$0xff]   ;;  %v293_v4 = vld [vmem:[%s365_s0] sm:$0xff]   ;;  %v290_v6 = vld [vmem:[%s364_s1 + $0x28] sm:$0xff]   ;;  %v184_v44 = vshrl.u32 %v183_v43, 7 }
   0x3   :  { %266 = vmatpush3.bf16.msra.mxu0 %v285_v0  ;;  %281 = vmatprep.mubr.bf16.mxu0 %v293_v4  ;;  %v289_v5 = vld [vmem:[%s364_s1 + $0x20] sm:$0xff]   ;;  %v291_v7 = vld [vmem:[%s364_s1 + $0x30] sm:$0xff]   ;;  %v292_v8 = vld [vmem:[%s364_s1 + $0x38] sm:$0xff]  }
   0x4   :  { %267 = vmatprep.subr.bf16.mxu0 %v286_v1  ;;  %v294_v9 = vld [vmem:[%s365_s0 + $0x8] sm:$0xff]   ;;  %v175_v45 = vld [vmem:[%s366_s2] sm:$0x1]  ;;  %v185_v46 = vsub.s32 0, %v184_v44 }
   0x5   :  { %v179_v49 = vld [vmem:[%s367_s3] sm:$0x1] }
   0x7   :  { %268 = vmatpush3.bf16.msra.mxu0 %v286_v1 }
   0x8   :  { %269 = vmatprep.subr.bf16.mxu0 %v287_v2 }
   0xb   :  { %270 = vmatpush3.bf16.msra.mxu0 %v287_v2 }
   0xc   :  { %271 = vmatprep.subr.bf16.mxu0 %v288_v3 }
   0xf   :  { %272 = vmatpush3.bf16.msra.mxu0 %v288_v3 }
  0x10   :  { %273 = vmatprep.subr.bf16.mxu0 %v289_v5 }
  0x13   :  { %274 = vmatpush3.bf16.msra.mxu0 %v289_v5 }
  0x14   :  { %275 = vmatprep.subr.bf16.mxu0 %v290_v6 }
  0x17   :  { %276 = vmatpush3.bf16.msra.mxu0 %v290_v6 }
  0x18   :  { %277 = vmatprep.subr.bf16.mxu0 %v291_v7 }
  0x1b   :  { %278 = vmatpush3.bf16.msra.mxu0 %v291_v7 }
  0x1c   :  { %279 = vmatprep.subr.bf16.mxu0 %v292_v8 }
  0x1f   :  { %280 = vmatpush3.bf16.msra.mxu0 %v292_v8 }
  0x22   :  { %282 = vmatmul.mubr.bf16.vlgmr.msra.gmra.mrb[0].mxu0 %v294_v9 }
  0xf5   :  { %v283_v10 = vpop.f32.mrb[0].mxu0 }
  0xf6   :  { %v132_v11 = vpop.f32.mrb[1].mxu0 }
  0xf7   :  { %v284_v12 = vpop.f32.mrb[2].mxu0 }
  0xf8   :  { %v135_v13 = vpop.f32.mrb[3].mxu0 }
  0xf9   :  { %v147_v14 = vadd.f32 %v135_v13, %v132_v11 }
  0xfb   :  { %v148_v15 = vadd.f32 %v283_v10, %v147_v14 }
  0xfd   :  { %v149_v16 = vadd.f32 %v284_v12, %v148_v15 }
  0xff   :  { %v150_v17 = vrot.slane %v149_v16, 4 }
 0x101   :  { %v151_v18 = vadd.f32 %v150_v17, %v149_v16 }
 0x103   :  { %v152_v19 = vrot.slane %v151_v18, 2 }
 0x105   :  { %v153_v20 = vadd.f32 %v152_v19, %v151_v18 }
 0x107   :  { %v154_v21 = vrot.slane %v153_v20, 1 }
 0x109   :  { %v155_v22 = vadd.f32 %v154_v21, %v153_v20 }
 0x10b   :  { %v156_v23 = vmul.f32 0.03125, %v155_v22 }
 0x10d   :  { %v157_v24 = vsub.f32 %v132_v11, %v156_v23  ;;  %v158_v25 = vsub.f32 %v135_v13, %v156_v23  ;;  %v159_v26 = vsub.f32 %v283_v10, %v156_v23  ;;  %v160_v27 = vsub.f32 %v284_v12, %v156_v23 }
 0x10f   :  { %v161_v28 = vmul.f32 %v157_v24, %v157_v24  ;;  %v162_v29 = vmul.f32 %v158_v25, %v158_v25  ;;  %v163_v30 = vmul.f32 %v159_v26, %v159_v26  ;;  %v164_v32 = vmul.f32 %v160_v27, %v160_v27 }
 0x111   :  { %v165_v31 = vadd.f32 %v162_v29, %v161_v28 }
 0x113   :  { %v166_v33 = vadd.f32 %v165_v31, %v163_v30 }
 0x115   :  { %v167_v34 = vadd.f32 %v166_v33, %v164_v32 }
 0x117   :  { %v168_v35 = vrot.slane %v167_v34, 4 }
 0x119   :  { %v169_v36 = vadd.f32 %v168_v35, %v167_v34 }
 0x11b   :  { %v170_v37 = vrot.slane %v169_v36, 2 }
 0x11d   :  { %v171_v38 = vadd.f32 %v170_v37, %v169_v36 }
 0x11f   :  { %v172_v39 = vrot.slane %v171_v38, 1 }
 0x121   :  { %v173_v40 = vadd.f32 %v172_v39, %v171_v38 }
 0x123   :  { %v174_v41 = vmul.f32 0.03125, %v173_v40 }
 0x125   :  { %v176_v42 = vadd.f32 1e-05, %v174_v41 }
 0x127   :  { %295 = vrsqrt.f32 %v176_v42 }
 0x131   :  { %v296_v47 = vpop.eup %295 }
 0x132   :  { %v178_v48 = vmul.f32 %v296_v47, %v175_v45 }
 0x134   :  { %v180_v50 = vmul.f32 %v178_v48, %v156_v23  ;;  %v186_v51 = vrot.slane %v178_v48, %v185_v46 }
 0x136   :  { %v181_v52 = vsub.f32 %v179_v49, %v180_v50  ;;  %v188_v53 = vmul.f32 %v186_v51, %v132_v11  ;;  %v189_v54 = vmul.f32 %v186_v51, %v135_v13  ;;  %v190_v55 = vmul.f32 %v283_v10, %v186_v51 }
 0x137   :  { %v191_v56 = vmul.f32 %v284_v12, %v186_v51 }
 0x138   :  { %v196_v57 = vrot.slane %v181_v52, %v185_v46 }
 0x13a   :  { %v198_v58 = vadd.f32 %v196_v57, %v188_v53  ;;  %v199_v59 = vadd.f32 %v196_v57, %v189_v54  ;;  %v200_v60 = vadd.f32 %v196_v57, %v190_v55  ;;  %v201_v61 = vadd.f32 %v196_v57, %v191_v56 }
 0x13c   :  { %v247_v62 = vpack.c.bf16 %v199_v59, %v198_v58  ;;  %v252_v63 = vpack.c.bf16 %v201_v61, %v200_v60 }
 0x13e   :  { %248 = vst [vmem:[%s368_s4] sm:$0xff] %v247_v62   ;;  %254 = vst [vmem:[%s368_s4 + $0x8] sm:$0xff] %v252_v63  }

// kernel: resnet_forward.72
= control target key start
LH: loop header
LB: loop body
LE: loop exit
PB: predicated region body
PF: predicated region fallthrough
CT: control target
= control target key end

     0   :  { %v183_v43 = vlaneseq  ;;  %s368_s1 = inlined_call_operand.vmem [shape: bf16[128,128], index: 1, kind: input, shape index: {}]   ;;  %s369_s0 = inlined_call_operand.vmem [shape: bf16[32,128], index: 0, kind: input, shape index: {}]   ;;  %s370_s2 = inlined_call_operand.vmem [shape: f32[1,128], index: 2, kind: input, shape index: {}]   ;;  %s371_s3 = inlined_call_operand.vmem [shape: f32[1,128], index: 3, kind: input, shape index: {}]   ;;  %s372_s4 = inlined_call_operand.vmem [shape: bf16[32,128], index: 4, kind: output, shape index: {}]  }
   0x1   :  { %v289_v0 = vld [vmem:[%s368_s1] sm:$0xff]   ;;  %v290_v1 = vld [vmem:[%s368_s1 + $0x8] sm:$0xff]   ;;  %v291_v2 = vld [vmem:[%s368_s1 + $0x10] sm:$0xff]  }
   0x2   :  { %269 = vmatprep.subr.bf16.mxu0 %v289_v0  ;;  %v292_v3 = vld [vmem:[%s368_s1 + $0x18] sm:$0xff]   ;;  %v297_v4 = vld [vmem:[%s369_s0] sm:$0xff]   ;;  %v294_v6 = vld [vmem:[%s368_s1 + $0x28] sm:$0xff]   ;;  %v184_v44 = vshrl.u32 %v183_v43, 7 }
   0x3   :  { %270 = vmatpush3.bf16.msra.mxu0 %v289_v0  ;;  %285 = vmatprep.mubr.bf16.mxu0 %v297_v4  ;;  %v293_v5 = vld [vmem:[%s368_s1 + $0x20] sm:$0xff]   ;;  %v295_v7 = vld [vmem:[%s368_s1 + $0x30] sm:$0xff]   ;;  %v296_v8 = vld [vmem:[%s368_s1 + $0x38] sm:$0xff]  }
   0x4   :  { %271 = vmatprep.subr.bf16.mxu0 %v290_v1  ;;  %v298_v9 = vld [vmem:[%s369_s0 + $0x8] sm:$0xff]   ;;  %v175_v45 = vld [vmem:[%s370_s2] sm:$0x1]  ;;  %v185_v46 = vsub.s32 0, %v184_v44 }
   0x5   :  { %v179_v49 = vld [vmem:[%s371_s3] sm:$0x1] }
   0x7   :  { %272 = vmatpush3.bf16.msra.mxu0 %v290_v1 }
   0x8   :  { %273 = vmatprep.subr.bf16.mxu0 %v291_v2 }
   0xb   :  { %274 = vmatpush3.bf16.msra.mxu0 %v291_v2 }
   0xc   :  { %275 = vmatprep.subr.bf16.mxu0 %v292_v3 }
   0xf   :  { %276 = vmatpush3.bf16.msra.mxu0 %v292_v3 }
  0x10   :  { %277 = vmatprep.subr.bf16.mxu0 %v293_v5 }
  0x13   :  { %278 = vmatpush3.bf16.msra.mxu0 %v293_v5 }
  0x14   :  { %279 = vmatprep.subr.bf16.mxu0 %v294_v6 }
  0x17   :  { %280 = vmatpush3.bf16.msra.mxu0 %v294_v6 }
  0x18   :  { %281 = vmatprep.subr.bf16.mxu0 %v295_v7 }
  0x1b   :  { %282 = vmatpush3.bf16.msra.mxu0 %v295_v7 }
  0x1c   :  { %283 = vmatprep.subr.bf16.mxu0 %v296_v8 }
  0x1f   :  { %284 = vmatpush3.bf16.msra.mxu0 %v296_v8 }
  0x22   :  { %286 = vmatmul.mubr.bf16.vlgmr.msra.gmra.mrb[0].mxu0 %v298_v9 }
  0xf5   :  { %v287_v10 = vpop.f32.mrb[0].mxu0 }
  0xf6   :  { %v132_v11 = vpop.f32.mrb[1].mxu0 }
  0xf7   :  { %v288_v12 = vpop.f32.mrb[2].mxu0 }
  0xf8   :  { %v135_v13 = vpop.f32.mrb[3].mxu0 }
  0xf9   :  { %v147_v14 = vadd.f32 %v135_v13, %v132_v11 }
  0xfb   :  { %v148_v15 = vadd.f32 %v287_v10, %v147_v14 }
  0xfd   :  { %v149_v16 = vadd.f32 %v288_v12, %v148_v15 }
  0xff   :  { %v150_v17 = vrot.slane %v149_v16, 4 }
 0x101   :  { %v151_v18 = vadd.f32 %v150_v17, %v149_v16 }
 0x103   :  { %v152_v19 = vrot.slane %v151_v18, 2 }
 0x105   :  { %v153_v20 = vadd.f32 %v152_v19, %v151_v18 }
 0x107   :  { %v154_v21 = vrot.slane %v153_v20, 1 }
 0x109   :  { %v155_v22 = vadd.f32 %v154_v21, %v153_v20 }
 0x10b   :  { %v156_v23 = vmul.f32 0.03125, %v155_v22 }
 0x10d   :  { %v157_v24 = vsub.f32 %v132_v11, %v156_v23  ;;  %v158_v25 = vsub.f32 %v135_v13, %v156_v23  ;;  %v159_v26 = vsub.f32 %v287_v10, %v156_v23  ;;  %v160_v27 = vsub.f32 %v288_v12, %v156_v23 }
 0x10f   :  { %v161_v28 = vmul.f32 %v157_v24, %v157_v24  ;;  %v162_v29 = vmul.f32 %v158_v25, %v158_v25  ;;  %v163_v30 = vmul.f32 %v159_v26, %v159_v26  ;;  %v164_v32 = vmul.f32 %v160_v27, %v160_v27 }
 0x111   :  { %v165_v31 = vadd.f32 %v162_v29, %v161_v28 }
 0x113   :  { %v166_v33 = vadd.f32 %v165_v31, %v163_v30 }
 0x115   :  { %v167_v34 = vadd.f32 %v166_v33, %v164_v32 }
 0x117   :  { %v168_v35 = vrot.slane %v167_v34, 4 }
 0x119   :  { %v169_v36 = vadd.f32 %v168_v35, %v167_v34 }
 0x11b   :  { %v170_v37 = vrot.slane %v169_v36, 2 }
 0x11d   :  { %v171_v38 = vadd.f32 %v170_v37, %v169_v36 }
 0x11f   :  { %v172_v39 = vrot.slane %v171_v38, 1 }
 0x121   :  { %v173_v40 = vadd.f32 %v172_v39, %v171_v38 }
 0x123   :  { %v174_v41 = vmul.f32 0.03125, %v173_v40 }
 0x125   :  { %v176_v42 = vadd.f32 1e-05, %v174_v41 }
 0x127   :  { %299 = vrsqrt.f32 %v176_v42 }
 0x131   :  { %v300_v47 = vpop.eup %299 }
 0x132   :  { %v178_v48 = vmul.f32 %v300_v47, %v175_v45 }
 0x134   :  { %v180_v50 = vmul.f32 %v178_v48, %v156_v23  ;;  %v186_v51 = vrot.slane %v178_v48, %v185_v46 }
 0x136   :  { %v181_v52 = vsub.f32 %v179_v49, %v180_v50  ;;  %v188_v53 = vmul.f32 %v186_v51, %v132_v11  ;;  %v189_v54 = vmul.f32 %v186_v51, %v135_v13  ;;  %v190_v55 = vmul.f32 %v287_v10, %v186_v51 }
 0x137   :  { %v191_v56 = vmul.f32 %v288_v12, %v186_v51 }
 0x138   :  { %v196_v57 = vrot.slane %v181_v52, %v185_v46 }
 0x13a   :  { %v198_v58 = vadd.f32 %v196_v57, %v188_v53  ;;  %v199_v59 = vadd.f32 %v196_v57, %v189_v54  ;;  %v200_v60 = vadd.f32 %v196_v57, %v190_v55  ;;  %v201_v61 = vadd.f32 %v196_v57, %v191_v56 }
 0x13c   :  { %v202_v62 = vmax.f32 %v198_v58, 0.0  ;;  %v203_v63 = vmax.f32 %v199_v59, 0.0  ;;  %v204_v0 = vmax.f32 %v200_v60, 0.0  ;;  %v205_v1 = vmax.f32 %v201_v61, 0.0 }
 0x13e   :  { %v251_v2 = vpack.c.bf16 %v203_v63, %v202_v62  ;;  %v256_v3 = vpack.c.bf16 %v205_v1, %v204_v0 }
 0x140   :  { %252 = vst [vmem:[%s372_s4] sm:$0xff] %v251_v2   ;;  %258 = vst [vmem:[%s372_s4 + $0x8] sm:$0xff] %v256_v3  }

// kernel: resnet_forward.69
= control target key start
LH: loop header
LB: loop body
LE: loop exit
PB: predicated region body
PF: predicated region fallthrough
CT: control target
= control target key end

     0   :  { %s1692_s1 = inlined_call_operand.vmem [shape: bf16[1152,128], index: 1, kind: input, shape index: {}]   ;;  %s1693_s0 = inlined_call_operand.vmem [shape: bf16[32,1152], index: 0, kind: input, shape index: {}]   ;;  %s1694_s2 = inlined_call_operand.vmem [shape: f32[1,128], index: 2, kind: input, shape index: {}]   ;;  %s1695_s3 = inlined_call_operand.vmem [shape: f32[1,128], index: 3, kind: input, shape index: {}]   ;;  %s1696_s4 = inlined_call_operand.vmem [shape: bf16[32,128], index: 4, kind: output, shape index: {}]  }
   0x1   :  { %v1285_v0 = vld [vmem:[%s1692_s1 + $0x40] sm:$0xff]   ;;  %v1289_v4 = vld [vmem:[%s1692_s1 + $0x48] sm:$0xff]   ;;  %v1293_v8 = vld [vmem:[%s1692_s1 + $0x50] sm:$0xff]  }
   0x2   :  { %v1286_v1 = vld [vmem:[%s1692_s1 + $0xc0] sm:$0xff]   ;;  %1143 = vmatprep.subr.bf16.mxu0 %v1285_v0  ;;  %v1290_v5 = vld [vmem:[%s1692_s1 + $0xc8] sm:$0xff]   ;;  %v1294_v9 = vld [vmem:[%s1692_s1 + $0xd0] sm:$0xff]  }
   0x3   :  { %v1287_v2 = vld [vmem:[%s1692_s1] sm:$0xff]   ;;  %1171 = vmatprep.subr.bf16.mxu1 %v1286_v1  ;;  %v1291_v6 = vld [vmem:[%s1692_s1 + $0x8] sm:$0xff]   ;;  %v1295_v10 = vld [vmem:[%s1692_s1 + $0x10] sm:$0xff]  }
   0x4   :  { %v1288_v3 = vld [vmem:[%s1692_s1 + $0x80] sm:$0xff]   ;;  %1144 = vmatpush3.bf16.msra.mxu0 %v1287_v2  ;;  %v1292_v7 = vld [vmem:[%s1692_s1 + $0x88] sm:$0xff]   ;;  %v1296_v11 = vld [vmem:[%s1692_s1 + $0x90] sm:$0xff]  }
   0x5   :  { %1172 = vmatpush3.bf16.msra.mxu1 %v1288_v3  ;;  %1145 = vmatprep.subr.bf16.mxu0 %v1289_v4  ;;  %v1297_v12 = vld [vmem:[%s1692_s1 + $0x58] sm:$0xff]   ;;  %v1301_v16 = vld [vmem:[%s1692_s1 + $0x60] sm:$0xff]   ;;  %v1305_v20 = vld [vmem:[%s1692_s1 + $0x68] sm:$0xff]  }
   0x6   :  { %1173 = vmatprep.subr.bf16.mxu1 %v1290_v5  ;;  %v1298_v13 = vld [vmem:[%s1692_s1 + $0xd8] sm:$0xff]   ;;  %v1302_v17 = vld [vmem:[%s1692_s1 + $0xe0] sm:$0xff]   ;;  %v1306_v21 = vld [vmem:[%s1692_s1 + $0xe8] sm:$0xff]  }
   0x7   :  { %v1299_v14 = vld [vmem:[%s1692_s1 + $0x18] sm:$0xff]   ;;  %v1303_v18 = vld [vmem:[%s1692_s1 + $0x20] sm:$0xff]   ;;  %v1307_v22 = vld [vmem:[%s1692_s1 + $0x28] sm:$0xff]  }
   0x8   :  { %1146 = vmatpush3.bf16.msra.mxu0 %v1291_v6  ;;  %v1300_v15 = vld [vmem:[%s1692_s1 + $0x98] sm:$0xff]   ;;  %v1304_v19 = vld [vmem:[%s1692_s1 + $0xa0] sm:$0xff]   ;;  %v1308_v23 = vld [vmem:[%s1692_s1 + $0xa8] sm:$0xff]  }
   0x9   :  { %1174 = vmatpush3.bf16.msra.mxu1 %v1292_v7  ;;  %1147 = vmatprep.subr.bf16.mxu0 %v1293_v8  ;;  %v1309_v24 = vld [vmem:[%s1692_s1 + $0x70] sm:$0xff]   ;;  %v1313_v28 = vld [vmem:[%s1692_s1 + $0x78] sm:$0xff]   ;;  %v1317_v32 = vld [vmem:[%s1693_s0] ss:$36 sps:$4 sm:$0xff]  }
   0xa   :  { %1175 = vmatprep.subr.bf16.mxu1 %v1294_v9  ;;  %v1310_v25 = vld [vmem:[%s1692_s1 + $0xf0] sm:$0xff]   ;;  %v1314_v29 = vld [vmem:[%s1692_s1 + $0xf8] sm:$0xff]   ;;  %v1319_v33 = vld [vmem:[%s1693_s0 + $0x4] ss:$36 sps:$4 sm:$0xff]  }
   0xb   :  { %v1311_v26 = vld [vmem:[%s1692_s1 + $0x30] sm:$0xff]   ;;  %v1315_v30 = vld [vmem:[%s1692_s1 + $0x38] sm:$0xff]   ;;  %v1320_v34 = vld [vmem:[%s1693_s0 + $0x8] ss:$36 sps:$4 sm:$0xff]   ;;  %738 = vmatprep.mubr.bf16.mxu0 %v1319_v33 }
   0xc   :  { %1148 = vmatpush3.bf16.msra.mxu0 %v1295_v10  ;;  %v1312_v27 = vld [vmem:[%s1692_s1 + $0xb0] sm:$0xff]   ;;  %v1316_v31 = vld [vmem:[%s1692_s1 + $0xb8] sm:$0xff]   ;;  %v1323_v36 = vld [vmem:[%s1692_s1 + $0x140] sm:$0xff]  }
   0xd   :  { %1176 = vmatpush3.bf16.msra.mxu1 %v1296_v11  ;;  %1149 = vmatprep.subr.bf16.mxu0 %v1297_v12  ;;  %v1322_v35 = vld [vmem:[%s1693_s0 + $0xc] ss:$36 sps:$4 sm:$0xff]   ;;  %v1324_v37 = vld [vmem:[%s1692_s1 + $0x100] sm:$0xff]   ;;  %v1335_v48 = vld [vmem:[%s1692_s1 + $0x158] sm:$0xff]  }
   0xe   :  { %1177 = vmatprep.subr.bf16.mxu1 %v1298_v13  ;;  %787 = vmatprep.mubr.bf16.mxu1 %v1322_v35  ;;  %v1325_v38 = vld [vmem:[%s1692_s1 + $0x1c0] sm:$0xff]   ;;  %v1327_v40 = vld [vmem:[%s1692_s1 + $0x148] sm:$0xff]   ;;  %v1331_v44 = vld [vmem:[%s1692_s1 + $0x150] sm:$0xff]  }
   0xf   :  { %v1326_v39 = vld [vmem:[%s1692_s1 + $0x180] sm:$0xff]   ;;  %v1328_v41 = vld [vmem:[%s1692_s1 + $0x108] sm:$0xff]   ;;  %v1332_v45 = vld [vmem:[%s1692_s1 + $0x110] sm:$0xff]  }
  0x10   :  { %1150 = vmatpush3.bf16.msra.mxu0 %v1299_v14  ;;  %v1329_v42 = vld [vmem:[%s1692_s1 + $0x1c8] sm:$0xff]   ;;  %v1333_v46 = vld [vmem:[%s1692_s1 + $0x1d0] sm:$0xff]   ;;  %v1336_v49 = vld [vmem:[%s1692_s1 + $0x118] sm:$0xff]  }
  0x11   :  { %1178 = vmatpush3.bf16.msra.mxu1 %v1300_v15  ;;  %1151 = vmatprep.subr.bf16.mxu0 %v1301_v16  ;;  %v1330_v43 = vld [vmem:[%s1692_s1 + $0x188] sm:$0xff]   ;;  %v1334_v47 = vld [vmem:[%s1692_s1 + $0x190] sm:$0xff]   ;;  %v1337_v50 = vld [vmem:[%s1692_s1 + $0x1d8] sm:$0xff]  }
  0x12   :  { %1179 = vmatprep.subr.bf16.mxu1 %v1302_v17  ;;  %v1338_v51 = vld [vmem:[%s1692_s1 + $0x198] sm:$0xff]   ;;  %v1339_v52 = vld [vmem:[%s1692_s1 + $0x160] sm:$0xff]   ;;  %v1343_v56 = vld [vmem:[%s1692_s1 + $0x168] sm:$0xff]  }
  0x13   :  { %v1340_v53 = vld [vmem:[%s1692_s1 + $0x120] sm:$0xff]   ;;  %v1344_v57 = vld [vmem:[%s1693_s0 + $0x4c] ss:$36 sps:$4 sm:$0xff]   ;;  %v1346_v58 = vld [vmem:[%s1693_s0 + $0x54] ss:$36 sps:$4 sm:$0xff]  }
  0x14   :  { %1152 = vmatpush3.bf16.msra.mxu0 %v1303_v18  ;;  %v1341_v54 = vld [vmem:[%s1692_s1 + $0x1e0] sm:$0xff]   ;;  %v1348_v59 = vld [vmem:[%s1692_s1 + $0x128] sm:$0xff]   ;;  %v1350_v61 = vld [vmem:[%s1693_s0 + $0x50] ss:$36 sps:$4 sm:$0xff]  }
  0x15   :  { %1180 = vmatpush3.bf16.msra.mxu1 %v1304_v19  ;;  %1153 = vmatprep.subr.bf16.mxu0 %v1305_v20  ;;  %v1342_v55 = vld [vmem:[%s1692_s1 + $0x1a0] sm:$0xff]   ;;  %v1349_v60 = vld [vmem:[%s1693_s0 + $0x48] ss:$36 sps:$4 sm:$0xff]   ;;  %v1353_v0 = vld [vmem:[%s1692_s1 + $0x170] sm:$0xff]  }
  0x16   :  { %1181 = vmatprep.subr.bf16.mxu1 %v1306_v21  ;;  %v1351_v62 = vld [vmem:[%s1692_s1 + $0x1e8] sm:$0xff]   ;;  %v1354_v1 = vld [vmem:[%s1692_s1 + $0x130] sm:$0xff]   ;;  %v1357_v4 = vld [vmem:[%s1692_s1 + $0x178] sm:$0xff]  }
  0x17   :  { %v1352_v63 = vld [vmem:[%s1692_s1 + $0x1a8] sm:$0xff]   ;;  %v1355_v2 = vld [vmem:[%s1692_s1 + $0x1f0] sm:$0xff]   ;;  %v1358_v5 = vld [vmem:[%s1692_s1 + $0x138] sm:$0xff]  }
  0x18   :  { %1154 = vmatpush3.bf16.msra.mxu0 %v1307_v22  ;;  %v1356_v3 = vld [vmem:[%s1692_s1 + $0x1b0] sm:$0xff]   ;;  %v1359_v6 = vld [vmem:[%s1692_s1 + $0x1f8] sm:$0xff]   ;;  %v1364_v10 = vld [vmem:[%s1692_s1 + $0x200] sm:$0xff]  }
  0x19   :  { %1182 = vmatpush3.bf16.msra.mxu1 %v1308_v23  ;;  %1155 = vmatprep.subr.bf16.mxu0 %v1309_v24  ;;  %v1360_v7 = vld [vmem:[%s1693_s0 + $0x10] ss:$36 sps:$4 sm:$0xff]   ;;  %v1363_v9 = vld [vmem:[%s1692_s1 + $0x1b8] sm:$0xff]   ;;  %v1368_v13 = vld [vmem:[%s1692_s1 + $0x208] sm:$0xff]  }
  0x1a   :  { %1183 = vmatprep.subr.bf16.mxu1 %v1310_v25  ;;  %v1362_v8 = vld [vmem:[%s1693_s0 + $0x14] ss:$36 sps:$4 sm:$0xff]   ;;  %v1367_v12 = vld [vmem:[%s1693_s0 + $0x1c] ss:$36 sps:$4 sm:$0xff]   ;;  %v1373_v17 = vld [vmem:[%s1693_s0 + $0x64] ss:$36 sps:$4 sm:$0xff]  }
  0x1b   :  { %v1365_v11 = vld [vmem:[%s1693_s0 + $0x18] ss:$36 sps:$4 sm:$0xff]   ;;  %v1372_v16 = vld [vmem:[%s1692_s1 + $0x210] sm:$0xff]   ;;  %v1375_v18 = vld [vmem:[%s1693_s0 + $0x60] ss:$36 sps:$4 sm:$0xff]  }
  0x1c   :  { %1156 = vmatpush3.bf16.msra.mxu0 %v1311_v26  ;;  %v1369_v14 = vld [vmem:[%s1693_s0 + $0x5c] ss:$36 sps:$4 sm:$0xff]   ;;  %v1378_v22 = vld [vmem:[%s1692_s1 + $0x228] sm:$0xff]   ;;  %v1379_v23 = vld [vmem:[%s1692_s1 + $0x230] sm:$0xff]  }
  0x1d   :  { %1184 = vmatpush3.bf16.msra.mxu1 %v1312_v27  ;;  %1157 = vmatprep.subr.bf16.mxu0 %v1313_v28  ;;  %v1371_v15 = vld [vmem:[%s1693_s0 + $0x58] ss:$36 sps:$4 sm:$0xff]   ;;  %v1377_v20 = vld [vmem:[%s1692_s1 + $0x220] sm:$0xff]   ;;  %v1382_v25 = vld [vmem:[%s1693_s0 + $0x68] ss:$36 sps:$4 sm:$0xff]  }
  0x1e   :  { %1185 = vmatprep.subr.bf16.mxu1 %v1314_v29  ;;  %v1376_v19 = vld [vmem:[%s1692_s1 + $0x218] sm:$0xff]   ;;  %v1381_v21 = vld [vmem:[%s1693_s0 + $0x20] ss:$36 sps:$4 sm:$0xff]  }
  0x1f   :  { %v1380_v24 = vld [vmem:[%s1692_s1 + $0x238] sm:$0xff]  }
  0x20   :  { %1158 = vmatpush3.bf16.msra.mxu0 %v1315_v30 }
  0x21   :  { %1186 = vmatpush3.bf16.msra.mxu1 %v1316_v31  ;;  %1199 = vmatprep.subr.bf16.mxu0 %v1323_v36 }
  0x22   :  { %1227 = vmatprep.subr.bf16.mxu1 %v1325_v38 }
  0x23   :  { %739 = vmatmul.mubr.bf16.vlgmr.msra.gmra.mrb[0].mxu0 %v1317_v32 }
  0x24   :  { %788 = vmatmul.mubr.bf16.vlgmr.msra.gmra.mrb[0].mxu1 %v1320_v34  ;;  %1200 = vmatpush3.bf16.msra.mxu0 %v1324_v37 }
  0x25   :  { %1228 = vmatpush3.bf16.msra.mxu1 %v1326_v39  ;;  %1201 = vmatprep.subr.bf16.mxu0 %v1327_v40 }
  0x26   :  { %1229 = vmatprep.subr.bf16.mxu1 %v1329_v42  ;;  %746 = vmatprep.mubr.bf16.mxu0 %v1344_v57 }
  0x27   :  { %795 = vmatprep.mubr.bf16.mxu1 %v1346_v58 }
  0x28   :  { %1202 = vmatpush3.bf16.msra.mxu0 %v1328_v41 }
  0x29   :  { %1230 = vmatpush3.bf16.msra.mxu1 %v1330_v43  ;;  %1203 = vmatprep.subr.bf16.mxu0 %v1331_v44 }
  0x2a   :  { %1231 = vmatprep.subr.bf16.mxu1 %v1333_v46 }
  0x2b   :  { %747 = vmatmul.mubr.bf16.gmra.mrb[4].mxu0 %v1349_v60 }
  0x2c   :  { %1204 = vmatpush3.bf16.msra.mxu0 %v1332_v45  ;;  %796 = vmatmul.mubr.bf16.gmra.mrb[4].mxu1 %v1350_v61 }
  0x2d   :  { %1232 = vmatpush3.bf16.msra.mxu1 %v1334_v47  ;;  %1205 = vmatprep.subr.bf16.mxu0 %v1335_v48 }
  0x2e   :  { %1233 = vmatprep.subr.bf16.mxu1 %v1337_v50  ;;  %836 = vmatprep.mubr.bf16.mxu0 %v1362_v8 }
  0x2f   :  { %885 = vmatprep.mubr.bf16.mxu1 %v1367_v12 }
  0x30   :  { %1206 = vmatpush3.bf16.msra.mxu0 %v1336_v49 }
  0x31   :  { %1234 = vmatpush3.bf16.msra.mxu1 %v1338_v51  ;;  %1207 = vmatprep.subr.bf16.mxu0 %v1339_v52 }
  0x32   :  { %1235 = vmatprep.subr.bf16.mxu1 %v1341_v54 }
  0x34   :  { %1208 = vmatpush3.bf16.msra.mxu0 %v1340_v53 }
  0x35   :  { %1236 = vmatpush3.bf16.msra.mxu1 %v1342_v55  ;;  %1209 = vmatprep.subr.bf16.mxu0 %v1343_v56 }
  0x36   :  { %1237 = vmatprep.subr.bf16.mxu1 %v1351_v62 }
  0x38   :  { %1210 = vmatpush3.bf16.msra.mxu0 %v1348_v59 }
  0x39   :  { %1238 = vmatpush3.bf16.msra.mxu1 %v1352_v63  ;;  %1211 = vmatprep.subr.bf16.mxu0 %v1353_v0 }
  0x3a   :  { %1239 = vmatprep.subr.bf16.mxu1 %v1355_v2 }
  0x3c   :  { %1212 = vmatpush3.bf16.msra.mxu0 %v1354_v1 }
  0x3d   :  { %1240 = vmatpush3.bf16.msra.mxu1 %v1356_v3  ;;  %1213 = vmatprep.subr.bf16.mxu0 %v1357_v4 }
  0x3e   :  { %1241 = vmatprep.subr.bf16.mxu1 %v1359_v6 }
  0x40   :  { %1214 = vmatpush3.bf16.msra.mxu0 %v1358_v5 }
  0x41   :  { %1242 = vmatpush3.bf16.msra.mxu1 %v1363_v9  ;;  %1265 = vmatprep.subr.bf16.mxu0 %v1364_v10 }
  0x43   :  { %837 = vmatmul.mubr.bf16.vlgmr.msra.gmra.mrb[8].mxu0 %v1360_v7 }
  0x44   :  { %1266 = vmatpush3.bf16.msra.mxu0 %v1364_v10  ;;  %886 = vmatmul.mubr.bf16.vlgmr.msra.gmra.mrb[8].mxu1 %v1365_v11 }
  0x45   :  { %1267 = vmatprep.subr.bf16.mxu0 %v1368_v13  ;;  %844 = vmatprep.mubr.bf16.mxu0 %v1369_v14 }
  0x46   :  { %893 = vmatprep.mubr.bf16.mxu1 %v1373_v17 }
  0x48   :  { %1268 = vmatpush3.bf16.msra.mxu0 %v1368_v13 }
  0x49   :  { %1269 = vmatprep.subr.bf16.mxu0 %v1372_v16 }
  0x4b   :  { %845 = vmatmul.mubr.bf16.gmra.mrb[12].mxu0 %v1371_v15 }
  0x4c   :  { %1270 = vmatpush3.bf16.msra.mxu0 %v1372_v16  ;;  %894 = vmatmul.mubr.bf16.gmra.mrb[12].mxu1 %v1375_v18 }
  0x4d   :  { %1271 = vmatprep.subr.bf16.mxu0 %v1376_v19  ;;  %1281 = vmatprep.mubr.bf16.mxu0 %v1381_v21 }
  0x50   :  { %1272 = vmatpush3.bf16.msra.mxu0 %v1376_v19 }
  0x51   :  { %1273 = vmatprep.subr.bf16.mxu0 %v1377_v20 }
  0x54   :  { %1274 = vmatpush3.bf16.msra.mxu0 %v1377_v20 }
  0x55   :  { %1275 = vmatprep.subr.bf16.mxu0 %v1378_v22 }
  0x58   :  { %1276 = vmatpush3.bf16.msra.mxu0 %v1378_v22 }
  0x59   :  { %1277 = vmatprep.subr.bf16.mxu0 %v1379_v23 }
  0x5c   :  { %1278 = vmatpush3.bf16.msra.mxu0 %v1379_v23 }
  0x5d   :  { %1279 = vmatprep.subr.bf16.mxu0 %v1380_v24 }
  0x60   :  { %1280 = vmatpush3.bf16.msra.mxu0 %v1380_v24 }
  0x63   :  { %1282 = vmatmul.mubr.bf16.vlgmr.msra.gmra.mrb[16].mxu0 %v1382_v25 }
  0xf6   :  { %v1159_v26 = vpop.f32.mrb[0].mxu0 }
  0xf7   :  { %v1187_v27 = vpop.f32.mrb[0].mxu1  ;;  %v1160_v28 = vpop.f32.mrb[1].mxu0 }
  0xf8   :  { %v1161_v29 = vadd.f32 %v1160_v28, %v1159_v26  ;;  %v1188_v30 = vpop.f32.mrb[1].mxu1  ;;  %v1162_v31 = vpop.f32.mrb[2].mxu0 }
  0xf9   :  { %v1189_v32 = vadd.f32 %v1188_v30, %v1187_v27  ;;  %v1190_v33 = vpop.f32.mrb[2].mxu1  ;;  %v1163_v34 = vpop.f32.mrb[3].mxu0 }
  0xfa   :  { %v1164_v35 = vadd.f32 %v1163_v34, %v1162_v31  ;;  %v1191_v36 = vpop.f32.mrb[3].mxu1 }
  0xfb   :  { %v790_v37 = vadd.f32 %v1189_v32, %v1161_v29  ;;  %v1192_v38 = vadd.f32 %v1191_v36, %v1190_v33 }
  0xfd   :  { %v793_v39 = vadd.f32 %v1192_v38, %v1164_v35 }
  0xfe   :  { %v1165_v40 = vpop.f32.mrb[4].mxu0 }
  0xff   :  { %v1193_v41 = vpop.f32.mrb[4].mxu1  ;;  %v1166_v42 = vpop.f32.mrb[5].mxu0 }
 0x100   :  { %v1194_v43 = vpop.f32.mrb[5].mxu1  ;;  %v1167_v44 = vadd.f32 %v1166_v42, %v1165_v40  ;;  %v1168_v46 = vpop.f32.mrb[6].mxu0 }
 0x101   :  { %v1195_v45 = vadd.f32 %v1194_v43, %v1193_v41  ;;  %v1196_v47 = vpop.f32.mrb[6].mxu1  ;;  %v1169_v48 = vpop.f32.mrb[7].mxu0 }
 0x102   :  { %v1197_v49 = vpop.f32.mrb[7].mxu1  ;;  %v1170_v51 = vadd.f32 %v1169_v48, %v1168_v46 }
 0x103   :  { %v798_v50 = vadd.f32 %v1195_v45, %v1167_v44  ;;  %v1198_v52 = vadd.f32 %v1197_v49, %v1196_v47 }
 0x105   :  { %v801_v53 = vadd.f32 %v1198_v52, %v1170_v51 }
 0x116   :  { %v1215_v54 = vpop.f32.mrb[8].mxu0 }
 0x117   :  { %v1216_v55 = vpop.f32.mrb[9].mxu0  ;;  %v1243_v58 = vpop.f32.mrb[8].mxu1 }
 0x118   :  { %v1217_v56 = vadd.f32 %v1216_v55, %v1215_v54  ;;  %v1218_v57 = vpop.f32.mrb[10].mxu0  ;;  %v1244_v62 = vpop.f32.mrb[9].mxu1 }
 0x119   :  { %v1219_v59 = vpop.f32.mrb[11].mxu0  ;;  %v1245_v63 = vadd.f32 %v1244_v62, %v1243_v58  ;;  %v1246_v0 = vpop.f32.mrb[10].mxu1 }
 0x11a   :  { %v839_v60 = vadd.f32 %v1217_v56, %v790_v37  ;;  %v1220_v61 = vadd.f32 %v1219_v59, %v1218_v57  ;;  %v1247_v2 = vpop.f32.mrb[11].mxu1  ;;  %v987_v59 = vlaneseq }
 0x11b   :  { %v1248_v3 = vadd.f32 %v1247_v2, %v1246_v0 }
 0x11c   :  { %v842_v1 = vadd.f32 %v1220_v61, %v793_v39  ;;  %v888_v4 = vadd.f32 %v1245_v63, %v839_v60  ;;  %v988_v60 = vshrl.u32 %v987_v59, 7  ;;  %v979_v61 = vld [vmem:[%s1694_s2] sm:$0x1] }
 0x11e   :  { %v1221_v5 = vpop.f32.mrb[12].mxu0  ;;  %v891_v7 = vadd.f32 %v1248_v3, %v842_v1  ;;  %v989_v62 = vsub.s32 0, %v988_v60  ;;  %v983_v1 = vld [vmem:[%s1695_s3] sm:$0x1] }
 0x11f   :  { %v1222_v6 = vpop.f32.mrb[13].mxu0  ;;  %v1249_v10 = vpop.f32.mrb[12].mxu1 }
 0x120   :  { %v1223_v8 = vadd.f32 %v1222_v6, %v1221_v5  ;;  %v1224_v9 = vpop.f32.mrb[14].mxu0  ;;  %v1250_v14 = vpop.f32.mrb[13].mxu1 }
 0x121   :  { %v1225_v11 = vpop.f32.mrb[15].mxu0  ;;  %v1251_v15 = vadd.f32 %v1250_v14, %v1249_v10  ;;  %v1252_v16 = vpop.f32.mrb[14].mxu1 }
 0x122   :  { %v847_v12 = vadd.f32 %v1223_v8, %v798_v50  ;;  %v1226_v13 = vadd.f32 %v1225_v11, %v1224_v9  ;;  %v1253_v18 = vpop.f32.mrb[15].mxu1 }
 0x123   :  { %v1254_v19 = vadd.f32 %v1253_v18, %v1252_v16 }
 0x124   :  { %v850_v17 = vadd.f32 %v1226_v13, %v801_v53  ;;  %v896_v20 = vadd.f32 %v1251_v15, %v847_v12 }
 0x126   :  { %v899_v21 = vadd.f32 %v1254_v19, %v850_v17 }
 0x136   :  { %v1283_v22 = vpop.f32.mrb[16].mxu0 }
 0x137   :  { %v945_v23 = vadd.f32 %v1283_v22, %v896_v20  ;;  %v936_v24 = vpop.f32.mrb[17].mxu0 }
 0x138   :  { %v937_v25 = vadd.f32 %v936_v24, %v888_v4  ;;  %v1284_v26 = vpop.f32.mrb[18].mxu0 }
 0x139   :  { %v948_v27 = vadd.f32 %v1284_v26, %v899_v21  ;;  %v939_v28 = vpop.f32.mrb[19].mxu0 }
 0x13a   :  { %v940_v29 = vadd.f32 %v939_v28, %v891_v7 }
 0x13c   :  { %v951_v30 = vadd.f32 %v940_v29, %v937_v25 }
 0x13e   :  { %v952_v31 = vadd.f32 %v951_v30, %v945_v23 }
 0x140   :  { %v953_v32 = vadd.f32 %v952_v31, %v948_v27 }
 0x142   :  { %v954_v33 = vrot.slane %v953_v32, 4 }
 0x144   :  { %v955_v34 = vadd.f32 %v954_v33, %v953_v32 }
 0x146   :  { %v956_v35 = vrot.slane %v955_v34, 2 }
 0x148   :  { %v957_v36 = vadd.f32 %v956_v35, %v955_v34 }
 0x14a   :  { %v958_v37 = vrot.slane %v957_v36, 1 }
 0x14c   :  { %v959_v38 = vadd.f32 %v958_v37, %v957_v36 }
 0x14e   :  { %v960_v39 = vmul.f32 0.03125, %v959_v38 }
 0x150   :  { %v961_v40 = vsub.f32 %v937_v25, %v960_v39  ;;  %v962_v41 = vsub.f32 %v940_v29, %v960_v39  ;;  %v963_v42 = vsub.f32 %v945_v23, %v960_v39  ;;  %v964_v43 = vsub.f32 %v948_v27, %v960_v39 }
 0x152   :  { %v965_v44 = vmul.f32 %v961_v40, %v961_v40  ;;  %v966_v45 = vmul.f32 %v962_v41, %v962_v41  ;;  %v967_v46 = vmul.f32 %v963_v42, %v963_v42  ;;  %v968_v48 = vmul.f32 %v964_v43, %v964_v43 }
 0x154   :  { %v969_v47 = vadd.f32 %v966_v45, %v965_v44 }
 0x156   :  { %v970_v49 = vadd.f32 %v969_v47, %v967_v46 }
 0x158   :  { %v971_v50 = vadd.f32 %v970_v49, %v968_v48 }
 0x15a   :  { %v972_v51 = vrot.slane %v971_v50, 4 }
 0x15c   :  { %v973_v52 = vadd.f32 %v972_v51, %v971_v50 }
 0x15e   :  { %v974_v53 = vrot.slane %v973_v52, 2 }
 0x160   :  { %v975_v54 = vadd.f32 %v974_v53, %v973_v52 }
 0x162   :  { %v976_v55 = vrot.slane %v975_v54, 1 }
 0x164   :  { %v977_v56 = vadd.f32 %v976_v55, %v975_v54 }
 0x166   :  { %v978_v57 = vmul.f32 0.03125, %v977_v56 }
 0x168   :  { %v980_v58 = vadd.f32 1e-05, %v978_v57 }
 0x16a   :  { %1383 = vrsqrt.f32 %v980_v58 }
 0x174   :  { %v1384_v63 = vpop.eup %1383 }
 0x175   :  { %v982_v0 = vmul.f32 %v1384_v63, %v979_v61 }
 0x177   :  { %v984_v2 = vmul.f32 %v982_v0, %v960_v39  ;;  %v990_v3 = vrot.slane %v982_v0, %v989_v62 }
 0x179   :  { %v985_v4 = vsub.f32 %v983_v1, %v984_v2  ;;  %v992_v5 = vmul.f32 %v990_v3, %v937_v25  ;;  %v993_v6 = vmul.f32 %v990_v3, %v940_v29  ;;  %v994_v7 = vmul.f32 %v990_v3, %v945_v23 }
 0x17a   :  { %v995_v8 = vmul.f32 %v990_v3, %v948_v27 }
 0x17b   :  { %v1000_v9 = vrot.slane %v985_v4, %v989_v62 }
 0x17d   :  { %v1002_v10 = vadd.f32 %v1000_v9, %v992_v5  ;;  %v1003_v11 = vadd.f32 %v1000_v9, %v993_v6  ;;  %v1004_v12 = vadd.f32 %v1000_v9, %v994_v7  ;;  %v1005_v13 = vadd.f32 %v1000_v9, %v995_v8 }
 0x17f   :  { %v1006_v14 = vmax.f32 %v1002_v10, 0.0  ;;  %v1007_v15 = vmax.f32 %v1003_v11, 0.0  ;;  %v1008_v16 = vmax.f32 %v1004_v12, 0.0  ;;  %v1009_v17 = vmax.f32 %v1005_v13, 0.0 }
 0x181   :  { %v1135_v18 = vpack.c.bf16 %v1007_v15, %v1006_v14  ;;  %v1140_v19 = vpack.c.bf16 %v1009_v17, %v1008_v16 }
 0x183   :  { %1136 = vst [vmem:[%s1696_s4] sm:$0xff] %v1135_v18   ;;  %1142 = vst [vmem:[%s1696_s4 + $0x8] sm:$0xff] %v1140_v19  }

// kernel: resnet_forward.85
= control target key start
LH: loop header
LB: loop body
LE: loop exit
PB: predicated region body
PF: predicated region fallthrough
CT: control target
= control target key end

     0   :  { %v216_v0 = vmov 0.0   ;;  %vm217_vm0 = vmmov 0   ;;  %v147_v31 = vlaneseq  ;;  %s279_s1 = inlined_call_operand.vmem [shape: bf16[128,128], index: 1, kind: input, shape index: {}]   ;;  %s280_s0 = inlined_call_operand.vmem [shape: bf16[8,128], index: 0, kind: input, shape index: {}]   ;;  %s281_s2 = inlined_call_operand.vmem [shape: f32[1,128], index: 2, kind: input, shape index: {}]   ;;  %s282_s3 = inlined_call_operand.vmem [shape: f32[1,128], index: 3, kind: input, shape index: {}]   ;;  %s283_s4 = inlined_call_operand.vmem [shape: bf16[8,128], index: 4, kind: output, shape index: {}]  }
   0x1   :  { %184 = vmatprep.subr.bf16.mxu0 %v216_v0  ;;  %v206_v1 = vld [vmem:[%s279_s1] sm:$0xff]   ;;  %200 = vmatprep.mubr.msk.bf16.mxu0 %vm217_vm0, %v216_v0  ;;  %v207_v2 = vld [vmem:[%s279_s1 + $0x8] sm:$0xff]   ;;  %v208_v3 = vld [vmem:[%s279_s1 + $0x10] sm:$0xff]  }
   0x2   :  { %185 = vmatpush3.bf16.msra.mxu0 %v206_v1  ;;  %v209_v4 = vld [vmem:[%s279_s1 + $0x18] sm:$0xff]   ;;  %v210_v5 = vld [vmem:[%s279_s1 + $0x20] sm:$0xff]   ;;  %v211_v6 = vld [vmem:[%s279_s1 + $0x28] sm:$0xff]   ;;  %v148_v32 = vshrl.u32 %v147_v31, 7 }
   0x3   :  { %186 = vmatprep.subr.bf16.mxu0 %v216_v0  ;;  %v212_v7 = vld [vmem:[%s279_s1 + $0x30] sm:$0xff]   ;;  %v213_v8 = vld [vmem:[%s279_s1 + $0x38] sm:$0xff]   ;;  %v18_v9 = vld [vmem:[%s280_s0] sm:$0xf] }
   0x4   :  { %v139_v33 = vld [vmem:[%s281_s2] sm:$0x1]  ;;  %v149_v34 = vsub.s32 0, %v148_v32 }
   0x5   :  { %v143_v37 = vld [vmem:[%s282_s3] sm:$0x1] }
   0x6   :  { %187 = vmatpush3.bf16.msra.mxu0 %v207_v2 }
   0x7   :  { %188 = vmatprep.subr.bf16.mxu0 %v216_v0 }
   0xa   :  { %189 = vmatpush3.bf16.msra.mxu0 %v208_v3 }
   0xb   :  { %190 = vmatprep.subr.bf16.mxu0 %v216_v0 }
   0xe   :  { %191 = vmatpush3.bf16.msra.mxu0 %v209_v4 }
   0xf   :  { %192 = vmatprep.subr.bf16.mxu0 %v216_v0 }
  0x12   :  { %193 = vmatpush3.bf16.msra.mxu0 %v210_v5 }
  0x13   :  { %194 = vmatprep.subr.bf16.mxu0 %v216_v0 }
  0x16   :  { %195 = vmatpush3.bf16.msra.mxu0 %v211_v6 }
  0x17   :  { %196 = vmatprep.subr.bf16.mxu0 %v216_v0 }
  0x1a   :  { %197 = vmatpush3.bf16.msra.mxu0 %v212_v7 }
  0x1b   :  { %198 = vmatprep.subr.bf16.mxu0 %v216_v0 }
  0x1e   :  { %199 = vmatpush3.bf16.msra.mxu0 %v213_v8 }
  0x21   :  { %201 = vmatmul.mubr.bf16.vlgmr.msra.gmra.mrb[0].mxu0 %v18_v9 }
  0xf4   :  { %v117_v10 = vpop.f32.mrb[0].mxu0 }
  0xf5   :  { %v123_v11 = vrot.slane %v117_v10, 4  ;;  %v202_v12 = vpop.f32.mrb[1].mxu0 }
  0xf6   :  { %v120_v13 = vpop.f32.mrb[2].mxu0 }
  0xf7   :  { %v124_v14 = vadd.f32 %v123_v11, %v117_v10  ;;  %v203_v15 = vpop.f32.mrb[3].mxu0 }
  0xf9   :  { %v125_v16 = vrot.slane %v124_v14, 2 }
  0xfb   :  { %v126_v17 = vadd.f32 %v125_v16, %v124_v14 }
  0xfd   :  { %v127_v18 = vrot.slane %v126_v17, 1 }
  0xff   :  { %v128_v19 = vadd.f32 %v127_v18, %v126_v17 }
 0x101   :  { %v129_v20 = vmul.f32 0.125, %v128_v19 }
 0x103   :  { %v130_v21 = vsub.f32 %v117_v10, %v129_v20 }
 0x105   :  { %v131_v22 = vmul.f32 %v130_v21, %v130_v21 }
 0x107   :  { %v132_v23 = vrot.slane %v131_v22, 4 }
 0x109   :  { %v133_v24 = vadd.f32 %v132_v23, %v131_v22 }
 0x10b   :  { %v134_v25 = vrot.slane %v133_v24, 2 }
 0x10d   :  { %v135_v26 = vadd.f32 %v134_v25, %v133_v24 }
 0x10f   :  { %v136_v27 = vrot.slane %v135_v26, 1 }
 0x111   :  { %v137_v28 = vadd.f32 %v136_v27, %v135_v26 }
 0x113   :  { %v138_v29 = vmul.f32 0.125, %v137_v28 }
 0x115   :  { %v140_v30 = vadd.f32 1e-05, %v138_v29 }
 0x117   :  { %214 = vrsqrt.f32 %v140_v30 }
 0x121   :  { %v215_v35 = vpop.eup %214 }
 0x122   :  { %v142_v36 = vmul.f32 %v215_v35, %v139_v33 }
 0x124   :  { %v144_v38 = vmul.f32 %v142_v36, %v129_v20  ;;  %v150_v39 = vrot.slane %v142_v36, %v149_v34 }
 0x126   :  { %v145_v40 = vsub.f32 %v143_v37, %v144_v38  ;;  %v152_v41 = vmul.f32 %v150_v39, %v117_v10 }
 0x128   :  { %v157_v42 = vrot.slane %v145_v40, %v149_v34 }
 0x12a   :  { %v159_v43 = vadd.f32 %v157_v42, %v152_v41 }
 0x12c   :  { %v160_v44 = vmax.f32 %v159_v43, 0.0 }
 0x12e   :  { %v161_v45 = vpack.c.bf16 %v160_v44, %v160_v44 }
 0x130   :  { %162 = vst [vmem:[%s283_s4] sm:$0xf] %v161_v45 }

// kernel: resnet_forward.84
= control target key start
LH: loop header
LB: loop body
LE: loop exit
PB: predicated region body
PF: predicated region fallthrough
CT: control target
= control target key end

     0   :  { %v222_v0 = vmov 0.0   ;;  %vm223_vm0 = vmmov 0   ;;  %v150_v31 = vlaneseq  ;;  %s293_s1 = inlined_call_operand.vmem [shape: bf16[128,128], index: 1, kind: input, shape index: {}]   ;;  %s294_s0 = inlined_call_operand.vmem [shape: bf16[8,128], index: 0, kind: input, shape index: {}]   ;;  %s295_s2 = inlined_call_operand.vmem [shape: f32[1,128], index: 2, kind: input, shape index: {}]   ;;  %s296_s3 = inlined_call_operand.vmem [shape: f32[1,128], index: 3, kind: input, shape index: {}]   ;;  %s297_s4 = inlined_call_operand.vmem [shape: bf16[8,128], index: 4, kind: input, shape index: {}]   ;;  %s298_s5 = inlined_call_operand.vmem [shape: bf16[8,128], index: 5, kind: output, shape index: {}]  }
   0x1   :  { %190 = vmatprep.subr.bf16.mxu0 %v222_v0  ;;  %v212_v1 = vld [vmem:[%s293_s1] sm:$0xff]   ;;  %206 = vmatprep.mubr.msk.bf16.mxu0 %vm223_vm0, %v222_v0  ;;  %v213_v2 = vld [vmem:[%s293_s1 + $0x8] sm:$0xff]   ;;  %v214_v3 = vld [vmem:[%s293_s1 + $0x10] sm:$0xff]  }
   0x2   :  { %191 = vmatpush3.bf16.msra.mxu0 %v212_v1  ;;  %v215_v4 = vld [vmem:[%s293_s1 + $0x18] sm:$0xff]   ;;  %v216_v5 = vld [vmem:[%s293_s1 + $0x20] sm:$0xff]   ;;  %v217_v6 = vld [vmem:[%s293_s1 + $0x28] sm:$0xff]   ;;  %v151_v32 = vshrl.u32 %v150_v31, 7 }
   0x3   :  { %192 = vmatprep.subr.bf16.mxu0 %v222_v0  ;;  %v218_v7 = vld [vmem:[%s293_s1 + $0x30] sm:$0xff]   ;;  %v219_v8 = vld [vmem:[%s293_s1 + $0x38] sm:$0xff]   ;;  %v21_v9 = vld [vmem:[%s294_s0] sm:$0xf] }
   0x4   :  { %v142_v33 = vld [vmem:[%s295_s2] sm:$0x1]  ;;  %v152_v34 = vsub.s32 0, %v151_v32 }
   0x5   :  { %v146_v37 = vld [vmem:[%s296_s3] sm:$0x1] }
   0x6   :  { %193 = vmatpush3.bf16.msra.mxu0 %v213_v2  ;;  %v163_v40 = vld [vmem:[%s297_s4] sm:$0xf] }
   0x7   :  { %194 = vmatprep.subr.bf16.mxu0 %v222_v0  ;;  %v164_v44 = vunpack.c.l.bf16 %v163_v40 }
   0xa   :  { %195 = vmatpush3.bf16.msra.mxu0 %v214_v3 }
   0xb   :  { %196 = vmatprep.subr.bf16.mxu0 %v222_v0 }
   0xe   :  { %197 = vmatpush3.bf16.msra.mxu0 %v215_v4 }
   0xf   :  { %198 = vmatprep.subr.bf16.mxu0 %v222_v0 }
  0x12   :  { %199 = vmatpush3.bf16.msra.mxu0 %v216_v5 }
  0x13   :  { %200 = vmatprep.subr.bf16.mxu0 %v222_v0 }
  0x16   :  { %201 = vmatpush3.bf16.msra.mxu0 %v217_v6 }
  0x17   :  { %202 = vmatprep.subr.bf16.mxu0 %v222_v0 }
  0x1a   :  { %203 = vmatpush3.bf16.msra.mxu0 %v218_v7 }
  0x1b   :  { %204 = vmatprep.subr.bf16.mxu0 %v222_v0 }
  0x1e   :  { %205 = vmatpush3.bf16.msra.mxu0 %v219_v8 }
  0x21   :  { %207 = vmatmul.mubr.bf16.vlgmr.msra.gmra.mrb[0].mxu0 %v21_v9 }
  0xf4   :  { %v120_v10 = vpop.f32.mrb[0].mxu0 }
  0xf5   :  { %v126_v11 = vrot.slane %v120_v10, 4  ;;  %v208_v12 = vpop.f32.mrb[1].mxu0 }
  0xf6   :  { %v123_v13 = vpop.f32.mrb[2].mxu0 }
  0xf7   :  { %v127_v14 = vadd.f32 %v126_v11, %v120_v10  ;;  %v209_v15 = vpop.f32.mrb[3].mxu0 }
  0xf9   :  { %v128_v16 = vrot.slane %v127_v14, 2 }
  0xfb   :  { %v129_v17 = vadd.f32 %v128_v16, %v127_v14 }
  0xfd   :  { %v130_v18 = vrot.slane %v129_v17, 1 }
  0xff   :  { %v131_v19 = vadd.f32 %v130_v18, %v129_v17 }
 0x101   :  { %v132_v20 = vmul.f32 0.125, %v131_v19 }
 0x103   :  { %v133_v21 = vsub.f32 %v120_v10, %v132_v20 }
 0x105   :  { %v134_v22 = vmul.f32 %v133_v21, %v133_v21 }
 0x107   :  { %v135_v23 = vrot.slane %v134_v22, 4 }
 0x109   :  { %v136_v24 = vadd.f32 %v135_v23, %v134_v22 }
 0x10b   :  { %v137_v25 = vrot.slane %v136_v24, 2 }
 0x10d   :  { %v138_v26 = vadd.f32 %v137_v25, %v136_v24 }
 0x10f   :  { %v139_v27 = vrot.slane %v138_v26, 1 }
 0x111   :  { %v140_v28 = vadd.f32 %v139_v27, %v138_v26 }
 0x113   :  { %v141_v29 = vmul.f32 0.125, %v140_v28 }
 0x115   :  { %v143_v30 = vadd.f32 1e-05, %v141_v29 }
 0x117   :  { %220 = vrsqrt.f32 %v143_v30 }
 0x121   :  { %v221_v35 = vpop.eup %220 }
 0x122   :  { %v145_v36 = vmul.f32 %v221_v35, %v142_v33 }
 0x124   :  { %v147_v38 = vmul.f32 %v145_v36, %v132_v20  ;;  %v153_v39 = vrot.slane %v145_v36, %v152_v34 }
 0x126   :  { %v148_v41 = vsub.f32 %v146_v37, %v147_v38  ;;  %v155_v42 = vmul.f32 %v153_v39, %v120_v10 }
 0x128   :  { %v160_v43 = vrot.slane %v148_v41, %v152_v34 }
 0x12a   :  { %v162_v45 = vadd.f32 %v160_v43, %v155_v42 }
 0x12c   :  { %v165_v46 = vadd.f32 %v164_v44, %v162_v45 }
 0x12e   :  { %v166_v47 = vmax.f32 %v165_v46, 0.0 }
 0x130   :  { %v167_v48 = vpack.c.bf16 %v166_v47, %v166_v47 }
 0x132   :  { %168 = vst [vmem:[%s298_s5] sm:$0xf] %v167_v48 }

// kernel: resnet_forward.83
= control target key start
LH: loop header
LB: loop body
LE: loop exit
PB: predicated region body
PF: predicated region fallthrough
CT: control target
= control target key end

     0   :  { %v215_v0 = vmov 0.0   ;;  %vm216_vm0 = vmmov 0   ;;  %v147_v31 = vlaneseq  ;;  %s278_s1 = inlined_call_operand.vmem [shape: bf16[128,128], index: 1, kind: input, shape index: {}]   ;;  %s279_s0 = inlined_call_operand.vmem [shape: bf16[8,128], index: 0, kind: input, shape index: {}]   ;;  %s280_s2 = inlined_call_operand.vmem [shape: f32[1,128], index: 2, kind: input, shape index: {}]   ;;  %s281_s3 = inlined_call_operand.vmem [shape: f32[1,128], index: 3, kind: input, shape index: {}]   ;;  %s282_s4 = inlined_call_operand.vmem [shape: bf16[8,128], index: 4, kind: output, shape index: {}]  }
   0x1   :  { %183 = vmatprep.subr.bf16.mxu0 %v215_v0  ;;  %v205_v1 = vld [vmem:[%s278_s1] sm:$0xff]   ;;  %199 = vmatprep.mubr.msk.bf16.mxu0 %vm216_vm0, %v215_v0  ;;  %v206_v2 = vld [vmem:[%s278_s1 + $0x8] sm:$0xff]   ;;  %v207_v3 = vld [vmem:[%s278_s1 + $0x10] sm:$0xff]  }
   0x2   :  { %184 = vmatpush3.bf16.msra.mxu0 %v205_v1  ;;  %v208_v4 = vld [vmem:[%s278_s1 + $0x18] sm:$0xff]   ;;  %v209_v5 = vld [vmem:[%s278_s1 + $0x20] sm:$0xff]   ;;  %v210_v6 = vld [vmem:[%s278_s1 + $0x28] sm:$0xff]   ;;  %v148_v32 = vshrl.u32 %v147_v31, 7 }
   0x3   :  { %185 = vmatprep.subr.bf16.mxu0 %v215_v0  ;;  %v211_v7 = vld [vmem:[%s278_s1 + $0x30] sm:$0xff]   ;;  %v212_v8 = vld [vmem:[%s278_s1 + $0x38] sm:$0xff]   ;;  %v18_v9 = vld [vmem:[%s279_s0] sm:$0xf] }
   0x4   :  { %v139_v33 = vld [vmem:[%s280_s2] sm:$0x1]  ;;  %v149_v34 = vsub.s32 0, %v148_v32 }
   0x5   :  { %v143_v37 = vld [vmem:[%s281_s3] sm:$0x1] }
   0x6   :  { %186 = vmatpush3.bf16.msra.mxu0 %v206_v2 }
   0x7   :  { %187 = vmatprep.subr.bf16.mxu0 %v215_v0 }
   0xa   :  { %188 = vmatpush3.bf16.msra.mxu0 %v207_v3 }
   0xb   :  { %189 = vmatprep.subr.bf16.mxu0 %v215_v0 }
   0xe   :  { %190 = vmatpush3.bf16.msra.mxu0 %v208_v4 }
   0xf   :  { %191 = vmatprep.subr.bf16.mxu0 %v215_v0 }
  0x12   :  { %192 = vmatpush3.bf16.msra.mxu0 %v209_v5 }
  0x13   :  { %193 = vmatprep.subr.bf16.mxu0 %v215_v0 }
  0x16   :  { %194 = vmatpush3.bf16.msra.mxu0 %v210_v6 }
  0x17   :  { %195 = vmatprep.subr.bf16.mxu0 %v215_v0 }
  0x1a   :  { %196 = vmatpush3.bf16.msra.mxu0 %v211_v7 }
  0x1b   :  { %197 = vmatprep.subr.bf16.mxu0 %v215_v0 }
  0x1e   :  { %198 = vmatpush3.bf16.msra.mxu0 %v212_v8 }
  0x21   :  { %200 = vmatmul.mubr.bf16.vlgmr.msra.gmra.mrb[0].mxu0 %v18_v9 }
  0xf4   :  { %v117_v10 = vpop.f32.mrb[0].mxu0 }
  0xf5   :  { %v123_v11 = vrot.slane %v117_v10, 4  ;;  %v201_v12 = vpop.f32.mrb[1].mxu0 }
  0xf6   :  { %v120_v13 = vpop.f32.mrb[2].mxu0 }
  0xf7   :  { %v124_v14 = vadd.f32 %v123_v11, %v117_v10  ;;  %v202_v15 = vpop.f32.mrb[3].mxu0 }
  0xf9   :  { %v125_v16 = vrot.slane %v124_v14, 2 }
  0xfb   :  { %v126_v17 = vadd.f32 %v125_v16, %v124_v14 }
  0xfd   :  { %v127_v18 = vrot.slane %v126_v17, 1 }
  0xff   :  { %v128_v19 = vadd.f32 %v127_v18, %v126_v17 }
 0x101   :  { %v129_v20 = vmul.f32 0.125, %v128_v19 }
 0x103   :  { %v130_v21 = vsub.f32 %v117_v10, %v129_v20 }
 0x105   :  { %v131_v22 = vmul.f32 %v130_v21, %v130_v21 }
 0x107   :  { %v132_v23 = vrot.slane %v131_v22, 4 }
 0x109   :  { %v133_v24 = vadd.f32 %v132_v23, %v131_v22 }
 0x10b   :  { %v134_v25 = vrot.slane %v133_v24, 2 }
 0x10d   :  { %v135_v26 = vadd.f32 %v134_v25, %v133_v24 }
 0x10f   :  { %v136_v27 = vrot.slane %v135_v26, 1 }
 0x111   :  { %v137_v28 = vadd.f32 %v136_v27, %v135_v26 }
 0x113   :  { %v138_v29 = vmul.f32 0.125, %v137_v28 }
 0x115   :  { %v140_v30 = vadd.f32 1e-05, %v138_v29 }
 0x117   :  { %213 = vrsqrt.f32 %v140_v30 }
 0x121   :  { %v214_v35 = vpop.eup %213 }
 0x122   :  { %v142_v36 = vmul.f32 %v214_v35, %v139_v33 }
 0x124   :  { %v144_v38 = vmul.f32 %v142_v36, %v129_v20  ;;  %v150_v39 = vrot.slane %v142_v36, %v149_v34 }
 0x126   :  { %v145_v40 = vsub.f32 %v143_v37, %v144_v38  ;;  %v152_v41 = vmul.f32 %v150_v39, %v117_v10 }
 0x128   :  { %v157_v42 = vrot.slane %v145_v40, %v149_v34 }
 0x12a   :  { %v159_v43 = vadd.f32 %v157_v42, %v152_v41 }
 0x12c   :  { %v160_v44 = vpack.c.bf16 %v159_v43, %v159_v43 }
 0x12e   :  { %161 = vst [vmem:[%s282_s4] sm:$0xf] %v160_v44 }

// kernel: resnet_forward.82
= control target key start
LH: loop header
LB: loop body
LE: loop exit
PB: predicated region body
PF: predicated region fallthrough
CT: control target
= control target key end

     0   :  { %vm1159_vm0 = vmmov 0   ;;  %s1425_s1 = inlined_call_operand.vmem [shape: bf16[1152,128], index: 1, kind: input, shape index: {}]   ;;  %s1426_s0 = inlined_call_operand.vmem [shape: bf16[8,1152], index: 0, kind: input, shape index: {}]   ;;  %s1427_s2 = inlined_call_operand.vmem [shape: f32[1,128], index: 2, kind: input, shape index: {}]   ;;  %s1428_s3 = inlined_call_operand.vmem [shape: f32[1,128], index: 3, kind: input, shape index: {}]   ;;  %s1429_s4 = inlined_call_operand.vmem [shape: bf16[8,128], index: 4, kind: output, shape index: {}]  }
   0x1   :  { %v1075_v0 = vld [vmem:[%s1425_s1 + $0x40] sm:$0xff]   ;;  %v1079_v4 = vld [vmem:[%s1425_s1 + $0x48] sm:$0xff]   ;;  %v1083_v8 = vld [vmem:[%s1425_s1 + $0x50] sm:$0xff]  }
   0x2   :  { %v1076_v1 = vld [vmem:[%s1425_s1 + $0xc0] sm:$0xff]   ;;  %956 = vmatprep.subr.bf16.mxu0 %v1075_v0  ;;  %v1080_v5 = vld [vmem:[%s1425_s1 + $0xc8] sm:$0xff]   ;;  %v1084_v9 = vld [vmem:[%s1425_s1 + $0xd0] sm:$0xff]  }
   0x3   :  { %v1077_v2 = vld [vmem:[%s1425_s1] sm:$0xff]   ;;  %978 = vmatprep.subr.bf16.mxu1 %v1076_v1  ;;  %v1081_v6 = vld [vmem:[%s1425_s1 + $0x8] sm:$0xff]   ;;  %v1085_v10 = vld [vmem:[%s1425_s1 + $0x10] sm:$0xff]  }
   0x4   :  { %v1078_v3 = vld [vmem:[%s1425_s1 + $0x80] sm:$0xff]   ;;  %957 = vmatpush3.bf16.msra.mxu0 %v1077_v2  ;;  %v1082_v7 = vld [vmem:[%s1425_s1 + $0x88] sm:$0xff]   ;;  %v1086_v11 = vld [vmem:[%s1425_s1 + $0x90] sm:$0xff]  }
   0x5   :  { %979 = vmatpush3.bf16.msra.mxu1 %v1078_v3  ;;  %958 = vmatprep.subr.bf16.mxu0 %v1079_v4  ;;  %v1087_v12 = vld [vmem:[%s1425_s1 + $0x58] sm:$0xff]   ;;  %v1091_v16 = vld [vmem:[%s1425_s1 + $0x60] sm:$0xff]   ;;  %v1095_v20 = vld [vmem:[%s1425_s1 + $0x68] sm:$0xff]  }
   0x6   :  { %980 = vmatprep.subr.bf16.mxu1 %v1080_v5  ;;  %v1088_v13 = vld [vmem:[%s1425_s1 + $0xd8] sm:$0xff]   ;;  %v1092_v17 = vld [vmem:[%s1425_s1 + $0xe0] sm:$0xff]   ;;  %v1096_v21 = vld [vmem:[%s1425_s1 + $0xe8] sm:$0xff]  }
   0x7   :  { %v1089_v14 = vld [vmem:[%s1425_s1 + $0x18] sm:$0xff]   ;;  %v1093_v18 = vld [vmem:[%s1425_s1 + $0x20] sm:$0xff]   ;;  %v1097_v22 = vld [vmem:[%s1425_s1 + $0x28] sm:$0xff]  }
   0x8   :  { %959 = vmatpush3.bf16.msra.mxu0 %v1081_v6  ;;  %v1090_v15 = vld [vmem:[%s1425_s1 + $0x98] sm:$0xff]   ;;  %v1094_v19 = vld [vmem:[%s1425_s1 + $0xa0] sm:$0xff]   ;;  %v1098_v23 = vld [vmem:[%s1425_s1 + $0xa8] sm:$0xff]  }
   0x9   :  { %981 = vmatpush3.bf16.msra.mxu1 %v1082_v7  ;;  %960 = vmatprep.subr.bf16.mxu0 %v1083_v8  ;;  %v1099_v24 = vld [vmem:[%s1425_s1 + $0x70] sm:$0xff]   ;;  %v1103_v28 = vld [vmem:[%s1425_s1 + $0x78] sm:$0xff]   ;;  %v18_v32 = vld [vmem:[%s1426_s0] sm:$0xff] }
   0xa   :  { %982 = vmatprep.subr.bf16.mxu1 %v1084_v9  ;;  %v1100_v25 = vld [vmem:[%s1425_s1 + $0xf0] sm:$0xff]   ;;  %v1104_v29 = vld [vmem:[%s1425_s1 + $0xf8] sm:$0xff]   ;;  %v19_v33 = vld [vmem:[%s1426_s0 + $0x8] sm:$0xff]  ;;  %v875_v34 = vcombine.low %v18_v32, %v18_v32  ;;  %v876_v35 = vcombine.high %v18_v32, %v18_v32 }
   0xb   :  { %v1101_v26 = vld [vmem:[%s1425_s1 + $0x30] sm:$0xff]   ;;  %v1105_v30 = vld [vmem:[%s1425_s1 + $0x38] sm:$0xff]   ;;  %v877_v36 = vcombine.low %v19_v33, %v19_v33  ;;  %v878_v37 = vcombine.high %v19_v33, %v19_v33  ;;  %v1111_v38 = vld [vmem:[%s1425_s1 + $0x140] sm:$0xff]  }
   0xc   :  { %961 = vmatpush3.bf16.msra.mxu0 %v1085_v10  ;;  %v1102_v27 = vld [vmem:[%s1425_s1 + $0xb0] sm:$0xff]   ;;  %v1106_v31 = vld [vmem:[%s1425_s1 + $0xb8] sm:$0xff]   ;;  %v1112_v39 = vld [vmem:[%s1425_s1 + $0x100] sm:$0xff]   ;;  %663 = vmatprep.mubr.bf16.mxu0 %v876_v35 }
   0xd   :  { %983 = vmatpush3.bf16.msra.mxu1 %v1086_v11  ;;  %962 = vmatprep.subr.bf16.mxu0 %v1087_v12  ;;  %v1113_v40 = vld [vmem:[%s1425_s1 + $0x1c0] sm:$0xff]   ;;  %v1115_v42 = vld [vmem:[%s1425_s1 + $0x148] sm:$0xff]   ;;  %v1119_v46 = vld [vmem:[%s1425_s1 + $0x150] sm:$0xff]  }
   0xe   :  { %984 = vmatprep.subr.bf16.mxu1 %v1088_v13  ;;  %703 = vmatprep.mubr.bf16.mxu1 %v878_v37  ;;  %v1114_v41 = vld [vmem:[%s1425_s1 + $0x180] sm:$0xff]   ;;  %v1116_v43 = vld [vmem:[%s1425_s1 + $0x108] sm:$0xff]   ;;  %v1120_v47 = vld [vmem:[%s1425_s1 + $0x110] sm:$0xff]   ;;  %v1158_v13 = vmov 0.0  }
   0xf   :  { %v1117_v44 = vld [vmem:[%s1425_s1 + $0x1c8] sm:$0xff]   ;;  %v1121_v48 = vld [vmem:[%s1425_s1 + $0x1d0] sm:$0xff]   ;;  %v1123_v50 = vld [vmem:[%s1425_s1 + $0x158] sm:$0xff]  }
  0x10   :  { %963 = vmatpush3.bf16.msra.mxu0 %v1089_v14  ;;  %v1118_v45 = vld [vmem:[%s1425_s1 + $0x188] sm:$0xff]   ;;  %v1122_v49 = vld [vmem:[%s1425_s1 + $0x190] sm:$0xff]   ;;  %v1124_v51 = vld [vmem:[%s1425_s1 + $0x118] sm:$0xff]  }
  0x11   :  { %985 = vmatpush3.bf16.msra.mxu1 %v1090_v15  ;;  %964 = vmatprep.subr.bf16.mxu0 %v1091_v16  ;;  %v1125_v52 = vld [vmem:[%s1425_s1 + $0x1d8] sm:$0xff]   ;;  %v1127_v54 = vld [vmem:[%s1425_s1 + $0x160] sm:$0xff]   ;;  %v1131_v58 = vld [vmem:[%s1425_s1 + $0x168] sm:$0xff]  }
  0x12   :  { %986 = vmatprep.subr.bf16.mxu1 %v1092_v17  ;;  %v1126_v53 = vld [vmem:[%s1425_s1 + $0x198] sm:$0xff]   ;;  %v1128_v55 = vld [vmem:[%s1425_s1 + $0x120] sm:$0xff]   ;;  %v1132_v59 = vld [vmem:[%s1425_s1 + $0x128] sm:$0xff]  }
  0x13   :  { %v1129_v56 = vld [vmem:[%s1425_s1 + $0x1e0] sm:$0xff]   ;;  %v1133_v60 = vld [vmem:[%s1425_s1 + $0x1e8] sm:$0xff]   ;;  %v1135_v62 = vld [vmem:[%s1425_s1 + $0x170] sm:$0xff]  }
  0x14   :  { %965 = vmatpush3.bf16.msra.mxu0 %v1093_v18  ;;  %v1130_v57 = vld [vmem:[%s1425_s1 + $0x1a0] sm:$0xff]   ;;  %v1134_v61 = vld [vmem:[%s1425_s1 + $0x1a8] sm:$0xff]   ;;  %v1136_v63 = vld [vmem:[%s1425_s1 + $0x130] sm:$0xff]  }
  0x15   :  { %987 = vmatpush3.bf16.msra.mxu1 %v1094_v19  ;;  %966 = vmatprep.subr.bf16.mxu0 %v1095_v20  ;;  %v1137_v0 = vld [vmem:[%s1425_s1 + $0x1f0] sm:$0xff]   ;;  %v1139_v2 = vld [vmem:[%s1425_s1 + $0x178] sm:$0xff]   ;;  %v1147_v12 = vld [vmem:[%s1425_s1 + $0x200] sm:$0xff]  }
  0x16   :  { %988 = vmatprep.subr.bf16.mxu1 %v1096_v21  ;;  %v1138_v1 = vld [vmem:[%s1425_s1 + $0x1b0] sm:$0xff]   ;;  %v1140_v3 = vld [vmem:[%s1425_s1 + $0x138] sm:$0xff]   ;;  %v1148_v14 = vld [vmem:[%s1425_s1 + $0x208] sm:$0xff]  }
  0x17   :  { %v1141_v4 = vld [vmem:[%s1425_s1 + $0x1f8] sm:$0xff]   ;;  %v20_v5 = vld [vmem:[%s1426_s0 + $0x10] sm:$0xff]  ;;  %v1151_v17 = vld [vmem:[%s1425_s1 + $0x220] sm:$0xff]  }
  0x18   :  { %967 = vmatpush3.bf16.msra.mxu0 %v1097_v22  ;;  %v880_v6 = vcombine.high %v20_v5, %v20_v5  ;;  %v1144_v7 = vld [vmem:[%s1425_s1 + $0x1b8] sm:$0xff]   ;;  %v879_v8 = vcombine.low %v20_v5, %v20_v5  ;;  %v1149_v15 = vld [vmem:[%s1425_s1 + $0x210] sm:$0xff]   ;;  %v1152_v18 = vld [vmem:[%s1425_s1 + $0x228] sm:$0xff]  }
  0x19   :  { %989 = vmatpush3.bf16.msra.mxu1 %v1098_v23  ;;  %968 = vmatprep.subr.bf16.mxu0 %v1099_v24  ;;  %v21_v9 = vld [vmem:[%s1426_s0 + $0x18] sm:$0xff]  ;;  %v1153_v19 = vld [vmem:[%s1425_s1 + $0x230] sm:$0xff]   ;;  %v1155_v21 = vld [vmem:[%s1426_s0 + $0x20] ss:$0 sps:$4 sm:$0xff]  }
  0x1a   :  { %990 = vmatprep.subr.bf16.mxu1 %v1100_v25  ;;  %v881_v10 = vcombine.low %v21_v9, %v21_v9  ;;  %v882_v11 = vcombine.high %v21_v9, %v21_v9  ;;  %v1150_v16 = vld [vmem:[%s1425_s1 + $0x218] sm:$0xff]   ;;  %v847_v5 = vld [vmem:[%s1427_s2] sm:$0x1] }
  0x1b   :  { %v1154_v20 = vld [vmem:[%s1425_s1 + $0x238] sm:$0xff]   ;;  %v851_v9 = vld [vmem:[%s1428_s3] sm:$0x1] }
  0x1c   :  { %969 = vmatpush3.bf16.msra.mxu0 %v1101_v26 }
  0x1d   :  { %991 = vmatpush3.bf16.msra.mxu1 %v1102_v27  ;;  %970 = vmatprep.subr.bf16.mxu0 %v1103_v28 }
  0x1e   :  { %992 = vmatprep.subr.bf16.mxu1 %v1104_v29 }
  0x20   :  { %971 = vmatpush3.bf16.msra.mxu0 %v1105_v30 }
  0x21   :  { %993 = vmatpush3.bf16.msra.mxu1 %v1106_v31  ;;  %1000 = vmatprep.subr.bf16.mxu0 %v1111_v38 }
  0x22   :  { %1022 = vmatprep.subr.bf16.mxu1 %v1113_v40 }
  0x23   :  { %664 = vmatmul.mubr.bf16.vlgmr.msra.gmra.mrb[0].mxu0 %v875_v34 }
  0x24   :  { %704 = vmatmul.mubr.bf16.vlgmr.msra.gmra.mrb[0].mxu1 %v877_v36  ;;  %1001 = vmatpush3.bf16.msra.mxu0 %v1112_v39 }
  0x25   :  { %1023 = vmatpush3.bf16.msra.mxu1 %v1114_v41  ;;  %1002 = vmatprep.subr.bf16.mxu0 %v1115_v42 }
  0x26   :  { %1024 = vmatprep.subr.bf16.mxu1 %v1117_v44  ;;  %743 = vmatprep.mubr.bf16.mxu0 %v880_v6 }
  0x27   :  { %783 = vmatprep.mubr.bf16.mxu1 %v882_v11 }
  0x28   :  { %1003 = vmatpush3.bf16.msra.mxu0 %v1116_v43 }
  0x29   :  { %1025 = vmatpush3.bf16.msra.mxu1 %v1118_v45  ;;  %1004 = vmatprep.subr.bf16.mxu0 %v1119_v46 }
  0x2a   :  { %1026 = vmatprep.subr.bf16.mxu1 %v1121_v48 }
  0x2c   :  { %1005 = vmatpush3.bf16.msra.mxu0 %v1120_v47 }
  0x2d   :  { %1027 = vmatpush3.bf16.msra.mxu1 %v1122_v49  ;;  %1006 = vmatprep.subr.bf16.mxu0 %v1123_v50 }
  0x2e   :  { %1028 = vmatprep.subr.bf16.mxu1 %v1125_v52 }
  0x30   :  { %1007 = vmatpush3.bf16.msra.mxu0 %v1124_v51 }
  0x31   :  { %1029 = vmatpush3.bf16.msra.mxu1 %v1126_v53  ;;  %1008 = vmatprep.subr.bf16.mxu0 %v1127_v54 }
  0x32   :  { %1030 = vmatprep.subr.bf16.mxu1 %v1129_v56 }
  0x34   :  { %1009 = vmatpush3.bf16.msra.mxu0 %v1128_v55 }
  0x35   :  { %1031 = vmatpush3.bf16.msra.mxu1 %v1130_v57  ;;  %1010 = vmatprep.subr.bf16.mxu0 %v1131_v58 }
  0x36   :  { %1032 = vmatprep.subr.bf16.mxu1 %v1133_v60 }
  0x38   :  { %1011 = vmatpush3.bf16.msra.mxu0 %v1132_v59 }
  0x39   :  { %1033 = vmatpush3.bf16.msra.mxu1 %v1134_v61  ;;  %1012 = vmatprep.subr.bf16.mxu0 %v1135_v62 }
  0x3a   :  { %1034 = vmatprep.subr.bf16.mxu1 %v1137_v0 }
  0x3c   :  { %1013 = vmatpush3.bf16.msra.mxu0 %v1136_v63 }
  0x3d   :  { %1035 = vmatpush3.bf16.msra.mxu1 %v1138_v1  ;;  %1014 = vmatprep.subr.bf16.mxu0 %v1139_v2 }
  0x3e   :  { %1036 = vmatprep.subr.bf16.mxu1 %v1141_v4 }
  0x40   :  { %1015 = vmatpush3.bf16.msra.mxu0 %v1140_v3  ;;  %v855_v3 = vlaneseq }
  0x41   :  { %1037 = vmatpush3.bf16.msra.mxu1 %v1144_v7  ;;  %1053 = vmatprep.subr.bf16.mxu0 %v1158_v13 }
  0x42   :  { %v856_v4 = vshrl.u32 %v855_v3, 7 }
  0x43   :  { %744 = vmatmul.mubr.bf16.vlgmr.msra.gmra.mrb[4].mxu0 %v879_v8 }
  0x44   :  { %1054 = vmatpush3.bf16.msra.mxu0 %v1147_v12  ;;  %784 = vmatmul.mubr.bf16.vlgmr.msra.gmra.mrb[4].mxu1 %v881_v10  ;;  %v857_v6 = vsub.s32 0, %v856_v4 }
  0x45   :  { %1055 = vmatprep.subr.bf16.mxu0 %v1158_v13  ;;  %1069 = vmatprep.mubr.msk.bf16.mxu0 %vm1159_vm0, %v1158_v13 }
  0x48   :  { %1056 = vmatpush3.bf16.msra.mxu0 %v1148_v14 }
  0x49   :  { %1057 = vmatprep.subr.bf16.mxu0 %v1158_v13 }
  0x4c   :  { %1058 = vmatpush3.bf16.msra.mxu0 %v1149_v15 }
  0x4d   :  { %1059 = vmatprep.subr.bf16.mxu0 %v1158_v13 }
  0x50   :  { %1060 = vmatpush3.bf16.msra.mxu0 %v1150_v16 }
  0x51   :  { %1061 = vmatprep.subr.bf16.mxu0 %v1158_v13 }
  0x54   :  { %1062 = vmatpush3.bf16.msra.mxu0 %v1151_v17 }
  0x55   :  { %1063 = vmatprep.subr.bf16.mxu0 %v1158_v13 }
  0x58   :  { %1064 = vmatpush3.bf16.msra.mxu0 %v1152_v18 }
  0x59   :  { %1065 = vmatprep.subr.bf16.mxu0 %v1158_v13 }
  0x5c   :  { %1066 = vmatpush3.bf16.msra.mxu0 %v1153_v19 }
  0x5d   :  { %1067 = vmatprep.subr.bf16.mxu0 %v1158_v13 }
  0x60   :  { %1068 = vmatpush3.bf16.msra.mxu0 %v1154_v20 }
  0x63   :  { %1070 = vmatmul.mubr.bf16.vlgmr.msra.gmra.mrb[8].mxu0 %v1155_v21 }
  0xf6   :  { %v972_v22 = vpop.f32.mrb[0].mxu0 }
  0xf7   :  { %v994_v23 = vpop.f32.mrb[0].mxu1  ;;  %v973_v24 = vpop.f32.mrb[1].mxu0 }
  0xf8   :  { %v995_v25 = vpop.f32.mrb[1].mxu1  ;;  %v974_v26 = vadd.f32 %v973_v24, %v972_v22  ;;  %v975_v28 = vpop.f32.mrb[2].mxu0 }
  0xf9   :  { %v996_v27 = vadd.f32 %v995_v25, %v994_v23  ;;  %v997_v29 = vpop.f32.mrb[2].mxu1  ;;  %v976_v30 = vpop.f32.mrb[3].mxu0 }
  0xfa   :  { %v998_v31 = vpop.f32.mrb[3].mxu1 }
  0xfb   :  { %v706_v32 = vadd.f32 %v996_v27, %v974_v26 }
 0x116   :  { %v1016_v33 = vpop.f32.mrb[4].mxu0 }
 0x117   :  { %v1017_v34 = vpop.f32.mrb[5].mxu0  ;;  %v1038_v35 = vpop.f32.mrb[4].mxu1 }
 0x118   :  { %v1018_v36 = vadd.f32 %v1017_v34, %v1016_v33  ;;  %v1019_v37 = vpop.f32.mrb[6].mxu0  ;;  %v1039_v38 = vpop.f32.mrb[5].mxu1 }
 0x119   :  { %v1020_v39 = vpop.f32.mrb[7].mxu0  ;;  %v1040_v40 = vadd.f32 %v1039_v38, %v1038_v35  ;;  %v1041_v41 = vpop.f32.mrb[6].mxu1 }
 0x11a   :  { %v746_v42 = vadd.f32 %v1018_v36, %v706_v32  ;;  %v1042_v43 = vpop.f32.mrb[7].mxu1 }
 0x11c   :  { %v786_v44 = vadd.f32 %v1040_v40, %v746_v42 }
 0x136   :  { %v825_v45 = vpop.f32.mrb[8].mxu0 }
 0x137   :  { %v826_v46 = vadd.f32 %v825_v45, %v786_v44  ;;  %v1071_v47 = vpop.f32.mrb[9].mxu0 }
 0x138   :  { %v828_v48 = vpop.f32.mrb[10].mxu0 }
 0x139   :  { %v831_v49 = vrot.slane %v826_v46, 4  ;;  %v1072_v50 = vpop.f32.mrb[11].mxu0 }
 0x13b   :  { %v832_v51 = vadd.f32 %v831_v49, %v826_v46 }
 0x13d   :  { %v833_v52 = vrot.slane %v832_v51, 2 }
 0x13f   :  { %v834_v53 = vadd.f32 %v833_v52, %v832_v51 }
 0x141   :  { %v835_v54 = vrot.slane %v834_v53, 1 }
 0x143   :  { %v836_v55 = vadd.f32 %v835_v54, %v834_v53 }
 0x145   :  { %v837_v56 = vmul.f32 0.125, %v836_v55 }
 0x147   :  { %v838_v57 = vsub.f32 %v826_v46, %v837_v56 }
 0x149   :  { %v839_v58 = vmul.f32 %v838_v57, %v838_v57 }
 0x14b   :  { %v840_v59 = vrot.slane %v839_v58, 4 }
 0x14d   :  { %v841_v60 = vadd.f32 %v840_v59, %v839_v58 }
 0x14f   :  { %v842_v61 = vrot.slane %v841_v60, 2 }
 0x151   :  { %v843_v62 = vadd.f32 %v842_v61, %v841_v60 }
 0x153   :  { %v844_v63 = vrot.slane %v843_v62, 1 }
 0x155   :  { %v845_v0 = vadd.f32 %v844_v63, %v843_v62 }
 0x157   :  { %v846_v1 = vmul.f32 0.125, %v845_v0 }
 0x159   :  { %v848_v2 = vadd.f32 1e-05, %v846_v1 }
 0x15b   :  { %1156 = vrsqrt.f32 %v848_v2 }
 0x165   :  { %v1157_v7 = vpop.eup %1156 }
 0x166   :  { %v850_v8 = vmul.f32 %v1157_v7, %v847_v5 }
 0x168   :  { %v852_v10 = vmul.f32 %v850_v8, %v837_v56  ;;  %v858_v11 = vrot.slane %v850_v8, %v857_v6 }
 0x16a   :  { %v853_v12 = vsub.f32 %v851_v9, %v852_v10  ;;  %v860_v13 = vmul.f32 %v858_v11, %v826_v46 }
 0x16c   :  { %v865_v14 = vrot.slane %v853_v12, %v857_v6 }
 0x16e   :  { %v867_v15 = vadd.f32 %v865_v14, %v860_v13 }
 0x170   :  { %v868_v16 = vmax.f32 %v867_v15, 0.0 }
 0x172   :  { %v869_v17 = vpack.c.bf16 %v868_v16, %v868_v16 }
 0x174   :  { %870 = vst [vmem:[%s1429_s4] sm:$0xf] %v869_v17 }

// kernel: resnet_forward.102
= control target key start
LH: loop header
LB: loop body
LE: loop exit
PB: predicated region body
PF: predicated region fallthrough
CT: control target
= control target key end

     0   :  { %s690_s15 = smov 0   ;;  %s692_s16 = smov 0   ;;  %s771_s0 = inlined_call_operand.vmem [shape: bf16[8,128], index: 0, kind: input, shape index: {}]   ;;  %s772_s1 = inlined_call_operand.vmem [shape: bf16[128,256], index: 1, kind: input, shape index: {}]   ;;  %s773_s2 = inlined_call_operand.vmem [shape: f32[1,256], index: 2, kind: input, shape index: {}]   ;;  %s774_s3 = inlined_call_operand.vmem [shape: f32[1,256], index: 3, kind: input, shape index: {}]   ;;  %s775_s4 = inlined_call_operand.vmem [shape: bf16[8,256], index: 4, kind: output, shape index: {}]  }
   0x1   :  { %s694_s17 = smov 0  }
   0x2 LB: > { %s554_s18 = sadd.s32 4294967295, %s661_s17   ;;  %s707_s19 = sadd.s32 1, %s661_s17   ;;  %s661_s17 = sphi %s694_s17, %s778_s17   ;;  %s657_s16 = sphi %s692_s16, %s777_s16   ;;  %s653_s15 = sphi %s690_s15, %s776_s15  }
   0x3   : > { %s39_s20 = ssub.s32 %s661_s17, %s707_s19  ;;  %s42_s21 = sadd.s32 1, %s657_s16 }
   0x4   : > { %p40_p0 = scmp.eq.s32.totalorder %s39_s20, 0  ;;  %p49_p1 = scmp.ne.s32.totalorder %s657_s16, %s653_s15 }
   0x5   : > { %p50_p2 = scmp.eq.s32.totalorder %s661_s17, 0  ;;  %p557_p4 = scmp.ge.s32.totalorder %s661_s17, 2 }
   0x6   : > { %s716_s22 = scalar_select %p40_p0, %s657_s16, %s42_s21  }
   0x7   : > { %p51_p3 = por %p50_p2, %p49_p1  ;;  %156 = sbr.rel (%p557_p4) target bundleno = 28 (0x1c), region = 20 }
   0xe   : > { %159 = sbr.rel (!%p51_p3) target bundleno = 28 (0x1c), region = 24  ;;  %s161_s23 = sand.u32 (%p51_p3), 1, %s657_s16  }
   0xf   : > { %s559_s24 = sshll.u32 (%p51_p3), %s661_s17, 2  ;;  %s558_s25 = sshll.u32 (%p51_p3), %s161_s23, 6 }
  0x10   : > { %s724_s28 = scalar_lea.vmem (%p51_p3), %s772_s1, %s559_s24  ;;  %s163_s29 = scalar_lea.vmem (%p51_p3), [#allocation2], %s558_s25 }
  0x11   : > { %v181_v0 = vld [vmem:[%s724_s28] sm:$0xf] (%p51_p3)  ;;  %v183_v1 = vld [vmem:[%s724_s28 + $0x8] sm:$0xf] (%p51_p3)  ;;  %v185_v2 = vld [vmem:[%s724_s28 + $0x10] sm:$0xf] (%p51_p3) }
  0x12   : > { %182 = vst [vmem:[%s163_s29] sm:$0xf] (%p51_p3), %v181_v0  ;;  %184 = vst [vmem:[%s163_s29 + $0x4] sm:$0xf] (%p51_p3), %v183_v1  ;;  %v187_v3 = vld [vmem:[%s724_s28 + $0x18] sm:$0xf] (%p51_p3) }
  0x13   : > { %v189_v4 = vld [vmem:[%s724_s28 + $0x20] sm:$0xf] (%p51_p3)  ;;  %186 = vst [vmem:[%s163_s29 + $0x8] sm:$0xf] (%p51_p3), %v185_v2  ;;  %188 = vst [vmem:[%s163_s29 + $0xc] sm:$0xf] (%p51_p3), %v187_v3 }
  0x14   : > { %190 = vst [vmem:[%s163_s29 + $0x10] sm:$0xf] (%p51_p3), %v189_v4  ;;  %v191_v5 = vld [vmem:[%s724_s28 + $0x28] sm:$0xf] (%p51_p3)  ;;  %v193_v6 = vld [vmem:[%s724_s28 + $0x30] sm:$0xf] (%p51_p3) }
  0x15   : > { %v195_v7 = vld [vmem:[%s724_s28 + $0x38] sm:$0xf]  ;;  %192 = vst [vmem:[%s163_s29 + $0x14] sm:$0xf] %v191_v5  ;;  %194 = vst [vmem:[%s163_s29 + $0x18] sm:$0xf] %v193_v6 }
  0x16   : > { %196 = vst [vmem:[%s163_s29 + $0x1c] sm:$0xf] %v195_v7  ;;  %v197_v8 = vld [vmem:[%s724_s28 + $0x40] sm:$0xf]  ;;  %v199_v9 = vld [vmem:[%s724_s28 + $0x48] sm:$0xf] }
  0x17   : > { %v201_v10 = vld [vmem:[%s724_s28 + $0x50] sm:$0xf]  ;;  %198 = vst [vmem:[%s163_s29 + $0x20] sm:$0xf] %v197_v8  ;;  %200 = vst [vmem:[%s163_s29 + $0x24] sm:$0xf] %v199_v9 }
  0x18   : > { %202 = vst [vmem:[%s163_s29 + $0x28] sm:$0xf] %v201_v10  ;;  %v203_v11 = vld [vmem:[%s724_s28 + $0x58] sm:$0xf]  ;;  %v205_v12 = vld [vmem:[%s724_s28 + $0x60] sm:$0xf] }
  0x19   : > { %v207_v13 = vld [vmem:[%s724_s28 + $0x68] sm:$0xf]  ;;  %204 = vst [vmem:[%s163_s29 + $0x2c] sm:$0xf] %v203_v11  ;;  %206 = vst [vmem:[%s163_s29 + $0x30] sm:$0xf] %v205_v12 }
  0x1a   : > { %208 = vst [vmem:[%s163_s29 + $0x34] sm:$0xf] %v207_v13  ;;  %v209_v14 = vld [vmem:[%s724_s28 + $0x70] sm:$0xf]  ;;  %v211_v15 = vld [vmem:[%s724_s28 + $0x78] sm:$0xf] }
  0x1b   : > { %210 = vst [vmem:[%s163_s29 + $0x38] sm:$0xf] %v209_v14  ;;  %212 = vst [vmem:[%s163_s29 + $0x3c] sm:$0xf] %v211_v15 }
  0x1c PF: > { %p560_p5 = scmp.ge.s32.totalorder %s661_s17, 1  ;;  %p278_p6 = scmp.lt.s32.totalorder %s661_s17, 3 }
  0x1e   : > { %p279_p7 = pnand %p560_p5, %p278_p6 }
  0x1f   : > { %s285_s30 = sand.u32 (!%p279_p7), 1, %s653_s15   ;;  %v663_v16 = vmov (!%p279_p7), 0.0   ;;  %vm664_vm0 = vmmov (!%p279_p7), 0   ;;  %v326_v25 = vld [vmem:[%s771_s0] sm:$0xf] (!%p279_p7)  ;;  %v431_v26 = vlaneseq (!%p279_p7)  ;;  %p315_p8 = scmp.lt.s32.totalorder (!%p279_p7), %s554_s18, 1 }
  0x20   : > { %282 = sbr.rel (%p279_p7) target bundleno = 340 (0x154), region = 73  ;;  %583 = vmatprep.subr.bf16.mxu0 (!%p279_p7), %v663_v16  ;;  %s561_s5 = sshll.u32 (!%p279_p7), %s285_s30, 6  ;;  %599 = vmatprep.mubr.msk.bf16.mxu0 (!%p279_p7), %vm664_vm0, %v663_v16 }
  0x21   : > { %s287_s6 = scalar_lea.vmem (!%p279_p7), [#allocation2], %s561_s5  ;;  %v432_v27 = vshrl.u32 (!%p279_p7), %v431_v26, 7 }
  0x22   : > { %v629_v17 = vld [vmem:[%s287_s6] sm:$0xff] (!%p279_p7)   ;;  %v630_v18 = vld [vmem:[%s287_s6 + $0x8] sm:$0xff] (!%p279_p7)   ;;  %v631_v19 = vld [vmem:[%s287_s6 + $0x10] sm:$0xff] (!%p279_p7)  }
  0x23   : > { %584 = vmatpush3.bf16.msra.mxu0 (!%p279_p7), %v629_v17  ;;  %v632_v20 = vld [vmem:[%s287_s6 + $0x18] sm:$0xff] (!%p279_p7)   ;;  %v633_v21 = vld [vmem:[%s287_s6 + $0x20] sm:$0xff] (!%p279_p7)   ;;  %v634_v22 = vld [vmem:[%s287_s6 + $0x28] sm:$0xff] (!%p279_p7)   ;;  %vm433_vm1 = vcmp.lt.s32.totalorder (!%p279_p7), %v432_v27, 2  ;;  %v464_v53 = vsub.s32 (!%p279_p7), 0, %v432_v27 }
  0x24   : > { %585 = vmatprep.subr.bf16.mxu0 (!%p279_p7), %v663_v16  ;;  %v635_v23 = vld [vmem:[%s287_s6 + $0x30] sm:$0xff] (!%p279_p7)   ;;  %v636_v24 = vld [vmem:[%s287_s6 + $0x38] sm:$0xff] (!%p279_p7)   ;;  %v571_v28 = vsel (!%p279_p7), %vm433_vm1, 1.0, %v663_v16 }
  0x27   : > { %586 = vmatpush3.bf16.msra.mxu0 %v630_v18  ;;  %s780_s18 = smov (!%p315_p8, %s554_s18), 1 }
  0x28   : > { %587 = vmatprep.subr.bf16.mxu0 %v663_v16  ;;  %s317_s11 = scalar_lea.vmem %s773_s2, %s780_s18  ;;  %s320_s14 = scalar_lea.vmem %s774_s3, %s780_s18 }
  0x29   : > { %v454_v52 = vld [vmem:[%s317_s11] sm:$0x1]  ;;  %s562_s15 = sshll.u32 %s780_s18, 2 }
  0x2a   : > { %v458_v56 = vld [vmem:[%s320_s14] sm:$0x1]  ;;  %s324_s21 = scalar_lea.vmem %s775_s4, %s562_s15 }
  0x2b   : > { %588 = vmatpush3.bf16.msra.mxu0 %v631_v19 }
  0x2c   : > { %589 = vmatprep.subr.bf16.mxu0 %v663_v16 }
  0x2f   : > { %590 = vmatpush3.bf16.msra.mxu0 %v632_v20 }
  0x30   : > { %591 = vmatprep.subr.bf16.mxu0 %v663_v16 }
  0x33   : > { %592 = vmatpush3.bf16.msra.mxu0 %v633_v21 }
  0x34   : > { %593 = vmatprep.subr.bf16.mxu0 %v663_v16 }
  0x37   : > { %594 = vmatpush3.bf16.msra.mxu0 %v634_v22 }
  0x38   : > { %595 = vmatprep.subr.bf16.mxu0 %v663_v16 }
  0x3b   : > { %596 = vmatpush3.bf16.msra.mxu0 %v635_v23 }
  0x3c   : > { %597 = vmatprep.subr.bf16.mxu0 %v663_v16 }
  0x3f   : > { %598 = vmatpush3.bf16.msra.mxu0 %v636_v24 }
  0x42   : > { %600 = vmatmul.mubr.bf16.vlgmr.msra.gmra.mrb[0].mxu0 %v326_v25 }
 0x115   : > { %v425_v29 = vpop.f32.mrb[0].mxu0 }
 0x116   : > { %v436_v30 = vmul.f32 %v571_v28, %v425_v29  ;;  %v601_v31 = vpop.f32.mrb[1].mxu0 }
 0x117   : > { %v428_v32 = vpop.f32.mrb[2].mxu0 }
 0x118   : > { %v437_v33 = vrot.slane %v436_v30, 4  ;;  %v602_v34 = vpop.f32.mrb[3].mxu0 }
 0x11a   : > { %v438_v35 = vadd.f32 %v437_v33, %v436_v30 }
 0x11c   : > { %v439_v36 = vrot.slane %v438_v35, 2 }
 0x11e   : > { %v440_v37 = vadd.f32 %v439_v36, %v438_v35 }
 0x120   : > { %v441_v38 = vrot.slane %v440_v37, 1 }
 0x122   : > { %v442_v39 = vadd.f32 %v441_v38, %v440_v37 }
 0x124   : > { %v443_v40 = vmul.f32 0.5, %v442_v39 }
 0x126   : > { %v444_v41 = vsub.f32 %v425_v29, %v443_v40 }
 0x128   : > { %v445_v42 = vmul.f32 %v444_v41, %v444_v41 }
 0x12a   : > { %v446_v43 = vmul.f32 %v571_v28, %v445_v42 }
 0x12c   : > { %v447_v44 = vrot.slane %v446_v43, 4 }
 0x12e   : > { %v448_v45 = vadd.f32 %v447_v44, %v446_v43 }
 0x130   : > { %v449_v46 = vrot.slane %v448_v45, 2 }
 0x132   : > { %v450_v47 = vadd.f32 %v449_v46, %v448_v45 }
 0x134   : > { %v451_v48 = vrot.slane %v450_v47, 1 }
 0x136   : > { %v452_v49 = vadd.f32 %v451_v48, %v450_v47 }
 0x138   : > { %v453_v50 = vmul.f32 0.5, %v452_v49 }
 0x13a   : > { %v455_v51 = vadd.f32 1e-05, %v453_v50 }
 0x13c   : > { %637 = vrsqrt.f32 %v455_v51 }
 0x146   : > { %v638_v54 = vpop.eup %637 }
 0x147   : > { %v457_v55 = vmul.f32 %v638_v54, %v454_v52 }
 0x149   : > { %v459_v57 = vmul.f32 %v457_v55, %v443_v40  ;;  %v465_v58 = vrot.slane %v457_v55, %v464_v53 }
 0x14b   : > { %v460_v59 = vsub.f32 %v458_v56, %v459_v57  ;;  %v467_v60 = vmul.f32 %v465_v58, %v425_v29 }
 0x14d   : > { %v472_v61 = vrot.slane %v460_v59, %v464_v53 }
 0x14f   : > { %v474_v62 = vadd.f32 %v472_v61, %v467_v60 }
 0x151   : > { %v475_v63 = vpack.c.bf16 %v474_v62, %v474_v62 }
 0x153   : > { %476 = vst [vmem:[%s324_s21] sm:$0xf] %v475_v63 }
 0x154 PF: > { %p11_p9 = scmp.ge.s32.totalorder %s707_s19, 4   ;;  %s776_s15 = smov %s657_s16 }
 0x155   : > { %s777_s16 = smov %s716_s22  ;;  %s778_s17 = smov %s707_s19 }
 0x156   :  { %13 = sbr.rel (!%p11_p9) target bundleno = 2 (0x2), region = 118 }

// kernel: resnet_forward.103
= control target key start
LH: loop header
LB: loop body
LE: loop exit
PB: predicated region body
PF: predicated region fallthrough
CT: control target
= control target key end

     0   :  { %s756_s18 = smov 0   ;;  %s758_s19 = smov 0   ;;  %s840_s0 = inlined_call_operand.vmem [shape: bf16[8,128], index: 0, kind: input, shape index: {}]   ;;  %s841_s1 = inlined_call_operand.vmem [shape: bf16[128,256], index: 1, kind: input, shape index: {}]   ;;  %s842_s2 = inlined_call_operand.vmem [shape: f32[1,256], index: 2, kind: input, shape index: {}]   ;;  %s843_s3 = inlined_call_operand.vmem [shape: f32[1,256], index: 3, kind: input, shape index: {}]   ;;  %s844_s4 = inlined_call_operand.vmem [shape: bf16[8,256], index: 4, kind: input, shape index: {}]   ;;  %s845_s5 = inlined_call_operand.vmem [shape: bf16[8,256], index: 5, kind: output, shape index: {}]  }
   0x1   :  { %s760_s20 = smov 0  }
   0x2 LB: > { %s614_s21 = sadd.s32 4294967295, %s722_s20   ;;  %s773_s22 = sadd.s32 1, %s722_s20   ;;  %s722_s20 = sphi %s760_s20, %s848_s20   ;;  %s718_s19 = sphi %s758_s19, %s847_s19   ;;  %s714_s18 = sphi %s756_s18, %s846_s18  }
   0x3   : > { %s40_s23 = ssub.s32 %s722_s20, %s773_s22  ;;  %s43_s24 = sadd.s32 1, %s718_s19 }
   0x4   : > { %p41_p0 = scmp.eq.s32.totalorder %s40_s23, 0  ;;  %p50_p1 = scmp.ne.s32.totalorder %s718_s19, %s714_s18 }
   0x5   : > { %p51_p2 = scmp.eq.s32.totalorder %s722_s20, 0  ;;  %p617_p4 = scmp.ge.s32.totalorder %s722_s20, 2 }
   0x6   : > { %s782_s25 = scalar_select %p41_p0, %s718_s19, %s43_s24  }
   0x7   : > { %p52_p3 = por %p51_p2, %p50_p1  ;;  %183 = sbr.rel (%p617_p4) target bundleno = 28 (0x1c), region = 20 }
   0xe   : > { %186 = sbr.rel (!%p52_p3) target bundleno = 28 (0x1c), region = 24  ;;  %s188_s26 = sand.u32 (%p52_p3), 1, %s718_s19  }
   0xf   : > { %s619_s27 = sshll.u32 (%p52_p3), %s722_s20, 2  ;;  %s618_s28 = sshll.u32 (%p52_p3), %s188_s26, 6 }
  0x10   : > { %s790_s6 = scalar_lea.vmem (%p52_p3), %s841_s1, %s619_s27  ;;  %s190_s7 = scalar_lea.vmem (%p52_p3), [#allocation2], %s618_s28 }
  0x11   : > { %v208_v0 = vld [vmem:[%s790_s6] sm:$0xf] (%p52_p3)  ;;  %v210_v1 = vld [vmem:[%s790_s6 + $0x8] sm:$0xf] (%p52_p3)  ;;  %v212_v2 = vld [vmem:[%s790_s6 + $0x10] sm:$0xf] (%p52_p3) }
  0x12   : > { %209 = vst [vmem:[%s190_s7] sm:$0xf] (%p52_p3), %v208_v0  ;;  %211 = vst [vmem:[%s190_s7 + $0x4] sm:$0xf] (%p52_p3), %v210_v1  ;;  %v214_v3 = vld [vmem:[%s790_s6 + $0x18] sm:$0xf] (%p52_p3) }
  0x13   : > { %v216_v4 = vld [vmem:[%s790_s6 + $0x20] sm:$0xf] (%p52_p3)  ;;  %213 = vst [vmem:[%s190_s7 + $0x8] sm:$0xf] (%p52_p3), %v212_v2  ;;  %215 = vst [vmem:[%s190_s7 + $0xc] sm:$0xf] (%p52_p3), %v214_v3 }
  0x14   : > { %217 = vst [vmem:[%s190_s7 + $0x10] sm:$0xf] (%p52_p3), %v216_v4  ;;  %v218_v5 = vld [vmem:[%s790_s6 + $0x28] sm:$0xf] (%p52_p3)  ;;  %v220_v6 = vld [vmem:[%s790_s6 + $0x30] sm:$0xf] (%p52_p3) }
  0x15   : > { %v222_v7 = vld [vmem:[%s790_s6 + $0x38] sm:$0xf]  ;;  %219 = vst [vmem:[%s190_s7 + $0x14] sm:$0xf] %v218_v5  ;;  %221 = vst [vmem:[%s190_s7 + $0x18] sm:$0xf] %v220_v6 }
  0x16   : > { %223 = vst [vmem:[%s190_s7 + $0x1c] sm:$0xf] %v222_v7  ;;  %v224_v8 = vld [vmem:[%s790_s6 + $0x40] sm:$0xf]  ;;  %v226_v9 = vld [vmem:[%s790_s6 + $0x48] sm:$0xf] }
  0x17   : > { %v228_v10 = vld [vmem:[%s790_s6 + $0x50] sm:$0xf]  ;;  %225 = vst [vmem:[%s190_s7 + $0x20] sm:$0xf] %v224_v8  ;;  %227 = vst [vmem:[%s190_s7 + $0x24] sm:$0xf] %v226_v9 }
  0x18   : > { %229 = vst [vmem:[%s190_s7 + $0x28] sm:$0xf] %v228_v10  ;;  %v230_v11 = vld [vmem:[%s790_s6 + $0x58] sm:$0xf]  ;;  %v232_v12 = vld [vmem:[%s790_s6 + $0x60] sm:$0xf] }
  0x19   : > { %v234_v13 = vld [vmem:[%s790_s6 + $0x68] sm:$0xf]  ;;  %231 = vst [vmem:[%s190_s7 + $0x2c] sm:$0xf] %v230_v11  ;;  %233 = vst [vmem:[%s190_s7 + $0x30] sm:$0xf] %v232_v12 }
  0x1a   : > { %235 = vst [vmem:[%s190_s7 + $0x34] sm:$0xf] %v234_v13  ;;  %v236_v14 = vld [vmem:[%s790_s6 + $0x70] sm:$0xf]  ;;  %v238_v15 = vld [vmem:[%s790_s6 + $0x78] sm:$0xf] }
  0x1b   : > { %237 = vst [vmem:[%s190_s7 + $0x38] sm:$0xf] %v236_v14  ;;  %239 = vst [vmem:[%s190_s7 + $0x3c] sm:$0xf] %v238_v15 }
  0x1c PF: > { %p620_p5 = scmp.ge.s32.totalorder %s722_s20, 1  ;;  %p312_p6 = scmp.lt.s32.totalorder %s722_s20, 3 }
  0x1e   : > { %p313_p7 = pnand %p620_p5, %p312_p6 }
  0x1f   : > { %s319_s8 = sand.u32 (!%p313_p7), 1, %s714_s18   ;;  %v724_v16 = vmov (!%p313_p7), 0.0   ;;  %vm725_vm0 = vmmov (!%p313_p7), 0   ;;  %v370_v25 = vld [vmem:[%s840_s0] sm:$0xf] (!%p313_p7)  ;;  %v475_v26 = vlaneseq (!%p313_p7)  ;;  %p355_p8 = scmp.lt.s32.totalorder (!%p313_p7), %s614_s21, 1 }
  0x20   : > { %316 = sbr.rel (%p313_p7) target bundleno = 344 (0x158), region = 77  ;;  %644 = vmatprep.subr.bf16.mxu0 (!%p313_p7), %v724_v16  ;;  %s621_s9 = sshll.u32 (!%p313_p7), %s319_s8, 6  ;;  %660 = vmatprep.mubr.msk.bf16.mxu0 (!%p313_p7), %vm725_vm0, %v724_v16 }
  0x21   : > { %s321_s10 = scalar_lea.vmem (!%p313_p7), [#allocation2], %s621_s9  ;;  %v476_v27 = vshrl.u32 (!%p313_p7), %v475_v26, 7 }
  0x22   : > { %v690_v17 = vld [vmem:[%s321_s10] sm:$0xff] (!%p313_p7)   ;;  %v691_v18 = vld [vmem:[%s321_s10 + $0x8] sm:$0xff] (!%p313_p7)   ;;  %v692_v19 = vld [vmem:[%s321_s10 + $0x10] sm:$0xff] (!%p313_p7)  }
  0x23   : > { %645 = vmatpush3.bf16.msra.mxu0 (!%p313_p7), %v690_v17  ;;  %v693_v20 = vld [vmem:[%s321_s10 + $0x18] sm:$0xff] (!%p313_p7)   ;;  %v694_v21 = vld [vmem:[%s321_s10 + $0x20] sm:$0xff] (!%p313_p7)   ;;  %v695_v22 = vld [vmem:[%s321_s10 + $0x28] sm:$0xff] (!%p313_p7)   ;;  %vm477_vm1 = vcmp.lt.s32.totalorder (!%p313_p7), %v476_v27, 2  ;;  %v508_v53 = vsub.s32 (!%p313_p7), 0, %v476_v27 }
  0x24   : > { %646 = vmatprep.subr.bf16.mxu0 (!%p313_p7), %v724_v16  ;;  %v696_v23 = vld [vmem:[%s321_s10 + $0x30] sm:$0xff] (!%p313_p7)   ;;  %v697_v24 = vld [vmem:[%s321_s10 + $0x38] sm:$0xff] (!%p313_p7)   ;;  %v632_v28 = vsel (!%p313_p7), %vm477_vm1, 1.0, %v724_v16 }
  0x27   : > { %647 = vmatpush3.bf16.msra.mxu0 %v691_v18  ;;  %s850_s21 = smov (!%p355_p8, %s614_s21), 1 }
  0x28   : > { %648 = vmatprep.subr.bf16.mxu0 %v724_v16  ;;  %s357_s15 = scalar_lea.vmem %s842_s2, %s850_s21  ;;  %s622_s16 = sshll.u32 %s850_s21, 2 }
  0x29   : > { %v498_v52 = vld [vmem:[%s357_s15] sm:$0x1]  ;;  %s360_s23 = scalar_lea.vmem %s843_s3, %s850_s21  ;;  %s364_s27 = scalar_lea.vmem %s844_s4, %s622_s16 }
  0x2a   : > { %v502_v56 = vld [vmem:[%s360_s23] sm:$0x1]  ;;  %s368_s28 = scalar_lea.vmem %s845_s5, %s622_s16 }
  0x2b   : > { %649 = vmatpush3.bf16.msra.mxu0 %v692_v19  ;;  %v519_v59 = vld [vmem:[%s364_s27] sm:$0xf] }
  0x2c   : > { %650 = vmatprep.subr.bf16.mxu0 %v724_v16  ;;  %v520_v63 = vunpack.c.l.bf16 %v519_v59 }
  0x2f   : > { %651 = vmatpush3.bf16.msra.mxu0 %v693_v20 }
  0x30   : > { %652 = vmatprep.subr.bf16.mxu0 %v724_v16 }
  0x33   : > { %653 = vmatpush3.bf16.msra.mxu0 %v694_v21 }
  0x34   : > { %654 = vmatprep.subr.bf16.mxu0 %v724_v16 }
  0x37   : > { %655 = vmatpush3.bf16.msra.mxu0 %v695_v22 }
  0x38   : > { %656 = vmatprep.subr.bf16.mxu0 %v724_v16 }
  0x3b   : > { %657 = vmatpush3.bf16.msra.mxu0 %v696_v23 }
  0x3c   : > { %658 = vmatprep.subr.bf16.mxu0 %v724_v16 }
  0x3f   : > { %659 = vmatpush3.bf16.msra.mxu0 %v697_v24 }
  0x42   : > { %661 = vmatmul.mubr.bf16.vlgmr.msra.gmra.mrb[0].mxu0 %v370_v25 }
 0x115   : > { %v469_v29 = vpop.f32.mrb[0].mxu0 }
 0x116   : > { %v480_v30 = vmul.f32 %v632_v28, %v469_v29  ;;  %v662_v31 = vpop.f32.mrb[1].mxu0 }
 0x117   : > { %v472_v32 = vpop.f32.mrb[2].mxu0 }
 0x118   : > { %v481_v33 = vrot.slane %v480_v30, 4  ;;  %v663_v34 = vpop.f32.mrb[3].mxu0 }
 0x11a   : > { %v482_v35 = vadd.f32 %v481_v33, %v480_v30 }
 0x11c   : > { %v483_v36 = vrot.slane %v482_v35, 2 }
 0x11e   : > { %v484_v37 = vadd.f32 %v483_v36, %v482_v35 }
 0x120   : > { %v485_v38 = vrot.slane %v484_v37, 1 }
 0x122   : > { %v486_v39 = vadd.f32 %v485_v38, %v484_v37 }
 0x124   : > { %v487_v40 = vmul.f32 0.5, %v486_v39 }
 0x126   : > { %v488_v41 = vsub.f32 %v469_v29, %v487_v40 }
 0x128   : > { %v489_v42 = vmul.f32 %v488_v41, %v488_v41 }
 0x12a   : > { %v490_v43 = vmul.f32 %v632_v28, %v489_v42 }
 0x12c   : > { %v491_v44 = vrot.slane %v490_v43, 4 }
 0x12e   : > { %v492_v45 = vadd.f32 %v491_v44, %v490_v43 }
 0x130   : > { %v493_v46 = vrot.slane %v492_v45, 2 }
 0x132   : > { %v494_v47 = vadd.f32 %v493_v46, %v492_v45 }
 0x134   : > { %v495_v48 = vrot.slane %v494_v47, 1 }
 0x136   : > { %v496_v49 = vadd.f32 %v495_v48, %v494_v47 }
 0x138   : > { %v497_v50 = vmul.f32 0.5, %v496_v49 }
 0x13a   : > { %v499_v51 = vadd.f32 1e-05, %v497_v50 }
 0x13c   : > { %698 = vrsqrt.f32 %v499_v51 }
 0x146   : > { %v699_v54 = vpop.eup %698 }
 0x147   : > { %v501_v55 = vmul.f32 %v699_v54, %v498_v52 }
 0x149   : > { %v503_v57 = vmul.f32 %v501_v55, %v487_v40  ;;  %v509_v58 = vrot.slane %v501_v55, %v508_v53 }
 0x14b   : > { %v504_v60 = vsub.f32 %v502_v56, %v503_v57  ;;  %v511_v61 = vmul.f32 %v509_v58, %v469_v29 }
 0x14d   : > { %v516_v62 = vrot.slane %v504_v60, %v508_v53 }
 0x14f   : > { %v518_v0 = vadd.f32 %v516_v62, %v511_v61 }
 0x151   : > { %v521_v1 = vadd.f32 %v520_v63, %v518_v0 }
 0x153   : > { %v522_v2 = vmax.f32 %v521_v1, 0.0 }
 0x155   : > { %v523_v3 = vpack.c.bf16 %v522_v2, %v522_v2 }
 0x157   : > { %524 = vst [vmem:[%s368_s28] sm:$0xf] %v523_v3 }
 0x158 PF: > { %p12_p9 = scmp.ge.s32.totalorder %s773_s22, 4   ;;  %s846_s18 = smov %s718_s19 }
 0x159   : > { %s847_s19 = smov %s782_s25  ;;  %s848_s20 = smov %s773_s22 }
 0x15a   :  { %14 = sbr.rel (!%p12_p9) target bundleno = 2 (0x2), region = 125 }

// kernel: resnet_forward.101
= control target key start
LH: loop header
LB: loop body
LE: loop exit
PB: predicated region body
PF: predicated region fallthrough
CT: control target
= control target key end

     0   :  { %vm1167_vm0 = vmmov 0   ;;  %s1433_s1 = inlined_call_operand.vmem [shape: bf16[1152,128], index: 1, kind: input, shape index: {}]   ;;  %s1434_s0 = inlined_call_operand.vmem [shape: bf16[8,1152], index: 0, kind: input, shape index: {}]   ;;  %s1435_s2 = inlined_call_operand.vmem [shape: f32[1,128], index: 2, kind: input, shape index: {}]   ;;  %s1436_s3 = inlined_call_operand.vmem [shape: f32[1,128], index: 3, kind: input, shape index: {}]   ;;  %s1437_s4 = inlined_call_operand.vmem [shape: bf16[8,128], index: 4, kind: output, shape index: {}]  }
   0x1   :  { %v1083_v0 = vld [vmem:[%s1433_s1 + $0x40] sm:$0xff]   ;;  %v1087_v4 = vld [vmem:[%s1433_s1 + $0x48] sm:$0xff]   ;;  %v1091_v8 = vld [vmem:[%s1433_s1 + $0x50] sm:$0xff]  }
   0x2   :  { %v1084_v1 = vld [vmem:[%s1433_s1 + $0xc0] sm:$0xff]   ;;  %964 = vmatprep.subr.bf16.mxu0 %v1083_v0  ;;  %v1088_v5 = vld [vmem:[%s1433_s1 + $0xc8] sm:$0xff]   ;;  %v1092_v9 = vld [vmem:[%s1433_s1 + $0xd0] sm:$0xff]  }
   0x3   :  { %v1085_v2 = vld [vmem:[%s1433_s1] sm:$0xff]   ;;  %986 = vmatprep.subr.bf16.mxu1 %v1084_v1  ;;  %v1089_v6 = vld [vmem:[%s1433_s1 + $0x8] sm:$0xff]   ;;  %v1093_v10 = vld [vmem:[%s1433_s1 + $0x10] sm:$0xff]  }
   0x4   :  { %v1086_v3 = vld [vmem:[%s1433_s1 + $0x80] sm:$0xff]   ;;  %965 = vmatpush3.bf16.msra.mxu0 %v1085_v2  ;;  %v1090_v7 = vld [vmem:[%s1433_s1 + $0x88] sm:$0xff]   ;;  %v1094_v11 = vld [vmem:[%s1433_s1 + $0x90] sm:$0xff]  }
   0x5   :  { %987 = vmatpush3.bf16.msra.mxu1 %v1086_v3  ;;  %966 = vmatprep.subr.bf16.mxu0 %v1087_v4  ;;  %v1095_v12 = vld [vmem:[%s1433_s1 + $0x58] sm:$0xff]   ;;  %v1099_v16 = vld [vmem:[%s1433_s1 + $0x60] sm:$0xff]   ;;  %v1103_v20 = vld [vmem:[%s1433_s1 + $0x68] sm:$0xff]  }
   0x6   :  { %988 = vmatprep.subr.bf16.mxu1 %v1088_v5  ;;  %v1096_v13 = vld [vmem:[%s1433_s1 + $0xd8] sm:$0xff]   ;;  %v1100_v17 = vld [vmem:[%s1433_s1 + $0xe0] sm:$0xff]   ;;  %v1104_v21 = vld [vmem:[%s1433_s1 + $0xe8] sm:$0xff]  }
   0x7   :  { %v1097_v14 = vld [vmem:[%s1433_s1 + $0x18] sm:$0xff]   ;;  %v1101_v18 = vld [vmem:[%s1433_s1 + $0x20] sm:$0xff]   ;;  %v1105_v22 = vld [vmem:[%s1433_s1 + $0x28] sm:$0xff]  }
   0x8   :  { %967 = vmatpush3.bf16.msra.mxu0 %v1089_v6  ;;  %v1098_v15 = vld [vmem:[%s1433_s1 + $0x98] sm:$0xff]   ;;  %v1102_v19 = vld [vmem:[%s1433_s1 + $0xa0] sm:$0xff]   ;;  %v1106_v23 = vld [vmem:[%s1433_s1 + $0xa8] sm:$0xff]  }
   0x9   :  { %989 = vmatpush3.bf16.msra.mxu1 %v1090_v7  ;;  %968 = vmatprep.subr.bf16.mxu0 %v1091_v8  ;;  %v1107_v24 = vld [vmem:[%s1433_s1 + $0x70] sm:$0xff]   ;;  %v1111_v28 = vld [vmem:[%s1433_s1 + $0x78] sm:$0xff]   ;;  %v18_v32 = vld [vmem:[%s1434_s0] sm:$0xff] }
   0xa   :  { %990 = vmatprep.subr.bf16.mxu1 %v1092_v9  ;;  %v1108_v25 = vld [vmem:[%s1433_s1 + $0xf0] sm:$0xff]   ;;  %v1112_v29 = vld [vmem:[%s1433_s1 + $0xf8] sm:$0xff]   ;;  %v19_v33 = vld [vmem:[%s1434_s0 + $0x8] sm:$0xff]  ;;  %v882_v34 = vcombine.low %v18_v32, %v18_v32  ;;  %v883_v35 = vcombine.high %v18_v32, %v18_v32 }
   0xb   :  { %v1109_v26 = vld [vmem:[%s1433_s1 + $0x30] sm:$0xff]   ;;  %v1113_v30 = vld [vmem:[%s1433_s1 + $0x38] sm:$0xff]   ;;  %v884_v36 = vcombine.low %v19_v33, %v19_v33  ;;  %v885_v37 = vcombine.high %v19_v33, %v19_v33  ;;  %v1119_v38 = vld [vmem:[%s1433_s1 + $0x140] sm:$0xff]  }
   0xc   :  { %969 = vmatpush3.bf16.msra.mxu0 %v1093_v10  ;;  %v1110_v27 = vld [vmem:[%s1433_s1 + $0xb0] sm:$0xff]   ;;  %v1114_v31 = vld [vmem:[%s1433_s1 + $0xb8] sm:$0xff]   ;;  %v1120_v39 = vld [vmem:[%s1433_s1 + $0x100] sm:$0xff]   ;;  %663 = vmatprep.mubr.bf16.mxu0 %v883_v35 }
   0xd   :  { %991 = vmatpush3.bf16.msra.mxu1 %v1094_v11  ;;  %970 = vmatprep.subr.bf16.mxu0 %v1095_v12  ;;  %v1121_v40 = vld [vmem:[%s1433_s1 + $0x1c0] sm:$0xff]   ;;  %v1123_v42 = vld [vmem:[%s1433_s1 + $0x148] sm:$0xff]   ;;  %v1127_v46 = vld [vmem:[%s1433_s1 + $0x150] sm:$0xff]  }
   0xe   :  { %992 = vmatprep.subr.bf16.mxu1 %v1096_v13  ;;  %703 = vmatprep.mubr.bf16.mxu1 %v885_v37  ;;  %v1122_v41 = vld [vmem:[%s1433_s1 + $0x180] sm:$0xff]   ;;  %v1124_v43 = vld [vmem:[%s1433_s1 + $0x108] sm:$0xff]   ;;  %v1128_v47 = vld [vmem:[%s1433_s1 + $0x110] sm:$0xff]   ;;  %v1166_v13 = vmov 0.0  }
   0xf   :  { %v1125_v44 = vld [vmem:[%s1433_s1 + $0x1c8] sm:$0xff]   ;;  %v1129_v48 = vld [vmem:[%s1433_s1 + $0x1d0] sm:$0xff]   ;;  %v1131_v50 = vld [vmem:[%s1433_s1 + $0x158] sm:$0xff]  }
  0x10   :  { %971 = vmatpush3.bf16.msra.mxu0 %v1097_v14  ;;  %v1126_v45 = vld [vmem:[%s1433_s1 + $0x188] sm:$0xff]   ;;  %v1130_v49 = vld [vmem:[%s1433_s1 + $0x190] sm:$0xff]   ;;  %v1132_v51 = vld [vmem:[%s1433_s1 + $0x118] sm:$0xff]  }
  0x11   :  { %993 = vmatpush3.bf16.msra.mxu1 %v1098_v15  ;;  %972 = vmatprep.subr.bf16.mxu0 %v1099_v16  ;;  %v1133_v52 = vld [vmem:[%s1433_s1 + $0x1d8] sm:$0xff]   ;;  %v1135_v54 = vld [vmem:[%s1433_s1 + $0x160] sm:$0xff]   ;;  %v1139_v58 = vld [vmem:[%s1433_s1 + $0x168] sm:$0xff]  }
  0x12   :  { %994 = vmatprep.subr.bf16.mxu1 %v1100_v17  ;;  %v1134_v53 = vld [vmem:[%s1433_s1 + $0x198] sm:$0xff]   ;;  %v1136_v55 = vld [vmem:[%s1433_s1 + $0x120] sm:$0xff]   ;;  %v1140_v59 = vld [vmem:[%s1433_s1 + $0x128] sm:$0xff]  }
  0x13   :  { %v1137_v56 = vld [vmem:[%s1433_s1 + $0x1e0] sm:$0xff]   ;;  %v1141_v60 = vld [vmem:[%s1433_s1 + $0x1e8] sm:$0xff]   ;;  %v1143_v62 = vld [vmem:[%s1433_s1 + $0x170] sm:$0xff]  }
  0x14   :  { %973 = vmatpush3.bf16.msra.mxu0 %v1101_v18  ;;  %v1138_v57 = vld [vmem:[%s1433_s1 + $0x1a0] sm:$0xff]   ;;  %v1142_v61 = vld [vmem:[%s1433_s1 + $0x1a8] sm:$0xff]   ;;  %v1144_v63 = vld [vmem:[%s1433_s1 + $0x130] sm:$0xff]  }
  0x15   :  { %995 = vmatpush3.bf16.msra.mxu1 %v1102_v19  ;;  %974 = vmatprep.subr.bf16.mxu0 %v1103_v20  ;;  %v1145_v0 = vld [vmem:[%s1433_s1 + $0x1f0] sm:$0xff]   ;;  %v1147_v2 = vld [vmem:[%s1433_s1 + $0x178] sm:$0xff]   ;;  %v1155_v12 = vld [vmem:[%s1433_s1 + $0x200] sm:$0xff]  }
  0x16   :  { %996 = vmatprep.subr.bf16.mxu1 %v1104_v21  ;;  %v1146_v1 = vld [vmem:[%s1433_s1 + $0x1b0] sm:$0xff]   ;;  %v1148_v3 = vld [vmem:[%s1433_s1 + $0x138] sm:$0xff]   ;;  %v1156_v14 = vld [vmem:[%s1433_s1 + $0x208] sm:$0xff]  }
  0x17   :  { %v1149_v4 = vld [vmem:[%s1433_s1 + $0x1f8] sm:$0xff]   ;;  %v20_v5 = vld [vmem:[%s1434_s0 + $0x10] sm:$0xff]  ;;  %v1159_v17 = vld [vmem:[%s1433_s1 + $0x220] sm:$0xff]  }
  0x18   :  { %975 = vmatpush3.bf16.msra.mxu0 %v1105_v22  ;;  %v887_v6 = vcombine.high %v20_v5, %v20_v5  ;;  %v1152_v7 = vld [vmem:[%s1433_s1 + $0x1b8] sm:$0xff]   ;;  %v886_v8 = vcombine.low %v20_v5, %v20_v5  ;;  %v1157_v15 = vld [vmem:[%s1433_s1 + $0x210] sm:$0xff]   ;;  %v1160_v18 = vld [vmem:[%s1433_s1 + $0x228] sm:$0xff]  }
  0x19   :  { %997 = vmatpush3.bf16.msra.mxu1 %v1106_v23  ;;  %976 = vmatprep.subr.bf16.mxu0 %v1107_v24  ;;  %v21_v9 = vld [vmem:[%s1434_s0 + $0x18] sm:$0xff]  ;;  %v1161_v19 = vld [vmem:[%s1433_s1 + $0x230] sm:$0xff]   ;;  %v1163_v21 = vld [vmem:[%s1434_s0 + $0x20] ss:$0 sps:$4 sm:$0xff]  }
  0x1a   :  { %998 = vmatprep.subr.bf16.mxu1 %v1108_v25  ;;  %v888_v10 = vcombine.low %v21_v9, %v21_v9  ;;  %v889_v11 = vcombine.high %v21_v9, %v21_v9  ;;  %v1158_v16 = vld [vmem:[%s1433_s1 + $0x218] sm:$0xff]  }
  0x1b   :  { %v1162_v20 = vld [vmem:[%s1433_s1 + $0x238] sm:$0xff]  }
  0x1c   :  { %977 = vmatpush3.bf16.msra.mxu0 %v1109_v26 }
  0x1d   :  { %999 = vmatpush3.bf16.msra.mxu1 %v1110_v27  ;;  %978 = vmatprep.subr.bf16.mxu0 %v1111_v28 }
  0x1e   :  { %1000 = vmatprep.subr.bf16.mxu1 %v1112_v29 }
  0x20   :  { %979 = vmatpush3.bf16.msra.mxu0 %v1113_v30 }
  0x21   :  { %1001 = vmatpush3.bf16.msra.mxu1 %v1114_v31  ;;  %1008 = vmatprep.subr.bf16.mxu0 %v1119_v38 }
  0x22   :  { %1030 = vmatprep.subr.bf16.mxu1 %v1121_v40 }
  0x23   :  { %664 = vmatmul.mubr.bf16.vlgmr.msra.gmra.mrb[0].mxu0 %v882_v34 }
  0x24   :  { %704 = vmatmul.mubr.bf16.vlgmr.msra.gmra.mrb[0].mxu1 %v884_v36  ;;  %1009 = vmatpush3.bf16.msra.mxu0 %v1120_v39 }
  0x25   :  { %1031 = vmatpush3.bf16.msra.mxu1 %v1122_v41  ;;  %1010 = vmatprep.subr.bf16.mxu0 %v1123_v42 }
  0x26   :  { %1032 = vmatprep.subr.bf16.mxu1 %v1125_v44  ;;  %743 = vmatprep.mubr.bf16.mxu0 %v887_v6 }
  0x27   :  { %783 = vmatprep.mubr.bf16.mxu1 %v889_v11 }
  0x28   :  { %1011 = vmatpush3.bf16.msra.mxu0 %v1124_v43 }
  0x29   :  { %1033 = vmatpush3.bf16.msra.mxu1 %v1126_v45  ;;  %1012 = vmatprep.subr.bf16.mxu0 %v1127_v46  ;;  %v831_v45 = vlaneseq }
  0x2a   :  { %1034 = vmatprep.subr.bf16.mxu1 %v1129_v48 }
  0x2b   :  { %v832_v46 = vshrl.u32 %v831_v45, 7 }
  0x2c   :  { %1013 = vmatpush3.bf16.msra.mxu0 %v1128_v47 }
  0x2d   :  { %1035 = vmatpush3.bf16.msra.mxu1 %v1130_v49  ;;  %1014 = vmatprep.subr.bf16.mxu0 %v1131_v50  ;;  %vm833_vm1 = vcmp.lt.s32.totalorder %v832_v46, 2  ;;  %v864_v9 = vsub.s32 0, %v832_v46 }
  0x2e   :  { %1036 = vmatprep.subr.bf16.mxu1 %v1133_v52  ;;  %v963_v48 = vsel %vm833_vm1, 1.0, %v1166_v13 }
  0x30   :  { %1015 = vmatpush3.bf16.msra.mxu0 %v1132_v51 }
  0x31   :  { %1037 = vmatpush3.bf16.msra.mxu1 %v1134_v53  ;;  %1016 = vmatprep.subr.bf16.mxu0 %v1135_v54 }
  0x32   :  { %1038 = vmatprep.subr.bf16.mxu1 %v1137_v56 }
  0x34   :  { %1017 = vmatpush3.bf16.msra.mxu0 %v1136_v55 }
  0x35   :  { %1039 = vmatpush3.bf16.msra.mxu1 %v1138_v57  ;;  %1018 = vmatprep.subr.bf16.mxu0 %v1139_v58 }
  0x36   :  { %1040 = vmatprep.subr.bf16.mxu1 %v1141_v60 }
  0x38   :  { %1019 = vmatpush3.bf16.msra.mxu0 %v1140_v59 }
  0x39   :  { %1041 = vmatpush3.bf16.msra.mxu1 %v1142_v61  ;;  %1020 = vmatprep.subr.bf16.mxu0 %v1143_v62 }
  0x3a   :  { %1042 = vmatprep.subr.bf16.mxu1 %v1145_v0 }
  0x3c   :  { %1021 = vmatpush3.bf16.msra.mxu0 %v1144_v63 }
  0x3d   :  { %1043 = vmatpush3.bf16.msra.mxu1 %v1146_v1  ;;  %1022 = vmatprep.subr.bf16.mxu0 %v1147_v2 }
  0x3e   :  { %1044 = vmatprep.subr.bf16.mxu1 %v1149_v4 }
  0x40   :  { %1023 = vmatpush3.bf16.msra.mxu0 %v1148_v3 }
  0x41   :  { %1045 = vmatpush3.bf16.msra.mxu1 %v1152_v7  ;;  %1061 = vmatprep.subr.bf16.mxu0 %v1166_v13 }
  0x43   :  { %744 = vmatmul.mubr.bf16.vlgmr.msra.gmra.mrb[4].mxu0 %v886_v8  ;;  %v854_v8 = vld [vmem:[%s1435_s2] sm:$0x1] }
  0x44   :  { %1062 = vmatpush3.bf16.msra.mxu0 %v1155_v12  ;;  %784 = vmatmul.mubr.bf16.vlgmr.msra.gmra.mrb[4].mxu1 %v888_v10  ;;  %v858_v12 = vld [vmem:[%s1436_s3] sm:$0x1] }
  0x45   :  { %1063 = vmatprep.subr.bf16.mxu0 %v1166_v13  ;;  %1077 = vmatprep.mubr.msk.bf16.mxu0 %vm1167_vm0, %v1166_v13 }
  0x48   :  { %1064 = vmatpush3.bf16.msra.mxu0 %v1156_v14 }
  0x49   :  { %1065 = vmatprep.subr.bf16.mxu0 %v1166_v13 }
  0x4c   :  { %1066 = vmatpush3.bf16.msra.mxu0 %v1157_v15 }
  0x4d   :  { %1067 = vmatprep.subr.bf16.mxu0 %v1166_v13 }
  0x50   :  { %1068 = vmatpush3.bf16.msra.mxu0 %v1158_v16 }
  0x51   :  { %1069 = vmatprep.subr.bf16.mxu0 %v1166_v13 }
  0x54   :  { %1070 = vmatpush3.bf16.msra.mxu0 %v1159_v17 }
  0x55   :  { %1071 = vmatprep.subr.bf16.mxu0 %v1166_v13 }
  0x58   :  { %1072 = vmatpush3.bf16.msra.mxu0 %v1160_v18 }
  0x59   :  { %1073 = vmatprep.subr.bf16.mxu0 %v1166_v13 }
  0x5c   :  { %1074 = vmatpush3.bf16.msra.mxu0 %v1161_v19 }
  0x5d   :  { %1075 = vmatprep.subr.bf16.mxu0 %v1166_v13 }
  0x60   :  { %1076 = vmatpush3.bf16.msra.mxu0 %v1162_v20 }
  0x63   :  { %1078 = vmatmul.mubr.bf16.vlgmr.msra.gmra.mrb[8].mxu0 %v1163_v21 }
  0xf6   :  { %v980_v22 = vpop.f32.mrb[0].mxu0 }
  0xf7   :  { %v1002_v23 = vpop.f32.mrb[0].mxu1  ;;  %v981_v24 = vpop.f32.mrb[1].mxu0 }
  0xf8   :  { %v1003_v25 = vpop.f32.mrb[1].mxu1  ;;  %v982_v26 = vadd.f32 %v981_v24, %v980_v22  ;;  %v983_v28 = vpop.f32.mrb[2].mxu0 }
  0xf9   :  { %v1004_v27 = vadd.f32 %v1003_v25, %v1002_v23  ;;  %v1005_v29 = vpop.f32.mrb[2].mxu1  ;;  %v984_v30 = vpop.f32.mrb[3].mxu0 }
  0xfa   :  { %v1006_v31 = vpop.f32.mrb[3].mxu1 }
  0xfb   :  { %v706_v32 = vadd.f32 %v1004_v27, %v982_v26 }
 0x116   :  { %v1024_v33 = vpop.f32.mrb[4].mxu0 }
 0x117   :  { %v1025_v34 = vpop.f32.mrb[5].mxu0  ;;  %v1046_v35 = vpop.f32.mrb[4].mxu1 }
 0x118   :  { %v1026_v36 = vadd.f32 %v1025_v34, %v1024_v33  ;;  %v1027_v37 = vpop.f32.mrb[6].mxu0  ;;  %v1047_v38 = vpop.f32.mrb[5].mxu1 }
 0x119   :  { %v1028_v39 = vpop.f32.mrb[7].mxu0  ;;  %v1048_v40 = vadd.f32 %v1047_v38, %v1046_v35  ;;  %v1049_v41 = vpop.f32.mrb[6].mxu1 }
 0x11a   :  { %v746_v42 = vadd.f32 %v1026_v36, %v706_v32  ;;  %v1050_v43 = vpop.f32.mrb[7].mxu1 }
 0x11c   :  { %v786_v44 = vadd.f32 %v1048_v40, %v746_v42 }
 0x136   :  { %v825_v47 = vpop.f32.mrb[8].mxu0 }
 0x137   :  { %v826_v49 = vadd.f32 %v825_v47, %v786_v44  ;;  %v1079_v50 = vpop.f32.mrb[9].mxu0 }
 0x138   :  { %v828_v51 = vpop.f32.mrb[10].mxu0 }
 0x139   :  { %v836_v52 = vmul.f32 %v963_v48, %v826_v49  ;;  %v1080_v53 = vpop.f32.mrb[11].mxu0 }
 0x13b   :  { %v837_v54 = vrot.slane %v836_v52, 4 }
 0x13d   :  { %v838_v55 = vadd.f32 %v837_v54, %v836_v52 }
 0x13f   :  { %v839_v56 = vrot.slane %v838_v55, 2 }
 0x141   :  { %v840_v57 = vadd.f32 %v839_v56, %v838_v55 }
 0x143   :  { %v841_v58 = vrot.slane %v840_v57, 1 }
 0x145   :  { %v842_v59 = vadd.f32 %v841_v58, %v840_v57 }
 0x147   :  { %v843_v60 = vmul.f32 0.5, %v842_v59 }
 0x149   :  { %v844_v61 = vsub.f32 %v826_v49, %v843_v60 }
 0x14b   :  { %v845_v62 = vmul.f32 %v844_v61, %v844_v61 }
 0x14d   :  { %v846_v63 = vmul.f32 %v963_v48, %v845_v62 }
 0x14f   :  { %v847_v0 = vrot.slane %v846_v63, 4 }
 0x151   :  { %v848_v1 = vadd.f32 %v847_v0, %v846_v63 }
 0x153   :  { %v849_v2 = vrot.slane %v848_v1, 2 }
 0x155   :  { %v850_v3 = vadd.f32 %v849_v2, %v848_v1 }
 0x157   :  { %v851_v4 = vrot.slane %v850_v3, 1 }
 0x159   :  { %v852_v5 = vadd.f32 %v851_v4, %v850_v3 }
 0x15b   :  { %v853_v6 = vmul.f32 0.5, %v852_v5 }
 0x15d   :  { %v855_v7 = vadd.f32 1e-05, %v853_v6 }
 0x15f   :  { %1164 = vrsqrt.f32 %v855_v7 }
 0x169   :  { %v1165_v10 = vpop.eup %1164 }
 0x16a   :  { %v857_v11 = vmul.f32 %v1165_v10, %v854_v8 }
 0x16c   :  { %v859_v13 = vmul.f32 %v857_v11, %v843_v60  ;;  %v865_v14 = vrot.slane %v857_v11, %v864_v9 }
 0x16e   :  { %v860_v15 = vsub.f32 %v858_v12, %v859_v13  ;;  %v867_v16 = vmul.f32 %v865_v14, %v826_v49 }
 0x170   :  { %v872_v17 = vrot.slane %v860_v15, %v864_v9 }
 0x172   :  { %v874_v18 = vadd.f32 %v872_v17, %v867_v16 }
 0x174   :  { %v875_v19 = vmax.f32 %v874_v18, 0.0 }
 0x176   :  { %v876_v20 = vpack.c.bf16 %v875_v19, %v875_v19 }
 0x178   :  { %877 = vst [vmem:[%s1437_s4] sm:$0xf] %v876_v20 }

// kernel: resnet_forward.104
= control target key start
LH: loop header
LB: loop body
LE: loop exit
PB: predicated region body
PF: predicated region fallthrough
CT: control target
= control target key end

     0   :  { %v194_v19 = vlaneseq  ;;  %v307_v23 = vmov 0.0   ;;  %s393_s1 = inlined_call_operand.vmem [shape: bf16[256,128], index: 1, kind: input, shape index: {}]   ;;  %s394_s0 = inlined_call_operand.vmem [shape: bf16[8,256], index: 0, kind: input, shape index: {}]   ;;  %s395_s2 = inlined_call_operand.vmem [shape: f32[1,128], index: 2, kind: input, shape index: {}]   ;;  %s396_s3 = inlined_call_operand.vmem [shape: f32[1,128], index: 3, kind: input, shape index: {}]   ;;  %s397_s4 = inlined_call_operand.vmem [shape: bf16[8,128], index: 4, kind: output, shape index: {}]  }
   0x1   :  { %v287_v0 = vld [vmem:[%s393_s1 + $0x40] sm:$0xff]   ;;  %v289_v2 = vld [vmem:[%s393_s1 + $0x48] sm:$0xff]   ;;  %v291_v4 = vld [vmem:[%s393_s1 + $0x50] sm:$0xff]  }
   0x2   :  { %v288_v1 = vld [vmem:[%s393_s1] sm:$0xff]   ;;  %264 = vmatprep.subr.bf16.mxu0 %v287_v0  ;;  %v290_v3 = vld [vmem:[%s393_s1 + $0x8] sm:$0xff]   ;;  %v292_v5 = vld [vmem:[%s393_s1 + $0x10] sm:$0xff]   ;;  %v195_v20 = vshrl.u32 %v194_v19, 7 }
   0x3   :  { %265 = vmatpush3.bf16.msra.mxu0 %v288_v1  ;;  %v293_v6 = vld [vmem:[%s393_s1 + $0x58] sm:$0xff]   ;;  %v295_v8 = vld [vmem:[%s393_s1 + $0x60] sm:$0xff]   ;;  %v297_v10 = vld [vmem:[%s393_s1 + $0x68] sm:$0xff]  }
   0x4   :  { %266 = vmatprep.subr.bf16.mxu0 %v289_v2  ;;  %v294_v7 = vld [vmem:[%s393_s1 + $0x18] sm:$0xff]   ;;  %v296_v9 = vld [vmem:[%s393_s1 + $0x20] sm:$0xff]   ;;  %v298_v13 = vld [vmem:[%s393_s1 + $0x28] sm:$0xff]   ;;  %vm196_vm0 = vcmp.lt.s32.totalorder %v195_v20, 2  ;;  %v227_v48 = vsub.s32 0, %v195_v20 }
   0x5   :  { %v18_v11 = vld [vmem:[%s394_s0] sm:$0xff]  ;;  %v299_v14 = vld [vmem:[%s393_s1 + $0x70] sm:$0xff]   ;;  %v301_v16 = vld [vmem:[%s393_s1 + $0x78] sm:$0xff]   ;;  %v263_v24 = vsel %vm196_vm0, 1.0, %v307_v23 }
   0x6   :  { %v246_v12 = vcombine.high %v18_v11, %v18_v11  ;;  %v300_v15 = vld [vmem:[%s393_s1 + $0x30] sm:$0xff]   ;;  %v302_v17 = vld [vmem:[%s393_s1 + $0x38] sm:$0xff]   ;;  %v245_v18 = vcombine.low %v18_v11, %v18_v11  ;;  %v217_v47 = vld [vmem:[%s395_s2] sm:$0x1] }
   0x7   :  { %267 = vmatpush3.bf16.msra.mxu0 %v290_v3  ;;  %v221_v51 = vld [vmem:[%s396_s3] sm:$0x1] }
   0x8   :  { %268 = vmatprep.subr.bf16.mxu0 %v291_v4  ;;  %186 = vmatprep.mubr.bf16.mxu0 %v246_v12 }
   0xb   :  { %269 = vmatpush3.bf16.msra.mxu0 %v292_v5 }
   0xc   :  { %270 = vmatprep.subr.bf16.mxu0 %v293_v6 }
   0xf   :  { %271 = vmatpush3.bf16.msra.mxu0 %v294_v7 }
  0x10   :  { %272 = vmatprep.subr.bf16.mxu0 %v295_v8 }
  0x13   :  { %273 = vmatpush3.bf16.msra.mxu0 %v296_v9 }
  0x14   :  { %274 = vmatprep.subr.bf16.mxu0 %v297_v10 }
  0x17   :  { %275 = vmatpush3.bf16.msra.mxu0 %v298_v13 }
  0x18   :  { %276 = vmatprep.subr.bf16.mxu0 %v299_v14 }
  0x1b   :  { %277 = vmatpush3.bf16.msra.mxu0 %v300_v15 }
  0x1c   :  { %278 = vmatprep.subr.bf16.mxu0 %v301_v16 }
  0x1f   :  { %279 = vmatpush3.bf16.msra.mxu0 %v302_v17 }
  0x22   :  { %187 = vmatmul.mubr.bf16.vlgmr.msra.gmra.mrb[0].mxu0 %v245_v18 }
  0xf5   :  { %v280_v21 = vpop.f32.mrb[0].mxu0 }
  0xf6   :  { %v281_v22 = vpop.f32.mrb[1].mxu0 }
  0xf7   :  { %v282_v25 = vadd.f32 %v281_v22, %v280_v21  ;;  %v283_v26 = vpop.f32.mrb[2].mxu0 }
  0xf8   :  { %v284_v27 = vpop.f32.mrb[3].mxu0 }
  0xf9   :  { %v199_v28 = vmul.f32 %v282_v25, %v263_v24 }
  0xfb   :  { %v200_v29 = vrot.slane %v199_v28, 4 }
  0xfd   :  { %v201_v30 = vadd.f32 %v200_v29, %v199_v28 }
  0xff   :  { %v202_v31 = vrot.slane %v201_v30, 2 }
 0x101   :  { %v203_v32 = vadd.f32 %v202_v31, %v201_v30 }
 0x103   :  { %v204_v33 = vrot.slane %v203_v32, 1 }
 0x105   :  { %v205_v34 = vadd.f32 %v204_v33, %v203_v32 }
 0x107   :  { %v206_v35 = vmul.f32 0.5, %v205_v34 }
 0x109   :  { %v207_v36 = vsub.f32 %v282_v25, %v206_v35 }
 0x10b   :  { %v208_v37 = vmul.f32 %v207_v36, %v207_v36 }
 0x10d   :  { %v209_v38 = vmul.f32 %v263_v24, %v208_v37 }
 0x10f   :  { %v210_v39 = vrot.slane %v209_v38, 4 }
 0x111   :  { %v211_v40 = vadd.f32 %v210_v39, %v209_v38 }
 0x113   :  { %v212_v41 = vrot.slane %v211_v40, 2 }
 0x115   :  { %v213_v42 = vadd.f32 %v212_v41, %v211_v40 }
 0x117   :  { %v214_v43 = vrot.slane %v213_v42, 1 }
 0x119   :  { %v215_v44 = vadd.f32 %v214_v43, %v213_v42 }
 0x11b   :  { %v216_v45 = vmul.f32 0.5, %v215_v44 }
 0x11d   :  { %v218_v46 = vadd.f32 1e-05, %v216_v45 }
 0x11f   :  { %305 = vrsqrt.f32 %v218_v46 }
 0x129   :  { %v306_v49 = vpop.eup %305 }
 0x12a   :  { %v220_v50 = vmul.f32 %v306_v49, %v217_v47 }
 0x12c   :  { %v222_v52 = vmul.f32 %v220_v50, %v206_v35  ;;  %v228_v53 = vrot.slane %v220_v50, %v227_v48 }
 0x12e   :  { %v223_v54 = vsub.f32 %v221_v51, %v222_v52  ;;  %v230_v55 = vmul.f32 %v282_v25, %v228_v53 }
 0x130   :  { %v235_v56 = vrot.slane %v223_v54, %v227_v48 }
 0x132   :  { %v237_v57 = vadd.f32 %v235_v56, %v230_v55 }
 0x134   :  { %v238_v58 = vmax.f32 %v237_v57, 0.0 }
 0x136   :  { %v239_v59 = vpack.c.bf16 %v238_v58, %v238_v58 }
 0x138   :  { %240 = vst [vmem:[%s397_s4] sm:$0xf] %v239_v59 }

// kernel: resnet_forward.110
= control target key start
LH: loop header
LB: loop body
LE: loop exit
PB: predicated region body
PF: predicated region fallthrough
CT: control target
= control target key end

     0   :  { %v414_v3 = vmov 0.0|0.0   ;;  %v69_v8 = vlaneseq  ;;  %vm85_vm0 = vcmask 1041409   ;;  %vm415_vm1 = vmmov 0   ;;  %s634_s1 = inlined_call_operand.vmem [shape: f32[256,128], index: 1, kind: input, shape index: {}]   ;;  %s635_s0 = inlined_call_operand.vmem [shape: bf16[2,1,256], index: 0, kind: input, shape index: {}]   ;;  %s636_s3 = inlined_call_operand.vmem [shape: f32[128,128], index: 3, kind: input, shape index: {}]   ;;  %s637_s2 = inlined_call_operand.vmem [shape: f32[1,128], index: 2, kind: input, shape index: {}]   ;;  %s638_s5 = inlined_call_operand.vmem [shape: f32[2,128], index: 5, kind: output, shape index: {0}]   ;;  %s639_s4 = inlined_call_operand.vmem [shape: f32[1,128], index: 4, kind: input, shape index: {}]   ;;  %s640_s6 = inlined_call_operand.vmem [shape: f32[2,128], index: 6, kind: output, shape index: {1}]  }
   0x1   :  { %v44_v0 = vld [vmem:[%s634_s1 + $0x80] sm:$0xff]  ;;  %v45_v1 = vld [vmem:[%s634_s1 + $0x88] sm:$0xff]  ;;  %385 = vmatprep.subr.bf16.mxu1 %v414_v3  ;;  %v46_v6 = vld [vmem:[%s634_s1 + $0x90] sm:$0xff] }
   0x2   :  { %v28_v2 = vld [vmem:[%s634_s1] sm:$0xff]  ;;  %v353_v4 = vpack.c.bf16 %v45_v1, %v44_v0  ;;  %v29_v5 = vld [vmem:[%s634_s1 + $0x8] sm:$0xff]  ;;  %v47_v7 = vld [vmem:[%s634_s1 + $0x98] sm:$0xff]  ;;  %v489_v19 = vshrl.u32 %v69_v8, 7 }
   0x3   :  { %v355_v9 = vpack.c.bf16 %v29_v5, %v28_v2  ;;  %v357_v10 = vpack.c.bf16 %v47_v7, %v46_v6  ;;  %v30_v11 = vld [vmem:[%s634_s1 + $0x10] sm:$0xff]  ;;  %v31_v12 = vld [vmem:[%s634_s1 + $0x18] sm:$0xff]  ;;  %v48_v13 = vld [vmem:[%s634_s1 + $0xa0] sm:$0xff] }
   0x4   :  { %354 = vmatprep.subr.bf16.mxu0 %v353_v4  ;;  %v49_v14 = vld [vmem:[%s634_s1 + $0xa8] sm:$0xff]  ;;  %v359_v15 = vpack.c.bf16 %v31_v12, %v30_v11  ;;  %v32_v17 = vld [vmem:[%s634_s1 + $0x20] sm:$0xff]  ;;  %v50_v20 = vld [vmem:[%s634_s1 + $0xb0] sm:$0xff]  ;;  %v75_v26 = vsub.s32 2, %v489_v19  ;;  %v71_v4 = vsub.s32 0, %v489_v19 }
   0x5   :  { %356 = vmatpush3.bf16.msra.mxu0 %v355_v9  ;;  %v361_v16 = vpack.c.bf16 %v49_v14, %v48_v13  ;;  %v33_v18 = vld [vmem:[%s634_s1 + $0x28] sm:$0xff]  ;;  %v51_v21 = vld [vmem:[%s634_s1 + $0xb8] sm:$0xff]  ;;  %v34_v24 = vld [vmem:[%s634_s1 + $0x30] sm:$0xff] }
   0x6   :  { %358 = vmatprep.subr.bf16.mxu0 %v357_v10  ;;  %v363_v22 = vpack.c.bf16 %v33_v18, %v32_v17  ;;  %v365_v23 = vpack.c.bf16 %v51_v21, %v50_v20  ;;  %v35_v25 = vld [vmem:[%s634_s1 + $0x38] sm:$0xff]  ;;  %v52_v27 = vld [vmem:[%s634_s1 + $0xc0] sm:$0xff]  ;;  %v53_v28 = vld [vmem:[%s634_s1 + $0xc8] sm:$0xff] }
   0x7   :  { %v513_v29 = vld [vmem:[%s635_s0] sm:$0x3]  ;;  %v518_v30 = vld [vmem:[%s635_s0 + $0x2] sm:$0x3]  ;;  %v162_v33 = vld [vmem:[%s636_s3 + $0x8] sm:$0xff]  ;;  %v367_v34 = vpack.c.bf16 %v35_v25, %v34_v24  ;;  %v369_v39 = vpack.c.bf16 %v53_v28, %v52_v27  ;;  %v416_v24 = vmov 0.0  }
   0x8   :  { %v24_v31 = vunpack.c.l.bf16 %v513_v29  ;;  %v161_v32 = vld [vmem:[%s636_s3] sm:$0xff]  ;;  %v25_v35 = vunpack.c.l.bf16 %v518_v30  ;;  %v163_v37 = vld [vmem:[%s636_s3 + $0x10] sm:$0xff]  ;;  %v164_v38 = vld [vmem:[%s636_s3 + $0x18] sm:$0xff]  ;;  %350 = vmatprep.mubr.msk.f32.mxu1 %vm415_vm1, %v416_v24 }
   0x9   :  { %360 = vmatpush3.bf16.msra.mxu0 %v359_v15  ;;  %v386_v36 = vpack.c.bf16 %v162_v33, %v161_v32  ;;  %v36_v40 = vld [vmem:[%s634_s1 + $0x40] sm:$0xff]  ;;  %v37_v41 = vld [vmem:[%s634_s1 + $0x48] sm:$0xff]  ;;  %v54_v43 = vld [vmem:[%s634_s1 + $0xd0] sm:$0xff]  ;;  %v389_v46 = vpack.c.bf16 %v164_v38, %v163_v37 }
   0xa   :  { %362 = vmatprep.subr.bf16.mxu0 %v361_v16  ;;  %v76_v42 = vrot.slane %v24_v31, %v75_v26  ;;  %v55_v44 = vld [vmem:[%s634_s1 + $0xd8] sm:$0xff]  ;;  %v84_v45 = vrot.slane %v25_v35, %v75_v26  ;;  %v165_v47 = vld [vmem:[%s636_s3 + $0x20] sm:$0xff]  ;;  %v166_v48 = vld [vmem:[%s636_s3 + $0x28] sm:$0xff]  ;;  %v371_v49 = vpack.c.bf16 %v37_v41, %v36_v40  ;;  %v72_v9 = vrot.slane %v24_v31, %v71_v4 }
   0xb   :  { %387 = vmatpush3.bf16.msra.mxu1 %v386_v36  ;;  %v373_v51 = vpack.c.bf16 %v55_v44, %v54_v43  ;;  %v38_v52 = vld [vmem:[%s634_s1 + $0x50] sm:$0xff]  ;;  %v39_v53 = vld [vmem:[%s634_s1 + $0x58] sm:$0xff]  ;;  %v56_v54 = vld [vmem:[%s634_s1 + $0xe0] sm:$0xff]  ;;  %v392_v56 = vpack.c.bf16 %v166_v48, %v165_v47  ;;  %v80_v10 = vrot.slane %v25_v35, %v71_v4 }
   0xc   :  { %388 = vmatprep.subr.bf16.mxu1 %v414_v3  ;;  %v87_v50 = vsel %vm85_vm0, %v84_v45, %v76_v42  ;;  %v57_v55 = vld [vmem:[%s634_s1 + $0xe8] sm:$0xff]  ;;  %v167_v57 = vld [vmem:[%s636_s3 + $0x30] sm:$0xff]  ;;  %v168_v58 = vld [vmem:[%s636_s3 + $0x38] sm:$0xff]  ;;  %v375_v59 = vpack.c.bf16 %v39_v53, %v38_v52 }
   0xd   :  { %364 = vmatpush3.bf16.msra.mxu0 %v363_v22  ;;  %154 = vmatprep.mubr.f32.mxu0 %v87_v50  ;;  %v377_v60 = vpack.c.bf16 %v57_v55, %v56_v54  ;;  %v40_v61 = vld [vmem:[%s634_s1 + $0x60] sm:$0xff]  ;;  %v41_v62 = vld [vmem:[%s634_s1 + $0x68] sm:$0xff]  ;;  %v58_v63 = vld [vmem:[%s634_s1 + $0xf0] sm:$0xff]  ;;  %v395_v1 = vpack.c.bf16 %v168_v58, %v167_v57  ;;  %v86_v11 = vsel %vm85_vm0, %v80_v10, %v72_v9 }
   0xe   :  { %366 = vmatprep.subr.bf16.mxu0 %v365_v23  ;;  %v59_v0 = vld [vmem:[%s634_s1 + $0xf8] sm:$0xff]  ;;  %v379_v2 = vpack.c.bf16 %v41_v62, %v40_v61  ;;  %v42_v6 = vld [vmem:[%s634_s1 + $0x70] sm:$0xff]  ;;  %v169_v12 = vld [vmem:[%s636_s3 + $0x40] sm:$0xff] }
   0xf   :  { %390 = vmatpush3.bf16.msra.mxu1 %v389_v46  ;;  %v381_v5 = vpack.c.bf16 %v59_v0, %v58_v63  ;;  %v43_v7 = vld [vmem:[%s634_s1 + $0x78] sm:$0xff]  ;;  %v170_v13 = vld [vmem:[%s636_s3 + $0x48] sm:$0xff]  ;;  %v171_v15 = vld [vmem:[%s636_s3 + $0x50] sm:$0xff] }
  0x10   :  { %391 = vmatprep.subr.bf16.mxu1 %v414_v3  ;;  %v383_v8 = vpack.c.bf16 %v43_v7, %v42_v6  ;;  %v398_v14 = vpack.c.bf16 %v170_v13, %v169_v12  ;;  %v172_v16 = vld [vmem:[%s636_s3 + $0x58] sm:$0xff]  ;;  %v173_v18 = vld [vmem:[%s636_s3 + $0x60] sm:$0xff]  ;;  %v174_v19 = vld [vmem:[%s636_s3 + $0x68] sm:$0xff] }
  0x11   :  { %368 = vmatpush3.bf16.msra.mxu0 %v367_v34  ;;  %v401_v17 = vpack.c.bf16 %v172_v16, %v171_v15  ;;  %v404_v20 = vpack.c.bf16 %v174_v19, %v173_v18  ;;  %v175_v21 = vld [vmem:[%s636_s3 + $0x70] sm:$0xff]  ;;  %v176_v22 = vld [vmem:[%s636_s3 + $0x78] sm:$0xff]  ;;  %v264_v26 = vld [vmem:[%s637_s2] ss:$0 sm:$0xff] }
  0x12   :  { %370 = vmatprep.subr.bf16.mxu0 %v369_v39  ;;  %v407_v23 = vpack.c.bf16 %v176_v22, %v175_v21  ;;  %v265_v30 = vld [vmem:[%s639_s4] ss:$0 sm:$0xff] }
  0x13   :  { %393 = vmatpush3.bf16.msra.mxu1 %v392_v56 }
  0x14   :  { %394 = vmatprep.subr.bf16.mxu1 %v414_v3 }
  0x15   :  { %372 = vmatpush3.bf16.msra.mxu0 %v371_v49 }
  0x16   :  { %374 = vmatprep.subr.bf16.mxu0 %v373_v51 }
  0x17   :  { %396 = vmatpush3.bf16.msra.mxu1 %v395_v1 }
  0x18   :  { %397 = vmatprep.subr.bf16.mxu1 %v414_v3 }
  0x19   :  { %376 = vmatpush3.bf16.msra.mxu0 %v375_v59 }
  0x1a   :  { %378 = vmatprep.subr.bf16.mxu0 %v377_v60 }
  0x1b   :  { %399 = vmatpush3.bf16.msra.mxu1 %v398_v14 }
  0x1c   :  { %400 = vmatprep.subr.bf16.mxu1 %v414_v3 }
  0x1d   :  { %380 = vmatpush3.bf16.msra.mxu0 %v379_v2 }
  0x1e   :  { %382 = vmatprep.subr.bf16.mxu0 %v381_v5 }
  0x1f   :  { %402 = vmatpush3.bf16.msra.mxu1 %v401_v17 }
  0x20   :  { %403 = vmatprep.subr.bf16.mxu1 %v414_v3 }
  0x21   :  { %384 = vmatpush3.bf16.msra.mxu0 %v383_v8 }
  0x23   :  { %405 = vmatpush3.bf16.msra.mxu1 %v404_v20 }
  0x24   :  { %155 = vmatmul.mubr.f32.vlgmr.msra.gmra.mrb[0].mxu0 %v86_v11  ;;  %406 = vmatprep.subr.bf16.mxu1 %v414_v3 }
  0x27   :  { %408 = vmatpush3.bf16.msra.mxu1 %v407_v23 }
  0xf7   :  { %v298_v25 = vpop.f32.mrb[0].mxu0 }
  0xf8   :  { %v299_v27 = vpop.f32.mrb[1].mxu0 }
  0xf9   :  { %v300_v3 = vadd.f32 %v299_v27, %v298_v25 }
  0xfb   :  { %v157_v28 = vadd.f32 %v300_v3, %v264_v26 }
  0xfd   :  { %412 = vtanh.f32 %v157_v28 }
 0x107   :  { %v413_v29 = vpop.eup %412 }
 0x108   :  { %254 = vst [vmem:[%s638_s5] sm:$0x3] %v413_v29  ;;  %351 = vmatmul.mubr.f32.vlgmr.msra.gmra.mrb[0].mxu1 %v413_v29 }
 0x1db   :  { %v250_v31 = vpop.f32.mrb[0].mxu1 }
 0x1dc   :  { %v251_v32 = vadd.f32 %v265_v30, %v250_v31  ;;  %v352_v33 = vpop.f32.mrb[1].mxu1 }
 0x1de   :  { %255 = vst [vmem:[%s640_s6] sm:$0x3] %v251_v32 }

// kernel: resnet_forward.111
= control target key start
LH: loop header
LB: loop body
LE: loop exit
PB: predicated region body
PF: predicated region fallthrough
CT: control target
= control target key end

     0   :  { %v24_v0 = vlaneseq  ;;  %s2472_s0 = inlined_call_operand.vmem [shape: f32[2,128], index: 0, kind: input, shape index: {}]   ;;  %s2473_s1 = inlined_call_operand.vmem [shape: f32[2,128], index: 1, kind: input, shape index: {}]   ;;  %s2474_s2 = inlined_call_operand.vmem [shape: f32[128,128], index: 2, kind: input, shape index: {}]   ;;  %s2475_s3 = inlined_call_operand.vmem [shape: s32[2,1], index: 3, kind: input, shape index: {}]   ;;  %s2476_s4 = inlined_call_operand.vmem [shape: f32[2,1], index: 4, kind: input, shape index: {}]   ;;  %s2477_s5 = inlined_call_operand.hbm [shape: f32[1,1], index: 5, kind: output, shape index: {}]  }
   0x1   :  { %10 = vsyncpa [#allocation3], 0  ;;  %v21_v2 = vld [vmem:[%s2472_s0] sm:$0x3]  ;;  %vm28_vm0 = vcmask 1041408   ;;  %v59_v33 = vld [vmem:[%s2474_s2 + $0x8] sm:$0xff] }
   0x2   :  { %v1647_v1 = vshrl.u32 %v24_v0, 7  ;;  %v1016_v7 = vsel %vm28_vm0, %v21_v2, 0.0  ;;  %v1612_v16 = vmov 1966171168   ;;  %v1674_v20 = vld [vmem:[%s2473_s1] sm:$0x3] }
   0x3   :  { %v1017_v8 = vrot.slane %v1016_v7, 4  ;;  %v76_v17 = vunpack.c.l.s4 %v1612_v16  ;;  %v1681_v25 = vand.u32 127, %v24_v0  ;;  %v58_v26 = vld [vmem:[%s2474_s2] sm:$0xff]  ;;  %v60_v41 = vld [vmem:[%s2474_s2 + $0x10] sm:$0xff]  ;;  %v61_v50 = vld [vmem:[%s2474_s2 + $0x18] sm:$0xff]  ;;  %vm1057_vm2 = vcmask 15360  }
   0x4   :  { %2486 = vst [vmem:[#allocation5_spill] sm:$0xff] %v1647_v1  ;;  %v1653_v3 = vsub.s32 0, %v1647_v1  ;;  %v166_v4 = vsub.s32 1, %v1647_v1  ;;  %v62_v59 = vld [vmem:[%s2474_s2 + $0x20] sm:$0xff]  ;;  %v64_v16 = vld [vmem:[%s2474_s2 + $0x30] sm:$0xff]  ;;  %s1615_s9 = smov [#allocation2]  }
   0x5   :  { %v1018_v9 = vadd.f32 %v1017_v8, %v1016_v7  ;;  %v77_v18 = vunpack.c.0.s8 %v76_v17  ;;  %vm26_vm1 = vcmp.lt.s32.totalorder %v1681_v25, 5  ;;  %s1363_s10 = sshll.u32 %s1615_s9, 4  ;;  %s1364_s10 = int_to_ptr.vmem [resolvable:$true] %s1363_s10 }
   0x6   :  { %v100_v5 = vrot.slane %v21_v2, %v1653_v3  ;;  %v167_v6 = vrot.slane %v21_v2, %v166_v4  ;;  %s1588_s12 = scalar_lea.vmem %s1364_s10, 16  ;;  %s1592_s13 = scalar_lea.vmem %s1364_s10, 32 }
   0x7   :  { %v1019_v10 = vrot.slane %v1018_v9, 2  ;;  %v1669_v19 = vsub.s32 %v77_v18, %v1647_v1  ;;  %p1589_p0 = scmp.ne.s32.totalorder %s1364_s10, %s1588_s12  ;;  %p1593_p1 = scmp.lt.s32.totalorder %s1364_s10, %s1364_s10 }
   0x8   :  { %102 = vbcast.lane.b32.xlu0 %v100_v5, 256  ;;  %169 = vbcast.lane.b32.xlu1 %v167_v6, 256  ;;  %p1594_p2 = scmp.lt.s32.totalorder %s1592_s13, %s1588_s12 }
   0x9   :  { %v1020_v11 = vadd.f32 %v1019_v10, %v1018_v9  ;;  %v81_v21 = vrot.slane %v1674_v20, %v1669_v19 }
   0xa   :  { %p1595_p3 = por %p1594_p2, %p1593_p1 }
   0xb   :  { %v1021_v12 = vrot.slane %v1020_v11, 1  ;;  %v82_v22 = vcombine.high %v81_v21, %v81_v21  ;;  %v89_v23 = vrot.slane %v81_v21, %v1669_v19 }
   0xc   :  { %106 = vbcast.lane.b32.xlu0 %v100_v5, 264  ;;  %173 = vbcast.lane.b32.xlu1 %v167_v6, 264  ;;  %p1596_p4 = pnand %p1595_p3, %p1589_p0 }
   0xd   :  { %v1022_v13 = vadd.f32 %v1021_v12, %v1020_v11  ;;  %v96_v24 = vrot.slane %v82_v22, %v1669_v19  ;;  %v1687_v27 = vrot.slane %v89_v23, %v1653_v3 }
   0xf   :  { %v1023_v14 = vmul.f32 0.5, %v1022_v13  ;;  %v1690_v28 = vrot.slane %v96_v24, %v1653_v3 }
  0x10   :  { %110 = vbcast.lane.b32.xlu0 %v100_v5, 272  ;;  %177 = vbcast.lane.b32.xlu1 %v167_v6, 272 }
  0x11   :  { %v1658_v15 = vsub.f32 %v21_v2, %v1023_v14 }
  0x13   :  { %1409 = vmatprep.subr.msk.mxu0 %vm28_vm0, %v1658_v15  ;;  %1435 = vmatprep.subr.msk.mxu1 %vm28_vm0, %v1658_v15 }
  0x14   :  { %114 = vbcast.lane.b32.xlu0 %v100_v5, 280  ;;  %181 = vbcast.lane.b32.xlu1 %v167_v6, 280 }
  0x15   :  { %1410 = vmatpush3.msk.msra.mxu0 %vm28_vm0, %v1658_v15  ;;  %1436 = vmatpush3.msk.msra.mxu1 %vm28_vm0, %v1658_v15 }
  0x18   :  { %118 = vbcast.lane.b32.xlu0 %v100_v5, 288  ;;  %185 = vbcast.lane.b32.xlu1 %v167_v6, 288 }
  0x1c   :  { %122 = vbcast.lane.b32.xlu0 %v100_v5, 296  ;;  %189 = vbcast.lane.b32.xlu1 %v167_v6, 296 }
  0x20   :  { %126 = vbcast.lane.b32.xlu0 %v100_v5, 304  ;;  %193 = vbcast.lane.b32.xlu1 %v167_v6, 304 }
  0x24   :  { %130 = vbcast.lane.b32.xlu0 %v100_v5, 312  ;;  %197 = vbcast.lane.b32.xlu1 %v167_v6, 312 }
  0x28   :  { %134 = vbcast.lane.b32.xlu0 %v100_v5, 320  ;;  %201 = vbcast.lane.b32.xlu1 %v167_v6, 320 }
  0x2c   :  { %138 = vbcast.lane.b32.xlu0 %v100_v5, 328  ;;  %205 = vbcast.lane.b32.xlu1 %v167_v6, 328 }
  0x30   :  { %142 = vbcast.lane.b32.xlu0 %v100_v5, 336  ;;  %209 = vbcast.lane.b32.xlu1 %v167_v6, 336 }
  0x34   :  { %146 = vbcast.lane.b32.xlu0 %v100_v5, 344  ;;  %213 = vbcast.lane.b32.xlu1 %v167_v6, 344 }
  0x38   :  { %150 = vbcast.lane.b32.xlu0 %v100_v5, 352  ;;  %217 = vbcast.lane.b32.xlu1 %v167_v6, 352 }
  0x3c   :  { %154 = vbcast.lane.b32.xlu0 %v100_v5, 360  ;;  %221 = vbcast.lane.b32.xlu1 %v167_v6, 360 }
  0x40   :  { %158 = vbcast.lane.b32.xlu0 %v100_v5, 368  ;;  %225 = vbcast.lane.b32.xlu1 %v167_v6, 368 }
  0x44   :  { %162 = vbcast.lane.b32.xlu0 %v100_v5, 376  ;;  %229 = vbcast.lane.b32.xlu1 %v167_v6, 376  ;;  %v63_v6 = vld [vmem:[%s2474_s2 + $0x28] sm:$0xff] }
  0x7a   :  { %v103_v29 = vpop.permute.xlu0 %102  ;;  %v170_v30 = vpop.permute.xlu1 %169 }
  0x7b   :  { %v231_v31 = vmul.f32 %v103_v29, %v58_v26  ;;  %v247_v32 = vmul.f32 %v170_v30, %v58_v26  ;;  %v65_v30 = vld [vmem:[%s2474_s2 + $0x38] sm:$0xff] }
  0x7d   :  { %v273_v34 = vsub.f32 %v1687_v27, %v231_v31  ;;  %v289_v35 = vsub.f32 %v1690_v28, %v247_v32 }
  0x7e   :  { %v107_v36 = vpop.permute.xlu0 %106  ;;  %v174_v37 = vpop.permute.xlu1 %173 }
  0x7f   :  { %v232_v38 = vmul.f32 %v107_v36, %v59_v33  ;;  %v1700_v39 = vsel %vm26_vm1, %v273_v34, -1e+30  ;;  %v248_v40 = vmul.f32 %v174_v37, %v59_v33  ;;  %v1708_v42 = vsel %vm26_vm1, %v289_v35, -1e+30 }
  0x80   :  { %337 = vmax.xlane.f32.xlu0 %v1700_v39 }
  0x81   :  { %v274_v43 = vsub.f32 %v1687_v27, %v232_v38  ;;  %v290_v44 = vsub.f32 %v1690_v28, %v248_v40  ;;  %v66_v40 = vld [vmem:[%s2474_s2 + $0x40] sm:$0xff] }
  0x82   :  { %v111_v45 = vpop.permute.xlu0 %110  ;;  %v178_v46 = vpop.permute.xlu1 %177 }
  0x83   :  { %v233_v47 = vmul.f32 %v111_v45, %v60_v41  ;;  %v1714_v48 = vsel %vm26_vm1, %v274_v43, -1e+30  ;;  %v249_v49 = vmul.f32 %v178_v46, %v60_v41  ;;  %v1723_v51 = vsel %vm26_vm1, %v290_v44, -1e+30 }
  0x84   :  { %369 = vmax.xlane.f32.xlu0 %v1708_v42  ;;  %339 = vmax.xlane.f32.xlu1 %v1714_v48 }
  0x85   :  { %v275_v52 = vsub.f32 %v1687_v27, %v233_v47  ;;  %v291_v53 = vsub.f32 %v1690_v28, %v249_v49 }
  0x86   :  { %v115_v54 = vpop.permute.xlu0 %114  ;;  %v182_v55 = vpop.permute.xlu1 %181 }
  0x87   :  { %v234_v56 = vmul.f32 %v115_v54, %v61_v50  ;;  %v1729_v57 = vsel %vm26_vm1, %v275_v52, -1e+30  ;;  %v250_v58 = vmul.f32 %v182_v55, %v61_v50  ;;  %v1738_v60 = vsel %vm26_vm1, %v291_v53, -1e+30  ;;  %v67_v52 = vld [vmem:[%s2474_s2 + $0x48] sm:$0xff] }
  0x88   :  { %371 = vmax.xlane.f32.xlu0 %v1723_v51  ;;  %341 = vmax.xlane.f32.xlu1 %v1729_v57 }
  0x89   :  { %v276_v61 = vsub.f32 %v1687_v27, %v234_v56  ;;  %v292_v62 = vsub.f32 %v1690_v28, %v250_v58 }
  0x8a   :  { %v119_v63 = vpop.permute.xlu0 %118  ;;  %v186_v0 = vpop.permute.xlu1 %185 }
  0x8b   :  { %v235_v2 = vmul.f32 %v119_v63, %v62_v59  ;;  %v1744_v4 = vsel %vm26_vm1, %v276_v61, -1e+30  ;;  %v251_v5 = vmul.f32 %v186_v0, %v62_v59  ;;  %v1753_v7 = vsel %vm26_vm1, %v292_v62, -1e+30  ;;  %v68_v63 = vld [vmem:[%s2474_s2 + $0x50] sm:$0xff] }
  0x8c   :  { %373 = vmax.xlane.f32.xlu0 %v1738_v60  ;;  %343 = vmax.xlane.f32.xlu1 %v1744_v4 }
  0x8d   :  { %v277_v8 = vsub.f32 %v1687_v27, %v235_v2  ;;  %v293_v9 = vsub.f32 %v1690_v28, %v251_v5 }
  0x8e   :  { %v123_v10 = vpop.permute.xlu0 %122  ;;  %v190_v11 = vpop.permute.xlu1 %189 }
  0x8f   :  { %v236_v12 = vmul.f32 %v123_v10, %v63_v6  ;;  %v1759_v13 = vsel %vm26_vm1, %v277_v8, -1e+30  ;;  %v252_v14 = vmul.f32 %v190_v11, %v63_v6  ;;  %v1768_v17 = vsel %vm26_vm1, %v293_v9, -1e+30 }
  0x90   :  { %375 = vmax.xlane.f32.xlu0 %v1753_v7  ;;  %345 = vmax.xlane.f32.xlu1 %v1759_v13 }
  0x91   :  { %v278_v18 = vsub.f32 %v1687_v27, %v236_v12  ;;  %v294_v21 = vsub.f32 %v1690_v28, %v252_v14  ;;  %v69_v12 = vld [vmem:[%s2474_s2 + $0x58] sm:$0xff] }
  0x92   :  { %v127_v22 = vpop.permute.xlu0 %126  ;;  %v194_v23 = vpop.permute.xlu1 %193 }
  0x93   :  { %v237_v24 = vmul.f32 %v127_v22, %v64_v16  ;;  %v1774_v26 = vsel %vm26_vm1, %v278_v18, -1e+30  ;;  %v253_v29 = vmul.f32 %v194_v23, %v64_v16  ;;  %v1783_v31 = vsel %vm26_vm1, %v294_v21, -1e+30 }
  0x94   :  { %377 = vmax.xlane.f32.xlu0 %v1768_v17  ;;  %347 = vmax.xlane.f32.xlu1 %v1774_v26 }
  0x95   :  { %v279_v32 = vsub.f32 %v1687_v27, %v237_v24  ;;  %v295_v33 = vsub.f32 %v1690_v28, %v253_v29 }
  0x96   :  { %v131_v34 = vpop.permute.xlu0 %130  ;;  %v198_v35 = vpop.permute.xlu1 %197 }
  0x97   :  { %v238_v36 = vmul.f32 %v131_v34, %v65_v30  ;;  %v1789_v37 = vsel %vm26_vm1, %v279_v32, -1e+30  ;;  %v254_v38 = vmul.f32 %v198_v35, %v65_v30  ;;  %v1798_v41 = vsel %vm26_vm1, %v295_v33, -1e+30  ;;  %v70_v30 = vld [vmem:[%s2474_s2 + $0x60] sm:$0xff] }
  0x98   :  { %379 = vmax.xlane.f32.xlu0 %v1783_v31  ;;  %349 = vmax.xlane.f32.xlu1 %v1789_v37 }
  0x99   :  { %v280_v43 = vsub.f32 %v1687_v27, %v238_v36  ;;  %v296_v44 = vsub.f32 %v1690_v28, %v254_v38 }
  0x9a   :  { %v135_v45 = vpop.permute.xlu0 %134  ;;  %v202_v46 = vpop.permute.xlu1 %201 }
  0x9b   :  { %v239_v47 = vmul.f32 %v135_v45, %v66_v40  ;;  %v1804_v49 = vsel %vm26_vm1, %v280_v43, -1e+30  ;;  %v255_v50 = vmul.f32 %v202_v46, %v66_v40  ;;  %v1813_v53 = vsel %vm26_vm1, %v296_v44, -1e+30  ;;  %v71_v44 = vld [vmem:[%s2474_s2 + $0x68] sm:$0xff] }
  0x9c   :  { %381 = vmax.xlane.f32.xlu0 %v1798_v41  ;;  %351 = vmax.xlane.f32.xlu1 %v1804_v49 }
  0x9d   :  { %v281_v54 = vsub.f32 %v1687_v27, %v239_v47  ;;  %v297_v55 = vsub.f32 %v1690_v28, %v255_v50 }
  0x9e   :  { %v139_v56 = vpop.permute.xlu0 %138  ;;  %v206_v58 = vpop.permute.xlu1 %205 }
  0x9f   :  { %v240_v59 = vmul.f32 %v139_v56, %v67_v52  ;;  %v1819_v61 = vsel %vm26_vm1, %v281_v54, -1e+30  ;;  %v256_v62 = vmul.f32 %v206_v58, %v67_v52  ;;  %v1828_v0 = vsel %vm26_vm1, %v297_v55, -1e+30  ;;  %v72_v58 = vld [vmem:[%s2474_s2 + $0x70] sm:$0xff] }
  0xa0   :  { %383 = vmax.xlane.f32.xlu0 %v1813_v53  ;;  %353 = vmax.xlane.f32.xlu1 %v1819_v61 }
  0xa1   :  { %v282_v2 = vsub.f32 %v1687_v27, %v240_v59  ;;  %v298_v5 = vsub.f32 %v1690_v28, %v256_v62 }
  0xa2   :  { %v143_v6 = vpop.permute.xlu0 %142  ;;  %v210_v8 = vpop.permute.xlu1 %209 }
  0xa3   :  { %v241_v9 = vmul.f32 %v143_v6, %v68_v63  ;;  %v1834_v10 = vsel %vm26_vm1, %v282_v2, -1e+30  ;;  %v257_v11 = vmul.f32 %v210_v8, %v68_v63  ;;  %v1843_v14 = vsel %vm26_vm1, %v298_v5, -1e+30 }
  0xa4   :  { %385 = vmax.xlane.f32.xlu0 %v1828_v0  ;;  %355 = vmax.xlane.f32.xlu1 %v1834_v10 }
  0xa5   :  { %v283_v16 = vsub.f32 %v1687_v27, %v241_v9  ;;  %v299_v18 = vsub.f32 %v1690_v28, %v257_v11  ;;  %v73_v11 = vld [vmem:[%s2474_s2 + $0x78] sm:$0xff] }
  0xa6   :  { %v147_v21 = vpop.permute.xlu0 %146  ;;  %v214_v22 = vpop.permute.xlu1 %213 }
  0xa7   :  { %v242_v23 = vmul.f32 %v147_v21, %v69_v12  ;;  %v1849_v24 = vsel %vm26_vm1, %v283_v16, -1e+30  ;;  %v258_v29 = vmul.f32 %v214_v22, %v69_v12  ;;  %v1858_v32 = vsel %vm26_vm1, %v299_v18, -1e+30 }
  0xa8   :  { %387 = vmax.xlane.f32.xlu0 %v1843_v14  ;;  %357 = vmax.xlane.f32.xlu1 %v1849_v24 }
  0xa9   :  { %v284_v33 = vsub.f32 %v1687_v27, %v242_v23  ;;  %v300_v34 = vsub.f32 %v1690_v28, %v258_v29 }
  0xaa   :  { %v151_v35 = vpop.permute.xlu0 %150  ;;  %v218_v36 = vpop.permute.xlu1 %217 }
  0xab   :  { %v243_v38 = vmul.f32 %v151_v35, %v70_v30  ;;  %v1864_v40 = vsel %vm26_vm1, %v284_v33, -1e+30  ;;  %v259_v43 = vmul.f32 %v218_v36, %v70_v30  ;;  %v1873_v45 = vsel %vm26_vm1, %v300_v34, -1e+30 }
  0xac   :  { %389 = vmax.xlane.f32.xlu0 %v1858_v32  ;;  %359 = vmax.xlane.f32.xlu1 %v1864_v40  ;;  %v1922_v36 = vsel %vm26_vm1, %v1674_v20, -1e+30  ;;  %v1613_v20 = vmov 0  }
  0xad   :  { %v285_v46 = vsub.f32 %v1687_v27, %v243_v38  ;;  %v301_v47 = vsub.f32 %v1690_v28, %v259_v43  ;;  %1447 = vset.pattern.permute.xlu1 %v1613_v20 }
  0xae   :  { %v155_v50 = vpop.permute.xlu0 %154  ;;  %v222_v52 = vpop.permute.xlu1 %221 }
  0xaf   :  { %v244_v54 = vmul.f32 %v155_v50, %v71_v44  ;;  %v1879_v55 = vsel %vm26_vm1, %v285_v46, -1e+30  ;;  %v260_v56 = vmul.f32 %v222_v52, %v71_v44  ;;  %v1888_v59 = vsel %vm26_vm1, %v301_v47, -1e+30 }
  0xb0   :  { %391 = vmax.xlane.f32.xlu0 %v1873_v45  ;;  %361 = vmax.xlane.f32.xlu1 %v1879_v55 }
  0xb1   :  { %v286_v62 = vsub.f32 %v1687_v27, %v244_v54  ;;  %v302_v63 = vsub.f32 %v1690_v28, %v260_v56 }
  0xb2   :  { %v159_v2 = vpop.permute.xlu0 %158  ;;  %v226_v5 = vpop.permute.xlu1 %225 }
  0xb3   :  { %v245_v6 = vmul.f32 %v159_v2, %v72_v58  ;;  %v1894_v8 = vsel %vm26_vm1, %v286_v62, -1e+30  ;;  %v261_v9 = vmul.f32 %v226_v5, %v72_v58  ;;  %v1903_v12 = vsel %vm26_vm1, %v302_v63, -1e+30 }
  0xb4   :  { %393 = vmax.xlane.f32.xlu0 %v1888_v59  ;;  %363 = vmax.xlane.f32.xlu1 %v1894_v8 }
  0xb5   :  { %v287_v16 = vsub.f32 %v1687_v27, %v245_v6  ;;  %v303_v18 = vsub.f32 %v1690_v28, %v261_v9 }
  0xb6   :  { %v163_v21 = vpop.permute.xlu0 %162  ;;  %v230_v22 = vpop.permute.xlu1 %229 }
  0xb7   :  { %v246_v23 = vmul.f32 %v163_v21, %v73_v11  ;;  %v1909_v29 = vsel %vm26_vm1, %v287_v16, -1e+30  ;;  %v262_v30 = vmul.f32 %v230_v22, %v73_v11  ;;  %v1915_v33 = vsel %vm26_vm1, %v303_v18, -1e+30 }
  0xb8   :  { %395 = vmax.xlane.f32.xlu0 %v1903_v12  ;;  %365 = vmax.xlane.f32.xlu1 %v1909_v29 }
  0xb9   :  { %v288_v34 = vsub.f32 %v1687_v27, %v246_v23  ;;  %v304_v35 = vsub.f32 %v1690_v28, %v262_v30  ;;  %v29_v27 = vsel %vm28_vm0, %v1922_v36, -inf }
  0xbb   :  { %v1926_v38 = vsel %vm26_vm1, %v288_v34, -1e+30  ;;  %v1932_v43 = vsel %vm26_vm1, %v304_v35, -1e+30 }
  0xbc   :  { %397 = vmax.xlane.f32.xlu0 %v1915_v33  ;;  %367 = vmax.xlane.f32.xlu1 %v1926_v38 }
  0xc0   :  { %399 = vmax.xlane.f32.xlu0 %v1932_v43  ;;  %30 = vmax.xlane.f32.xlu1 %v29_v27 }
  0xed   :  { %1025 = vxpose.xlu0.b32.start.end [1/1] (short) %v1658_v15, 128 }
 0x10d   :  { %v338_v28 = vpop.xlane.xlu0 %337 }
 0x10e   :  { %v401_v44 = vsub.f32 %v1700_v39, %v338_v28 }
 0x110   :  { %v433_v46 = vmul.f32 1.442695, %v401_v44 }
 0x111   :  { %v340_v47 = vpop.xlane.xlu1 %339  ;;  %v370_v50 = vpop.xlane.xlu0 %369 }
 0x112   :  { %1449 = vpow2.f32 %v433_v46  ;;  %v402_v52 = vsub.f32 %v1714_v48, %v340_v47  ;;  %v417_v54 = vsub.f32 %v1708_v42, %v370_v50 }
 0x114   :  { %v435_v56 = vmul.f32 1.442695, %v402_v52  ;;  %v465_v63 = vmul.f32 1.442695, %v417_v54 }
 0x115   :  { %v342_v58 = vpop.xlane.xlu1 %341  ;;  %v372_v62 = vpop.xlane.xlu0 %371 }
 0x116   :  { %1451 = vpow2.f32 %v435_v56  ;;  %v418_v15 = vsub.f32 %v1723_v51, %v372_v62  ;;  %1448 = vset.pattern.permute.xlu0 %v1613_v20  ;;  %v403_v39 = vsub.f32 %v1729_v57, %v342_v58 }
 0x117   :  { %1453 = vpow2.f32 %v465_v63 }
 0x118   :  { %v467_v5 = vmul.f32 1.442695, %v418_v15  ;;  %v437_v42 = vmul.f32 1.442695, %v403_v39 }
 0x119   :  { %v344_v2 = vpop.xlane.xlu1 %343  ;;  %v374_v6 = vpop.xlane.xlu0 %373 }
 0x11a   :  { %1455 = vpow2.f32 %v467_v5  ;;  %v419_v48 = vsub.f32 %v1738_v60, %v374_v6  ;;  %v404_v57 = vsub.f32 %v1744_v4, %v344_v2 }
 0x11b   :  { %1457 = vpow2.f32 %v437_v42 }
 0x11c   :  { %v1943_v9 = vpop.eup %1449  ;;  %v469_v21 = vmul.f32 1.442695, %v419_v48  ;;  %v439_v30 = vmul.f32 1.442695, %v404_v57 }
 0x11d   :  { %v346_v11 = vpop.xlane.xlu1 %345  ;;  %497 = vadd.xlane.f32.xlu1 %v1943_v9  ;;  %v376_v18 = vpop.xlane.xlu0 %375 }
 0x11e   :  { %1459 = vpow2.f32 %v469_v21  ;;  %v420_v34 = vsub.f32 %v1753_v7, %v376_v18  ;;  %v405_v20 = vsub.f32 %v1759_v13, %v346_v11 }
 0x11f   :  { %1461 = vpow2.f32 %v439_v30 }
 0x120   :  { %v1947_v16 = vpop.eup %1451  ;;  %v471_v4 = vmul.f32 1.442695, %v420_v34  ;;  %v441_v47 = vmul.f32 1.442695, %v405_v20 }
 0x121   :  { %v348_v51 = vpop.xlane.xlu1 %347  ;;  %499 = vadd.xlane.f32.xlu1 %v1947_v16  ;;  %v1951_v22 = vpop.eup %1453 }
 0x122   :  { %v378_v60 = vpop.xlane.xlu0 %377  ;;  %1463 = vpow2.f32 %v471_v4  ;;  %v406_v13 = vsub.f32 %v1774_v26, %v348_v51 }
 0x123   :  { %v421_v7 = vsub.f32 %v1768_v17, %v378_v60  ;;  %1465 = vpow2.f32 %v441_v47 }
 0x124   :  { %v1955_v35 = vpop.eup %1455  ;;  %v443_v63 = vmul.f32 1.442695, %v406_v13 }
 0x125   :  { %v350_v23 = vpop.xlane.xlu1 %349  ;;  %529 = vadd.xlane.f32.xlu1 %v1951_v22  ;;  %v1959_v28 = vpop.eup %1457  ;;  %v473_v54 = vmul.f32 1.442695, %v421_v7 }
 0x126   :  { %v380_v44 = vpop.xlane.xlu0 %379  ;;  %v407_v20 = vsub.f32 %v1789_v37, %v350_v23 }
 0x127   :  { %1467 = vpow2.f32 %v473_v54  ;;  %v422_v42 = vsub.f32 %v1783_v31, %v380_v44 }
 0x128   :  { %v1965_v50 = vpop.eup %1459  ;;  %1469 = vpow2.f32 %v443_v63  ;;  %v445_v44 = vmul.f32 1.442695, %v407_v20 }
 0x129   :  { %v352_v27 = vpop.xlane.xlu1 %351  ;;  %531 = vadd.xlane.f32.xlu1 %v1955_v35  ;;  %v1971_v58 = vpop.eup %1461  ;;  %v475_v57 = vmul.f32 1.442695, %v422_v42 }
 0x12a   :  { %v382_v56 = vpop.xlane.xlu0 %381  ;;  %v408_v13 = vsub.f32 %v1804_v49, %v352_v27 }
 0x12b   :  { %1471 = vpow2.f32 %v475_v57  ;;  %v423_v47 = vsub.f32 %v1798_v41, %v382_v56 }
 0x12c   :  { %v1976_v17 = vpop.eup %1463 }
 0x12d   :  { %v1961_v46 = vpop.xlane.xlu1 %353  ;;  %501 = vadd.xlane.f32.xlu1 %v1959_v28  ;;  %v1981_v39 = vpop.eup %1465  ;;  %v477_v54 = vmul.f32 1.442695, %v423_v47 }
 0x12e   :  { %v384_v15 = vpop.xlane.xlu0 %383  ;;  %v409_v56 = vsub.f32 %v1819_v61, %v1961_v46 }
 0x12f   :  { %v424_v37 = vsub.f32 %v1813_v53, %v384_v15 }
 0x130   :  { %v449_v57 = vmul.f32 1.442695, %v409_v56 }
 0x131   :  { %v1967_v52 = vpop.xlane.xlu1 %355  ;;  %533 = vadd.xlane.f32.xlu1 %v1965_v50  ;;  %v1986_v6 = vpop.eup %1467  ;;  %v479_v49 = vmul.f32 1.442695, %v424_v37 }
 0x132   :  { %v386_v5 = vpop.xlane.xlu0 %385  ;;  %v1992_v48 = vpop.eup %1469  ;;  %v410_v20 = vsub.f32 %v1834_v10, %v1967_v52 }
 0x133   :  { %v425_v53 = vsub.f32 %v1828_v0, %v386_v5 }
 0x134   :  { %v451_v0 = vmul.f32 1.442695, %v410_v20 }
 0x135   :  { %v1973_v62 = vpop.xlane.xlu1 %357  ;;  %503 = vadd.xlane.f32.xlu1 %v1971_v58  ;;  %v2007_v7 = vpop.eup %1471  ;;  %v481_v61 = vmul.f32 1.442695, %v425_v53 }
 0x136   :  { %v388_v18 = vpop.xlane.xlu0 %387  ;;  %v411_v52 = vsub.f32 %v1849_v24, %v1973_v62 }
 0x137   :  { %v426_v5 = vsub.f32 %v1843_v14, %v388_v18 }
 0x138   :  { %v453_v14 = vmul.f32 1.442695, %v411_v52 }
 0x139   :  { %v1978_v2 = vpop.xlane.xlu1 %359  ;;  %535 = vadd.xlane.f32.xlu1 %v1976_v17 }
 0x13a   :  { %v390_v30 = vpop.xlane.xlu0 %389  ;;  %v412_v24 = vsub.f32 %v1864_v40, %v1978_v2 }
 0x13b   :  { %v427_v18 = vsub.f32 %v1858_v32, %v390_v30 }
 0x13d   :  { %v1983_v26 = vpop.xlane.xlu1 %361  ;;  %505 = vadd.xlane.f32.xlu1 %v1981_v39  ;;  %v485_v62 = vmul.f32 1.442695, %v427_v18 }
 0x13e   :  { %v2004_v4 = vpop.xlane.xlu0 %391  ;;  %v413_v40 = vsub.f32 %v1879_v55, %v1983_v26 }
 0x13f   :  { %v428_v32 = vsub.f32 %v1873_v45, %v2004_v4 }
 0x141   :  { %v1988_v11 = vpop.xlane.xlu1 %363  ;;  %537 = vadd.xlane.f32.xlu1 %v1986_v6  ;;  %v487_v2 = vmul.f32 1.442695, %v428_v32 }
 0x142   :  { %v2011_v63 = vpop.xlane.xlu0 %393  ;;  %v414_v55 = vsub.f32 %v1894_v8, %v1988_v11 }
 0x143   :  { %v429_v45 = vsub.f32 %v1888_v59, %v2011_v63 }
 0x145   :  { %v1994_v51 = vpop.xlane.xlu1 %365  ;;  %507 = vadd.xlane.f32.xlu1 %v1992_v48  ;;  %v489_v26 = vmul.f32 1.442695, %v429_v45 }
 0x146   :  { %v2016_v42 = vpop.xlane.xlu0 %395  ;;  %v415_v8 = vsub.f32 %v1909_v29, %v1994_v51 }
 0x147   :  { %v430_v59 = vsub.f32 %v1903_v12, %v2016_v42 }
 0x149   :  { %v1997_v21 = vpop.xlane.xlu1 %367  ;;  %v491_v11 = vmul.f32 1.442695, %v430_v59 }
 0x14a   :  { %v2026_v15 = vpop.xlane.xlu0 %397  ;;  %v416_v29 = vsub.f32 %v1926_v38, %v1997_v21 }
 0x14b   :  { %v431_v12 = vsub.f32 %v1915_v33, %v2026_v15 }
 0x14c   :  { %v463_v33 = vmul.f32 1.442695, %v416_v29 }
 0x14d   :  { %v1999_v34 = vpop.xlane.xlu1 %30  ;;  %v493_v51 = vmul.f32 1.442695, %v431_v12 }
 0x14e   :  { %2487 = vst [vmem:[#allocation6_spill] sm:$0xff] %v1999_v34  ;;  %v32_v60 = vsub.f32 %v1922_v36, %v1999_v34  ;;  %v447_v36 = vmul.f32 1.442695, %v408_v13  ;;  %v483_v13 = vmul.f32 1.442695, %v426_v5 }
 0x150   :  { %v33_v31 = vmul.f32 1.442695, %v32_v60 }
 0x152   :  { %1473 = vpow2.f32 %v33_v31  ;;  %v2035_v31 = vpop.xlane.xlu0 %399 }
 0x153   :  { %1475 = vpow2.f32 %v445_v44  ;;  %v2040_v44 = vld [vmem:[%s2475_s3] sm:$0x3]  ;;  %v432_v38 = vsub.f32 %v1932_v43, %v2035_v31 }
 0x154   :  { %1477 = vpow2.f32 %v477_v54 }
 0x155   :  { %1479 = vpow2.f32 %v447_v36 }
 0x156   :  { %539 = vadd.xlane.f32.xlu0 %v2007_v7  ;;  %1481 = vpow2.f32 %v479_v49 }
 0x157   :  { %1483 = vpow2.f32 %v449_v57  ;;  %v455_v57 = vmul.f32 1.442695, %v412_v24 }
 0x158   :  { %1485 = vpow2.f32 %v481_v61 }
 0x159   :  { %1487 = vpow2.f32 %v451_v0  ;;  %v457_v0 = vmul.f32 1.442695, %v413_v40 }
 0x15a   :  { %1489 = vpow2.f32 %v483_v13 }
 0x15b   :  { %1491 = vpow2.f32 %v453_v14  ;;  %v459_v14 = vmul.f32 1.442695, %v414_v55 }
 0x15c   :  { %v2014_v23 = vpop.eup %1473  ;;  %1493 = vpow2.f32 %v485_v62 }
 0x15d   :  { %v35_v41 = vsel %vm28_vm0, %v2014_v23, 0.0  ;;  %v2022_v27 = vpop.eup %1475  ;;  %1495 = vpow2.f32 %v455_v57  ;;  %v461_v57 = vmul.f32 1.442695, %v415_v8 }
 0x15e   :  { %36 = vadd.xlane.f32.xlu1 %v35_v41  ;;  %v2028_v60 = vpop.eup %1477  ;;  %1497 = vpow2.f32 %v487_v2 }
 0x15f   :  { %v2033_v46 = vpop.eup %1479  ;;  %1499 = vpow2.f32 %v457_v0 }
 0x160   :  { %v2045_v47 = vpop.eup %1481  ;;  %1501 = vpow2.f32 %v489_v26 }
 0x161   :  { %2488 = vst [vmem:[#allocation7_spill] sm:$0xff] %v2045_v47  ;;  %v2052_v54 = vpop.eup %1483  ;;  %1503 = vpow2.f32 %v459_v14 }
 0x162   :  { %509 = vadd.xlane.f32.xlu1 %v2022_v27  ;;  %v2058_v37 = vpop.eup %1485  ;;  %1505 = vpow2.f32 %v491_v11 }
 0x163   :  { %2489 = vst [vmem:[#allocation8_spill] sm:$0xff] %v2058_v37  ;;  %v2063_v56 = vpop.eup %1487  ;;  %1507 = vpow2.f32 %v461_v57 }
 0x164   :  { %v2068_v30 = vpop.eup %1489  ;;  %1509 = vpow2.f32 %v493_v51 }
 0x165   :  { %2490 = vst [vmem:[#allocation9_spill] sm:$0xff] %v2068_v30  ;;  %v2073_v20 = vpop.eup %1491  ;;  %1511 = vpow2.f32 %v463_v33 }
 0x166   :  { %541 = vadd.xlane.f32.xlu1 %v2028_v60  ;;  %v2078_v4 = vpop.eup %1493 }
 0x167   :  { %2491 = vst [vmem:[#allocation10_spill] sm:$0xff] %v2078_v4  ;;  %v2083_v52 = vpop.eup %1495 }
 0x168   :  { %v2088_v63 = vpop.eup %1497 }
 0x169   :  { %2492 = vst [vmem:[#allocation11_spill] sm:$0xff] %v2088_v63  ;;  %v2093_v24 = vpop.eup %1499 }
 0x16a   :  { %511 = vadd.xlane.f32.xlu1 %v2033_v46  ;;  %v2098_v42 = vpop.eup %1501 }
 0x16b   :  { %v2106_v40 = vpop.eup %1503 }
 0x16c   :  { %42 = vperm.xlu0 %1448, %v2040_v44   ;;  %v2116_v21 = vpop.eup %1505 }
 0x16d   :  { %v2047_v10 = vpop.trf.xlu0 }
 0x16e   :  { %543 = vadd.xlane.f32.xlu1 %v2045_v47  ;;  %1411 = vmatprep.mubr.msk.f32.mxu0 %vm1057_vm2, %v2047_v10  ;;  %v495_v10 = vmul.f32 1.442695, %v432_v38 }
 0x170   :  { %1513 = vpow2.f32 %v495_v10 }
 0x171   :  { %v2054_v36 = vpop.trf.xlu0 }
 0x172   :  { %513 = vadd.xlane.f32.xlu1 %v2052_v54  ;;  %1412 = vmatmul.mubr.msk.f32.vlgmr.msra.gmra.mrb[0].mxu0 %vm1057_vm2, %v2054_v36  ;;  %v2123_v36 = vpop.eup %1507 }
 0x173   :  { %v2129_v31 = vpop.eup %1509 }
 0x175   :  { %v1043_v41 = vpop.trf.xlu0 }
 0x176   :  { %545 = vadd.xlane.f32.xlu1 %v2058_v37  ;;  %1414 = vmatprep.mubr.msk.f32.mxu0 %vm1057_vm2, %v1043_v41 }
 0x179   :  { %v1044_v49 = vpop.trf.xlu0 }
 0x17a   :  { %515 = vadd.xlane.f32.xlu1 %v2063_v56  ;;  %1415 = vmatmul.mubr.msk.f32.gmra.mrb[2].mxu0 %vm1057_vm2, %v1044_v49  ;;  %v2134_v49 = vpop.eup %1511 }
 0x17b   :  { %v2138_v0 = vpop.eup %1513 }
 0x17d   :  { %v1045_v53 = vpop.trf.xlu0 }
 0x17e   :  { %547 = vadd.xlane.f32.xlu1 %v2068_v30  ;;  %1417 = vmatprep.mubr.msk.f32.mxu0 %vm1057_vm2, %v1045_v53 }
 0x181   :  { %v1046_v61 = vpop.trf.xlu0 }
 0x182   :  { %517 = vadd.xlane.f32.xlu1 %v2073_v20  ;;  %1418 = vmatmul.mubr.msk.f32.gmra.mrb[4].mxu0 %vm1057_vm2, %v1046_v61 }
 0x185   :  { %v1047_v5 = vpop.trf.xlu0 }
 0x186   :  { %549 = vadd.xlane.f32.xlu1 %v2078_v4  ;;  %1420 = vmatprep.mubr.msk.f32.mxu0 %vm1057_vm2, %v1047_v5  ;;  %v631_v5 = vrot.slane %v2040_v44, %v1669_v19 }
 0x188   :  { %v632_v55 = vcombine.high %v631_v5, %v631_v5  ;;  %v639_v26 = vrot.slane %v631_v5, %v1669_v19 }
 0x189   :  { %v1048_v13 = vpop.trf.xlu0 }
 0x18a   :  { %519 = vadd.xlane.f32.xlu1 %v2083_v52  ;;  %1421 = vmatmul.mubr.msk.f32.gmra.mrb[6].mxu0 %vm1057_vm2, %v1048_v13  ;;  %v646_v14 = vrot.slane %v632_v55, %v1669_v19  ;;  %v650_v59 = vrot.slane %v639_v26, %v1653_v3 }
 0x18c   :  { %v654_v8 = vrot.slane %v646_v14, %v1653_v3 }
 0x18d   :  { %v1049_v18 = vpop.trf.xlu0 }
 0x18e   :  { %551 = vadd.xlane.f32.xlu1 %v2088_v63  ;;  %1423 = vmatprep.mubr.msk.f32.mxu1 %vm1057_vm2, %v1049_v18 }
 0x191   :  { %v1050_v62 = vpop.trf.xlu0 }
 0x192   :  { %521 = vadd.xlane.f32.xlu1 %v2093_v24  ;;  %1424 = vmatmul.mubr.msk.f32.vlgmr.msra.gmra.mrb[0].mxu1 %vm1057_vm2, %v1050_v62 }
 0x195   :  { %v1051_v32 = vpop.trf.xlu0 }
 0x196   :  { %553 = vadd.xlane.f32.xlu1 %v2098_v42  ;;  %1426 = vmatprep.mubr.msk.f32.mxu1 %vm1057_vm2, %v1051_v32 }
 0x199   :  { %v1052_v2 = vpop.trf.xlu0 }
 0x19a   :  { %523 = vadd.xlane.f32.xlu1 %v2106_v40  ;;  %1427 = vmatmul.mubr.msk.f32.gmra.mrb[2].mxu1 %vm1057_vm2, %v1052_v2 }
 0x19d   :  { %v1053_v15 = vpop.trf.xlu0 }
 0x19e   :  { %555 = vadd.xlane.f32.xlu1 %v2116_v21  ;;  %1429 = vmatprep.mubr.msk.f32.mxu1 %vm1057_vm2, %v1053_v15 }
 0x1a1   :  { %v1054_v43 = vpop.trf.xlu0 }
 0x1a2   :  { %525 = vadd.xlane.f32.xlu1 %v2123_v36  ;;  %1430 = vmatmul.mubr.msk.f32.gmra.mrb[4].mxu1 %vm1057_vm2, %v1054_v43 }
 0x1a5   :  { %v1055_v41 = vpop.trf.xlu0 }
 0x1a6   :  { %557 = vadd.xlane.f32.xlu1 %v2129_v31  ;;  %1432 = vmatprep.mubr.msk.f32.mxu1 %vm1057_vm2, %v1055_v41 }
 0x1a9   :  { %v1056_v53 = vpop.trf.xlu0 }
 0x1aa   :  { %527 = vadd.xlane.f32.xlu1 %v2134_v49  ;;  %1433 = vmatmul.mubr.msk.f32.gmra.mrb[6].mxu1 %vm1057_vm2, %v1056_v53  ;;  %v498_v61 = vpop.xlane.xlu1 %497 }
 0x1ab   :  { %1515 = vrcp.f32 %v498_v61 }
 0x1ae   :  { %559 = vadd.xlane.f32.xlu1 %v2138_v0  ;;  %v500_v45 = vpop.xlane.xlu1 %499 }
 0x1af   :  { %1517 = vrcp.f32 %v500_v45 }
 0x1b2   :  { %v530_v13 = vpop.xlane.xlu1 %529 }
 0x1b3   :  { %1519 = vrcp.f32 %v530_v13  ;;  %v1614_v13 = vmov 0.0  }
 0x1b5   :  { %v1516_v37 = vpop.eup %1515 }
 0x1b6   :  { %v532_v18 = vpop.xlane.xlu1 %531  ;;  %v562_v61 = vmul.f32 %v1516_v37, %v1943_v9 }
 0x1b7   :  { %1521 = vrcp.f32 %v532_v18 }
 0x1ba   :  { %v502_v11 = vpop.xlane.xlu1 %501 }
 0x1be   :  { %v534_v62 = vpop.xlane.xlu1 %533 }
 0x1bf   :  { %656 = vperm.xlu1 %1447, %v650_v59  }
 0x1c2   :  { %v504_v57 = vpop.xlane.xlu1 %503 }
 0x1c3   :  { %659 = vperm.xlu1 %1447, %v654_v8  }
 0x1c6   :  { %v2147_v12 = vpop.xlane.xlu1 %535 }
 0x1ca   :  { %v2149_v32 = vpop.xlane.xlu1 %505 }
 0x1ce   :  { %v2151_v44 = vpop.xlane.xlu1 %537 }
 0x1d2   :  { %v2153_v29 = vpop.xlane.xlu1 %507 }
 0x1eb   :  { %v2155_v51 = vpop.xlane.xlu1 %36 }
 0x1ef   :  { %v510_v19 = vpop.xlane.xlu1 %509 }
 0x1f0   :  { %1523 = vrcp.f32 %v510_v19 }
 0x1f3   :  { %v2157_v2 = vpop.xlane.xlu1 %541 }
 0x1f7   :  { %v512_v33 = vpop.xlane.xlu1 %511 }
 0x1fb   :  { %v2159_v38 = vpop.xlane.xlu1 %543 }
 0x1ff   :  { %v514_v3 = vpop.xlane.xlu1 %513 }
 0x203   :  { %v2161_v15 = vpop.xlane.xlu1 %545 }
 0x207   :  { %v516_v10 = vpop.xlane.xlu1 %515 }
 0x20b   :  { %v2163_v43 = vpop.xlane.xlu1 %547 }
 0x20f   :  { %v2165_v41 = vpop.xlane.xlu1 %517 }
 0x213   :  { %v2167_v53 = vpop.xlane.xlu1 %549 }
 0x217   :  { %v2169_v5 = vpop.xlane.xlu1 %519 }
 0x21b   :  { %v2171_v55 = vpop.xlane.xlu1 %551 }
 0x21c   :  { %2493 = vst [vmem:[#allocation12_spill] sm:$0xff] %v2171_v55  ;;  %v1518_v55 = vpop.eup %1517 }
 0x21d   :  { %v1520_v47 = vpop.eup %1519 }
 0x21e   :  { %v1522_v45 = vpop.eup %1521 }
 0x21f   :  { %v2173_v26 = vpop.xlane.xlu1 %521  ;;  %v1524_v19 = vpop.eup %1523  ;;  %v596_v9 = vmul.f32 %v1522_v45, %v1955_v35 }
 0x223   :  { %v554_v14 = vpop.xlane.xlu1 %553 }
 0x224   :  { %1525 = vrcp.f32 %v554_v14 }
 0x227   :  { %v2175_v59 = vpop.xlane.xlu1 %523 }
 0x22b   :  { %v556_v8 = vpop.xlane.xlu1 %555 }
 0x22c   :  { %1527 = vrcp.f32 %v556_v8 }
 0x22e   :  { %v1526_v14 = vpop.eup %1525 }
 0x22f   :  { %v2177_v34 = vpop.xlane.xlu1 %525 }
 0x233   :  { %v558_v63 = vpop.xlane.xlu1 %557 }
 0x234   :  { %1529 = vrcp.f32 %v558_v63 }
 0x237   :  { %v2179_v4 = vpop.xlane.xlu1 %527 }
 0x23b   :  { %v560_v30 = vpop.xlane.xlu1 %559 }
 0x23c   :  { %1531 = vrcp.f32 %v560_v30 }
 0x23d   :  { %1533 = vrcp.f32 %v502_v11  ;;  %v1528_v11 = vpop.eup %1527 }
 0x23e   :  { %1535 = vrcp.f32 %v512_v33  ;;  %v1530_v37 = vpop.eup %1529  ;;  %v620_v35 = vmul.f32 %v1528_v11, %v2116_v21 }
 0x23f   :  { %v657_v1 = vpop.permute.xlu1 %656  ;;  %1537 = vrcp.f32 %v534_v62 }
 0x240   :  { %vm661_vm3 = vcmp.eq.s32.totalorder %v1681_v25, %v657_v1  ;;  %1539 = vrcp.f32 %v514_v3  ;;  %v564_v1 = vmul.f32 %v1518_v55, %v1947_v16  ;;  %v574_v3 = vmul.f32 %v1524_v19, %v2022_v27 }
 0x241   :  { %v2184_v18 = vsel %vm661_vm3, 1.0, %v1614_v13  ;;  %1541 = vrcp.f32 %v504_v57  ;;  %v618_v16 = vmul.f32 %v1526_v14, %v2098_v42  ;;  %v622_v55 = vmul.f32 %v1530_v37, %v2129_v31 }
 0x242   :  { %v667_v63 = vmul.f32 %v2184_v18, %v562_v61  ;;  %v668_v62 = vmul.f32 %v2184_v18, %v564_v1  ;;  %1543 = vrcp.f32 %v516_v10  ;;  %v673_v45 = vmul.f32 %v2184_v18, %v574_v3 }
 0x243   :  { %v660_v30 = vpop.permute.xlu1 %659  ;;  %1545 = vrcp.f32 %v2147_v12 }
 0x244   :  { %vm662_vm4 = vcmp.eq.s32.totalorder %v1681_v25, %v660_v30  ;;  %699 = vadd.xlane.f32.xlu1 %v667_v63  ;;  %v594_v30 = vmul.f32 %v1520_v47, %v1951_v22  ;;  %1547 = vrcp.f32 %v2165_v41 }
 0x245   :  { %v2191_v33 = vsel %vm662_vm4, 1.0, %v1614_v13  ;;  %1549 = vrcp.f32 %v2149_v32 }
 0x246   :  { %v684_v8 = vmul.f32 %v2191_v33, %v596_v9  ;;  %v1532_v61 = vpop.eup %1531  ;;  %v683_v10 = vmul.f32 %v2191_v33, %v594_v30  ;;  %v2204_v27 = vmul.f32 %v2191_v33, %v618_v16  ;;  %v2207_v22 = vmul.f32 %v2191_v33, %v620_v35 }
 0x247   :  { %v1534_v63 = vpop.eup %1533  ;;  %v2210_v47 = vmul.f32 %v2191_v33, %v622_v55  ;;  %v624_v42 = vmul.f32 %v1532_v61, %v2138_v0  ;;  %1551 = vrcp.f32 %v2169_v5 }
 0x248   :  { %701 = vadd.xlane.f32.xlu1 %v668_v62  ;;  %733 = vadd.xlane.f32.xlu0 %v684_v8  ;;  %v1536_v57 = vpop.eup %1535  ;;  %v566_v12 = vmul.f32 %v1534_v63, %v1959_v28  ;;  %1553 = vrcp.f32 %v2151_v44  ;;  %v540_v44 = vpop.xlane.xlu0 %539 }
 0x249   :  { %v1538_v21 = vpop.eup %1537  ;;  %v576_v31 = vmul.f32 %v1536_v57, %v2033_v46  ;;  %v2217_v19 = vmul.f32 %v2191_v33, %v624_v42  ;;  %1555 = vrcp.f32 %v2173_v26 }
 0x24a   :  { %v1540_v14 = vpop.eup %1539  ;;  %v669_v1 = vmul.f32 %v2184_v18, %v566_v12  ;;  %v598_v46 = vmul.f32 %v1538_v21, %v1965_v50  ;;  %1557 = vrcp.f32 %v2153_v29 }
 0x24b   :  { %v674_v11 = vmul.f32 %v2184_v18, %v576_v31  ;;  %v1542_v0 = vpop.eup %1541  ;;  %v578_v41 = vmul.f32 %v1540_v14, %v2052_v54  ;;  %1559 = vrcp.f32 %v2175_v59 }
 0x24c   :  { %711 = vadd.xlane.f32.xlu0 %v673_v45  ;;  %731 = vadd.xlane.f32.xlu1 %v683_v10  ;;  %v1544_v28 = vpop.eup %1543  ;;  %v685_v32 = vmul.f32 %v2191_v33, %v598_v46  ;;  %v568_v62 = vmul.f32 %v1542_v0, %v1971_v58  ;;  %1561 = vrcp.f32 %v540_v44  ;;  %v43_v45 = vpop.permute.xlu0 %42  ;;  %v2494_v46 = vld [vmem:[#allocation7_spill] sm:$0xff]  ;;  %v2496_v44 = vld [vmem:[#allocation12_spill] sm:$0xff] }
 0x24d   :  { %v675_v9 = vmul.f32 %v2184_v18, %v578_v41  ;;  %v1546_v37 = vpop.eup %1545  ;;  %v580_v5 = vmul.f32 %v1544_v28, %v2063_v56  ;;  %1563 = vrcp.f32 %v2177_v34  ;;  %vm44_vm5 = vcmp.eq.s32.totalorder %v1681_v25, %v43_v45 }
 0x24e   :  { %v1548_v8 = vpop.eup %1547  ;;  %v670_v54 = vmul.f32 %v2184_v18, %v568_v62  ;;  %v600_v3 = vmul.f32 %v1546_v37, %v1976_v17  ;;  %1565 = vrcp.f32 %v2155_v51  ;;  %v1371_v14 = vsel %vm44_vm5, 1.0, %v1614_v13 }
 0x24f   :  { %v676_v50 = vmul.f32 %v2184_v18, %v580_v5  ;;  %v1550_v61 = vpop.eup %1549  ;;  %v582_v26 = vmul.f32 %v1548_v8, %v2073_v20  ;;  %1567 = vrcp.f32 %v2179_v4 }
 0x250   :  { %713 = vadd.xlane.f32.xlu0 %v674_v11  ;;  %703 = vadd.xlane.f32.xlu1 %v669_v1  ;;  %v686_v29 = vmul.f32 %v2191_v33, %v600_v3  ;;  %v570_v63 = vmul.f32 %v1550_v61, %v1981_v39  ;;  %1569 = vrcp.f32 %v2157_v2 }
 0x251   :  { %v1552_v56 = vpop.eup %1551  ;;  %v677_v58 = vmul.f32 %v2184_v18, %v582_v26  ;;  %1571 = vrcp.f32 %v2159_v38 }
 0x252   :  { %v1554_v30 = vpop.eup %1553  ;;  %v584_v59 = vmul.f32 %v1552_v56, %v2083_v52  ;;  %v671_v16 = vmul.f32 %v2184_v18, %v570_v63  ;;  %1573 = vrcp.f32 %v2161_v15 }
 0x253   :  { %v1556_v20 = vpop.eup %1555  ;;  %v602_v55 = vmul.f32 %v1554_v30, %v1986_v6  ;;  %1575 = vrcp.f32 %v2163_v43 }
 0x254   :  { %715 = vadd.xlane.f32.xlu0 %v675_v9  ;;  %735 = vadd.xlane.f32.xlu1 %v685_v32  ;;  %v678_v17 = vmul.f32 %v2184_v18, %v584_v59  ;;  %v1558_v35 = vpop.eup %1557  ;;  %v586_v34 = vmul.f32 %v1556_v20, %v2093_v24  ;;  %1577 = vrcp.f32 %v2167_v53  ;;  %v1413_v9 = vpop.f32.mrb[0].mxu0 }
 0x255   :  { %v1560_v57 = vpop.eup %1559  ;;  %v687_v4 = vmul.f32 %v2191_v33, %v602_v55  ;;  %v572_v10 = vmul.f32 %v1558_v35, %v1992_v48  ;;  %v1175_v8 = vpop.f32.mrb[1].mxu0  ;;  %1579 = vrcp.f32 %v2496_v44 }
 0x256   :  { %v679_v39 = vmul.f32 %v2184_v18, %v586_v34  ;;  %v1562_v52 = vpop.eup %1561  ;;  %v588_v2 = vmul.f32 %v1560_v57, %v2106_v40 }
 0x257   :  { %v1564_v42 = vpop.eup %1563  ;;  %v672_v6 = vmul.f32 %v2184_v18, %v572_v10  ;;  %v604_v12 = vmul.f32 %v1562_v52, %v2007_v7  ;;  %v2498_v52 = vld [vmem:[#allocation9_spill] sm:$0xff] }
 0x258   :  { %717 = vadd.xlane.f32.xlu0 %v676_v50  ;;  %705 = vadd.xlane.f32.xlu1 %v670_v54  ;;  %v1566_v21 = vpop.eup %1565  ;;  %v680_v24 = vmul.f32 %v2184_v18, %v588_v2  ;;  %v590_v38 = vmul.f32 %v1564_v42, %v2123_v36  ;;  %v1416_v54 = vpop.f32.mrb[2].mxu0 }
 0x259   :  { %v1568_v31 = vpop.eup %1567  ;;  %v53_v48 = vmul.f32 %v1566_v21, %v2014_v23  ;;  %v688_v1 = vmul.f32 %v2191_v33, %v604_v12  ;;  %v1185_v56 = vpop.f32.mrb[3].mxu0 }
 0x25a   :  { %v1570_v40 = vpop.eup %1569  ;;  %v681_v11 = vmul.f32 %v2184_v18, %v590_v38  ;;  %v592_v0 = vmul.f32 %v1568_v31, %v2134_v49  ;;  %v2495_v49 = vld [vmem:[#allocation5_spill] sm:$0xff]  ;;  %v1419_v63 = vpop.f32.mrb[4].mxu0 }
 0x25b   :  { %v1572_v15 = vpop.eup %1571  ;;  %v606_v36 = vmul.f32 %v1570_v40, %v2028_v60  ;;  %v54_v41 = vmul.f32 %v1371_v14, %v53_v48  ;;  %v1256_v32 = vadd.s32 8, %v2495_v49  ;;  %vm1271_vm6 = vcmp.eq.s32.totalorder %v2495_v49, %v1681_v25  ;;  %v1195_v34 = vpop.f32.mrb[5].mxu0  ;;  %v2499_v40 = vld [vmem:[#allocation10_spill] sm:$0xff] }
 0x25c   :  { %719 = vadd.xlane.f32.xlu0 %v677_v58  ;;  %737 = vadd.xlane.f32.xlu1 %v686_v29  ;;  %v682_v7 = vmul.f32 %v2184_v18, %v592_v0  ;;  %v608_v28 = vmul.f32 %v1572_v15, %v2494_v46  ;;  %v1258_v43 = vadd.s32 24, %v2495_v49  ;;  %v1257_v60 = vadd.s32 16, %v2495_v49  ;;  %v1574_v37 = vpop.eup %1573  ;;  %v1587_v18 = vld [vmem:[%s2473_s1] sm:$0x3]  ;;  %v2500_v46 = vld [vmem:[#allocation11_spill] sm:$0xff] }
 0x25d   :  { %v689_v23 = vmul.f32 %v2191_v33, %v606_v36  ;;  %v47_v53 = vmul.f32 %v1587_v18, %v1371_v14  ;;  %v55_v62 = vsel %vm28_vm0, %v54_v41, 0.0  ;;  %vm1272_vm7 = vcmp.eq.s32.totalorder %v1256_v32, %v1681_v25  ;;  %v2497_v58 = vld [vmem:[#allocation8_spill] sm:$0xff] }
 0x25e   :  { %v690_v5 = vmul.f32 %v2191_v33, %v608_v28  ;;  %v1287_v50 = vsel %vm1271_vm6, 0.0, %v1175_v8  ;;  %vm1274_vm8 = vcmp.eq.s32.totalorder %v1258_v43, %v1681_v25  ;;  %vm1273_vm9 = vcmp.eq.s32.totalorder %v1257_v60, %v1681_v25 }
 0x25f   :  { %v1288_v61 = vsel %vm1272_vm7, 0.0, %v1413_v9  ;;  %v1303_v26 = vmul.f32 %v1287_v50, %v1287_v50  ;;  %v1290_v3 = vsel %vm1274_vm8, 0.0, %v1416_v54  ;;  %v610_v29 = vmul.f32 %v1574_v37, %v2497_v58 }
 0x260   :  { %721 = vadd.xlane.f32.xlu0 %v678_v17  ;;  %707 = vadd.xlane.f32.xlu1 %v671_v16  ;;  %v1304_v30 = vmul.f32 %v1288_v61, %v1288_v61  ;;  %v1289_v59 = vsel %vm1273_vm9, 0.0, %v1185_v56  ;;  %v1260_v20 = vadd.s32 40, %v2495_v49  ;;  %v1576_v17 = vpop.eup %1575  ;;  %v48_v16 = vsel %vm28_vm0, %v47_v53, 0.0 }
 0x261   :  { %v1305_v35 = vmul.f32 %v1289_v59, %v1289_v59  ;;  %v1259_v55 = vadd.s32 32, %v2495_v49  ;;  %v691_v57 = vmul.f32 %v2191_v33, %v610_v29  ;;  %v612_v45 = vmul.f32 %v1576_v17, %v2498_v52  ;;  %v1578_v21 = vpop.eup %1577 }
 0x262   :  { %vm1276_vm10 = vcmp.eq.s32.totalorder %v1260_v20, %v1681_v25  ;;  %v1261_v12 = vadd.s32 48, %v2495_v49  ;;  %v614_v48 = vmul.f32 %v1578_v21, %v2499_v40  ;;  %v1262_v0 = vadd.s32 56, %v2495_v49 }
 0x263   :  { %vm1275_vm11 = vcmp.eq.s32.totalorder %v1259_v55, %v1681_v25  ;;  %v1292_v10 = vsel %vm1276_vm10, 0.0, %v1419_v63  ;;  %v1263_v43 = vadd.s32 64, %v2495_v49  ;;  %v1264_v18 = vadd.s32 72, %v2495_v49 }
 0x264   :  { %723 = vadd.xlane.f32.xlu0 %v679_v39  ;;  %739 = vadd.xlane.f32.xlu1 %v687_v4  ;;  %v1319_v39 = vadd.f32 %v1304_v30, %v1303_v26  ;;  %v1306_v4 = vmul.f32 %v1290_v3, %v1290_v3  ;;  %v1291_v42 = vsel %vm1275_vm11, 0.0, %v1195_v34  ;;  %v1308_v38 = vmul.f32 %v1292_v10, %v1292_v10 }
 0x265   :  { %vm1277_vm12 = vcmp.eq.s32.totalorder %v1261_v12, %v1681_v25  ;;  %v693_v36 = vmul.f32 %v2191_v33, %v614_v48  ;;  %vm1278_vm13 = vcmp.eq.s32.totalorder %v1262_v0, %v1681_v25  ;;  %v1425_v32 = vpop.f32.mrb[0].mxu1  ;;  %vm1279_vm14 = vcmp.eq.s32.totalorder %v1263_v43, %v1681_v25 }
 0x266   :  { %v1320_v2 = vadd.f32 %v1319_v39, %v1305_v35  ;;  %v1215_v53 = vpop.f32.mrb[1].mxu1  ;;  %v1266_v8 = vadd.s32 88, %v2495_v49  ;;  %v1265_v50 = vadd.s32 80, %v2495_v49  ;;  %vm1280_vm15 = vcmp.eq.s32.totalorder %v1264_v18, %v1681_v25 }
 0x267   :  { %v1295_v54 = vsel %vm1279_vm14, 0.0, %v1215_v53  ;;  %v1296_v26 = vsel %vm1280_vm15, 0.0, %v1425_v32  ;;  %v1268_v30 = vadd.s32 104, %v2495_v49  ;;  %v1267_v17 = vadd.s32 96, %v2495_v49 }
 0x268   :  { %725 = vadd.xlane.f32.xlu0 %v680_v24  ;;  %709 = vadd.xlane.f32.xlu1 %v672_v6  ;;  %v1307_v24 = vmul.f32 %v1291_v42, %v1291_v42  ;;  %v692_v6 = vmul.f32 %v2191_v33, %v612_v45  ;;  %v1321_v31 = vadd.f32 %v1320_v2, %v1306_v4  ;;  %v1270_v55 = vadd.s32 120, %v2495_v49 }
 0x269   :  { %v1311_v3 = vmul.f32 %v1295_v54, %v1295_v54  ;;  %vm1282_vm1 = vcmp.eq.s32.totalorder %v1266_v8, %v1681_v25  ;;  %vm1281_vm2 = vcmp.eq.s32.totalorder %v1265_v50, %v1681_v25  ;;  %v1312_v56 = vmul.f32 %v1296_v26, %v1296_v26 }
 0x26a   :  { %v1322_v14 = vadd.f32 %v1321_v31, %v1307_v24  ;;  %vm1284_vm3 = vcmp.eq.s32.totalorder %v1268_v30, %v1681_v25  ;;  %vm1283_vm4 = vcmp.eq.s32.totalorder %v1267_v17, %v1681_v25  ;;  %v1269_v52 = vadd.s32 112, %v2495_v49 }
 0x26b   :  { %vm1286_vm5 = vcmp.eq.s32.totalorder %v1270_v55, %v1681_v25  ;;  %v813_v32 = vadd.s32 4294967272, %v1681_v25  ;;  %v820_v43 = vadd.s32 4294967264, %v1681_v25  ;;  %v827_v18 = vadd.s32 4294967256, %v1681_v25 }
 0x26c   :  { %727 = vadd.xlane.f32.xlu0 %v681_v11  ;;  %741 = vadd.xlane.f32.xlu1 %v688_v1  ;;  %v1422_v11 = vpop.f32.mrb[6].mxu0  ;;  %v1580_v1 = vpop.eup %1579  ;;  %vm1285_vm6 = vcmp.eq.s32.totalorder %v1269_v52, %v1681_v25  ;;  %vm804_vm7 = vcmask 130112   ;;  %v834_v26 = vadd.s32 4294967248, %v1681_v25  ;;  %vm811_vm8 = vcmask 195712  }
 0x26d   :  { %v1205_v15 = vpop.f32.mrb[7].mxu0  ;;  %v616_v28 = vmul.f32 %v1580_v1, %v2500_v46  ;;  %v1294_v9 = vsel %vm1278_vm13, 0.0, %v1422_v11  ;;  %v2350_v8 = vsub.s32 %v813_v32, %v2495_v49  ;;  %v2353_v50 = vsub.s32 %v820_v43, %v2495_v49 }
 0x26e   :  { %v1293_v41 = vsel %vm1277_vm12, 0.0, %v1205_v15  ;;  %v1310_v60 = vmul.f32 %v1294_v9, %v1294_v9  ;;  %v806_v9 = vadd.s32 4294967280, %v1681_v25  ;;  %vm818_vm9 = vcmask 261312  }
 0x26f   :  { %vm825_vm10 = vcmask 326912   ;;  %v2372_v17 = vsub.s32 %v834_v26, %v2495_v49  ;;  %vm832_vm11 = vcmask 392512   ;;  %vm839_vm12 = vcmask 458112  }
 0x270   :  { %729 = vadd.xlane.f32.xlu0 %v682_v7  ;;  %743 = vadd.xlane.f32.xlu1 %v689_v23  ;;  %v1309_v7 = vmul.f32 %v1293_v41, %v1293_v41  ;;  %v1323_v23 = vadd.f32 %v1322_v14, %v1308_v38  ;;  %v2343_v53 = vsub.s32 %v806_v9, %v2495_v49  ;;  %vm846_vm13 = vcmask 523712  }
 0x271   :  { %vm853_vm14 = vcmask 589312   ;;  %vm860_vm15 = vcmask 654912   ;;  %v883_v32 = vadd.s32 4294967192, %v1681_v25 }
 0x272   :  { %v1324_v37 = vadd.f32 %v1323_v23, %v1309_v7 }
 0x274   :  { %745 = vadd.xlane.f32.xlu1 %v690_v5  ;;  %56 = vadd.xlane.f32.xlu0 %v55_v62  ;;  %v694_v5 = vmul.f32 %v2191_v33, %v616_v28  ;;  %v1428_v62 = vpop.f32.mrb[2].mxu1  ;;  %v1325_v44 = vadd.f32 %v1324_v37, %v1310_v60  ;;  %v799_v28 = vadd.s32 4294967288, %v1681_v25 }
 0x275   :  { %v1225_v61 = vpop.f32.mrb[3].mxu1  ;;  %v1298_v58 = vsel %vm1282_vm1, 0.0, %v1428_v62  ;;  %v2347_v62 = vsub.s32 %v1681_v25, %v2495_v49  ;;  %vm867_vm1 = vcmask 720512  }
 0x276   :  { %v1431_v33 = vpop.f32.mrb[4].mxu1  ;;  %v1297_v29 = vsel %vm1281_vm2, 0.0, %v1225_v61  ;;  %v1326_v63 = vadd.f32 %v1325_v44, %v1311_v3  ;;  %v2339_v37 = vsub.s32 %v799_v28, %v2495_v49  ;;  %v2359_v61 = vsub.s32 %v827_v18, %v2495_v49 }
 0x277   :  { %v1235_v59 = vpop.f32.mrb[5].mxu1  ;;  %v1313_v20 = vmul.f32 %v1297_v29, %v1297_v29  ;;  %vm874_vm2 = vcmask 786112  }
 0x278   :  { %747 = vadd.xlane.f32.xlu1 %v691_v57  ;;  %49 = vadd.xlane.f32.xlu0 %v48_v16  ;;  %v1314_v16 = vmul.f32 %v1298_v58, %v1298_v58  ;;  %v1327_v35 = vadd.f32 %v1326_v63, %v1312_v56  ;;  %v1300_v57 = vsel %vm1284_vm3, 0.0, %v1431_v33  ;;  %v1299_v39 = vsel %vm1283_vm4, 0.0, %v1235_v59 }
 0x279   :  { %v1315_v2 = vmul.f32 %v1299_v39, %v1299_v39  ;;  %v841_v63 = vadd.s32 4294967240, %v1681_v25  ;;  %vm881_vm3 = vcmask 851712   ;;  %vm888_vm4 = vcmask 917312  }
 0x27a   :  { %v1328_v45 = vadd.f32 %v1327_v35, %v1313_v20 }
 0x27b   :  { %v2381_v39 = vsub.s32 %v841_v63, %v2495_v49  ;;  %v897_v63 = vadd.s32 4294967176, %v1681_v25 }
 0x27c   :  { %749 = vadd.xlane.f32.xlu1 %v692_v6  ;;  %v1329_v10 = vadd.f32 %v1328_v45, %v1314_v16 }
 0x27d   :  { %v1434_v34 = vpop.f32.mrb[6].mxu1 }
 0x27e   :  { %v1245_v4 = vpop.f32.mrb[7].mxu1  ;;  %v1302_v21 = vsel %vm1286_vm5, 0.0, %v1434_v34  ;;  %v1330_v24 = vadd.f32 %v1329_v10, %v1315_v2  ;;  %v848_v34 = vadd.s32 4294967232, %v1681_v25  ;;  %v855_v2 = vadd.s32 4294967224, %v1681_v25 }
 0x27f   :  { %v1301_v42 = vsel %vm1285_vm6, 0.0, %v1245_v4  ;;  %v1318_v31 = vmul.f32 %v1302_v21, %v1302_v21  ;;  %vm895_vm5 = vcmask 982912   ;;  %vm902_vm6 = vcmask 1048512  }
 0x280   :  { %751 = vadd.xlane.f32.xlu1 %v693_v36  ;;  %v1317_v6 = vmul.f32 %v1301_v42, %v1301_v42 }
 0x284   :  { %753 = vadd.xlane.f32.xlu1 %v694_v5 }
 0x288   :  { %755 = vadd.xlane.f32.xlu1 %v2204_v27  ;;  %v1316_v27 = vmul.f32 %v1300_v57, %v1300_v57 }
 0x28a   :  { %v1331_v38 = vadd.f32 %v1330_v24, %v1316_v27  ;;  %v2387_v27 = vsub.s32 %v848_v34, %v2495_v49  ;;  %v862_v24 = vadd.s32 4294967216, %v1681_v25 }
 0x28c   :  { %757 = vadd.xlane.f32.xlu1 %v2207_v22  ;;  %v1332_v12 = vadd.f32 %v1331_v38, %v1317_v6  ;;  %v2395_v6 = vsub.s32 %v855_v2, %v2495_v49 }
 0x28e   :  { %v1333_v40 = vadd.f32 %v1332_v12, %v1318_v31 }
 0x290   :  { %759 = vadd.xlane.f32.xlu1 %v2210_v47  ;;  %1334 = vadd.xlane.f32.xlu0 %v1333_v40 }
 0x294   :  { %761 = vadd.xlane.f32.xlu1 %v2217_v19 }
 0x2d1   :  { %v700_v48 = vpop.xlane.xlu1 %699 }
 0x2d2   :  { %v798_v33 = vrot.slane %v700_v48, %v2347_v62  ;;  %v869_v48 = vadd.s32 4294967208, %v1681_v25 }
 0x2d5   :  { %v702_v14 = vpop.xlane.xlu1 %701  ;;  %v2326_v0 = vpop.xlane.xlu0 %733 }
 0x2d6   :  { %v803_v44 = vrot.slane %v702_v14, %v2339_v37  ;;  %v865_v14 = vsub.s32 %v862_v24, %v2495_v49  ;;  %v911_v18 = vrot.slane %v2326_v0, %v2339_v37  ;;  %v890_v0 = vadd.s32 4294967184, %v1681_v25 }
 0x2d8   :  { %v805_v59 = vsel %vm804_vm7, %v803_v44, %v798_v33 }
 0x2d9   :  { %v2322_v11 = vpop.xlane.xlu1 %731  ;;  %v712_v36 = vpop.xlane.xlu0 %711 }
 0x2da   :  { %v838_v52 = vrot.slane %v712_v36, %v2372_v17  ;;  %v876_v36 = vadd.s32 4294967200, %v1681_v25 }
 0x2dd   :  { %v704_v22 = vpop.xlane.xlu1 %703  ;;  %v714_v7 = vpop.xlane.xlu0 %713 }
 0x2de   :  { %v810_v3 = vrot.slane %v704_v22, %v2343_v53  ;;  %v845_v21 = vrot.slane %v714_v7, %v2381_v39  ;;  %v907_v7 = vrot.slane %v2322_v11, %v2347_v62  ;;  %v879_v62 = vsub.s32 %v876_v36, %v2495_v49 }
 0x2e0   :  { %v812_v16 = vsel %vm811_vm8, %v810_v3, %v805_v59 }
 0x2e1   :  { %v2324_v1 = vpop.xlane.xlu1 %735  ;;  %v716_v19 = vpop.xlane.xlu0 %715 }
 0x2e2   :  { %v852_v38 = vrot.slane %v716_v19, %v2387_v27  ;;  %v916_v28 = vrot.slane %v2324_v1, %v2343_v53  ;;  %v912_v1 = vsel %vm804_vm7, %v911_v18, %v907_v7  ;;  %vm983_vm7 = vcmask 1041409  }
 0x2e4   :  { %v917_v37 = vsel %vm811_vm8, %v916_v28, %v912_v1  ;;  %vm989_vm8 = vcmp.lt.s32.totalorder %v1681_v25, 32  ;;  %v2501_v1 = vld [vmem:[#allocation6_spill] sm:$0xff] }
 0x2e5   :  { %v706_v15 = vpop.xlane.xlu1 %705  ;;  %v718_v5 = vpop.xlane.xlu0 %717 }
 0x2e6   :  { %v817_v56 = vrot.slane %v706_v15, %v2350_v8  ;;  %v859_v15 = vrot.slane %v718_v5, %v2395_v6 }
 0x2e8   :  { %v819_v35 = vsel %vm818_vm9, %v817_v56, %v812_v16 }
 0x2e9   :  { %v2328_v41 = vpop.xlane.xlu1 %737  ;;  %v720_v58 = vpop.xlane.xlu0 %719 }
 0x2ea   :  { %v866_v9 = vrot.slane %v720_v58, %v865_v14  ;;  %v921_v5 = vrot.slane %v2328_v41, %v2350_v8  ;;  %v886_v41 = vsub.s32 %v883_v32, %v2495_v49 }
 0x2ec   :  { %v922_v8 = vsel %vm818_vm9, %v921_v5, %v917_v37  ;;  %vm1004_vm9 = vcmask 1024  }
 0x2ed   :  { %v708_v47 = vpop.xlane.xlu1 %707  ;;  %v722_v45 = vpop.xlane.xlu0 %721 }
 0x2ee   :  { %v824_v29 = vrot.slane %v708_v47, %v2353_v50 }
 0x2f0   :  { %v826_v55 = vsel %vm825_vm10, %v824_v29, %v819_v35 }
 0x2f1   :  { %v2330_v23 = vpop.xlane.xlu1 %739  ;;  %v724_v12 = vpop.xlane.xlu0 %723 }
 0x2f2   :  { %v926_v11 = vrot.slane %v2330_v23, %v2353_v50 }
 0x2f4   :  { %v927_v56 = vsel %vm825_vm10, %v926_v11, %v922_v8 }
 0x2f5   :  { %v710_v46 = vpop.xlane.xlu1 %709  ;;  %v726_v43 = vpop.xlane.xlu0 %725 }
 0x2f6   :  { %v831_v20 = vrot.slane %v710_v46, %v2359_v61  ;;  %v872_v46 = vsub.s32 %v869_v48, %v2495_v49  ;;  %v887_v35 = vrot.slane %v726_v43, %v886_v41 }
 0x2f8   :  { %v833_v4 = vsel %vm832_vm11, %v831_v20, %v826_v55  ;;  %v873_v53 = vrot.slane %v722_v45, %v872_v46  ;;  %v900_v45 = vsub.s32 %v897_v63, %v2495_v49 }
 0x2f9   :  { %v2336_v60 = vpop.xlane.xlu1 %741  ;;  %v840_v10 = vsel %vm839_vm12, %v838_v52, %v833_v4 }
 0x2fa   :  { %v847_v31 = vsel %vm846_vm13, %v845_v21, %v840_v10  ;;  %v931_v3 = vrot.slane %v2336_v60, %v2359_v61  ;;  %v880_v60 = vrot.slane %v724_v12, %v879_v62  ;;  %v728_v61 = vpop.xlane.xlu0 %727 }
 0x2fb   :  { %v854_v22 = vsel %vm853_vm14, %v852_v38, %v847_v31 }
 0x2fc   :  { %v861_v19 = vsel %vm860_vm15, %v859_v15, %v854_v22  ;;  %v932_v59 = vsel %vm832_vm11, %v931_v3, %v927_v56  ;;  %vm1355_vm11 = vcmask 0  }
 0x2fd   :  { %v2355_v54 = vpop.xlane.xlu1 %743  ;;  %v868_v44 = vsel %vm867_vm1, %v866_v9, %v861_v19  ;;  %v1374_v9 = vsel %vm989_vm8, 1.0, %v1614_v13  ;;  %v1002_v13 = vld [vmem:[%s2476_s4] sm:$0x3] }
 0x2fe   :  { %v936_v23 = vrot.slane %v2355_v54, %v2372_v17  ;;  %v875_v50 = vsel %vm874_vm2, %v873_v53, %v868_v44  ;;  %v893_v54 = vsub.s32 %v890_v0, %v2495_v49 }
 0x2ff   :  { %v882_v17 = vsel %vm881_vm3, %v880_v60, %v875_v50 }
 0x300   :  { %v889_v52 = vsel %vm888_vm4, %v887_v35, %v882_v17  ;;  %v894_v10 = vrot.slane %v728_v61, %v893_v54 }
 0x301   :  { %v2366_v30 = vpop.xlane.xlu1 %745 }
 0x302   :  { %v941_v33 = vrot.slane %v2366_v30, %v2381_v39  ;;  %v937_v30 = vsel %vm839_vm12, %v936_v23, %v932_v59  ;;  %v896_v31 = vsel %vm895_vm5, %v894_v10, %v889_v52 }
 0x304   :  { %v942_v34 = vsel %vm846_vm13, %v941_v33, %v937_v30 }
 0x305   :  { %v2378_v57 = vpop.xlane.xlu1 %747 }
 0x306   :  { %v946_v58 = vrot.slane %v2378_v57, %v2387_v27 }
 0x308   :  { %v947_v57 = vsel %vm853_vm14, %v946_v58, %v942_v34 }
 0x309   :  { %v2390_v42 = vpop.xlane.xlu1 %749 }
 0x30a   :  { %v951_v20 = vrot.slane %v2390_v42, %v2395_v6  ;;  %v730_v42 = vpop.xlane.xlu0 %729 }
 0x30c   :  { %v952_v2 = vsel %vm860_vm15, %v951_v20, %v947_v57 }
 0x30d   :  { %v752_v40 = vpop.xlane.xlu1 %751 }
 0x30e   :  { %v956_v16 = vrot.slane %v752_v40, %v865_v14  ;;  %v901_v40 = vrot.slane %v730_v42, %v900_v45  ;;  %v57_v36 = vpop.xlane.xlu0 %56 }
 0x310   :  { %v957_v21 = vsel %vm867_vm1, %v956_v16, %v952_v2  ;;  %v903_v22 = vsel %vm902_vm6, %v901_v40, %v896_v31 }
 0x311   :  { %v754_v47 = vpop.xlane.xlu1 %753 }
 0x312   :  { %v961_v55 = vrot.slane %v754_v47, %v872_v46 }
 0x314   :  { %v962_v6 = vsel %vm874_vm2, %v961_v55, %v957_v21 }
 0x315   :  { %v756_v26 = vpop.xlane.xlu1 %755 }
 0x316   :  { %v966_v39 = vrot.slane %v756_v26, %v879_v62  ;;  %v50_v26 = vpop.xlane.xlu0 %49 }
 0x318   :  { %v967_v38 = vsel %vm881_vm3, %v966_v39, %v962_v6 }
 0x319   :  { %v758_v29 = vpop.xlane.xlu1 %757 }
 0x31a   :  { %v971_v27 = vrot.slane %v758_v29, %v886_v41 }
 0x31c   :  { %v972_v48 = vsel %vm888_vm4, %v971_v27, %v967_v38 }
 0x31d   :  { %v760_v4 = vpop.xlane.xlu1 %759 }
 0x31e   :  { %v976_v24 = vrot.slane %v760_v4, %v893_v54 }
 0x320   :  { %v977_v14 = vsel %vm895_vm5, %v976_v24, %v972_v48 }
 0x321   :  { %v762_v12 = vpop.xlane.xlu1 %761 }
 0x322   :  { %v981_v49 = vrot.slane %v762_v12, %v900_v45 }
 0x324   :  { %v982_v15 = vsel %vm902_vm6, %v981_v49, %v977_v14 }
 0x325   :  { %v984_v47 = vsel %vm983_vm7, %v982_v15, %v903_v22 }
 0x326   :  { %v986_v7 = vsub.f32 %v57_v36, %v984_v47 }
 0x328   :  { %v987_v46 = vadd.f32 1.0, %v986_v7 }
 0x32a   :  { %v988_v19 = vmax.f32 %v987_v46, 1.0 }
 0x32c   :  { %1581 = vlog2.f32 %v988_v19 }
 0x32d   :  { %1583 = vlog2.f32 %v2155_v51  ;;  %v1335_v51 = vpop.xlane.xlu0 %1334 }
 0x32e   :  { %v1336_v8 = vrot.slane %v1335_v51, 4 }
 0x330   :  { %v1337_v50 = vadd.f32 %v1336_v8, %v1335_v51 }
 0x332   :  { %v1338_v33 = vrot.slane %v1337_v50, 2 }
 0x334   :  { %v1339_v58 = vadd.f32 %v1338_v33, %v1337_v50 }
 0x336   :  { %v1582_v28 = vpop.eup %1581  ;;  %v1340_v54 = vrot.slane %v1339_v58, 1 }
 0x337   :  { %v993_v32 = vmul.f32 0.6931472, %v1582_v28  ;;  %v1584_v5 = vpop.eup %1583 }
 0x338   :  { %v39_v11 = vmul.f32 0.6931472, %v1584_v5  ;;  %v1341_v17 = vadd.f32 %v1340_v54, %v1339_v58 }
 0x339   :  { %v994_v43 = vmul.f32 %v1374_v9, %v993_v32 }
 0x33a   :  { %v40_v53 = vadd.f32 %v39_v11, %v2501_v1 }
 0x33b   :  { %v995_v18 = vsel %vm28_vm0, %v994_v43, 0.0 }
 0x33c   :  { %996 = vadd.xlane.f32.xlu1 %v995_v18  ;;  %v51_v0 = vsub.f32 %v40_v53, %v50_v26 }
 0x3c9   :  { %v997_v62 = vpop.xlane.xlu1 %996 }
 0x3ca   :  { %v998_v44 = vmul.f32 0.03125, %v997_v62 }
 0x3cc   :  { %v999_v3 = vsub.f32 0.0, %v998_v44 }
 0x3ce   :  { %v1000_v25 = vmul.f32 0.05, %v999_v3 }
 0x3d0   :  { %v1001_v37 = vadd.f32 %v1000_v25, %v51_v0 }
 0x3d2   :  { %v1003_v41 = vmul.f32 %v1002_v13, %v1001_v37 }
 0x3d4   :  { %v1005_v23 = vsel %vm1004_vm9, %v1003_v41, 0.0 }
 0x3d5   :  { %1006 = vadd.xlane.f32.xlu1 %v1005_v23 }
 0x462   :  { %v1007_v56 = vpop.xlane.xlu1 %1006 }
 0x463   :  { %v1008_v60 = vrot.slane %v1007_v56, 4 }
 0x465   :  { %v1009_v61 = vadd.f32 %v1008_v60, %v1007_v56 }
 0x467   :  { %v1010_v29 = vrot.slane %v1009_v61, 2 }
 0x469   :  { %v1011_v59 = vadd.f32 %v1010_v29, %v1009_v61 }
 0x46b   :  { %v1012_v63 = vrot.slane %v1011_v59, 1 }
 0x46d   :  { %v1013_v20 = vadd.f32 %v1012_v63, %v1011_v59 }
 0x46f   :  { %1437 = vpush %v1013_v20 }
 0x470   :  { %1439 = vpush %v1341_v17 }
 0x4a0   :  { %s1438_s4 = spop %1437 }
 0x4a1   :  { %s1440_s30 = spop %1439  ;;  %s1015_s6 = smul.f32 0.5, %s1438_s4 }
 0x4a2   :  { %v1343_v30 = vstv %s1440_s30 }
 0x4a3   :  { %1585 = vrsqrt.f32 %v1343_v30  ;;  %vm1346_vm0 = vcmp.eq.f32.partialorder %v1343_v30, inf  ;;  %v1349_v34 = vand.u32 2147483648, %v1343_v30  ;;  %vm1348_vm10 = vcmp.eq.f32.partialorder %v1343_v30, 0.0 }
 0x4ad   :  { %v1586_v16 = vpop.eup %1585 }
 0x4ae   :  { %v1345_v35 = vmul.f32 %v1586_v16, %v1343_v30 }
 0x4b0   :  { %v1347_v55 = vsel %vm1346_vm0, %v1343_v30, %v1345_v35 }
 0x4b1   :  { %v1350_v57 = vsel %vm1348_vm10, %v1349_v34, %v1347_v55 }
 0x4b2   :  { %1441 = vpush %v1350_v57 }
 0x4e3   :  { %s1442_s7 = spop %1441 }
 0x4e4   :  { %s1352_s8 = smul.f32 0.1, %s1442_s7 }
 0x4e6   :  { %s1353_s11 = sadd.f32 %s1352_s8, %s1015_s6 }
 0x4e8   :  { %v1354_v39 = vstv %s1353_s11 }
 0x4e9   :  { %1356 = vst.msk [vmem:[#allocation2] sm:$0x1] %vm1355_vm11, %v1354_v39 }
 0x4ea   :  { %1599 = shalt.err (!%p1596_p4)
}
 0x4eb   :  { %s1600_s16 = scalar_lea.hbm %s2477_s5, 16 }
 0x4ec   :  { %p1601_p5 = scmp.ne.s32.totalorder %s2477_s5, %s1600_s16  ;;  %p1604_p6 = scmp.lt.u32.totalorder %s1600_s16, %s2477_s5 }
 0x4ee   :  { %p1606_p7 = pnand %p1604_p6, %p1601_p5 }
 0x4f0   :  { %1609 = shalt.err (!%p1606_p7)
}
 0x4f1   :  { %1366 = dma.vmem_to_hbm [thread:$0]  %s1364_s10, 16, %s2477_s5, [#allocation3]  }
 0x4f2   :  { %1610 = dma.done.wait [#allocation3], 16  }
 0x4f3   :  { %1611 = vsyncadd [#allocation3], 4294967280 }
 0x4f4   :  { %1370 = vsyncpa [#allocation3], 1 }

</bundles_post_ra>
